<compile_context>
chip_gen: v5e
topology: v5e:2x2
jax: 0.10.0
libtpu: 0.0.40
codegen_flags: <defaults>
</compile_context>

<pallas_src>
import functools

import jax
import jax.numpy as jnp
from jax.experimental import pallas as pl
from jax.experimental.pallas import tpu as pltpu

EMBEDDING_DIM = 128
LSTM_SIZE = 128
NUM_LAYERS = 3


def _round_up(x, m):
    return ((x + m - 1) // m) * m


# ---------------------------------------------------------------------------
# Pallas kernels
# ---------------------------------------------------------------------------
def _lstm3_kernel(x_ref, wih_ref, whh_ref, b_ref, h0_ref, c0_ref,
                  y_ref, hN_ref, cN_ref, gx_sc):
    """Fused multi-layer LSTM. Single grid step; time loop is in-kernel.

    x_ref:   (T, Bp, D)  f32
    wih_ref: (L, D, 4H)  bf16   (W_ih^T per layer)
    whh_ref: (L, H, 4H)  bf16   (W_hh^T per layer)
    b_ref:   (L, 1, 4H)  f32    (b_ih + b_hh per layer)
    h0/c0:   (L, Bp, H)  f32
    y_ref:   (T, Bp, H)  f32    (last layer output; also reused as the
                                 inter-layer activation buffer in VMEM)
    hN/cN:   (L, Bp, H)  f32
    gx_sc:   (T*Bp, 4H)  f32    scratch for the hoisted input projection
    """
    L = wih_ref.shape[0]
    H = whh_ref.shape[1]

    def run_layer(layer, src_ref):
        Tn, Bn, Dn = src_ref.shape

        # --- Hoisted input projection for the whole sequence (big MXU matmul),
        #     bias broadcast folded in once (outside the time loop).
        xin = src_ref[...].reshape(Tn * Bn, Dn).astype(jnp.bfloat16)
        gx_sc[...] = (jnp.dot(xin, wih_ref[layer],
                              preferred_element_type=jnp.float32)
                      + b_ref[layer])

        whh_l = whh_ref[layer]  # (H, 4H) bf16, resident across the time loop

        def step(t, carry):
            h, c = carry  # f32 (Bn, H)
            off = pl.multiple_of(t * Bn, Bn)
            gates = gx_sc[pl.ds(off, Bn), :] + jnp.dot(
                h.astype(jnp.bfloat16), whh_l,
                preferred_element_type=jnp.float32)          # (Bn, 4H)

            i_g = jax.nn.sigmoid(gates[:, 0 * H:1 * H])
            f_g = jax.nn.sigmoid(gates[:, 1 * H:2 * H])
            g_g = jnp.tanh(gates[:, 2 * H:3 * H])
            o_g = jax.nn.sigmoid(gates[:, 3 * H:4 * H])

            c_new = f_g * c + i_g * g_g
            h_new = o_g * jnp.tanh(c_new)

            y_ref[t] = h_new.astype(y_ref.dtype)
            return h_new, c_new

        hT, cT = jax.lax.fori_loop(
            0, Tn, step,
            (h0_ref[layer].astype(jnp.float32),
             c0_ref[layer].astype(jnp.float32)),
            unroll=Tn <= 16)

        hN_ref[layer] = hT.astype(hN_ref.dtype)
        cN_ref[layer] = cT.astype(cN_ref.dtype)

    # Layer 0 reads the embeddings; layers 1..L-1 read the previous layer's
    # output held in y_ref (its gx is fully precomputed into gx_sc before the
    # recurrence overwrites y_ref, so the in-place reuse is safe).
    run_layer(0, x_ref)
    for layer in range(1, L):
        run_layer(layer, y_ref)


def _fc_kernel(x_ref, w_ref, b_ref, o_ref):
    """One (tn, H) x (H, tv) tile of the vocab projection."""
    o_ref[...] = (jnp.dot(x_ref[...].astype(jnp.bfloat16), w_ref[...],
                          preferred_element_type=jnp.float32)
                  + b_ref[...]).astype(o_ref.dtype)


# ---------------------------------------------------------------------------
# Wrappers around pallas_call
# ---------------------------------------------------------------------------
def lstm_stack(x, wih, whh, bias, h0, c0):
    """x: (T, Bp, D) f32; wih: (L, D, 4H) bf16; whh: (L, H, 4H) bf16;
       bias: (L, 1, 4H) f32; h0, c0: (L, Bp, H) f32.
       Returns (y (T,Bp,H), hN (L,Bp,H), cN (L,Bp,H))."""
    T, Bp, D = x.shape
    L = wih.shape[0]
    H = whh.shape[1]

    out_shape = (
        jax.ShapeDtypeStruct((T, Bp, H), jnp.float32),
        jax.ShapeDtypeStruct((L, Bp, H), jnp.float32),
        jax.ShapeDtypeStruct((L, Bp, H), jnp.float32),
    )
    grid_spec = pltpu.PrefetchScalarGridSpec(
        num_scalar_prefetch=0,
        grid=(1,),
        in_specs=[
            pl.BlockSpec((T, Bp, D), lambda i: (0, 0, 0)),      # x
            pl.BlockSpec((L, D, 4 * H), lambda i: (0, 0, 0)),   # W_ih^T (all L)
            pl.BlockSpec((L, H, 4 * H), lambda i: (0, 0, 0)),   # W_hh^T (all L)
            pl.BlockSpec((L, 1, 4 * H), lambda i: (0, 0, 0)),   # bias
            pl.BlockSpec((L, Bp, H), lambda i: (0, 0, 0)),      # h0
            pl.BlockSpec((L, Bp, H), lambda i: (0, 0, 0)),      # c0
        ],
        out_specs=[
            pl.BlockSpec((T, Bp, H), lambda i: (0, 0, 0)),      # y
            pl.BlockSpec((L, Bp, H), lambda i: (0, 0, 0)),      # hN
            pl.BlockSpec((L, Bp, H), lambda i: (0, 0, 0)),      # cN
        ],
        scratch_shapes=[
            pltpu.VMEM((T * Bp, 4 * H), jnp.float32),           # hoisted gates_x
        ],
    )
    return pl.pallas_call(
        _lstm3_kernel,
        out_shape=out_shape,
        grid_spec=grid_spec,
        compiler_params=pltpu.CompilerParams(
            dimension_semantics=("arbitrary",)),
    )(x, wih, whh, bias, h0, c0)


def fc_layer(x2d, w_t, bias):
    """Tiled vocab projection. x2d: (N, H) f32; w_t: (H, V) bf16;
       bias: (1, V) f32 -> (N, V) f32."""
    N, H = x2d.shape
    V = w_t.shape[-1]

    tn = _round_up(min(N, 256), 8)
    tv = _round_up(min(V, 512), 128)
    N_pad = _round_up(N, tn)
    V_pad = _round_up(V, tv)

    if N_pad != N:
        x2d = jnp.pad(x2d, ((0, N_pad - N), (0, 0)))
    if V_pad != V:
        w_t = jnp.pad(w_t, ((0, 0), (0, V_pad - V)))
        bias = jnp.pad(bias, ((0, 0), (0, V_pad - V)))

    grid = (N_pad // tn, V_pad // tv)
    out = pl.pallas_call(
        _fc_kernel,
        out_shape=jax.ShapeDtypeStruct((N_pad, V_pad), jnp.float32),
        grid_spec=pltpu.PrefetchScalarGridSpec(
            num_scalar_prefetch=0,
            grid=grid,
            in_specs=[
                pl.BlockSpec((tn, H), lambda i, j: (i, 0)),
                pl.BlockSpec((H, tv), lambda i, j: (0, j)),
                pl.BlockSpec((1, tv), lambda i, j: (0, j)),
            ],
            out_specs=pl.BlockSpec((tn, tv), lambda i, j: (i, j)),
        ),
        compiler_params=pltpu.CompilerParams(
            dimension_semantics=("parallel", "parallel")),
    )(x2d, w_t, bias)
    return out[:N, :V]


# ---------------------------------------------------------------------------
# Model (parameter container + forward)
# ---------------------------------------------------------------------------
def init_params(key, vocab_size):
    keys = jax.random.split(key, 2 + 4 * NUM_LAYERS + 2)
    kidx = 0

    def nxt():
        nonlocal kidx
        k = keys[kidx]
        kidx += 1
        return k

    params = {}
    # Embedding: N(0, 1) like nn.Embedding default.
    params["emb"] = jax.random.normal(nxt(), (vocab_size, EMBEDDING_DIM),
                                      jnp.float32)

    # LSTM layers: uniform(-1/sqrt(H), 1/sqrt(H)) like nn.LSTM default.
    bound = 1.0 / (LSTM_SIZE ** 0.5)
    wih, whh, bias = [], [], []
    for l in range(NUM_LAYERS):
        in_dim = EMBEDDING_DIM if l == 0 else LSTM_SIZE   # both are 128
        w_ih = jax.random.uniform(nxt(), (4 * LSTM_SIZE, in_dim),
                                  jnp.float32, -bound, bound)
        w_hh = jax.random.uniform(nxt(), (4 * LSTM_SIZE, LSTM_SIZE),
                                  jnp.float32, -bound, bound)
        b_ih = jax.random.uniform(nxt(), (4 * LSTM_SIZE,),
                                  jnp.float32, -bound, bound)
        b_hh = jax.random.uniform(nxt(), (4 * LSTM_SIZE,),
                                  jnp.float32, -bound, bound)
        wih.append(w_ih.T)                                # (in_dim, 4H)
        whh.append(w_hh.T)                                # (H, 4H)
        bias.append((b_ih + b_hh)[None, :])               # (1, 4H)

    params["wih"] = jnp.stack(wih).astype(jnp.bfloat16)   # (L, D, 4H)
    params["whh"] = jnp.stack(whh).astype(jnp.bfloat16)   # (L, H, 4H)
    params["bias"] = jnp.stack(bias)                      # (L, 1, 4H) f32

    # Linear: uniform(-1/sqrt(H), 1/sqrt(H)) like nn.Linear default.
    fc_w = jax.random.uniform(nxt(), (vocab_size, LSTM_SIZE),
                              jnp.float32, -bound, bound)
    fc_b = jax.random.uniform(nxt(), (vocab_size,),
                              jnp.float32, -bound, bound)
    params["fc_w_t"] = fc_w.T.astype(jnp.bfloat16)        # (H, V)
    params["fc_b"] = fc_b[None, :]                        # (1, V) f32
    return params


@jax.jit
def forward(params, inputs, hidden):
    """inputs: (T, B) int32; hidden = (h0, c0) each (num_layers, B, H).
       Returns (log_probs (T, B, V), (hN, cN))."""
    h0_all, c0_all = hidden
    T, B = inputs.shape

    # Embedding lookup (glue).
    x = jnp.take(params["emb"], inputs, axis=0)           # (T, B, D) f32

    # Pad batch to a multiple of 8 sublanes for lane/sublane-dense tiles.
    Bp = _round_up(B, 8)
    if Bp != B:
        pad = Bp - B
        x = jnp.pad(x, ((0, 0), (0, pad), (0, 0)))
        h0_all = jnp.pad(h0_all, ((0, 0), (0, pad), (0, 0)))
        c0_all = jnp.pad(c0_all, ((0, 0), (0, pad), (0, 0)))

    y, hN, cN = lstm_stack(x, params["wih"], params["whh"], params["bias"],
                           h0_all, c0_all)
    y = y[:, :B]
    hN = hN[:, :B]
    cN = cN[:, :B]

    # Final projection (tiled Pallas matmul), then reshape back to (T, B, V).
    V = params["fc_w_t"].shape[-1]
    logits = fc_layer(y.reshape(T * B, LSTM_SIZE), params["fc_w_t"],
                      params["fc_b"]).reshape(T, B, V)
    return logits, (hN, cN)


# ---------------------------------------------------------------------------
# Pure-JAX reference (same bf16 matmul precision) for a correctness check
# ---------------------------------------------------------------------------
def forward_ref(params, inputs, hidden):
    h0_all, c0_all = hidden
    x = jnp.take(params["emb"], inputs, axis=0)
    h_finals, c_finals = [], []
    for l in range(NUM_LAYERS):
        wih = params["wih"][l]
        whh = params["whh"][l]
        b = params["bias"][l]

        def step(carry, x_t, wih=wih, whh=whh, b=b):
            h, c = carry
            gates = (jnp.dot(x_t.astype(jnp.bfloat16), wih,
                             preferred_element_type=jnp.float32)
                     + jnp.dot(h.astype(jnp.bfloat16), whh,
                               preferred_element_type=jnp.float32)
                     + b)
            H = LSTM_SIZE
            i = jax.nn.sigmoid(gates[:, :H])
            f = jax.nn.sigmoid(gates[:, H:2 * H])
            g = jnp.tanh(gates[:, 2 * H:3 * H])
            o = jax.nn.sigmoid(gates[:, 3 * H:])
            c = f * c + i * g
            h = o * jnp.tanh(c)
            return (h, c), h

        (hT, cT), ys = jax.lax.scan(step, (h0_all[l], c0_all[l]), x)
        x = ys
        h_finals.append(hT)
        c_finals.append(cT)

    T, B, _ = x.shape
    logits = (jnp.dot(x.reshape(T * B, LSTM_SIZE).astype(jnp.bfloat16),
                      params["fc_w_t"], preferred_element_type=jnp.float32)
              + params["fc_b"]).reshape(T, B, -1)
    return logits, (jnp.stack(h_finals), jnp.stack(c_finals))


# ---------------------------------------------------------------------------
if __name__ == "__main__":
    vocab_size = 16   # small synthetic vocab
    T, B = 8, 2       # seq_len, batch

    key = jax.random.PRNGKey(0)
    k_par, k_inp = jax.random.split(key)

    params = init_params(k_par, vocab_size)
    inputs = jax.random.randint(k_inp, (T, B), 0, vocab_size, dtype=jnp.int32)
    h0 = jnp.zeros((NUM_LAYERS, B, LSTM_SIZE), jnp.float32)
    c0 = jnp.zeros((NUM_LAYERS, B, LSTM_SIZE), jnp.float32)

    log_probs, (hN, cN) = forward(params, inputs, (h0, c0))
    jax.block_until_ready((log_probs, hN, cN))

    # Sanity check against pure-JAX reference (same bf16 matmul precision).
    ref_lp, (ref_h, ref_c) = forward_ref(params, inputs, (h0, c0))
    assert jnp.allclose(log_probs, ref_lp, atol=2e-3, rtol=2e-3)
    assert jnp.allclose(hN, ref_h, atol=2e-3, rtol=2e-3)
    assert jnp.allclose(cN, ref_c, atol=2e-3, rtol=2e-3)

    print("KERNEL_OK")
</pallas_src>

<mosaic_0001>
module attributes {stable_mosaic.version = 11 : i64} {
  func.func @_lstm3_kernel(%arg0: i32, %arg1: memref<8x8x128xf32, #tpu.memory_space<vmem>>, %arg2: memref<3x128x512xbf16, #tpu.memory_space<vmem>>, %arg3: memref<3x128x512xbf16, #tpu.memory_space<vmem>>, %arg4: memref<3x1x512xf32, #tpu.memory_space<vmem>>, %arg5: memref<3x8x128xf32, #tpu.memory_space<vmem>>, %arg6: memref<3x8x128xf32, #tpu.memory_space<vmem>>, %arg7: memref<8x8x128xf32, #tpu.memory_space<vmem>>, %arg8: memref<3x8x128xf32, #tpu.memory_space<vmem>>, %arg9: memref<3x8x128xf32, #tpu.memory_space<vmem>>, %arg10: memref<64x512xf32, #tpu.memory_space<vmem>>) attributes {dimension_semantics = [#tpu.dimension_semantics<arbitrary>], iteration_bounds = array<i64: 1>, scalar_prefetch = 0 : i64, scratch_operands = 1 : i64, tpu.core_type = #tpu.core_type<tc>, window_params = [{pipeline_mode = #tpu.pipeline_mode<synchronous>, transform_indices = @transform_0, window_bounds = array<i64: 8, 8, 128>}, {pipeline_mode = #tpu.pipeline_mode<synchronous>, transform_indices = @transform_1, window_bounds = array<i64: 3, 128, 512>}, {pipeline_mode = #tpu.pipeline_mode<synchronous>, transform_indices = @transform_2, window_bounds = array<i64: 3, 128, 512>}, {pipeline_mode = #tpu.pipeline_mode<synchronous>, transform_indices = @transform_3, window_bounds = array<i64: 3, 1, 512>}, {pipeline_mode = #tpu.pipeline_mode<synchronous>, transform_indices = @transform_4, window_bounds = array<i64: 3, 8, 128>}, {pipeline_mode = #tpu.pipeline_mode<synchronous>, transform_indices = @transform_5, window_bounds = array<i64: 3, 8, 128>}, {pipeline_mode = #tpu.pipeline_mode<synchronous>, transform_indices = @transform_6, window_bounds = array<i64: 8, 8, 128>}, {pipeline_mode = #tpu.pipeline_mode<synchronous>, transform_indices = @transform_7, window_bounds = array<i64: 3, 8, 128>}, {pipeline_mode = #tpu.pipeline_mode<synchronous>, transform_indices = @transform_8, window_bounds = array<i64: 3, 8, 128>}]} {
    %c0 = arith.constant 0 : index
    %c0_0 = arith.constant 0 : index
    %c0_1 = arith.constant 0 : index
    %0 = vector.load %arg1[%c0, %c0_0, %c0_1] : memref<8x8x128xf32, #tpu.memory_space<vmem>>, vector<8x8x128xf32>
    %1 = vector.shape_cast %0 : vector<8x8x128xf32> to vector<64x128xf32>
    %2 = arith.truncf %1 : vector<64x128xf32> to vector<64x128xbf16>
    %c0_2 = arith.constant 0 : index
    %c0_3 = arith.constant 0 : index
    %c0_4 = arith.constant 0 : index
    %3 = vector.load %arg2[%c0_2, %c0_3, %c0_4] : memref<3x128x512xbf16, #tpu.memory_space<vmem>>, vector<1x128x512xbf16>
    %4 = vector.shape_cast %3 : vector<1x128x512xbf16> to vector<128x512xbf16>
    %cst = arith.constant dense<0.000000e+00> : vector<64x512xf32>
    %5 = tpu.matmul %2, %4, %cst {dimension_numbers = #tpu.dot_dimension_numbers<[1], [0], [0], [1], [0, 0, 1, 1], [], []>} : vector<64x128xbf16>, vector<128x512xbf16>, vector<64x512xf32> -> vector<64x512xf32>
    %c0_5 = arith.constant 0 : index
    %c0_6 = arith.constant 0 : index
    %c0_7 = arith.constant 0 : index
    %6 = vector.load %arg4[%c0_5, %c0_6, %c0_7] : memref<3x1x512xf32, #tpu.memory_space<vmem>>, vector<1x1x512xf32>
    %7 = vector.shape_cast %6 : vector<1x1x512xf32> to vector<1x512xf32>
    %8 = vector.broadcast %7 : vector<1x512xf32> to vector<64x512xf32>
    %9 = arith.addf %5, %8 : vector<64x512xf32>
    %c0_8 = arith.constant 0 : index
    %c0_9 = arith.constant 0 : index
    %10 = vector.load %arg10[%c0_8, %c0_9] : memref<64x512xf32, #tpu.memory_space<vmem>>, vector<64x512xf32>
    tpu.vector_store %arg10[%c0_8, %c0_9], %9 {strides = array<i32>} : memref<64x512xf32, #tpu.memory_space<vmem>>, vector<64x512xf32>,
    %c0_10 = arith.constant 0 : index
    %c0_11 = arith.constant 0 : index
    %c0_12 = arith.constant 0 : index
    %11 = vector.load %arg3[%c0_10, %c0_11, %c0_12] : memref<3x128x512xbf16, #tpu.memory_space<vmem>>, vector<1x128x512xbf16>
    %12 = vector.shape_cast %11 : vector<1x128x512xbf16> to vector<128x512xbf16>
    %c0_13 = arith.constant 0 : index
    %c0_14 = arith.constant 0 : index
    %c0_15 = arith.constant 0 : index
    %13 = vector.load %arg5[%c0_13, %c0_14, %c0_15] : memref<3x8x128xf32, #tpu.memory_space<vmem>>, vector<1x8x128xf32>
    %14 = vector.shape_cast %13 : vector<1x8x128xf32> to vector<8x128xf32>
    %c0_16 = arith.constant 0 : index
    %c0_17 = arith.constant 0 : index
    %c0_18 = arith.constant 0 : index
    %15 = vector.load %arg6[%c0_16, %c0_17, %c0_18] : memref<3x8x128xf32, #tpu.memory_space<vmem>>, vector<1x8x128xf32>
    %16 = vector.shape_cast %15 : vector<1x8x128xf32> to vector<8x128xf32>
    %c0_i32 = arith.constant 0 : i32
    %c8_i32 = arith.constant 8 : i32
    %17 = arith.muli %c0_i32, %c8_i32 : i32
    %18 = tpu.assume_multiple %17, 8 : i32
    %19 = arith.index_cast %18 : i32 to index
    %c0_19 = arith.constant 0 : index
    %20 = vector.load %arg10[%19, %c0_19] : memref<64x512xf32, #tpu.memory_space<vmem>>, vector<8x512xf32>
    %21 = arith.truncf %14 : vector<8x128xf32> to vector<8x128xbf16>
    %cst_20 = arith.constant dense<0.000000e+00> : vector<8x512xf32>
    %22 = tpu.matmul %21, %12, %cst_20 {dimension_numbers = #tpu.dot_dimension_numbers<[1], [0], [0], [1], [0, 0, 1, 1], [], []>} : vector<8x128xbf16>, vector<128x512xbf16>, vector<8x512xf32> -> vector<8x512xf32>
    %23 = arith.addf %20, %22 : vector<8x512xf32>
    %24 = vector.extract_strided_slice %23 {offsets = [0, 0], sizes = [8, 128], strides = [1, 1]} : vector<8x512xf32> to vector<8x128xf32>
    %25 = arith.negf %24 : vector<8x128xf32>
    %26 = math.exp %25 : vector<8x128xf32>
    %cst_21 = arith.constant 1.000000e+00 : f32
    %27 = vector.broadcast %cst_21 : f32 to vector<8x128xf32>
    %28 = arith.addf %27, %26 : vector<8x128xf32>
    %29 = arith.divf %27, %28 : vector<8x128xf32>
    %30 = vector.extract_strided_slice %23 {offsets = [0, 128], sizes = [8, 128], strides = [1, 1]} : vector<8x512xf32> to vector<8x128xf32>
    %31 = arith.negf %30 : vector<8x128xf32>
    %32 = math.exp %31 : vector<8x128xf32>
    %cst_22 = arith.constant 1.000000e+00 : f32
    %33 = vector.broadcast %cst_22 : f32 to vector<8x128xf32>
    %34 = arith.addf %33, %32 : vector<8x128xf32>
    %35 = arith.divf %33, %34 : vector<8x128xf32>
    %36 = vector.extract_strided_slice %23 {offsets = [0, 256], sizes = [8, 128], strides = [1, 1]} : vector<8x512xf32> to vector<8x128xf32>
    %37 = math.tanh %36 : vector<8x128xf32>
    %38 = vector.extract_strided_slice %23 {offsets = [0, 384], sizes = [8, 128], strides = [1, 1]} : vector<8x512xf32> to vector<8x128xf32>
    %39 = arith.negf %38 : vector<8x128xf32>
    %40 = math.exp %39 : vector<8x128xf32>
    %cst_23 = arith.constant 1.000000e+00 : f32
    %41 = vector.broadcast %cst_23 : f32 to vector<8x128xf32>
    %42 = arith.addf %41, %40 : vector<8x128xf32>
    %43 = arith.divf %41, %42 : vector<8x128xf32>
    %44 = arith.mulf %35, %16 : vector<8x128xf32>
    %45 = arith.mulf %29, %37 : vector<8x128xf32>
    %46 = arith.addf %44, %45 : vector<8x128xf32>
    %47 = math.tanh %46 : vector<8x128xf32>
    %48 = arith.mulf %43, %47 : vector<8x128xf32>
    %49 = arith.index_cast %c0_i32 : i32 to index
    %c0_24 = arith.constant 0 : index
    %c0_25 = arith.constant 0 : index
    %50 = vector.load %arg7[%49, %c0_24, %c0_25] : memref<8x8x128xf32, #tpu.memory_space<vmem>>, vector<1x8x128xf32>
    %51 = vector.shape_cast %50 : vector<1x8x128xf32> to vector<8x128xf32>
    %52 = vector.shape_cast %48 : vector<8x128xf32> to vector<1x8x128xf32>
    tpu.vector_store %arg7[%49, %c0_24, %c0_25], %52 {strides = array<i32>} : memref<8x8x128xf32, #tpu.memory_space<vmem>>, vector<1x8x128xf32>,
    %c1_i32 = arith.constant 1 : i32
    %c8_i32_26 = arith.constant 8 : i32
    %53 = arith.muli %c1_i32, %c8_i32_26 : i32
    %54 = tpu.assume_multiple %53, 8 : i32
    %55 = arith.index_cast %54 : i32 to index
    %c0_27 = arith.constant 0 : index
    %56 = vector.load %arg10[%55, %c0_27] : memref<64x512xf32, #tpu.memory_space<vmem>>, vector<8x512xf32>
    %57 = arith.truncf %48 : vector<8x128xf32> to vector<8x128xbf16>
    %cst_28 = arith.constant dense<0.000000e+00> : vector<8x512xf32>
    %58 = tpu.matmul %57, %12, %cst_28 {dimension_numbers = #tpu.dot_dimension_numbers<[1], [0], [0], [1], [0, 0, 1, 1], [], []>} : vector<8x128xbf16>, vector<128x512xbf16>, vector<8x512xf32> -> vector<8x512xf32>
    %59 = arith.addf %56, %58 : vector<8x512xf32>
    %60 = vector.extract_strided_slice %59 {offsets = [0, 0], sizes = [8, 128], strides = [1, 1]} : vector<8x512xf32> to vector<8x128xf32>
    %61 = arith.negf %60 : vector<8x128xf32>
    %62 = math.exp %61 : vector<8x128xf32>
    %cst_29 = arith.constant 1.000000e+00 : f32
    %63 = vector.broadcast %cst_29 : f32 to vector<8x128xf32>
    %64 = arith.addf %63, %62 : vector<8x128xf32>
    %65 = arith.divf %63, %64 : vector<8x128xf32>
    %66 = vector.extract_strided_slice %59 {offsets = [0, 128], sizes = [8, 128], strides = [1, 1]} : vector<8x512xf32> to vector<8x128xf32>
    %67 = arith.negf %66 : vector<8x128xf32>
    %68 = math.exp %67 : vector<8x128xf32>
    %cst_30 = arith.constant 1.000000e+00 : f32
    %69 = vector.broadcast %cst_30 : f32 to vector<8x128xf32>
    %70 = arith.addf %69, %68 : vector<8x128xf32>
    %71 = arith.divf %69, %70 : vector<8x128xf32>
    %72 = vector.extract_strided_slice %59 {offsets = [0, 256], sizes = [8, 128], strides = [1, 1]} : vector<8x512xf32> to vector<8x128xf32>
    %73 = math.tanh %72 : vector<8x128xf32>
    %74 = vector.extract_strided_slice %59 {offsets = [0, 384], sizes = [8, 128], strides = [1, 1]} : vector<8x512xf32> to vector<8x128xf32>
    %75 = arith.negf %74 : vector<8x128xf32>
    %76 = math.exp %75 : vector<8x128xf32>
    %cst_31 = arith.constant 1.000000e+00 : f32
    %77 = vector.broadcast %cst_31 : f32 to vector<8x128xf32>
    %78 = arith.addf %77, %76 : vector<8x128xf32>
    %79 = arith.divf %77, %78 : vector<8x128xf32>
    %80 = arith.mulf %71, %46 : vector<8x128xf32>
    %81 = arith.mulf %65, %73 : vector<8x128xf32>
    %82 = arith.addf %80, %81 : vector<8x128xf32>
    %83 = math.tanh %82 : vector<8x128xf32>
    %84 = arith.mulf %79, %83 : vector<8x128xf32>
    %85 = arith.index_cast %c1_i32 : i32 to index
    %c0_32 = arith.constant 0 : index
    %c0_33 = arith.constant 0 : index
    %86 = vector.load %arg7[%85, %c0_32, %c0_33] : memref<8x8x128xf32, #tpu.memory_space<vmem>>, vector<1x8x128xf32>
    %87 = vector.shape_cast %86 : vector<1x8x128xf32> to vector<8x128xf32>
    %88 = vector.shape_cast %84 : vector<8x128xf32> to vector<1x8x128xf32>
    tpu.vector_store %arg7[%85, %c0_32, %c0_33], %88 {strides = array<i32>} : memref<8x8x128xf32, #tpu.memory_space<vmem>>, vector<1x8x128xf32>,
    %c2_i32 = arith.constant 2 : i32
    %c8_i32_34 = arith.constant 8 : i32
    %89 = arith.muli %c2_i32, %c8_i32_34 : i32
    %90 = tpu.assume_multiple %89, 8 : i32
    %91 = arith.index_cast %90 : i32 to index
    %c0_35 = arith.constant 0 : index
    %92 = vector.load %arg10[%91, %c0_35] : memref<64x512xf32, #tpu.memory_space<vmem>>, vector<8x512xf32>
    %93 = arith.truncf %84 : vector<8x128xf32> to vector<8x128xbf16>
    %cst_36 = arith.constant dense<0.000000e+00> : vector<8x512xf32>
    %94 = tpu.matmul %93, %12, %cst_36 {dimension_numbers = #tpu.dot_dimension_numbers<[1], [0], [0], [1], [0, 0, 1, 1], [], []>} : vector<8x128xbf16>, vector<128x512xbf16>, vector<8x512xf32> -> vector<8x512xf32>
    %95 = arith.addf %92, %94 : vector<8x512xf32>
    %96 = vector.extract_strided_slice %95 {offsets = [0, 0], sizes = [8, 128], strides = [1, 1]} : vector<8x512xf32> to vector<8x128xf32>
    %97 = arith.negf %96 : vector<8x128xf32>
    %98 = math.exp %97 : vector<8x128xf32>
    %cst_37 = arith.constant 1.000000e+00 : f32
    %99 = vector.broadcast %cst_37 : f32 to vector<8x128xf32>
    %100 = arith.addf %99, %98 : vector<8x128xf32>
    %101 = arith.divf %99, %100 : vector<8x128xf32>
    %102 = vector.extract_strided_slice %95 {offsets = [0, 128], sizes = [8, 128], strides = [1, 1]} : vector<8x512xf32> to vector<8x128xf32>
    %103 = arith.negf %102 : vector<8x128xf32>
    %104 = math.exp %103 : vector<8x128xf32>
    %cst_38 = arith.constant 1.000000e+00 : f32
    %105 = vector.broadcast %cst_38 : f32 to vector<8x128xf32>
    %106 = arith.addf %105, %104 : vector<8x128xf32>
    %107 = arith.divf %105, %106 : vector<8x128xf32>
    %108 = vector.extract_strided_slice %95 {offsets = [0, 256], sizes = [8, 128], strides = [1, 1]} : vector<8x512xf32> to vector<8x128xf32>
    %109 = math.tanh %108 : vector<8x128xf32>
    %110 = vector.extract_strided_slice %95 {offsets = [0, 384], sizes = [8, 128], strides = [1, 1]} : vector<8x512xf32> to vector<8x128xf32>
    %111 = arith.negf %110 : vector<8x128xf32>
    %112 = math.exp %111 : vector<8x128xf32>
    %cst_39 = arith.constant 1.000000e+00 : f32
    %113 = vector.broadcast %cst_39 : f32 to vector<8x128xf32>
    %114 = arith.addf %113, %112 : vector<8x128xf32>
    %115 = arith.divf %113, %114 : vector<8x128xf32>
    %116 = arith.mulf %107, %82 : vector<8x128xf32>
    %117 = arith.mulf %101, %109 : vector<8x128xf32>
    %118 = arith.addf %116, %117 : vector<8x128xf32>
    %119 = math.tanh %118 : vector<8x128xf32>
    %120 = arith.mulf %115, %119 : vector<8x128xf32>
    %121 = arith.index_cast %c2_i32 : i32 to index
    %c0_40 = arith.constant 0 : index
    %c0_41 = arith.constant 0 : index
    %122 = vector.load %arg7[%121, %c0_40, %c0_41] : memref<8x8x128xf32, #tpu.memory_space<vmem>>, vector<1x8x128xf32>
    %123 = vector.shape_cast %122 : vector<1x8x128xf32> to vector<8x128xf32>
    %124 = vector.shape_cast %120 : vector<8x128xf32> to vector<1x8x128xf32>
    tpu.vector_store %arg7[%121, %c0_40, %c0_41], %124 {strides = array<i32>} : memref<8x8x128xf32, #tpu.memory_space<vmem>>, vector<1x8x128xf32>,
    %c3_i32 = arith.constant 3 : i32
    %c8_i32_42 = arith.constant 8 : i32
    %125 = arith.muli %c3_i32, %c8_i32_42 : i32
    %126 = tpu.assume_multiple %125, 8 : i32
    %127 = arith.index_cast %126 : i32 to index
    %c0_43 = arith.constant 0 : index
    %128 = vector.load %arg10[%127, %c0_43] : memref<64x512xf32, #tpu.memory_space<vmem>>, vector<8x512xf32>
    %129 = arith.truncf %120 : vector<8x128xf32> to vector<8x128xbf16>
    %cst_44 = arith.constant dense<0.000000e+00> : vector<8x512xf32>
    %130 = tpu.matmul %129, %12, %cst_44 {dimension_numbers = #tpu.dot_dimension_numbers<[1], [0], [0], [1], [0, 0, 1, 1], [], []>} : vector<8x128xbf16>, vector<128x512xbf16>, vector<8x512xf32> -> vector<8x512xf32>
    %131 = arith.addf %128, %130 : vector<8x512xf32>
    %132 = vector.extract_strided_slice %131 {offsets = [0, 0], sizes = [8, 128], strides = [1, 1]} : vector<8x512xf32> to vector<8x128xf32>
    %133 = arith.negf %132 : vector<8x128xf32>
    %134 = math.exp %133 : vector<8x128xf32>
    %cst_45 = arith.constant 1.000000e+00 : f32
    %135 = vector.broadcast %cst_45 : f32 to vector<8x128xf32>
    %136 = arith.addf %135, %134 : vector<8x128xf32>
    %137 = arith.divf %135, %136 : vector<8x128xf32>
    %138 = vector.extract_strided_slice %131 {offsets = [0, 128], sizes = [8, 128], strides = [1, 1]} : vector<8x512xf32> to vector<8x128xf32>
    %139 = arith.negf %138 : vector<8x128xf32>
    %140 = math.exp %139 : vector<8x128xf32>
    %cst_46 = arith.constant 1.000000e+00 : f32
    %141 = vector.broadcast %cst_46 : f32 to vector<8x128xf32>
    %142 = arith.addf %141, %140 : vector<8x128xf32>
    %143 = arith.divf %141, %142 : vector<8x128xf32>
    %144 = vector.extract_strided_slice %131 {offsets = [0, 256], sizes = [8, 128], strides = [1, 1]} : vector<8x512xf32> to vector<8x128xf32>
    %145 = math.tanh %144 : vector<8x128xf32>
    %146 = vector.extract_strided_slice %131 {offsets = [0, 384], sizes = [8, 128], strides = [1, 1]} : vector<8x512xf32> to vector<8x128xf32>
    %147 = arith.negf %146 : vector<8x128xf32>
    %148 = math.exp %147 : vector<8x128xf32>
    %cst_47 = arith.constant 1.000000e+00 : f32
    %149 = vector.broadcast %cst_47 : f32 to vector<8x128xf32>
    %150 = arith.addf %149, %148 : vector<8x128xf32>
    %151 = arith.divf %149, %150 : vector<8x128xf32>
    %152 = arith.mulf %143, %118 : vector<8x128xf32>
    %153 = arith.mulf %137, %145 : vector<8x128xf32>
    %154 = arith.addf %152, %153 : vector<8x128xf32>
    %155 = math.tanh %154 : vector<8x128xf32>
    %156 = arith.mulf %151, %155 : vector<8x128xf32>
    %157 = arith.index_cast %c3_i32 : i32 to index
    %c0_48 = arith.constant 0 : index
    %c0_49 = arith.constant 0 : index
    %158 = vector.load %arg7[%157, %c0_48, %c0_49] : memref<8x8x128xf32, #tpu.memory_space<vmem>>, vector<1x8x128xf32>
    %159 = vector.shape_cast %158 : vector<1x8x128xf32> to vector<8x128xf32>
    %160 = vector.shape_cast %156 : vector<8x128xf32> to vector<1x8x128xf32>
    tpu.vector_store %arg7[%157, %c0_48, %c0_49], %160 {strides = array<i32>} : memref<8x8x128xf32, #tpu.memory_space<vmem>>, vector<1x8x128xf32>,
    %c4_i32 = arith.constant 4 : i32
    %c8_i32_50 = arith.constant 8 : i32
    %161 = arith.muli %c4_i32, %c8_i32_50 : i32
    %162 = tpu.assume_multiple %161, 8 : i32
    %163 = arith.index_cast %162 : i32 to index
    %c0_51 = arith.constant 0 : index
    %164 = vector.load %arg10[%163, %c0_51] : memref<64x512xf32, #tpu.memory_space<vmem>>, vector<8x512xf32>
    %165 = arith.truncf %156 : vector<8x128xf32> to vector<8x128xbf16>
    %cst_52 = arith.constant dense<0.000000e+00> : vector<8x512xf32>
    %166 = tpu.matmul %165, %12, %cst_52 {dimension_numbers = #tpu.dot_dimension_numbers<[1], [0], [0], [1], [0, 0, 1, 1], [], []>} : vector<8x128xbf16>, vector<128x512xbf16>, vector<8x512xf32> -> vector<8x512xf32>
    %167 = arith.addf %164, %166 : vector<8x512xf32>
    %168 = vector.extract_strided_slice %167 {offsets = [0, 0], sizes = [8, 128], strides = [1, 1]} : vector<8x512xf32> to vector<8x128xf32>
    %169 = arith.negf %168 : vector<8x128xf32>
    %170 = math.exp %169 : vector<8x128xf32>
    %cst_53 = arith.constant 1.000000e+00 : f32
    %171 = vector.broadcast %cst_53 : f32 to vector<8x128xf32>
    %172 = arith.addf %171, %170 : vector<8x128xf32>
    %173 = arith.divf %171, %172 : vector<8x128xf32>
    %174 = vector.extract_strided_slice %167 {offsets = [0, 128], sizes = [8, 128], strides = [1, 1]} : vector<8x512xf32> to vector<8x128xf32>
    %175 = arith.negf %174 : vector<8x128xf32>
    %176 = math.exp %175 : vector<8x128xf32>
    %cst_54 = arith.constant 1.000000e+00 : f32
    %177 = vector.broadcast %cst_54 : f32 to vector<8x128xf32>
    %178 = arith.addf %177, %176 : vector<8x128xf32>
    %179 = arith.divf %177, %178 : vector<8x128xf32>
    %180 = vector.extract_strided_slice %167 {offsets = [0, 256], sizes = [8, 128], strides = [1, 1]} : vector<8x512xf32> to vector<8x128xf32>
    %181 = math.tanh %180 : vector<8x128xf32>
    %182 = vector.extract_strided_slice %167 {offsets = [0, 384], sizes = [8, 128], strides = [1, 1]} : vector<8x512xf32> to vector<8x128xf32>
    %183 = arith.negf %182 : vector<8x128xf32>
    %184 = math.exp %183 : vector<8x128xf32>
    %cst_55 = arith.constant 1.000000e+00 : f32
    %185 = vector.broadcast %cst_55 : f32 to vector<8x128xf32>
    %186 = arith.addf %185, %184 : vector<8x128xf32>
    %187 = arith.divf %185, %186 : vector<8x128xf32>
    %188 = arith.mulf %179, %154 : vector<8x128xf32>
    %189 = arith.mulf %173, %181 : vector<8x128xf32>
    %190 = arith.addf %188, %189 : vector<8x128xf32>
    %191 = math.tanh %190 : vector<8x128xf32>
    %192 = arith.mulf %187, %191 : vector<8x128xf32>
    %193 = arith.index_cast %c4_i32 : i32 to index
    %c0_56 = arith.constant 0 : index
    %c0_57 = arith.constant 0 : index
    %194 = vector.load %arg7[%193, %c0_56, %c0_57] : memref<8x8x128xf32, #tpu.memory_space<vmem>>, vector<1x8x128xf32>
    %195 = vector.shape_cast %194 : vector<1x8x128xf32> to vector<8x128xf32>
    %196 = vector.shape_cast %192 : vector<8x128xf32> to vector<1x8x128xf32>
    tpu.vector_store %arg7[%193, %c0_56, %c0_57], %196 {strides = array<i32>} : memref<8x8x128xf32, #tpu.memory_space<vmem>>, vector<1x8x128xf32>,
    %c5_i32 = arith.constant 5 : i32
    %c8_i32_58 = arith.constant 8 : i32
    %197 = arith.muli %c5_i32, %c8_i32_58 : i32
    %198 = tpu.assume_multiple %197, 8 : i32
    %199 = arith.index_cast %198 : i32 to index
    %c0_59 = arith.constant 0 : index
    %200 = vector.load %arg10[%199, %c0_59] : memref<64x512xf32, #tpu.memory_space<vmem>>, vector<8x512xf32>
    %201 = arith.truncf %192 : vector<8x128xf32> to vector<8x128xbf16>
    %cst_60 = arith.constant dense<0.000000e+00> : vector<8x512xf32>
    %202 = tpu.matmul %201, %12, %cst_60 {dimension_numbers = #tpu.dot_dimension_numbers<[1], [0], [0], [1], [0, 0, 1, 1], [], []>} : vector<8x128xbf16>, vector<128x512xbf16>, vector<8x512xf32> -> vector<8x512xf32>
    %203 = arith.addf %200, %202 : vector<8x512xf32>
    %204 = vector.extract_strided_slice %203 {offsets = [0, 0], sizes = [8, 128], strides = [1, 1]} : vector<8x512xf32> to vector<8x128xf32>
    %205 = arith.negf %204 : vector<8x128xf32>
    %206 = math.exp %205 : vector<8x128xf32>
    %cst_61 = arith.constant 1.000000e+00 : f32
    %207 = vector.broadcast %cst_61 : f32 to vector<8x128xf32>
    %208 = arith.addf %207, %206 : vector<8x128xf32>
    %209 = arith.divf %207, %208 : vector<8x128xf32>
    %210 = vector.extract_strided_slice %203 {offsets = [0, 128], sizes = [8, 128], strides = [1, 1]} : vector<8x512xf32> to vector<8x128xf32>
    %211 = arith.negf %210 : vector<8x128xf32>
    %212 = math.exp %211 : vector<8x128xf32>
    %cst_62 = arith.constant 1.000000e+00 : f32
    %213 = vector.broadcast %cst_62 : f32 to vector<8x128xf32>
    %214 = arith.addf %213, %212 : vector<8x128xf32>
    %215 = arith.divf %213, %214 : vector<8x128xf32>
    %216 = vector.extract_strided_slice %203 {offsets = [0, 256], sizes = [8, 128], strides = [1, 1]} : vector<8x512xf32> to vector<8x128xf32>
    %217 = math.tanh %216 : vector<8x128xf32>
    %218 = vector.extract_strided_slice %203 {offsets = [0, 384], sizes = [8, 128], strides = [1, 1]} : vector<8x512xf32> to vector<8x128xf32>
    %219 = arith.negf %218 : vector<8x128xf32>
    %220 = math.exp %219 : vector<8x128xf32>
    %cst_63 = arith.constant 1.000000e+00 : f32
    %221 = vector.broadcast %cst_63 : f32 to vector<8x128xf32>
    %222 = arith.addf %221, %220 : vector<8x128xf32>
    %223 = arith.divf %221, %222 : vector<8x128xf32>
    %224 = arith.mulf %215, %190 : vector<8x128xf32>
    %225 = arith.mulf %209, %217 : vector<8x128xf32>
    %226 = arith.addf %224, %225 : vector<8x128xf32>
    %227 = math.tanh %226 : vector<8x128xf32>
    %228 = arith.mulf %223, %227 : vector<8x128xf32>
    %229 = arith.index_cast %c5_i32 : i32 to index
    %c0_64 = arith.constant 0 : index
    %c0_65 = arith.constant 0 : index
    %230 = vector.load %arg7[%229, %c0_64, %c0_65] : memref<8x8x128xf32, #tpu.memory_space<vmem>>, vector<1x8x128xf32>
    %231 = vector.shape_cast %230 : vector<1x8x128xf32> to vector<8x128xf32>
    %232 = vector.shape_cast %228 : vector<8x128xf32> to vector<1x8x128xf32>
    tpu.vector_store %arg7[%229, %c0_64, %c0_65], %232 {strides = array<i32>} : memref<8x8x128xf32, #tpu.memory_space<vmem>>, vector<1x8x128xf32>,
    %c6_i32 = arith.constant 6 : i32
    %c8_i32_66 = arith.constant 8 : i32
    %233 = arith.muli %c6_i32, %c8_i32_66 : i32
    %234 = tpu.assume_multiple %233, 8 : i32
    %235 = arith.index_cast %234 : i32 to index
    %c0_67 = arith.constant 0 : index
    %236 = vector.load %arg10[%235, %c0_67] : memref<64x512xf32, #tpu.memory_space<vmem>>, vector<8x512xf32>
    %237 = arith.truncf %228 : vector<8x128xf32> to vector<8x128xbf16>
    %cst_68 = arith.constant dense<0.000000e+00> : vector<8x512xf32>
    %238 = tpu.matmul %237, %12, %cst_68 {dimension_numbers = #tpu.dot_dimension_numbers<[1], [0], [0], [1], [0, 0, 1, 1], [], []>} : vector<8x128xbf16>, vector<128x512xbf16>, vector<8x512xf32> -> vector<8x512xf32>
    %239 = arith.addf %236, %238 : vector<8x512xf32>
    %240 = vector.extract_strided_slice %239 {offsets = [0, 0], sizes = [8, 128], strides = [1, 1]} : vector<8x512xf32> to vector<8x128xf32>
    %241 = arith.negf %240 : vector<8x128xf32>
    %242 = math.exp %241 : vector<8x128xf32>
    %cst_69 = arith.constant 1.000000e+00 : f32
    %243 = vector.broadcast %cst_69 : f32 to vector<8x128xf32>
    %244 = arith.addf %243, %242 : vector<8x128xf32>
    %245 = arith.divf %243, %244 : vector<8x128xf32>
    %246 = vector.extract_strided_slice %239 {offsets = [0, 128], sizes = [8, 128], strides = [1, 1]} : vector<8x512xf32> to vector<8x128xf32>
    %247 = arith.negf %246 : vector<8x128xf32>
    %248 = math.exp %247 : vector<8x128xf32>
    %cst_70 = arith.constant 1.000000e+00 : f32
    %249 = vector.broadcast %cst_70 : f32 to vector<8x128xf32>
    %250 = arith.addf %249, %248 : vector<8x128xf32>
    %251 = arith.divf %249, %250 : vector<8x128xf32>
    %252 = vector.extract_strided_slice %239 {offsets = [0, 256], sizes = [8, 128], strides = [1, 1]} : vector<8x512xf32> to vector<8x128xf32>
    %253 = math.tanh %252 : vector<8x128xf32>
    %254 = vector.extract_strided_slice %239 {offsets = [0, 384], sizes = [8, 128], strides = [1, 1]} : vector<8x512xf32> to vector<8x128xf32>
    %255 = arith.negf %254 : vector<8x128xf32>
    %256 = math.exp %255 : vector<8x128xf32>
    %cst_71 = arith.constant 1.000000e+00 : f32
    %257 = vector.broadcast %cst_71 : f32 to vector<8x128xf32>
    %258 = arith.addf %257, %256 : vector<8x128xf32>
    %259 = arith.divf %257, %258 : vector<8x128xf32>
    %260 = arith.mulf %251, %226 : vector<8x128xf32>
    %261 = arith.mulf %245, %253 : vector<8x128xf32>
    %262 = arith.addf %260, %261 : vector<8x128xf32>
    %263 = math.tanh %262 : vector<8x128xf32>
    %264 = arith.mulf %259, %263 : vector<8x128xf32>
    %265 = arith.index_cast %c6_i32 : i32 to index
    %c0_72 = arith.constant 0 : index
    %c0_73 = arith.constant 0 : index
    %266 = vector.load %arg7[%265, %c0_72, %c0_73] : memref<8x8x128xf32, #tpu.memory_space<vmem>>, vector<1x8x128xf32>
    %267 = vector.shape_cast %266 : vector<1x8x128xf32> to vector<8x128xf32>
    %268 = vector.shape_cast %264 : vector<8x128xf32> to vector<1x8x128xf32>
    tpu.vector_store %arg7[%265, %c0_72, %c0_73], %268 {strides = array<i32>} : memref<8x8x128xf32, #tpu.memory_space<vmem>>, vector<1x8x128xf32>,
    %c7_i32 = arith.constant 7 : i32
    %c8_i32_74 = arith.constant 8 : i32
    %269 = arith.muli %c7_i32, %c8_i32_74 : i32
    %270 = tpu.assume_multiple %269, 8 : i32
    %271 = arith.index_cast %270 : i32 to index
    %c0_75 = arith.constant 0 : index
    %272 = vector.load %arg10[%271, %c0_75] : memref<64x512xf32, #tpu.memory_space<vmem>>, vector<8x512xf32>
    %273 = arith.truncf %264 : vector<8x128xf32> to vector<8x128xbf16>
    %cst_76 = arith.constant dense<0.000000e+00> : vector<8x512xf32>
    %274 = tpu.matmul %273, %12, %cst_76 {dimension_numbers = #tpu.dot_dimension_numbers<[1], [0], [0], [1], [0, 0, 1, 1], [], []>} : vector<8x128xbf16>, vector<128x512xbf16>, vector<8x512xf32> -> vector<8x512xf32>
    %275 = arith.addf %272, %274 : vector<8x512xf32>
    %276 = vector.extract_strided_slice %275 {offsets = [0, 0], sizes = [8, 128], strides = [1, 1]} : vector<8x512xf32> to vector<8x128xf32>
    %277 = arith.negf %276 : vector<8x128xf32>
    %278 = math.exp %277 : vector<8x128xf32>
    %cst_77 = arith.constant 1.000000e+00 : f32
    %279 = vector.broadcast %cst_77 : f32 to vector<8x128xf32>
    %280 = arith.addf %279, %278 : vector<8x128xf32>
    %281 = arith.divf %279, %280 : vector<8x128xf32>
    %282 = vector.extract_strided_slice %275 {offsets = [0, 128], sizes = [8, 128], strides = [1, 1]} : vector<8x512xf32> to vector<8x128xf32>
    %283 = arith.negf %282 : vector<8x128xf32>
    %284 = math.exp %283 : vector<8x128xf32>
    %cst_78 = arith.constant 1.000000e+00 : f32
    %285 = vector.broadcast %cst_78 : f32 to vector<8x128xf32>
    %286 = arith.addf %285, %284 : vector<8x128xf32>
    %287 = arith.divf %285, %286 : vector<8x128xf32>
    %288 = vector.extract_strided_slice %275 {offsets = [0, 256], sizes = [8, 128], strides = [1, 1]} : vector<8x512xf32> to vector<8x128xf32>
    %289 = math.tanh %288 : vector<8x128xf32>
    %290 = vector.extract_strided_slice %275 {offsets = [0, 384], sizes = [8, 128], strides = [1, 1]} : vector<8x512xf32> to vector<8x128xf32>
    %291 = arith.negf %290 : vector<8x128xf32>
    %292 = math.exp %291 : vector<8x128xf32>
    %cst_79 = arith.constant 1.000000e+00 : f32
    %293 = vector.broadcast %cst_79 : f32 to vector<8x128xf32>
    %294 = arith.addf %293, %292 : vector<8x128xf32>
    %295 = arith.divf %293, %294 : vector<8x128xf32>
    %296 = arith.mulf %287, %262 : vector<8x128xf32>
    %297 = arith.mulf %281, %289 : vector<8x128xf32>
    %298 = arith.addf %296, %297 : vector<8x128xf32>
    %299 = math.tanh %298 : vector<8x128xf32>
    %300 = arith.mulf %295, %299 : vector<8x128xf32>
    %301 = arith.index_cast %c7_i32 : i32 to index
    %c0_80 = arith.constant 0 : index
    %c0_81 = arith.constant 0 : index
    %302 = vector.load %arg7[%301, %c0_80, %c0_81] : memref<8x8x128xf32, #tpu.memory_space<vmem>>, vector<1x8x128xf32>
    %303 = vector.shape_cast %302 : vector<1x8x128xf32> to vector<8x128xf32>
    %304 = vector.shape_cast %300 : vector<8x128xf32> to vector<1x8x128xf32>
    tpu.vector_store %arg7[%301, %c0_80, %c0_81], %304 {strides = array<i32>} : memref<8x8x128xf32, #tpu.memory_space<vmem>>, vector<1x8x128xf32>,
    %c8_i32_82 = arith.constant 8 : i32
    %c0_83 = arith.constant 0 : index
    %c0_84 = arith.constant 0 : index
    %c0_85 = arith.constant 0 : index
    %305 = vector.load %arg8[%c0_83, %c0_84, %c0_85] : memref<3x8x128xf32, #tpu.memory_space<vmem>>, vector<1x8x128xf32>
    %306 = vector.shape_cast %305 : vector<1x8x128xf32> to vector<8x128xf32>
    %307 = vector.shape_cast %300 : vector<8x128xf32> to vector<1x8x128xf32>
    tpu.vector_store %arg8[%c0_83, %c0_84, %c0_85], %307 {strides = array<i32>} : memref<3x8x128xf32, #tpu.memory_space<vmem>>, vector<1x8x128xf32>,
    %c0_86 = arith.constant 0 : index
    %c0_87 = arith.constant 0 : index
    %c0_88 = arith.constant 0 : index
    %308 = vector.load %arg9[%c0_86, %c0_87, %c0_88] : memref<3x8x128xf32, #tpu.memory_space<vmem>>, vector<1x8x128xf32>
    %309 = vector.shape_cast %308 : vector<1x8x128xf32> to vector<8x128xf32>
    %310 = vector.shape_cast %298 : vector<8x128xf32> to vector<1x8x128xf32>
    tpu.vector_store %arg9[%c0_86, %c0_87, %c0_88], %310 {strides = array<i32>} : memref<3x8x128xf32, #tpu.memory_space<vmem>>, vector<1x8x128xf32>,
    %c0_89 = arith.constant 0 : index
    %c0_90 = arith.constant 0 : index
    %c0_91 = arith.constant 0 : index
    %311 = vector.load %arg7[%c0_89, %c0_90, %c0_91] : memref<8x8x128xf32, #tpu.memory_space<vmem>>, vector<8x8x128xf32>
    %312 = vector.shape_cast %311 : vector<8x8x128xf32> to vector<64x128xf32>
    %313 = arith.truncf %312 : vector<64x128xf32> to vector<64x128xbf16>
    %c1 = arith.constant 1 : index
    %c0_92 = arith.constant 0 : index
    %c0_93 = arith.constant 0 : index
    %314 = vector.load %arg2[%c1, %c0_92, %c0_93] : memref<3x128x512xbf16, #tpu.memory_space<vmem>>, vector<1x128x512xbf16>
    %315 = vector.shape_cast %314 : vector<1x128x512xbf16> to vector<128x512xbf16>
    %cst_94 = arith.constant dense<0.000000e+00> : vector<64x512xf32>
    %316 = tpu.matmul %313, %315, %cst_94 {dimension_numbers = #tpu.dot_dimension_numbers<[1], [0], [0], [1], [0, 0, 1, 1], [], []>} : vector<64x128xbf16>, vector<128x512xbf16>, vector<64x512xf32> -> vector<64x512xf32>
    %c1_95 = arith.constant 1 : index
    %c0_96 = arith.constant 0 : index
    %c0_97 = arith.constant 0 : index
    %317 = vector.load %arg4[%c1_95, %c0_96, %c0_97] : memref<3x1x512xf32, #tpu.memory_space<vmem>>, vector<1x1x512xf32>
    %318 = vector.shape_cast %317 : vector<1x1x512xf32> to vector<1x512xf32>
    %319 = vector.broadcast %318 : vector<1x512xf32> to vector<64x512xf32>
    %320 = arith.addf %316, %319 : vector<64x512xf32>
    %c0_98 = arith.constant 0 : index
    %c0_99 = arith.constant 0 : index
    %321 = vector.load %arg10[%c0_98, %c0_99] : memref<64x512xf32, #tpu.memory_space<vmem>>, vector<64x512xf32>
    tpu.vector_store %arg10[%c0_98, %c0_99], %320 {strides = array<i32>} : memref<64x512xf32, #tpu.memory_space<vmem>>, vector<64x512xf32>,
    %c1_100 = arith.constant 1 : index
    %c0_101 = arith.constant 0 : index
    %c0_102 = arith.constant 0 : index
    %322 = vector.load %arg3[%c1_100, %c0_101, %c0_102] : memref<3x128x512xbf16, #tpu.memory_space<vmem>>, vector<1x128x512xbf16>
    %323 = vector.shape_cast %322 : vector<1x128x512xbf16> to vector<128x512xbf16>
    %c1_103 = arith.constant 1 : index
    %c0_104 = arith.constant 0 : index
    %c0_105 = arith.constant 0 : index
    %324 = vector.load %arg5[%c1_103, %c0_104, %c0_105] : memref<3x8x128xf32, #tpu.memory_space<vmem>>, vector<1x8x128xf32>
    %325 = vector.shape_cast %324 : vector<1x8x128xf32> to vector<8x128xf32>
    %c1_106 = arith.constant 1 : index
    %c0_107 = arith.constant 0 : index
    %c0_108 = arith.constant 0 : index
    %326 = vector.load %arg6[%c1_106, %c0_107, %c0_108] : memref<3x8x128xf32, #tpu.memory_space<vmem>>, vector<1x8x128xf32>
    %327 = vector.shape_cast %326 : vector<1x8x128xf32> to vector<8x128xf32>
    %c0_i32_109 = arith.constant 0 : i32
    %c8_i32_110 = arith.constant 8 : i32
    %328 = arith.muli %c0_i32_109, %c8_i32_110 : i32
    %329 = tpu.assume_multiple %328, 8 : i32
    %330 = arith.index_cast %329 : i32 to index
    %c0_111 = arith.constant 0 : index
    %331 = vector.load %arg10[%330, %c0_111] : memref<64x512xf32, #tpu.memory_space<vmem>>, vector<8x512xf32>
    %332 = arith.truncf %325 : vector<8x128xf32> to vector<8x128xbf16>
    %cst_112 = arith.constant dense<0.000000e+00> : vector<8x512xf32>
    %333 = tpu.matmul %332, %323, %cst_112 {dimension_numbers = #tpu.dot_dimension_numbers<[1], [0], [0], [1], [0, 0, 1, 1], [], []>} : vector<8x128xbf16>, vector<128x512xbf16>, vector<8x512xf32> -> vector<8x512xf32>
    %334 = arith.addf %331, %333 : vector<8x512xf32>
    %335 = vector.extract_strided_slice %334 {offsets = [0, 0], sizes = [8, 128], strides = [1, 1]} : vector<8x512xf32> to vector<8x128xf32>
    %336 = arith.negf %335 : vector<8x128xf32>
    %337 = math.exp %336 : vector<8x128xf32>
    %cst_113 = arith.constant 1.000000e+00 : f32
    %338 = vector.broadcast %cst_113 : f32 to vector<8x128xf32>
    %339 = arith.addf %338, %337 : vector<8x128xf32>
    %340 = arith.divf %338, %339 : vector<8x128xf32>
    %341 = vector.extract_strided_slice %334 {offsets = [0, 128], sizes = [8, 128], strides = [1, 1]} : vector<8x512xf32> to vector<8x128xf32>
    %342 = arith.negf %341 : vector<8x128xf32>
    %343 = math.exp %342 : vector<8x128xf32>
    %cst_114 = arith.constant 1.000000e+00 : f32
    %344 = vector.broadcast %cst_114 : f32 to vector<8x128xf32>
    %345 = arith.addf %344, %343 : vector<8x128xf32>
    %346 = arith.divf %344, %345 : vector<8x128xf32>
    %347 = vector.extract_strided_slice %334 {offsets = [0, 256], sizes = [8, 128], strides = [1, 1]} : vector<8x512xf32> to vector<8x128xf32>
    %348 = math.tanh %347 : vector<8x128xf32>
    %349 = vector.extract_strided_slice %334 {offsets = [0, 384], sizes = [8, 128], strides = [1, 1]} : vector<8x512xf32> to vector<8x128xf32>
    %350 = arith.negf %349 : vector<8x128xf32>
    %351 = math.exp %350 : vector<8x128xf32>
    %cst_115 = arith.constant 1.000000e+00 : f32
    %352 = vector.broadcast %cst_115 : f32 to vector<8x128xf32>
    %353 = arith.addf %352, %351 : vector<8x128xf32>
    %354 = arith.divf %352, %353 : vector<8x128xf32>
    %355 = arith.mulf %346, %327 : vector<8x128xf32>
    %356 = arith.mulf %340, %348 : vector<8x128xf32>
    %357 = arith.addf %355, %356 : vector<8x128xf32>
    %358 = math.tanh %357 : vector<8x128xf32>
    %359 = arith.mulf %354, %358 : vector<8x128xf32>
    %360 = arith.index_cast %c0_i32_109 : i32 to index
    %c0_116 = arith.constant 0 : index
    %c0_117 = arith.constant 0 : index
    %361 = vector.load %arg7[%360, %c0_116, %c0_117] : memref<8x8x128xf32, #tpu.memory_space<vmem>>, vector<1x8x128xf32>
    %362 = vector.shape_cast %361 : vector<1x8x128xf32> to vector<8x128xf32>
    %363 = vector.shape_cast %359 : vector<8x128xf32> to vector<1x8x128xf32>
    tpu.vector_store %arg7[%360, %c0_116, %c0_117], %363 {strides = array<i32>} : memref<8x8x128xf32, #tpu.memory_space<vmem>>, vector<1x8x128xf32>,
    %c1_i32_118 = arith.constant 1 : i32
    %c8_i32_119 = arith.constant 8 : i32
    %364 = arith.muli %c1_i32_118, %c8_i32_119 : i32
    %365 = tpu.assume_multiple %364, 8 : i32
    %366 = arith.index_cast %365 : i32 to index
    %c0_120 = arith.constant 0 : index
    %367 = vector.load %arg10[%366, %c0_120] : memref<64x512xf32, #tpu.memory_space<vmem>>, vector<8x512xf32>
    %368 = arith.truncf %359 : vector<8x128xf32> to vector<8x128xbf16>
    %cst_121 = arith.constant dense<0.000000e+00> : vector<8x512xf32>
    %369 = tpu.matmul %368, %323, %cst_121 {dimension_numbers = #tpu.dot_dimension_numbers<[1], [0], [0], [1], [0, 0, 1, 1], [], []>} : vector<8x128xbf16>, vector<128x512xbf16>, vector<8x512xf32> -> vector<8x512xf32>
    %370 = arith.addf %367, %369 : vector<8x512xf32>
    %371 = vector.extract_strided_slice %370 {offsets = [0, 0], sizes = [8, 128], strides = [1, 1]} : vector<8x512xf32> to vector<8x128xf32>
    %372 = arith.negf %371 : vector<8x128xf32>
    %373 = math.exp %372 : vector<8x128xf32>
    %cst_122 = arith.constant 1.000000e+00 : f32
    %374 = vector.broadcast %cst_122 : f32 to vector<8x128xf32>
    %375 = arith.addf %374, %373 : vector<8x128xf32>
    %376 = arith.divf %374, %375 : vector<8x128xf32>
    %377 = vector.extract_strided_slice %370 {offsets = [0, 128], sizes = [8, 128], strides = [1, 1]} : vector<8x512xf32> to vector<8x128xf32>
    %378 = arith.negf %377 : vector<8x128xf32>
    %379 = math.exp %378 : vector<8x128xf32>
    %cst_123 = arith.constant 1.000000e+00 : f32
    %380 = vector.broadcast %cst_123 : f32 to vector<8x128xf32>
    %381 = arith.addf %380, %379 : vector<8x128xf32>
    %382 = arith.divf %380, %381 : vector<8x128xf32>
    %383 = vector.extract_strided_slice %370 {offsets = [0, 256], sizes = [8, 128], strides = [1, 1]} : vector<8x512xf32> to vector<8x128xf32>
    %384 = math.tanh %383 : vector<8x128xf32>
    %385 = vector.extract_strided_slice %370 {offsets = [0, 384], sizes = [8, 128], strides = [1, 1]} : vector<8x512xf32> to vector<8x128xf32>
    %386 = arith.negf %385 : vector<8x128xf32>
    %387 = math.exp %386 : vector<8x128xf32>
    %cst_124 = arith.constant 1.000000e+00 : f32
    %388 = vector.broadcast %cst_124 : f32 to vector<8x128xf32>
    %389 = arith.addf %388, %387 : vector<8x128xf32>
    %390 = arith.divf %388, %389 : vector<8x128xf32>
    %391 = arith.mulf %382, %357 : vector<8x128xf32>
    %392 = arith.mulf %376, %384 : vector<8x128xf32>
    %393 = arith.addf %391, %392 : vector<8x128xf32>
    %394 = math.tanh %393 : vector<8x128xf32>
    %395 = arith.mulf %390, %394 : vector<8x128xf32>
    %396 = arith.index_cast %c1_i32_118 : i32 to index
    %c0_125 = arith.constant 0 : index
    %c0_126 = arith.constant 0 : index
    %397 = vector.load %arg7[%396, %c0_125, %c0_126] : memref<8x8x128xf32, #tpu.memory_space<vmem>>, vector<1x8x128xf32>
    %398 = vector.shape_cast %397 : vector<1x8x128xf32> to vector<8x128xf32>
    %399 = vector.shape_cast %395 : vector<8x128xf32> to vector<1x8x128xf32>
    tpu.vector_store %arg7[%396, %c0_125, %c0_126], %399 {strides = array<i32>} : memref<8x8x128xf32, #tpu.memory_space<vmem>>, vector<1x8x128xf32>,
    %c2_i32_127 = arith.constant 2 : i32
    %c8_i32_128 = arith.constant 8 : i32
    %400 = arith.muli %c2_i32_127, %c8_i32_128 : i32
    %401 = tpu.assume_multiple %400, 8 : i32
    %402 = arith.index_cast %401 : i32 to index
    %c0_129 = arith.constant 0 : index
    %403 = vector.load %arg10[%402, %c0_129] : memref<64x512xf32, #tpu.memory_space<vmem>>, vector<8x512xf32>
    %404 = arith.truncf %395 : vector<8x128xf32> to vector<8x128xbf16>
    %cst_130 = arith.constant dense<0.000000e+00> : vector<8x512xf32>
    %405 = tpu.matmul %404, %323, %cst_130 {dimension_numbers = #tpu.dot_dimension_numbers<[1], [0], [0], [1], [0, 0, 1, 1], [], []>} : vector<8x128xbf16>, vector<128x512xbf16>, vector<8x512xf32> -> vector<8x512xf32>
    %406 = arith.addf %403, %405 : vector<8x512xf32>
    %407 = vector.extract_strided_slice %406 {offsets = [0, 0], sizes = [8, 128], strides = [1, 1]} : vector<8x512xf32> to vector<8x128xf32>
    %408 = arith.negf %407 : vector<8x128xf32>
    %409 = math.exp %408 : vector<8x128xf32>
    %cst_131 = arith.constant 1.000000e+00 : f32
    %410 = vector.broadcast %cst_131 : f32 to vector<8x128xf32>
    %411 = arith.addf %410, %409 : vector<8x128xf32>
    %412 = arith.divf %410, %411 : vector<8x128xf32>
    %413 = vector.extract_strided_slice %406 {offsets = [0, 128], sizes = [8, 128], strides = [1, 1]} : vector<8x512xf32> to vector<8x128xf32>
    %414 = arith.negf %413 : vector<8x128xf32>
    %415 = math.exp %414 : vector<8x128xf32>
    %cst_132 = arith.constant 1.000000e+00 : f32
    %416 = vector.broadcast %cst_132 : f32 to vector<8x128xf32>
    %417 = arith.addf %416, %415 : vector<8x128xf32>
    %418 = arith.divf %416, %417 : vector<8x128xf32>
    %419 = vector.extract_strided_slice %406 {offsets = [0, 256], sizes = [8, 128], strides = [1, 1]} : vector<8x512xf32> to vector<8x128xf32>
    %420 = math.tanh %419 : vector<8x128xf32>
    %421 = vector.extract_strided_slice %406 {offsets = [0, 384], sizes = [8, 128], strides = [1, 1]} : vector<8x512xf32> to vector<8x128xf32>
    %422 = arith.negf %421 : vector<8x128xf32>
    %423 = math.exp %422 : vector<8x128xf32>
    %cst_133 = arith.constant 1.000000e+00 : f32
    %424 = vector.broadcast %cst_133 : f32 to vector<8x128xf32>
    %425 = arith.addf %424, %423 : vector<8x128xf32>
    %426 = arith.divf %424, %425 : vector<8x128xf32>
    %427 = arith.mulf %418, %393 : vector<8x128xf32>
    %428 = arith.mulf %412, %420 : vector<8x128xf32>
    %429 = arith.addf %427, %428 : vector<8x128xf32>
    %430 = math.tanh %429 : vector<8x128xf32>
    %431 = arith.mulf %426, %430 : vector<8x128xf32>
    %432 = arith.index_cast %c2_i32_127 : i32 to index
    %c0_134 = arith.constant 0 : index
    %c0_135 = arith.constant 0 : index
    %433 = vector.load %arg7[%432, %c0_134, %c0_135] : memref<8x8x128xf32, #tpu.memory_space<vmem>>, vector<1x8x128xf32>
    %434 = vector.shape_cast %433 : vector<1x8x128xf32> to vector<8x128xf32>
    %435 = vector.shape_cast %431 : vector<8x128xf32> to vector<1x8x128xf32>
    tpu.vector_store %arg7[%432, %c0_134, %c0_135], %435 {strides = array<i32>} : memref<8x8x128xf32, #tpu.memory_space<vmem>>, vector<1x8x128xf32>,
    %c3_i32_136 = arith.constant 3 : i32
    %c8_i32_137 = arith.constant 8 : i32
    %436 = arith.muli %c3_i32_136, %c8_i32_137 : i32
    %437 = tpu.assume_multiple %436, 8 : i32
    %438 = arith.index_cast %437 : i32 to index
    %c0_138 = arith.constant 0 : index
    %439 = vector.load %arg10[%438, %c0_138] : memref<64x512xf32, #tpu.memory_space<vmem>>, vector<8x512xf32>
    %440 = arith.truncf %431 : vector<8x128xf32> to vector<8x128xbf16>
    %cst_139 = arith.constant dense<0.000000e+00> : vector<8x512xf32>
    %441 = tpu.matmul %440, %323, %cst_139 {dimension_numbers = #tpu.dot_dimension_numbers<[1], [0], [0], [1], [0, 0, 1, 1], [], []>} : vector<8x128xbf16>, vector<128x512xbf16>, vector<8x512xf32> -> vector<8x512xf32>
    %442 = arith.addf %439, %441 : vector<8x512xf32>
    %443 = vector.extract_strided_slice %442 {offsets = [0, 0], sizes = [8, 128], strides = [1, 1]} : vector<8x512xf32> to vector<8x128xf32>
    %444 = arith.negf %443 : vector<8x128xf32>
    %445 = math.exp %444 : vector<8x128xf32>
    %cst_140 = arith.constant 1.000000e+00 : f32
    %446 = vector.broadcast %cst_140 : f32 to vector<8x128xf32>
    %447 = arith.addf %446, %445 : vector<8x128xf32>
    %448 = arith.divf %446, %447 : vector<8x128xf32>
    %449 = vector.extract_strided_slice %442 {offsets = [0, 128], sizes = [8, 128], strides = [1, 1]} : vector<8x512xf32> to vector<8x128xf32>
    %450 = arith.negf %449 : vector<8x128xf32>
    %451 = math.exp %450 : vector<8x128xf32>
    %cst_141 = arith.constant 1.000000e+00 : f32
    %452 = vector.broadcast %cst_141 : f32 to vector<8x128xf32>
    %453 = arith.addf %452, %451 : vector<8x128xf32>
    %454 = arith.divf %452, %453 : vector<8x128xf32>
    %455 = vector.extract_strided_slice %442 {offsets = [0, 256], sizes = [8, 128], strides = [1, 1]} : vector<8x512xf32> to vector<8x128xf32>
    %456 = math.tanh %455 : vector<8x128xf32>
    %457 = vector.extract_strided_slice %442 {offsets = [0, 384], sizes = [8, 128], strides = [1, 1]} : vector<8x512xf32> to vector<8x128xf32>
    %458 = arith.negf %457 : vector<8x128xf32>
    %459 = math.exp %458 : vector<8x128xf32>
    %cst_142 = arith.constant 1.000000e+00 : f32
    %460 = vector.broadcast %cst_142 : f32 to vector<8x128xf32>
    %461 = arith.addf %460, %459 : vector<8x128xf32>
    %462 = arith.divf %460, %461 : vector<8x128xf32>
    %463 = arith.mulf %454, %429 : vector<8x128xf32>
    %464 = arith.mulf %448, %456 : vector<8x128xf32>
    %465 = arith.addf %463, %464 : vector<8x128xf32>
    %466 = math.tanh %465 : vector<8x128xf32>
    %467 = arith.mulf %462, %466 : vector<8x128xf32>
    %468 = arith.index_cast %c3_i32_136 : i32 to index
    %c0_143 = arith.constant 0 : index
    %c0_144 = arith.constant 0 : index
    %469 = vector.load %arg7[%468, %c0_143, %c0_144] : memref<8x8x128xf32, #tpu.memory_space<vmem>>, vector<1x8x128xf32>
    %470 = vector.shape_cast %469 : vector<1x8x128xf32> to vector<8x128xf32>
    %471 = vector.shape_cast %467 : vector<8x128xf32> to vector<1x8x128xf32>
    tpu.vector_store %arg7[%468, %c0_143, %c0_144], %471 {strides = array<i32>} : memref<8x8x128xf32, #tpu.memory_space<vmem>>, vector<1x8x128xf32>,
    %c4_i32_145 = arith.constant 4 : i32
    %c8_i32_146 = arith.constant 8 : i32
    %472 = arith.muli %c4_i32_145, %c8_i32_146 : i32
    %473 = tpu.assume_multiple %472, 8 : i32
    %474 = arith.index_cast %473 : i32 to index
    %c0_147 = arith.constant 0 : index
    %475 = vector.load %arg10[%474, %c0_147] : memref<64x512xf32, #tpu.memory_space<vmem>>, vector<8x512xf32>
    %476 = arith.truncf %467 : vector<8x128xf32> to vector<8x128xbf16>
    %cst_148 = arith.constant dense<0.000000e+00> : vector<8x512xf32>
    %477 = tpu.matmul %476, %323, %cst_148 {dimension_numbers = #tpu.dot_dimension_numbers<[1], [0], [0], [1], [0, 0, 1, 1], [], []>} : vector<8x128xbf16>, vector<128x512xbf16>, vector<8x512xf32> -> vector<8x512xf32>
    %478 = arith.addf %475, %477 : vector<8x512xf32>
    %479 = vector.extract_strided_slice %478 {offsets = [0, 0], sizes = [8, 128], strides = [1, 1]} : vector<8x512xf32> to vector<8x128xf32>
    %480 = arith.negf %479 : vector<8x128xf32>
    %481 = math.exp %480 : vector<8x128xf32>
    %cst_149 = arith.constant 1.000000e+00 : f32
    %482 = vector.broadcast %cst_149 : f32 to vector<8x128xf32>
    %483 = arith.addf %482, %481 : vector<8x128xf32>
    %484 = arith.divf %482, %483 : vector<8x128xf32>
    %485 = vector.extract_strided_slice %478 {offsets = [0, 128], sizes = [8, 128], strides = [1, 1]} : vector<8x512xf32> to vector<8x128xf32>
    %486 = arith.negf %485 : vector<8x128xf32>
    %487 = math.exp %486 : vector<8x128xf32>
    %cst_150 = arith.constant 1.000000e+00 : f32
    %488 = vector.broadcast %cst_150 : f32 to vector<8x128xf32>
    %489 = arith.addf %488, %487 : vector<8x128xf32>
    %490 = arith.divf %488, %489 : vector<8x128xf32>
    %491 = vector.extract_strided_slice %478 {offsets = [0, 256], sizes = [8, 128], strides = [1, 1]} : vector<8x512xf32> to vector<8x128xf32>
    %492 = math.tanh %491 : vector<8x128xf32>
    %493 = vector.extract_strided_slice %478 {offsets = [0, 384], sizes = [8, 128], strides = [1, 1]} : vector<8x512xf32> to vector<8x128xf32>
    %494 = arith.negf %493 : vector<8x128xf32>
    %495 = math.exp %494 : vector<8x128xf32>
    %cst_151 = arith.constant 1.000000e+00 : f32
    %496 = vector.broadcast %cst_151 : f32 to vector<8x128xf32>
    %497 = arith.addf %496, %495 : vector<8x128xf32>
    %498 = arith.divf %496, %497 : vector<8x128xf32>
    %499 = arith.mulf %490, %465 : vector<8x128xf32>
    %500 = arith.mulf %484, %492 : vector<8x128xf32>
    %501 = arith.addf %499, %500 : vector<8x128xf32>
    %502 = math.tanh %501 : vector<8x128xf32>
    %503 = arith.mulf %498, %502 : vector<8x128xf32>
    %504 = arith.index_cast %c4_i32_145 : i32 to index
    %c0_152 = arith.constant 0 : index
    %c0_153 = arith.constant 0 : index
    %505 = vector.load %arg7[%504, %c0_152, %c0_153] : memref<8x8x128xf32, #tpu.memory_space<vmem>>, vector<1x8x128xf32>
    %506 = vector.shape_cast %505 : vector<1x8x128xf32> to vector<8x128xf32>
    %507 = vector.shape_cast %503 : vector<8x128xf32> to vector<1x8x128xf32>
    tpu.vector_store %arg7[%504, %c0_152, %c0_153], %507 {strides = array<i32>} : memref<8x8x128xf32, #tpu.memory_space<vmem>>, vector<1x8x128xf32>,
    %c5_i32_154 = arith.constant 5 : i32
    %c8_i32_155 = arith.constant 8 : i32
    %508 = arith.muli %c5_i32_154, %c8_i32_155 : i32
    %509 = tpu.assume_multiple %508, 8 : i32
    %510 = arith.index_cast %509 : i32 to index
    %c0_156 = arith.constant 0 : index
    %511 = vector.load %arg10[%510, %c0_156] : memref<64x512xf32, #tpu.memory_space<vmem>>, vector<8x512xf32>
    %512 = arith.truncf %503 : vector<8x128xf32> to vector<8x128xbf16>
    %cst_157 = arith.constant dense<0.000000e+00> : vector<8x512xf32>
    %513 = tpu.matmul %512, %323, %cst_157 {dimension_numbers = #tpu.dot_dimension_numbers<[1], [0], [0], [1], [0, 0, 1, 1], [], []>} : vector<8x128xbf16>, vector<128x512xbf16>, vector<8x512xf32> -> vector<8x512xf32>
    %514 = arith.addf %511, %513 : vector<8x512xf32>
    %515 = vector.extract_strided_slice %514 {offsets = [0, 0], sizes = [8, 128], strides = [1, 1]} : vector<8x512xf32> to vector<8x128xf32>
    %516 = arith.negf %515 : vector<8x128xf32>
    %517 = math.exp %516 : vector<8x128xf32>
    %cst_158 = arith.constant 1.000000e+00 : f32
    %518 = vector.broadcast %cst_158 : f32 to vector<8x128xf32>
    %519 = arith.addf %518, %517 : vector<8x128xf32>
    %520 = arith.divf %518, %519 : vector<8x128xf32>
    %521 = vector.extract_strided_slice %514 {offsets = [0, 128], sizes = [8, 128], strides = [1, 1]} : vector<8x512xf32> to vector<8x128xf32>
    %522 = arith.negf %521 : vector<8x128xf32>
    %523 = math.exp %522 : vector<8x128xf32>
    %cst_159 = arith.constant 1.000000e+00 : f32
    %524 = vector.broadcast %cst_159 : f32 to vector<8x128xf32>
    %525 = arith.addf %524, %523 : vector<8x128xf32>
    %526 = arith.divf %524, %525 : vector<8x128xf32>
    %527 = vector.extract_strided_slice %514 {offsets = [0, 256], sizes = [8, 128], strides = [1, 1]} : vector<8x512xf32> to vector<8x128xf32>
    %528 = math.tanh %527 : vector<8x128xf32>
    %529 = vector.extract_strided_slice %514 {offsets = [0, 384], sizes = [8, 128], strides = [1, 1]} : vector<8x512xf32> to vector<8x128xf32>
    %530 = arith.negf %529 : vector<8x128xf32>
    %531 = math.exp %530 : vector<8x128xf32>
    %cst_160 = arith.constant 1.000000e+00 : f32
    %532 = vector.broadcast %cst_160 : f32 to vector<8x128xf32>
    %533 = arith.addf %532, %531 : vector<8x128xf32>
    %534 = arith.divf %532, %533 : vector<8x128xf32>
    %535 = arith.mulf %526, %501 : vector<8x128xf32>
    %536 = arith.mulf %520, %528 : vector<8x128xf32>
    %537 = arith.addf %535, %536 : vector<8x128xf32>
    %538 = math.tanh %537 : vector<8x128xf32>
    %539 = arith.mulf %534, %538 : vector<8x128xf32>
    %540 = arith.index_cast %c5_i32_154 : i32 to index
    %c0_161 = arith.constant 0 : index
    %c0_162 = arith.constant 0 : index
    %541 = vector.load %arg7[%540, %c0_161, %c0_162] : memref<8x8x128xf32, #tpu.memory_space<vmem>>, vector<1x8x128xf32>
    %542 = vector.shape_cast %541 : vector<1x8x128xf32> to vector<8x128xf32>
    %543 = vector.shape_cast %539 : vector<8x128xf32> to vector<1x8x128xf32>
    tpu.vector_store %arg7[%540, %c0_161, %c0_162], %543 {strides = array<i32>} : memref<8x8x128xf32, #tpu.memory_space<vmem>>, vector<1x8x128xf32>,
    %c6_i32_163 = arith.constant 6 : i32
    %c8_i32_164 = arith.constant 8 : i32
    %544 = arith.muli %c6_i32_163, %c8_i32_164 : i32
    %545 = tpu.assume_multiple %544, 8 : i32
    %546 = arith.index_cast %545 : i32 to index
    %c0_165 = arith.constant 0 : index
    %547 = vector.load %arg10[%546, %c0_165] : memref<64x512xf32, #tpu.memory_space<vmem>>, vector<8x512xf32>
    %548 = arith.truncf %539 : vector<8x128xf32> to vector<8x128xbf16>
    %cst_166 = arith.constant dense<0.000000e+00> : vector<8x512xf32>
    %549 = tpu.matmul %548, %323, %cst_166 {dimension_numbers = #tpu.dot_dimension_numbers<[1], [0], [0], [1], [0, 0, 1, 1], [], []>} : vector<8x128xbf16>, vector<128x512xbf16>, vector<8x512xf32> -> vector<8x512xf32>
    %550 = arith.addf %547, %549 : vector<8x512xf32>
    %551 = vector.extract_strided_slice %550 {offsets = [0, 0], sizes = [8, 128], strides = [1, 1]} : vector<8x512xf32> to vector<8x128xf32>
    %552 = arith.negf %551 : vector<8x128xf32>
    %553 = math.exp %552 : vector<8x128xf32>
    %cst_167 = arith.constant 1.000000e+00 : f32
    %554 = vector.broadcast %cst_167 : f32 to vector<8x128xf32>
    %555 = arith.addf %554, %553 : vector<8x128xf32>
    %556 = arith.divf %554, %555 : vector<8x128xf32>
    %557 = vector.extract_strided_slice %550 {offsets = [0, 128], sizes = [8, 128], strides = [1, 1]} : vector<8x512xf32> to vector<8x128xf32>
    %558 = arith.negf %557 : vector<8x128xf32>
    %559 = math.exp %558 : vector<8x128xf32>
    %cst_168 = arith.constant 1.000000e+00 : f32
    %560 = vector.broadcast %cst_168 : f32 to vector<8x128xf32>
    %561 = arith.addf %560, %559 : vector<8x128xf32>
    %562 = arith.divf %560, %561 : vector<8x128xf32>
    %563 = vector.extract_strided_slice %550 {offsets = [0, 256], sizes = [8, 128], strides = [1, 1]} : vector<8x512xf32> to vector<8x128xf32>
    %564 = math.tanh %563 : vector<8x128xf32>
    %565 = vector.extract_strided_slice %550 {offsets = [0, 384], sizes = [8, 128], strides = [1, 1]} : vector<8x512xf32> to vector<8x128xf32>
    %566 = arith.negf %565 : vector<8x128xf32>
    %567 = math.exp %566 : vector<8x128xf32>
    %cst_169 = arith.constant 1.000000e+00 : f32
    %568 = vector.broadcast %cst_169 : f32 to vector<8x128xf32>
    %569 = arith.addf %568, %567 : vector<8x128xf32>
    %570 = arith.divf %568, %569 : vector<8x128xf32>
    %571 = arith.mulf %562, %537 : vector<8x128xf32>
    %572 = arith.mulf %556, %564 : vector<8x128xf32>
    %573 = arith.addf %571, %572 : vector<8x128xf32>
    %574 = math.tanh %573 : vector<8x128xf32>
    %575 = arith.mulf %570, %574 : vector<8x128xf32>
    %576 = arith.index_cast %c6_i32_163 : i32 to index
    %c0_170 = arith.constant 0 : index
    %c0_171 = arith.constant 0 : index
    %577 = vector.load %arg7[%576, %c0_170, %c0_171] : memref<8x8x128xf32, #tpu.memory_space<vmem>>, vector<1x8x128xf32>
    %578 = vector.shape_cast %577 : vector<1x8x128xf32> to vector<8x128xf32>
    %579 = vector.shape_cast %575 : vector<8x128xf32> to vector<1x8x128xf32>
    tpu.vector_store %arg7[%576, %c0_170, %c0_171], %579 {strides = array<i32>} : memref<8x8x128xf32, #tpu.memory_space<vmem>>, vector<1x8x128xf32>,
    %c7_i32_172 = arith.constant 7 : i32
    %c8_i32_173 = arith.constant 8 : i32
    %580 = arith.muli %c7_i32_172, %c8_i32_173 : i32
    %581 = tpu.assume_multiple %580, 8 : i32
    %582 = arith.index_cast %581 : i32 to index
    %c0_174 = arith.constant 0 : index
    %583 = vector.load %arg10[%582, %c0_174] : memref<64x512xf32, #tpu.memory_space<vmem>>, vector<8x512xf32>
    %584 = arith.truncf %575 : vector<8x128xf32> to vector<8x128xbf16>
    %cst_175 = arith.constant dense<0.000000e+00> : vector<8x512xf32>
    %585 = tpu.matmul %584, %323, %cst_175 {dimension_numbers = #tpu.dot_dimension_numbers<[1], [0], [0], [1], [0, 0, 1, 1], [], []>} : vector<8x128xbf16>, vector<128x512xbf16>, vector<8x512xf32> -> vector<8x512xf32>
    %586 = arith.addf %583, %585 : vector<8x512xf32>
    %587 = vector.extract_strided_slice %586 {offsets = [0, 0], sizes = [8, 128], strides = [1, 1]} : vector<8x512xf32> to vector<8x128xf32>
    %588 = arith.negf %587 : vector<8x128xf32>
    %589 = math.exp %588 : vector<8x128xf32>
    %cst_176 = arith.constant 1.000000e+00 : f32
    %590 = vector.broadcast %cst_176 : f32 to vector<8x128xf32>
    %591 = arith.addf %590, %589 : vector<8x128xf32>
    %592 = arith.divf %590, %591 : vector<8x128xf32>
    %593 = vector.extract_strided_slice %586 {offsets = [0, 128], sizes = [8, 128], strides = [1, 1]} : vector<8x512xf32> to vector<8x128xf32>
    %594 = arith.negf %593 : vector<8x128xf32>
    %595 = math.exp %594 : vector<8x128xf32>
    %cst_177 = arith.constant 1.000000e+00 : f32
    %596 = vector.broadcast %cst_177 : f32 to vector<8x128xf32>
    %597 = arith.addf %596, %595 : vector<8x128xf32>
    %598 = arith.divf %596, %597 : vector<8x128xf32>
    %599 = vector.extract_strided_slice %586 {offsets = [0, 256], sizes = [8, 128], strides = [1, 1]} : vector<8x512xf32> to vector<8x128xf32>
    %600 = math.tanh %599 : vector<8x128xf32>
    %601 = vector.extract_strided_slice %586 {offsets = [0, 384], sizes = [8, 128], strides = [1, 1]} : vector<8x512xf32> to vector<8x128xf32>
    %602 = arith.negf %601 : vector<8x128xf32>
    %603 = math.exp %602 : vector<8x128xf32>
    %cst_178 = arith.constant 1.000000e+00 : f32
    %604 = vector.broadcast %cst_178 : f32 to vector<8x128xf32>
    %605 = arith.addf %604, %603 : vector<8x128xf32>
    %606 = arith.divf %604, %605 : vector<8x128xf32>
    %607 = arith.mulf %598, %573 : vector<8x128xf32>
    %608 = arith.mulf %592, %600 : vector<8x128xf32>
    %609 = arith.addf %607, %608 : vector<8x128xf32>
    %610 = math.tanh %609 : vector<8x128xf32>
    %611 = arith.mulf %606, %610 : vector<8x128xf32>
    %612 = arith.index_cast %c7_i32_172 : i32 to index
    %c0_179 = arith.constant 0 : index
    %c0_180 = arith.constant 0 : index
    %613 = vector.load %arg7[%612, %c0_179, %c0_180] : memref<8x8x128xf32, #tpu.memory_space<vmem>>, vector<1x8x128xf32>
    %614 = vector.shape_cast %613 : vector<1x8x128xf32> to vector<8x128xf32>
    %615 = vector.shape_cast %611 : vector<8x128xf32> to vector<1x8x128xf32>
    tpu.vector_store %arg7[%612, %c0_179, %c0_180], %615 {strides = array<i32>} : memref<8x8x128xf32, #tpu.memory_space<vmem>>, vector<1x8x128xf32>,
    %c8_i32_181 = arith.constant 8 : i32
    %c1_182 = arith.constant 1 : index
    %c0_183 = arith.constant 0 : index
    %c0_184 = arith.constant 0 : index
    %616 = vector.load %arg8[%c1_182, %c0_183, %c0_184] : memref<3x8x128xf32, #tpu.memory_space<vmem>>, vector<1x8x128xf32>
    %617 = vector.shape_cast %616 : vector<1x8x128xf32> to vector<8x128xf32>
    %618 = vector.shape_cast %611 : vector<8x128xf32> to vector<1x8x128xf32>
    tpu.vector_store %arg8[%c1_182, %c0_183, %c0_184], %618 {strides = array<i32>} : memref<3x8x128xf32, #tpu.memory_space<vmem>>, vector<1x8x128xf32>,
    %c1_185 = arith.constant 1 : index
    %c0_186 = arith.constant 0 : index
    %c0_187 = arith.constant 0 : index
    %619 = vector.load %arg9[%c1_185, %c0_186, %c0_187] : memref<3x8x128xf32, #tpu.memory_space<vmem>>, vector<1x8x128xf32>
    %620 = vector.shape_cast %619 : vector<1x8x128xf32> to vector<8x128xf32>
    %621 = vector.shape_cast %609 : vector<8x128xf32> to vector<1x8x128xf32>
    tpu.vector_store %arg9[%c1_185, %c0_186, %c0_187], %621 {strides = array<i32>} : memref<3x8x128xf32, #tpu.memory_space<vmem>>, vector<1x8x128xf32>,
    %c0_188 = arith.constant 0 : index
    %c0_189 = arith.constant 0 : index
    %c0_190 = arith.constant 0 : index
    %622 = vector.load %arg7[%c0_188, %c0_189, %c0_190] : memref<8x8x128xf32, #tpu.memory_space<vmem>>, vector<8x8x128xf32>
    %623 = vector.shape_cast %622 : vector<8x8x128xf32> to vector<64x128xf32>
    %624 = arith.truncf %623 : vector<64x128xf32> to vector<64x128xbf16>
    %c2 = arith.constant 2 : index
    %c0_191 = arith.constant 0 : index
    %c0_192 = arith.constant 0 : index
    %625 = vector.load %arg2[%c2, %c0_191, %c0_192] : memref<3x128x512xbf16, #tpu.memory_space<vmem>>, vector<1x128x512xbf16>
    %626 = vector.shape_cast %625 : vector<1x128x512xbf16> to vector<128x512xbf16>
    %cst_193 = arith.constant dense<0.000000e+00> : vector<64x512xf32>
    %627 = tpu.matmul %624, %626, %cst_193 {dimension_numbers = #tpu.dot_dimension_numbers<[1], [0], [0], [1], [0, 0, 1, 1], [], []>} : vector<64x128xbf16>, vector<128x512xbf16>, vector<64x512xf32> -> vector<64x512xf32>
    %c2_194 = arith.constant 2 : index
    %c0_195 = arith.constant 0 : index
    %c0_196 = arith.constant 0 : index
    %628 = vector.load %arg4[%c2_194, %c0_195, %c0_196] : memref<3x1x512xf32, #tpu.memory_space<vmem>>, vector<1x1x512xf32>
    %629 = vector.shape_cast %628 : vector<1x1x512xf32> to vector<1x512xf32>
    %630 = vector.broadcast %629 : vector<1x512xf32> to vector<64x512xf32>
    %631 = arith.addf %627, %630 : vector<64x512xf32>
    %c0_197 = arith.constant 0 : index
    %c0_198 = arith.constant 0 : index
    %632 = vector.load %arg10[%c0_197, %c0_198] : memref<64x512xf32, #tpu.memory_space<vmem>>, vector<64x512xf32>
    tpu.vector_store %arg10[%c0_197, %c0_198], %631 {strides = array<i32>} : memref<64x512xf32, #tpu.memory_space<vmem>>, vector<64x512xf32>,
    %c2_199 = arith.constant 2 : index
    %c0_200 = arith.constant 0 : index
    %c0_201 = arith.constant 0 : index
    %633 = vector.load %arg3[%c2_199, %c0_200, %c0_201] : memref<3x128x512xbf16, #tpu.memory_space<vmem>>, vector<1x128x512xbf16>
    %634 = vector.shape_cast %633 : vector<1x128x512xbf16> to vector<128x512xbf16>
    %c2_202 = arith.constant 2 : index
    %c0_203 = arith.constant 0 : index
    %c0_204 = arith.constant 0 : index
    %635 = vector.load %arg5[%c2_202, %c0_203, %c0_204] : memref<3x8x128xf32, #tpu.memory_space<vmem>>, vector<1x8x128xf32>
    %636 = vector.shape_cast %635 : vector<1x8x128xf32> to vector<8x128xf32>
    %c2_205 = arith.constant 2 : index
    %c0_206 = arith.constant 0 : index
    %c0_207 = arith.constant 0 : index
    %637 = vector.load %arg6[%c2_205, %c0_206, %c0_207] : memref<3x8x128xf32, #tpu.memory_space<vmem>>, vector<1x8x128xf32>
    %638 = vector.shape_cast %637 : vector<1x8x128xf32> to vector<8x128xf32>
    %c0_i32_208 = arith.constant 0 : i32
    %c8_i32_209 = arith.constant 8 : i32
    %639 = arith.muli %c0_i32_208, %c8_i32_209 : i32
    %640 = tpu.assume_multiple %639, 8 : i32
    %641 = arith.index_cast %640 : i32 to index
    %c0_210 = arith.constant 0 : index
    %642 = vector.load %arg10[%641, %c0_210] : memref<64x512xf32, #tpu.memory_space<vmem>>, vector<8x512xf32>
    %643 = arith.truncf %636 : vector<8x128xf32> to vector<8x128xbf16>
    %cst_211 = arith.constant dense<0.000000e+00> : vector<8x512xf32>
    %644 = tpu.matmul %643, %634, %cst_211 {dimension_numbers = #tpu.dot_dimension_numbers<[1], [0], [0], [1], [0, 0, 1, 1], [], []>} : vector<8x128xbf16>, vector<128x512xbf16>, vector<8x512xf32> -> vector<8x512xf32>
    %645 = arith.addf %642, %644 : vector<8x512xf32>
    %646 = vector.extract_strided_slice %645 {offsets = [0, 0], sizes = [8, 128], strides = [1, 1]} : vector<8x512xf32> to vector<8x128xf32>
    %647 = arith.negf %646 : vector<8x128xf32>
    %648 = math.exp %647 : vector<8x128xf32>
    %cst_212 = arith.constant 1.000000e+00 : f32
    %649 = vector.broadcast %cst_212 : f32 to vector<8x128xf32>
    %650 = arith.addf %649, %648 : vector<8x128xf32>
    %651 = arith.divf %649, %650 : vector<8x128xf32>
    %652 = vector.extract_strided_slice %645 {offsets = [0, 128], sizes = [8, 128], strides = [1, 1]} : vector<8x512xf32> to vector<8x128xf32>
    %653 = arith.negf %652 : vector<8x128xf32>
    %654 = math.exp %653 : vector<8x128xf32>
    %cst_213 = arith.constant 1.000000e+00 : f32
    %655 = vector.broadcast %cst_213 : f32 to vector<8x128xf32>
    %656 = arith.addf %655, %654 : vector<8x128xf32>
    %657 = arith.divf %655, %656 : vector<8x128xf32>
    %658 = vector.extract_strided_slice %645 {offsets = [0, 256], sizes = [8, 128], strides = [1, 1]} : vector<8x512xf32> to vector<8x128xf32>
    %659 = math.tanh %658 : vector<8x128xf32>
    %660 = vector.extract_strided_slice %645 {offsets = [0, 384], sizes = [8, 128], strides = [1, 1]} : vector<8x512xf32> to vector<8x128xf32>
    %661 = arith.negf %660 : vector<8x128xf32>
    %662 = math.exp %661 : vector<8x128xf32>
    %cst_214 = arith.constant 1.000000e+00 : f32
    %663 = vector.broadcast %cst_214 : f32 to vector<8x128xf32>
    %664 = arith.addf %663, %662 : vector<8x128xf32>
    %665 = arith.divf %663, %664 : vector<8x128xf32>
    %666 = arith.mulf %657, %638 : vector<8x128xf32>
    %667 = arith.mulf %651, %659 : vector<8x128xf32>
    %668 = arith.addf %666, %667 : vector<8x128xf32>
    %669 = math.tanh %668 : vector<8x128xf32>
    %670 = arith.mulf %665, %669 : vector<8x128xf32>
    %671 = arith.index_cast %c0_i32_208 : i32 to index
    %c0_215 = arith.constant 0 : index
    %c0_216 = arith.constant 0 : index
    %672 = vector.load %arg7[%671, %c0_215, %c0_216] : memref<8x8x128xf32, #tpu.memory_space<vmem>>, vector<1x8x128xf32>
    %673 = vector.shape_cast %672 : vector<1x8x128xf32> to vector<8x128xf32>
    %674 = vector.shape_cast %670 : vector<8x128xf32> to vector<1x8x128xf32>
    tpu.vector_store %arg7[%671, %c0_215, %c0_216], %674 {strides = array<i32>} : memref<8x8x128xf32, #tpu.memory_space<vmem>>, vector<1x8x128xf32>,
    %c1_i32_217 = arith.constant 1 : i32
    %c8_i32_218 = arith.constant 8 : i32
    %675 = arith.muli %c1_i32_217, %c8_i32_218 : i32
    %676 = tpu.assume_multiple %675, 8 : i32
    %677 = arith.index_cast %676 : i32 to index
    %c0_219 = arith.constant 0 : index
    %678 = vector.load %arg10[%677, %c0_219] : memref<64x512xf32, #tpu.memory_space<vmem>>, vector<8x512xf32>
    %679 = arith.truncf %670 : vector<8x128xf32> to vector<8x128xbf16>
    %cst_220 = arith.constant dense<0.000000e+00> : vector<8x512xf32>
    %680 = tpu.matmul %679, %634, %cst_220 {dimension_numbers = #tpu.dot_dimension_numbers<[1], [0], [0], [1], [0, 0, 1, 1], [], []>} : vector<8x128xbf16>, vector<128x512xbf16>, vector<8x512xf32> -> vector<8x512xf32>
    %681 = arith.addf %678, %680 : vector<8x512xf32>
    %682 = vector.extract_strided_slice %681 {offsets = [0, 0], sizes = [8, 128], strides = [1, 1]} : vector<8x512xf32> to vector<8x128xf32>
    %683 = arith.negf %682 : vector<8x128xf32>
    %684 = math.exp %683 : vector<8x128xf32>
    %cst_221 = arith.constant 1.000000e+00 : f32
    %685 = vector.broadcast %cst_221 : f32 to vector<8x128xf32>
    %686 = arith.addf %685, %684 : vector<8x128xf32>
    %687 = arith.divf %685, %686 : vector<8x128xf32>
    %688 = vector.extract_strided_slice %681 {offsets = [0, 128], sizes = [8, 128], strides = [1, 1]} : vector<8x512xf32> to vector<8x128xf32>
    %689 = arith.negf %688 : vector<8x128xf32>
    %690 = math.exp %689 : vector<8x128xf32>
    %cst_222 = arith.constant 1.000000e+00 : f32
    %691 = vector.broadcast %cst_222 : f32 to vector<8x128xf32>
    %692 = arith.addf %691, %690 : vector<8x128xf32>
    %693 = arith.divf %691, %692 : vector<8x128xf32>
    %694 = vector.extract_strided_slice %681 {offsets = [0, 256], sizes = [8, 128], strides = [1, 1]} : vector<8x512xf32> to vector<8x128xf32>
    %695 = math.tanh %694 : vector<8x128xf32>
    %696 = vector.extract_strided_slice %681 {offsets = [0, 384], sizes = [8, 128], strides = [1, 1]} : vector<8x512xf32> to vector<8x128xf32>
    %697 = arith.negf %696 : vector<8x128xf32>
    %698 = math.exp %697 : vector<8x128xf32>
    %cst_223 = arith.constant 1.000000e+00 : f32
    %699 = vector.broadcast %cst_223 : f32 to vector<8x128xf32>
    %700 = arith.addf %699, %698 : vector<8x128xf32>
    %701 = arith.divf %699, %700 : vector<8x128xf32>
    %702 = arith.mulf %693, %668 : vector<8x128xf32>
    %703 = arith.mulf %687, %695 : vector<8x128xf32>
    %704 = arith.addf %702, %703 : vector<8x128xf32>
    %705 = math.tanh %704 : vector<8x128xf32>
    %706 = arith.mulf %701, %705 : vector<8x128xf32>
    %707 = arith.index_cast %c1_i32_217 : i32 to index
    %c0_224 = arith.constant 0 : index
    %c0_225 = arith.constant 0 : index
    %708 = vector.load %arg7[%707, %c0_224, %c0_225] : memref<8x8x128xf32, #tpu.memory_space<vmem>>, vector<1x8x128xf32>
    %709 = vector.shape_cast %708 : vector<1x8x128xf32> to vector<8x128xf32>
    %710 = vector.shape_cast %706 : vector<8x128xf32> to vector<1x8x128xf32>
    tpu.vector_store %arg7[%707, %c0_224, %c0_225], %710 {strides = array<i32>} : memref<8x8x128xf32, #tpu.memory_space<vmem>>, vector<1x8x128xf32>,
    %c2_i32_226 = arith.constant 2 : i32
    %c8_i32_227 = arith.constant 8 : i32
    %711 = arith.muli %c2_i32_226, %c8_i32_227 : i32
    %712 = tpu.assume_multiple %711, 8 : i32
    %713 = arith.index_cast %712 : i32 to index
    %c0_228 = arith.constant 0 : index
    %714 = vector.load %arg10[%713, %c0_228] : memref<64x512xf32, #tpu.memory_space<vmem>>, vector<8x512xf32>
    %715 = arith.truncf %706 : vector<8x128xf32> to vector<8x128xbf16>
    %cst_229 = arith.constant dense<0.000000e+00> : vector<8x512xf32>
    %716 = tpu.matmul %715, %634, %cst_229 {dimension_numbers = #tpu.dot_dimension_numbers<[1], [0], [0], [1], [0, 0, 1, 1], [], []>} : vector<8x128xbf16>, vector<128x512xbf16>, vector<8x512xf32> -> vector<8x512xf32>
    %717 = arith.addf %714, %716 : vector<8x512xf32>
    %718 = vector.extract_strided_slice %717 {offsets = [0, 0], sizes = [8, 128], strides = [1, 1]} : vector<8x512xf32> to vector<8x128xf32>
    %719 = arith.negf %718 : vector<8x128xf32>
    %720 = math.exp %719 : vector<8x128xf32>
    %cst_230 = arith.constant 1.000000e+00 : f32
    %721 = vector.broadcast %cst_230 : f32 to vector<8x128xf32>
    %722 = arith.addf %721, %720 : vector<8x128xf32>
    %723 = arith.divf %721, %722 : vector<8x128xf32>
    %724 = vector.extract_strided_slice %717 {offsets = [0, 128], sizes = [8, 128], strides = [1, 1]} : vector<8x512xf32> to vector<8x128xf32>
    %725 = arith.negf %724 : vector<8x128xf32>
    %726 = math.exp %725 : vector<8x128xf32>
    %cst_231 = arith.constant 1.000000e+00 : f32
    %727 = vector.broadcast %cst_231 : f32 to vector<8x128xf32>
    %728 = arith.addf %727, %726 : vector<8x128xf32>
    %729 = arith.divf %727, %728 : vector<8x128xf32>
    %730 = vector.extract_strided_slice %717 {offsets = [0, 256], sizes = [8, 128], strides = [1, 1]} : vector<8x512xf32> to vector<8x128xf32>
    %731 = math.tanh %730 : vector<8x128xf32>
    %732 = vector.extract_strided_slice %717 {offsets = [0, 384], sizes = [8, 128], strides = [1, 1]} : vector<8x512xf32> to vector<8x128xf32>
    %733 = arith.negf %732 : vector<8x128xf32>
    %734 = math.exp %733 : vector<8x128xf32>
    %cst_232 = arith.constant 1.000000e+00 : f32
    %735 = vector.broadcast %cst_232 : f32 to vector<8x128xf32>
    %736 = arith.addf %735, %734 : vector<8x128xf32>
    %737 = arith.divf %735, %736 : vector<8x128xf32>
    %738 = arith.mulf %729, %704 : vector<8x128xf32>
    %739 = arith.mulf %723, %731 : vector<8x128xf32>
    %740 = arith.addf %738, %739 : vector<8x128xf32>
    %741 = math.tanh %740 : vector<8x128xf32>
    %742 = arith.mulf %737, %741 : vector<8x128xf32>
    %743 = arith.index_cast %c2_i32_226 : i32 to index
    %c0_233 = arith.constant 0 : index
    %c0_234 = arith.constant 0 : index
    %744 = vector.load %arg7[%743, %c0_233, %c0_234] : memref<8x8x128xf32, #tpu.memory_space<vmem>>, vector<1x8x128xf32>
    %745 = vector.shape_cast %744 : vector<1x8x128xf32> to vector<8x128xf32>
    %746 = vector.shape_cast %742 : vector<8x128xf32> to vector<1x8x128xf32>
    tpu.vector_store %arg7[%743, %c0_233, %c0_234], %746 {strides = array<i32>} : memref<8x8x128xf32, #tpu.memory_space<vmem>>, vector<1x8x128xf32>,
    %c3_i32_235 = arith.constant 3 : i32
    %c8_i32_236 = arith.constant 8 : i32
    %747 = arith.muli %c3_i32_235, %c8_i32_236 : i32
    %748 = tpu.assume_multiple %747, 8 : i32
    %749 = arith.index_cast %748 : i32 to index
    %c0_237 = arith.constant 0 : index
    %750 = vector.load %arg10[%749, %c0_237] : memref<64x512xf32, #tpu.memory_space<vmem>>, vector<8x512xf32>
    %751 = arith.truncf %742 : vector<8x128xf32> to vector<8x128xbf16>
    %cst_238 = arith.constant dense<0.000000e+00> : vector<8x512xf32>
    %752 = tpu.matmul %751, %634, %cst_238 {dimension_numbers = #tpu.dot_dimension_numbers<[1], [0], [0], [1], [0, 0, 1, 1], [], []>} : vector<8x128xbf16>, vector<128x512xbf16>, vector<8x512xf32> -> vector<8x512xf32>
    %753 = arith.addf %750, %752 : vector<8x512xf32>
    %754 = vector.extract_strided_slice %753 {offsets = [0, 0], sizes = [8, 128], strides = [1, 1]} : vector<8x512xf32> to vector<8x128xf32>
    %755 = arith.negf %754 : vector<8x128xf32>
    %756 = math.exp %755 : vector<8x128xf32>
    %cst_239 = arith.constant 1.000000e+00 : f32
    %757 = vector.broadcast %cst_239 : f32 to vector<8x128xf32>
    %758 = arith.addf %757, %756 : vector<8x128xf32>
    %759 = arith.divf %757, %758 : vector<8x128xf32>
    %760 = vector.extract_strided_slice %753 {offsets = [0, 128], sizes = [8, 128], strides = [1, 1]} : vector<8x512xf32> to vector<8x128xf32>
    %761 = arith.negf %760 : vector<8x128xf32>
    %762 = math.exp %761 : vector<8x128xf32>
    %cst_240 = arith.constant 1.000000e+00 : f32
    %763 = vector.broadcast %cst_240 : f32 to vector<8x128xf32>
    %764 = arith.addf %763, %762 : vector<8x128xf32>
    %765 = arith.divf %763, %764 : vector<8x128xf32>
    %766 = vector.extract_strided_slice %753 {offsets = [0, 256], sizes = [8, 128], strides = [1, 1]} : vector<8x512xf32> to vector<8x128xf32>
    %767 = math.tanh %766 : vector<8x128xf32>
    %768 = vector.extract_strided_slice %753 {offsets = [0, 384], sizes = [8, 128], strides = [1, 1]} : vector<8x512xf32> to vector<8x128xf32>
    %769 = arith.negf %768 : vector<8x128xf32>
    %770 = math.exp %769 : vector<8x128xf32>
    %cst_241 = arith.constant 1.000000e+00 : f32
    %771 = vector.broadcast %cst_241 : f32 to vector<8x128xf32>
    %772 = arith.addf %771, %770 : vector<8x128xf32>
    %773 = arith.divf %771, %772 : vector<8x128xf32>
    %774 = arith.mulf %765, %740 : vector<8x128xf32>
    %775 = arith.mulf %759, %767 : vector<8x128xf32>
    %776 = arith.addf %774, %775 : vector<8x128xf32>
    %777 = math.tanh %776 : vector<8x128xf32>
    %778 = arith.mulf %773, %777 : vector<8x128xf32>
    %779 = arith.index_cast %c3_i32_235 : i32 to index
    %c0_242 = arith.constant 0 : index
    %c0_243 = arith.constant 0 : index
    %780 = vector.load %arg7[%779, %c0_242, %c0_243] : memref<8x8x128xf32, #tpu.memory_space<vmem>>, vector<1x8x128xf32>
    %781 = vector.shape_cast %780 : vector<1x8x128xf32> to vector<8x128xf32>
    %782 = vector.shape_cast %778 : vector<8x128xf32> to vector<1x8x128xf32>
    tpu.vector_store %arg7[%779, %c0_242, %c0_243], %782 {strides = array<i32>} : memref<8x8x128xf32, #tpu.memory_space<vmem>>, vector<1x8x128xf32>,
    %c4_i32_244 = arith.constant 4 : i32
    %c8_i32_245 = arith.constant 8 : i32
    %783 = arith.muli %c4_i32_244, %c8_i32_245 : i32
    %784 = tpu.assume_multiple %783, 8 : i32
    %785 = arith.index_cast %784 : i32 to index
    %c0_246 = arith.constant 0 : index
    %786 = vector.load %arg10[%785, %c0_246] : memref<64x512xf32, #tpu.memory_space<vmem>>, vector<8x512xf32>
    %787 = arith.truncf %778 : vector<8x128xf32> to vector<8x128xbf16>
    %cst_247 = arith.constant dense<0.000000e+00> : vector<8x512xf32>
    %788 = tpu.matmul %787, %634, %cst_247 {dimension_numbers = #tpu.dot_dimension_numbers<[1], [0], [0], [1], [0, 0, 1, 1], [], []>} : vector<8x128xbf16>, vector<128x512xbf16>, vector<8x512xf32> -> vector<8x512xf32>
    %789 = arith.addf %786, %788 : vector<8x512xf32>
    %790 = vector.extract_strided_slice %789 {offsets = [0, 0], sizes = [8, 128], strides = [1, 1]} : vector<8x512xf32> to vector<8x128xf32>
    %791 = arith.negf %790 : vector<8x128xf32>
    %792 = math.exp %791 : vector<8x128xf32>
    %cst_248 = arith.constant 1.000000e+00 : f32
    %793 = vector.broadcast %cst_248 : f32 to vector<8x128xf32>
    %794 = arith.addf %793, %792 : vector<8x128xf32>
    %795 = arith.divf %793, %794 : vector<8x128xf32>
    %796 = vector.extract_strided_slice %789 {offsets = [0, 128], sizes = [8, 128], strides = [1, 1]} : vector<8x512xf32> to vector<8x128xf32>
    %797 = arith.negf %796 : vector<8x128xf32>
    %798 = math.exp %797 : vector<8x128xf32>
    %cst_249 = arith.constant 1.000000e+00 : f32
    %799 = vector.broadcast %cst_249 : f32 to vector<8x128xf32>
    %800 = arith.addf %799, %798 : vector<8x128xf32>
    %801 = arith.divf %799, %800 : vector<8x128xf32>
    %802 = vector.extract_strided_slice %789 {offsets = [0, 256], sizes = [8, 128], strides = [1, 1]} : vector<8x512xf32> to vector<8x128xf32>
    %803 = math.tanh %802 : vector<8x128xf32>
    %804 = vector.extract_strided_slice %789 {offsets = [0, 384], sizes = [8, 128], strides = [1, 1]} : vector<8x512xf32> to vector<8x128xf32>
    %805 = arith.negf %804 : vector<8x128xf32>
    %806 = math.exp %805 : vector<8x128xf32>
    %cst_250 = arith.constant 1.000000e+00 : f32
    %807 = vector.broadcast %cst_250 : f32 to vector<8x128xf32>
    %808 = arith.addf %807, %806 : vector<8x128xf32>
    %809 = arith.divf %807, %808 : vector<8x128xf32>
    %810 = arith.mulf %801, %776 : vector<8x128xf32>
    %811 = arith.mulf %795, %803 : vector<8x128xf32>
    %812 = arith.addf %810, %811 : vector<8x128xf32>
    %813 = math.tanh %812 : vector<8x128xf32>
    %814 = arith.mulf %809, %813 : vector<8x128xf32>
    %815 = arith.index_cast %c4_i32_244 : i32 to index
    %c0_251 = arith.constant 0 : index
    %c0_252 = arith.constant 0 : index
    %816 = vector.load %arg7[%815, %c0_251, %c0_252] : memref<8x8x128xf32, #tpu.memory_space<vmem>>, vector<1x8x128xf32>
    %817 = vector.shape_cast %816 : vector<1x8x128xf32> to vector<8x128xf32>
    %818 = vector.shape_cast %814 : vector<8x128xf32> to vector<1x8x128xf32>
    tpu.vector_store %arg7[%815, %c0_251, %c0_252], %818 {strides = array<i32>} : memref<8x8x128xf32, #tpu.memory_space<vmem>>, vector<1x8x128xf32>,
    %c5_i32_253 = arith.constant 5 : i32
    %c8_i32_254 = arith.constant 8 : i32
    %819 = arith.muli %c5_i32_253, %c8_i32_254 : i32
    %820 = tpu.assume_multiple %819, 8 : i32
    %821 = arith.index_cast %820 : i32 to index
    %c0_255 = arith.constant 0 : index
    %822 = vector.load %arg10[%821, %c0_255] : memref<64x512xf32, #tpu.memory_space<vmem>>, vector<8x512xf32>
    %823 = arith.truncf %814 : vector<8x128xf32> to vector<8x128xbf16>
    %cst_256 = arith.constant dense<0.000000e+00> : vector<8x512xf32>
    %824 = tpu.matmul %823, %634, %cst_256 {dimension_numbers = #tpu.dot_dimension_numbers<[1], [0], [0], [1], [0, 0, 1, 1], [], []>} : vector<8x128xbf16>, vector<128x512xbf16>, vector<8x512xf32> -> vector<8x512xf32>
    %825 = arith.addf %822, %824 : vector<8x512xf32>
    %826 = vector.extract_strided_slice %825 {offsets = [0, 0], sizes = [8, 128], strides = [1, 1]} : vector<8x512xf32> to vector<8x128xf32>
    %827 = arith.negf %826 : vector<8x128xf32>
    %828 = math.exp %827 : vector<8x128xf32>
    %cst_257 = arith.constant 1.000000e+00 : f32
    %829 = vector.broadcast %cst_257 : f32 to vector<8x128xf32>
    %830 = arith.addf %829, %828 : vector<8x128xf32>
    %831 = arith.divf %829, %830 : vector<8x128xf32>
    %832 = vector.extract_strided_slice %825 {offsets = [0, 128], sizes = [8, 128], strides = [1, 1]} : vector<8x512xf32> to vector<8x128xf32>
    %833 = arith.negf %832 : vector<8x128xf32>
    %834 = math.exp %833 : vector<8x128xf32>
    %cst_258 = arith.constant 1.000000e+00 : f32
    %835 = vector.broadcast %cst_258 : f32 to vector<8x128xf32>
    %836 = arith.addf %835, %834 : vector<8x128xf32>
    %837 = arith.divf %835, %836 : vector<8x128xf32>
    %838 = vector.extract_strided_slice %825 {offsets = [0, 256], sizes = [8, 128], strides = [1, 1]} : vector<8x512xf32> to vector<8x128xf32>
    %839 = math.tanh %838 : vector<8x128xf32>
    %840 = vector.extract_strided_slice %825 {offsets = [0, 384], sizes = [8, 128], strides = [1, 1]} : vector<8x512xf32> to vector<8x128xf32>
    %841 = arith.negf %840 : vector<8x128xf32>
    %842 = math.exp %841 : vector<8x128xf32>
    %cst_259 = arith.constant 1.000000e+00 : f32
    %843 = vector.broadcast %cst_259 : f32 to vector<8x128xf32>
    %844 = arith.addf %843, %842 : vector<8x128xf32>
    %845 = arith.divf %843, %844 : vector<8x128xf32>
    %846 = arith.mulf %837, %812 : vector<8x128xf32>
    %847 = arith.mulf %831, %839 : vector<8x128xf32>
    %848 = arith.addf %846, %847 : vector<8x128xf32>
    %849 = math.tanh %848 : vector<8x128xf32>
    %850 = arith.mulf %845, %849 : vector<8x128xf32>
    %851 = arith.index_cast %c5_i32_253 : i32 to index
    %c0_260 = arith.constant 0 : index
    %c0_261 = arith.constant 0 : index
    %852 = vector.load %arg7[%851, %c0_260, %c0_261] : memref<8x8x128xf32, #tpu.memory_space<vmem>>, vector<1x8x128xf32>
    %853 = vector.shape_cast %852 : vector<1x8x128xf32> to vector<8x128xf32>
    %854 = vector.shape_cast %850 : vector<8x128xf32> to vector<1x8x128xf32>
    tpu.vector_store %arg7[%851, %c0_260, %c0_261], %854 {strides = array<i32>} : memref<8x8x128xf32, #tpu.memory_space<vmem>>, vector<1x8x128xf32>,
    %c6_i32_262 = arith.constant 6 : i32
    %c8_i32_263 = arith.constant 8 : i32
    %855 = arith.muli %c6_i32_262, %c8_i32_263 : i32
    %856 = tpu.assume_multiple %855, 8 : i32
    %857 = arith.index_cast %856 : i32 to index
    %c0_264 = arith.constant 0 : index
    %858 = vector.load %arg10[%857, %c0_264] : memref<64x512xf32, #tpu.memory_space<vmem>>, vector<8x512xf32>
    %859 = arith.truncf %850 : vector<8x128xf32> to vector<8x128xbf16>
    %cst_265 = arith.constant dense<0.000000e+00> : vector<8x512xf32>
    %860 = tpu.matmul %859, %634, %cst_265 {dimension_numbers = #tpu.dot_dimension_numbers<[1], [0], [0], [1], [0, 0, 1, 1], [], []>} : vector<8x128xbf16>, vector<128x512xbf16>, vector<8x512xf32> -> vector<8x512xf32>
    %861 = arith.addf %858, %860 : vector<8x512xf32>
    %862 = vector.extract_strided_slice %861 {offsets = [0, 0], sizes = [8, 128], strides = [1, 1]} : vector<8x512xf32> to vector<8x128xf32>
    %863 = arith.negf %862 : vector<8x128xf32>
    %864 = math.exp %863 : vector<8x128xf32>
    %cst_266 = arith.constant 1.000000e+00 : f32
    %865 = vector.broadcast %cst_266 : f32 to vector<8x128xf32>
    %866 = arith.addf %865, %864 : vector<8x128xf32>
    %867 = arith.divf %865, %866 : vector<8x128xf32>
    %868 = vector.extract_strided_slice %861 {offsets = [0, 128], sizes = [8, 128], strides = [1, 1]} : vector<8x512xf32> to vector<8x128xf32>
    %869 = arith.negf %868 : vector<8x128xf32>
    %870 = math.exp %869 : vector<8x128xf32>
    %cst_267 = arith.constant 1.000000e+00 : f32
    %871 = vector.broadcast %cst_267 : f32 to vector<8x128xf32>
    %872 = arith.addf %871, %870 : vector<8x128xf32>
    %873 = arith.divf %871, %872 : vector<8x128xf32>
    %874 = vector.extract_strided_slice %861 {offsets = [0, 256], sizes = [8, 128], strides = [1, 1]} : vector<8x512xf32> to vector<8x128xf32>
    %875 = math.tanh %874 : vector<8x128xf32>
    %876 = vector.extract_strided_slice %861 {offsets = [0, 384], sizes = [8, 128], strides = [1, 1]} : vector<8x512xf32> to vector<8x128xf32>
    %877 = arith.negf %876 : vector<8x128xf32>
    %878 = math.exp %877 : vector<8x128xf32>
    %cst_268 = arith.constant 1.000000e+00 : f32
    %879 = vector.broadcast %cst_268 : f32 to vector<8x128xf32>
    %880 = arith.addf %879, %878 : vector<8x128xf32>
    %881 = arith.divf %879, %880 : vector<8x128xf32>
    %882 = arith.mulf %873, %848 : vector<8x128xf32>
    %883 = arith.mulf %867, %875 : vector<8x128xf32>
    %884 = arith.addf %882, %883 : vector<8x128xf32>
    %885 = math.tanh %884 : vector<8x128xf32>
    %886 = arith.mulf %881, %885 : vector<8x128xf32>
    %887 = arith.index_cast %c6_i32_262 : i32 to index
    %c0_269 = arith.constant 0 : index
    %c0_270 = arith.constant 0 : index
    %888 = vector.load %arg7[%887, %c0_269, %c0_270] : memref<8x8x128xf32, #tpu.memory_space<vmem>>, vector<1x8x128xf32>
    %889 = vector.shape_cast %888 : vector<1x8x128xf32> to vector<8x128xf32>
    %890 = vector.shape_cast %886 : vector<8x128xf32> to vector<1x8x128xf32>
    tpu.vector_store %arg7[%887, %c0_269, %c0_270], %890 {strides = array<i32>} : memref<8x8x128xf32, #tpu.memory_space<vmem>>, vector<1x8x128xf32>,
    %c7_i32_271 = arith.constant 7 : i32
    %c8_i32_272 = arith.constant 8 : i32
    %891 = arith.muli %c7_i32_271, %c8_i32_272 : i32
    %892 = tpu.assume_multiple %891, 8 : i32
    %893 = arith.index_cast %892 : i32 to index
    %c0_273 = arith.constant 0 : index
    %894 = vector.load %arg10[%893, %c0_273] : memref<64x512xf32, #tpu.memory_space<vmem>>, vector<8x512xf32>
    %895 = arith.truncf %886 : vector<8x128xf32> to vector<8x128xbf16>
    %cst_274 = arith.constant dense<0.000000e+00> : vector<8x512xf32>
    %896 = tpu.matmul %895, %634, %cst_274 {dimension_numbers = #tpu.dot_dimension_numbers<[1], [0], [0], [1], [0, 0, 1, 1], [], []>} : vector<8x128xbf16>, vector<128x512xbf16>, vector<8x512xf32> -> vector<8x512xf32>
    %897 = arith.addf %894, %896 : vector<8x512xf32>
    %898 = vector.extract_strided_slice %897 {offsets = [0, 0], sizes = [8, 128], strides = [1, 1]} : vector<8x512xf32> to vector<8x128xf32>
    %899 = arith.negf %898 : vector<8x128xf32>
    %900 = math.exp %899 : vector<8x128xf32>
    %cst_275 = arith.constant 1.000000e+00 : f32
    %901 = vector.broadcast %cst_275 : f32 to vector<8x128xf32>
    %902 = arith.addf %901, %900 : vector<8x128xf32>
    %903 = arith.divf %901, %902 : vector<8x128xf32>
    %904 = vector.extract_strided_slice %897 {offsets = [0, 128], sizes = [8, 128], strides = [1, 1]} : vector<8x512xf32> to vector<8x128xf32>
    %905 = arith.negf %904 : vector<8x128xf32>
    %906 = math.exp %905 : vector<8x128xf32>
    %cst_276 = arith.constant 1.000000e+00 : f32
    %907 = vector.broadcast %cst_276 : f32 to vector<8x128xf32>
    %908 = arith.addf %907, %906 : vector<8x128xf32>
    %909 = arith.divf %907, %908 : vector<8x128xf32>
    %910 = vector.extract_strided_slice %897 {offsets = [0, 256], sizes = [8, 128], strides = [1, 1]} : vector<8x512xf32> to vector<8x128xf32>
    %911 = math.tanh %910 : vector<8x128xf32>
    %912 = vector.extract_strided_slice %897 {offsets = [0, 384], sizes = [8, 128], strides = [1, 1]} : vector<8x512xf32> to vector<8x128xf32>
    %913 = arith.negf %912 : vector<8x128xf32>
    %914 = math.exp %913 : vector<8x128xf32>
    %cst_277 = arith.constant 1.000000e+00 : f32
    %915 = vector.broadcast %cst_277 : f32 to vector<8x128xf32>
    %916 = arith.addf %915, %914 : vector<8x128xf32>
    %917 = arith.divf %915, %916 : vector<8x128xf32>
    %918 = arith.mulf %909, %884 : vector<8x128xf32>
    %919 = arith.mulf %903, %911 : vector<8x128xf32>
    %920 = arith.addf %918, %919 : vector<8x128xf32>
    %921 = math.tanh %920 : vector<8x128xf32>
    %922 = arith.mulf %917, %921 : vector<8x128xf32>
    %923 = arith.index_cast %c7_i32_271 : i32 to index
    %c0_278 = arith.constant 0 : index
    %c0_279 = arith.constant 0 : index
    %924 = vector.load %arg7[%923, %c0_278, %c0_279] : memref<8x8x128xf32, #tpu.memory_space<vmem>>, vector<1x8x128xf32>
    %925 = vector.shape_cast %924 : vector<1x8x128xf32> to vector<8x128xf32>
    %926 = vector.shape_cast %922 : vector<8x128xf32> to vector<1x8x128xf32>
    tpu.vector_store %arg7[%923, %c0_278, %c0_279], %926 {strides = array<i32>} : memref<8x8x128xf32, #tpu.memory_space<vmem>>, vector<1x8x128xf32>,
    %c8_i32_280 = arith.constant 8 : i32
    %c2_281 = arith.constant 2 : index
    %c0_282 = arith.constant 0 : index
    %c0_283 = arith.constant 0 : index
    %927 = vector.load %arg8[%c2_281, %c0_282, %c0_283] : memref<3x8x128xf32, #tpu.memory_space<vmem>>, vector<1x8x128xf32>
    %928 = vector.shape_cast %927 : vector<1x8x128xf32> to vector<8x128xf32>
    %929 = vector.shape_cast %922 : vector<8x128xf32> to vector<1x8x128xf32>
    tpu.vector_store %arg8[%c2_281, %c0_282, %c0_283], %929 {strides = array<i32>} : memref<3x8x128xf32, #tpu.memory_space<vmem>>, vector<1x8x128xf32>,
    %c2_284 = arith.constant 2 : index
    %c0_285 = arith.constant 0 : index
    %c0_286 = arith.constant 0 : index
    %930 = vector.load %arg9[%c2_284, %c0_285, %c0_286] : memref<3x8x128xf32, #tpu.memory_space<vmem>>, vector<1x8x128xf32>
    %931 = vector.shape_cast %930 : vector<1x8x128xf32> to vector<8x128xf32>
    %932 = vector.shape_cast %920 : vector<8x128xf32> to vector<1x8x128xf32>
    tpu.vector_store %arg9[%c2_284, %c0_285, %c0_286], %932 {strides = array<i32>} : memref<3x8x128xf32, #tpu.memory_space<vmem>>, vector<1x8x128xf32>,
    return
  }
  func.func @transform_0(%arg0: i32) -> (i32, i32, i32) {
    %c0_i32 = arith.constant 0 : i32
    %c0_i32_0 = arith.constant 0 : i32
    %c0_i32_1 = arith.constant 0 : i32
    %c0_i32_2 = arith.constant 0 : i32
    return %c0_i32, %c0_i32_0, %c0_i32_1 : i32, i32, i32
  }
  func.func @transform_1(%arg0: i32) -> (i32, i32, i32) {
    %c0_i32 = arith.constant 0 : i32
    %c0_i32_0 = arith.constant 0 : i32
    %c0_i32_1 = arith.constant 0 : i32
    %c0_i32_2 = arith.constant 0 : i32
    return %c0_i32, %c0_i32_0, %c0_i32_1 : i32, i32, i32
  }
  func.func @transform_2(%arg0: i32) -> (i32, i32, i32) {
    %c0_i32 = arith.constant 0 : i32
    %c0_i32_0 = arith.constant 0 : i32
    %c0_i32_1 = arith.constant 0 : i32
    %c0_i32_2 = arith.constant 0 : i32
    return %c0_i32, %c0_i32_0, %c0_i32_1 : i32, i32, i32
  }
  func.func @transform_3(%arg0: i32) -> (i32, i32, i32) {
    %c0_i32 = arith.constant 0 : i32
    %c0_i32_0 = arith.constant 0 : i32
    %c0_i32_1 = arith.constant 0 : i32
    %c0_i32_2 = arith.constant 0 : i32
    return %c0_i32, %c0_i32_0, %c0_i32_1 : i32, i32, i32
  }
  func.func @transform_4(%arg0: i32) -> (i32, i32, i32) {
    %c0_i32 = arith.constant 0 : i32
    %c0_i32_0 = arith.constant 0 : i32
    %c0_i32_1 = arith.constant 0 : i32
    %c0_i32_2 = arith.constant 0 : i32
    return %c0_i32, %c0_i32_0, %c0_i32_1 : i32, i32, i32
  }
  func.func @transform_5(%arg0: i32) -> (i32, i32, i32) {
    %c0_i32 = arith.constant 0 : i32
    %c0_i32_0 = arith.constant 0 : i32
    %c0_i32_1 = arith.constant 0 : i32
    %c0_i32_2 = arith.constant 0 : i32
    return %c0_i32, %c0_i32_0, %c0_i32_1 : i32, i32, i32
  }
  func.func @transform_6(%arg0: i32) -> (i32, i32, i32) {
    %c0_i32 = arith.constant 0 : i32
    %c0_i32_0 = arith.constant 0 : i32
    %c0_i32_1 = arith.constant 0 : i32
    %c0_i32_2 = arith.constant 0 : i32
    return %c0_i32, %c0_i32_0, %c0_i32_1 : i32, i32, i32
  }
  func.func @transform_7(%arg0: i32) -> (i32, i32, i32) {
    %c0_i32 = arith.constant 0 : i32
    %c0_i32_0 = arith.constant 0 : i32
    %c0_i32_1 = arith.constant 0 : i32
    %c0_i32_2 = arith.constant 0 : i32
    return %c0_i32, %c0_i32_0, %c0_i32_1 : i32, i32, i32
  }
  func.func @transform_8(%arg0: i32) -> (i32, i32, i32) {
    %c0_i32 = arith.constant 0 : i32
    %c0_i32_0 = arith.constant 0 : i32
    %c0_i32_1 = arith.constant 0 : i32
    %c0_i32_2 = arith.constant 0 : i32
    return %c0_i32, %c0_i32_0, %c0_i32_1 : i32, i32, i32
  }
}

module attributes {stable_mosaic.version = 11 : i64} {
  func.func @_fc_kernel(%arg0: i32, %arg1: i32, %arg2: memref<16x128xf32, #tpu.memory_space<vmem>>, %arg3: memref<128x128xbf16, #tpu.memory_space<vmem>>, %arg4: memref<1x128xf32, #tpu.memory_space<vmem>>, %arg5: memref<16x128xf32, #tpu.memory_space<vmem>>) attributes {dimension_semantics = [#tpu.dimension_semantics<parallel>, #tpu.dimension_semantics<parallel>], iteration_bounds = array<i64: 1, 1>, scalar_prefetch = 0 : i64, scratch_operands = 0 : i64, tpu.core_type = #tpu.core_type<tc>, window_params = [{transform_indices = @transform_0, window_bounds = array<i64: 16, 128>}, {transform_indices = @transform_1, window_bounds = array<i64: 128, 128>}, {transform_indices = @transform_2, window_bounds = array<i64: 1, 128>}, {transform_indices = @transform_3, window_bounds = array<i64: 16, 128>}]} {
    %c0 = arith.constant 0 : index
    %c0_0 = arith.constant 0 : index
    %0 = vector.load %arg2[%c0, %c0_0] : memref<16x128xf32, #tpu.memory_space<vmem>>, vector<16x128xf32>
    %1 = arith.truncf %0 : vector<16x128xf32> to vector<16x128xbf16>
    %c0_1 = arith.constant 0 : index
    %c0_2 = arith.constant 0 : index
    %2 = vector.load %arg3[%c0_1, %c0_2] : memref<128x128xbf16, #tpu.memory_space<vmem>>, vector<128x128xbf16>
    %cst = arith.constant dense<0.000000e+00> : vector<16x128xf32>
    %3 = tpu.matmul %1, %2, %cst {dimension_numbers = #tpu.dot_dimension_numbers<[1], [0], [0], [1], [0, 0, 1, 1], [], []>} : vector<16x128xbf16>, vector<128x128xbf16>, vector<16x128xf32> -> vector<16x128xf32>
    %c0_3 = arith.constant 0 : index
    %c0_4 = arith.constant 0 : index
    %4 = vector.load %arg4[%c0_3, %c0_4] : memref<1x128xf32, #tpu.memory_space<vmem>>, vector<1x128xf32>
    %5 = vector.broadcast %4 : vector<1x128xf32> to vector<16x128xf32>
    %6 = arith.addf %3, %5 : vector<16x128xf32>
    %c0_5 = arith.constant 0 : index
    %c0_6 = arith.constant 0 : index
    %7 = vector.load %arg5[%c0_5, %c0_6] : memref<16x128xf32, #tpu.memory_space<vmem>>, vector<16x128xf32>
    tpu.vector_store %arg5[%c0_5, %c0_6], %6 {strides = array<i32>} : memref<16x128xf32, #tpu.memory_space<vmem>>, vector<16x128xf32>,
    return
  }
  func.func @transform_0(%arg0: i32, %arg1: i32) -> (i32, i32) {
    %c0_i32 = arith.constant 0 : i32
    %c0_i32_0 = arith.constant 0 : i32
    return %arg0, %c0_i32 : i32, i32
  }
  func.func @transform_1(%arg0: i32, %arg1: i32) -> (i32, i32) {
    %c0_i32 = arith.constant 0 : i32
    %c0_i32_0 = arith.constant 0 : i32
    return %c0_i32, %arg1 : i32, i32
  }
  func.func @transform_2(%arg0: i32, %arg1: i32) -> (i32, i32) {
    %c0_i32 = arith.constant 0 : i32
    %c0_i32_0 = arith.constant 0 : i32
    return %c0_i32, %arg1 : i32, i32
  }
  func.func @transform_3(%arg0: i32, %arg1: i32) -> (i32, i32) {
    %c0_i32 = arith.constant 0 : i32
    return %arg0, %arg1 : i32, i32
  }
}

</mosaic_0001>

<bundles_post_ra>
// kernel: forward.3
= control target key start
LH: loop header
LB: loop body
LE: loop exit
PB: predicated region body
PF: predicated region fallthrough
CT: control target
= control target key end

     0   :  { %s249_s0 = inlined_call_operand.vmem [shape: f32[16,128], index: 0, kind: input, shape index: {}]   ;;  %s250_s1 = inlined_call_operand.vmem [shape: bf16[128,128], index: 1, kind: input, shape index: {}]   ;;  %s251_s2 = inlined_call_operand.vmem [shape: f32[1,128], index: 2, kind: input, shape index: {}]   ;;  %s252_s3 = inlined_call_operand.hbm [shape: f32[16,128], index: 3, kind: output, shape index: {}]  }
   0x1   :  { %v159_v0 = vld [vmem:[%s250_s1 + $0x38] sm:$0xff]  ;;  %v158_v1 = vld [vmem:[%s250_s1 + $0x30] sm:$0xff] }
   0x2   :  { %86 = vmatpush.bf16.msra.mxu0 %v159_v0 }
   0x3   :  { %8 = vsyncpa [#allocation3], 0  ;;  %v157_v2 = vld [vmem:[%s250_s1 + $0x28] sm:$0xff]  ;;  %v156_v3 = vld [vmem:[%s250_s1 + $0x20] sm:$0xff]  ;;  %s190_s7 = smov [#allocation2]   ;;  %s108_s10 = sshll.u32 %s252_s3, 4  ;;  %s109_s10 = int_to_ptr.hbm [resolvable:$true] %s108_s10 }
   0x4   :  { %v155_v4 = vld [vmem:[%s250_s1 + $0x18] sm:$0xff]  ;;  %v154_v5 = vld [vmem:[%s250_s1 + $0x10] sm:$0xff]  ;;  %v153_v6 = vld [vmem:[%s250_s1 + $0x8] sm:$0xff]  ;;  %s192_s11 = smov 8  }
   0x5   :  { %v152_v7 = vld [vmem:[%s250_s1] sm:$0xff]  ;;  %v16_v9 = vld [vmem:[%s249_s0 + $0x8] sm:$0xff]  ;;  %s106_s1 = sshll.u32 %s190_s7, 4  ;;  %s107_s1 = int_to_ptr.vmem [resolvable:$true] %s106_s1 }
   0x6   :  { %87 = vmatpush.bf16.msra.mxu0 %v158_v1  ;;  %v15_v8 = vld [vmem:[%s249_s0] sm:$0xff]  ;;  %s191_s0 = smov 128  }
   0x7   :  { %v17_v10 = vpack.c.bf16 %v16_v9, %v15_v8  ;;  %v163_v11 = vld [vmem:[%s251_s2] ss:$0 sm:$0xff] }
   0xa   :  { %88 = vmatpush.bf16.msra.mxu0 %v157_v2 }
   0xe   :  { %89 = vmatpush.bf16.msra.mxu0 %v156_v3 }
  0x12   :  { %90 = vmatpush.bf16.msra.mxu0 %v155_v4 }
  0x16   :  { %91 = vmatpush.bf16.msra.mxu0 %v154_v5 }
  0x1a   :  { %92 = vmatpush.bf16.msra.mxu0 %v153_v6 }
  0x1e   :  { %93 = vmatpush.bf16.msra.mxu0 %v152_v7 }
  0x21   :  { %94 = vmatmul.bf16.vlgmr.msra.gmra.mxu0 %v17_v10 }
  0x9e   :  { %v95_v12 = vpop.f32.mrf.mxu0 }
  0x9f   :  { %v96_v13 = vadd.f32 %v163_v11, %v95_v12 }
  0xa1   :  { %100 = vst [vmem:[#allocation2] sm:$0xff] %v96_v13 }
  0xa6   :  { %v97_v14 = vpop.f32.mrf.mxu0 }
  0xa7   :  { %v98_v15 = vadd.f32 %v163_v11, %v97_v14 }
  0xa9   :  { %101 = vst [vmem:[#allocation2 + $0x8] sm:$0xff] %v98_v15 }
  0xaa   :  { %114 = dma.vmem_to_hbm [thread:$0]  %s107_s1, 256, %s109_s10, [#allocation3], %s191_s0, %s191_s0, %s192_s11  }
  0xab   :  { %188 = dma.done.wait [#allocation3], 256  }
  0xac   :  { %189 = vsyncadd [#allocation3], 4294967040 }
  0xad   :  { %119 = vsyncpa [#allocation3], 1 }

// kernel: forward.2
= control target key start
LH: loop header
LB: loop body
LE: loop exit
PB: predicated region body
PF: predicated region fallthrough
CT: control target
= control target key end

     0   :  { %14 = vsyncpa [#allocation4], 0  ;;  %s8148_s0 = inlined_call_operand.vmem [shape: f32[8,8,128], index: 0, kind: input, shape index: {}]   ;;  %s8149_s1 = inlined_call_operand.hbm [shape: bf16[3,128,512], index: 1, kind: input, shape index: {}]   ;;  %s8150_s2 = inlined_call_operand.hbm [shape: bf16[3,128,512], index: 2, kind: input, shape index: {}]   ;;  %s8151_s3 = inlined_call_operand.vmem [shape: f32[3,1,512], index: 3, kind: input, shape index: {}]   ;;  %s8152_s4 = inlined_call_operand.vmem [shape: f32[3,8,128], index: 4, kind: input, shape index: {}]   ;;  %s8153_s5 = inlined_call_operand.vmem [shape: f32[3,8,128], index: 5, kind: input, shape index: {}]   ;;  %s8154_s6 = inlined_call_operand.vmem [shape: f32[8,8,128], index: 6, kind: output, shape index: {0}]   ;;  %s8155_s7 = inlined_call_operand.vmem [shape: f32[3,8,128], index: 7, kind: output, shape index: {1}]   ;;  %s8156_s8 = inlined_call_operand.vmem [shape: f32[3,8,128], index: 8, kind: output, shape index: {2}]  }
   0x1   :  { %s22_s29 = sshll.u32 %s8149_s1, 4  ;;  %s23_s29 = int_to_ptr.hbm [resolvable:$true] %s22_s29 }
   0x2   :  { %15 = vsyncpa [#allocation6], 0  ;;  %s6301_s30 = smov [#allocation3]   ;;  %s35_s12 = sshll.u32 %s8150_s2, 4  ;;  %s36_s12 = int_to_ptr.hbm [resolvable:$true] %s35_s12 }
   0x3   :  { %s24_s9 = sshll.u32 %s6301_s30, 4  ;;  %s6302_s13 = smov 256   ;;  %s25_s9 = int_to_ptr.vmem [resolvable:$true] %s24_s9 }
   0x4   :  { %s6303_s14 = smov 16   ;;  %s6304_s15 = smov [#allocation5]  }
   0x5   :  { %30 = dma.hbm_to_vmem [thread:$0]  %s23_s29, 12288, %s25_s9, [#allocation4], %s6302_s13, %s6302_s13, %s6303_s14  }
   0x6   :  { %s37_s16 = sshll.u32 %s6304_s15, 4  ;;  %s38_s16 = int_to_ptr.vmem [resolvable:$true] %s37_s16 }
   0x7   :  { %43 = dma.hbm_to_vmem [thread:$0]  %s36_s12, 12288, %s38_s16, [#allocation6], %s6302_s13, %s6302_s13, %s6303_s14  }
   0x8   :  { %6297 = dma.done.wait [#allocation4], 12288  }
   0x9   :  { %6298 = vsyncadd [#allocation4], 4294955008 }
   0xa   :  { %6299 = dma.done.wait [#allocation6], 12288  }
   0xb   :  { %6300 = vsyncadd [#allocation6], 4294955008  ;;  %v4912_v0 = vld [vmem:[#allocation3 + $0xe0] sm:$0xf]  ;;  %v5699_v1 = vld [vmem:[#allocation3 + $0xec] sm:$0xf0] }
   0xc   :  { %v5697_v2 = vld [vmem:[#allocation3 + $0xe4] sm:$0xf]  ;;  %v4913_v3 = vor.u32 %v5699_v1, %v4912_v0  ;;  %v4914_v4 = vld [vmem:[#allocation3 + $0xf0] sm:$0xf0]  ;;  %v4920_v5 = vld [vmem:[#allocation3 + $0xe8] sm:$0xf] }
   0xd   :  { %v5700_v6 = vld [vmem:[#allocation3 + $0xf4] sm:$0xf0]  ;;  %v4917_v7 = vor.u32 %v5697_v2, %v4914_v4  ;;  %v5698_v9 = vld [vmem:[#allocation3 + $0xec] sm:$0xf]  ;;  %v4922_v10 = vld [vmem:[#allocation3 + $0xf8] sm:$0xf0] }
   0xe   :  { %v4921_v8 = vor.u32 %v5700_v6, %v4920_v5  ;;  %v4896_v11 = vld [vmem:[#allocation3 + $0xc0] sm:$0xf]  ;;  %272 = vmatpush.bf16.msra.mxu0 %v4913_v3  ;;  %v4925_v12 = vor.u32 %v5698_v9, %v4922_v10  ;;  %v5695_v13 = vld [vmem:[#allocation3 + $0xcc] sm:$0xf0]  ;;  %v5693_v14 = vld [vmem:[#allocation3 + $0xc4] sm:$0xf] }
   0xf   :  { %v4898_v15 = vld [vmem:[#allocation3 + $0xd0] sm:$0xf0]  ;;  %301 = vmatpush.bf16.msra.mxu1 %v4917_v7  ;;  %v4897_v16 = vor.u32 %v5695_v13, %v4896_v11  ;;  %v4904_v18 = vld [vmem:[#allocation3 + $0xc8] sm:$0xf]  ;;  %v5696_v19 = vld [vmem:[#allocation3 + $0xd4] sm:$0xf0] }
  0x10   :  { %330 = vmatpush.bf16.msra.mxu2 %v4921_v8  ;;  %v4901_v17 = vor.u32 %v5693_v14, %v4898_v15  ;;  %v5694_v20 = vld [vmem:[#allocation3 + $0xcc] sm:$0xf]  ;;  %359 = vmatpush.bf16.msra.mxu3 %v4925_v12  ;;  %v4905_v21 = vor.u32 %v5696_v19, %v4904_v18  ;;  %v4906_v22 = vld [vmem:[#allocation3 + $0xd8] sm:$0xf0]  ;;  %v4880_v23 = vld [vmem:[#allocation3 + $0xa0] sm:$0xf] }
  0x11   :  { %v5691_v24 = vld [vmem:[#allocation3 + $0xac] sm:$0xf0]  ;;  %v4909_v25 = vor.u32 %v5694_v20, %v4906_v22  ;;  %v5689_v26 = vld [vmem:[#allocation3 + $0xa4] sm:$0xf]  ;;  %v4882_v27 = vld [vmem:[#allocation3 + $0xb0] sm:$0xf0] }
  0x12   :  { %v4888_v28 = vld [vmem:[#allocation3 + $0xa8] sm:$0xf]  ;;  %273 = vmatpush.bf16.msra.mxu0 %v4897_v16  ;;  %v4881_v29 = vor.u32 %v5691_v24, %v4880_v23  ;;  %v5692_v30 = vld [vmem:[#allocation3 + $0xb4] sm:$0xf0]  ;;  %v5690_v31 = vld [vmem:[#allocation3 + $0xac] sm:$0xf]  ;;  %v4885_v33 = vor.u32 %v5689_v26, %v4882_v27 }
  0x13   :  { %v4890_v32 = vld [vmem:[#allocation3 + $0xb8] sm:$0xf0]  ;;  %302 = vmatpush.bf16.msra.mxu1 %v4901_v17  ;;  %v4889_v34 = vor.u32 %v5692_v30, %v4888_v28  ;;  %v4864_v35 = vld [vmem:[#allocation3 + $0x80] sm:$0xf]  ;;  %v5687_v36 = vld [vmem:[#allocation3 + $0x8c] sm:$0xf0] }
  0x14   :  { %331 = vmatpush.bf16.msra.mxu2 %v4905_v21  ;;  %v5685_v37 = vld [vmem:[#allocation3 + $0x84] sm:$0xf]  ;;  %360 = vmatpush.bf16.msra.mxu3 %v4909_v25  ;;  %v4893_v38 = vor.u32 %v5690_v31, %v4890_v32  ;;  %v4866_v39 = vld [vmem:[#allocation3 + $0x90] sm:$0xf0]  ;;  %v4872_v40 = vld [vmem:[#allocation3 + $0x88] sm:$0xf]  ;;  %v4865_v44 = vor.u32 %v5687_v36, %v4864_v35 }
  0x15   :  { %v5688_v41 = vld [vmem:[#allocation3 + $0x94] sm:$0xf0]  ;;  %v5686_v42 = vld [vmem:[#allocation3 + $0x8c] sm:$0xf]  ;;  %v4874_v43 = vld [vmem:[#allocation3 + $0x98] sm:$0xf0]  ;;  %v4869_v45 = vor.u32 %v5685_v37, %v4866_v39 }
  0x16   :  { %274 = vmatpush.bf16.msra.mxu0 %v4881_v29  ;;  %v4873_v46 = vor.u32 %v5688_v41, %v4872_v40  ;;  %v4848_v47 = vld [vmem:[#allocation3 + $0x60] sm:$0xf]  ;;  %v5683_v48 = vld [vmem:[#allocation3 + $0x6c] sm:$0xf0]  ;;  %v5681_v49 = vld [vmem:[#allocation3 + $0x64] sm:$0xf]  ;;  %v4877_v50 = vor.u32 %v5686_v42, %v4874_v43 }
  0x17   :  { %303 = vmatpush.bf16.msra.mxu1 %v4885_v33  ;;  %v4850_v51 = vld [vmem:[#allocation3 + $0x70] sm:$0xf0]  ;;  %v4856_v52 = vld [vmem:[#allocation3 + $0x68] sm:$0xf]  ;;  %v5684_v53 = vld [vmem:[#allocation3 + $0x74] sm:$0xf0]  ;;  %v4849_v56 = vor.u32 %v5683_v48, %v4848_v47 }
  0x18   :  { %332 = vmatpush.bf16.msra.mxu2 %v4889_v34  ;;  %361 = vmatpush.bf16.msra.mxu3 %v4893_v38  ;;  %v5682_v54 = vld [vmem:[#allocation3 + $0x6c] sm:$0xf]  ;;  %v4858_v55 = vld [vmem:[#allocation3 + $0x78] sm:$0xf0]  ;;  %v4853_v57 = vor.u32 %v5681_v49, %v4850_v51  ;;  %v4857_v58 = vor.u32 %v5684_v53, %v4856_v52  ;;  %v4832_v59 = vld [vmem:[#allocation3 + $0x40] sm:$0xf] }
  0x19   :  { %v5679_v60 = vld [vmem:[#allocation3 + $0x4c] sm:$0xf0]  ;;  %v5677_v61 = vld [vmem:[#allocation3 + $0x44] sm:$0xf]  ;;  %v4861_v62 = vor.u32 %v5682_v54, %v4858_v55  ;;  %v4834_v63 = vld [vmem:[#allocation3 + $0x50] sm:$0xf0] }
  0x1a   :  { %275 = vmatpush.bf16.msra.mxu0 %v4865_v44  ;;  %v4840_v0 = vld [vmem:[#allocation3 + $0x48] sm:$0xf]  ;;  %v5680_v1 = vld [vmem:[#allocation3 + $0x54] sm:$0xf0]  ;;  %v5678_v2 = vld [vmem:[#allocation3 + $0x4c] sm:$0xf]  ;;  %v4833_v4 = vor.u32 %v5679_v60, %v4832_v59  ;;  %v4837_v5 = vor.u32 %v5677_v61, %v4834_v63 }
  0x1b   :  { %304 = vmatpush.bf16.msra.mxu1 %v4869_v45  ;;  %v4842_v3 = vld [vmem:[#allocation3 + $0x58] sm:$0xf0]  ;;  %v4841_v6 = vor.u32 %v5680_v1, %v4840_v0  ;;  %v4816_v7 = vld [vmem:[#allocation3 + $0x20] sm:$0xf]  ;;  %v5675_v8 = vld [vmem:[#allocation3 + $0x2c] sm:$0xf0] }
  0x1c   :  { %333 = vmatpush.bf16.msra.mxu2 %v4873_v46  ;;  %362 = vmatpush.bf16.msra.mxu3 %v4877_v50  ;;  %v5673_v9 = vld [vmem:[#allocation3 + $0x24] sm:$0xf]  ;;  %v4845_v10 = vor.u32 %v5678_v2, %v4842_v3  ;;  %v4818_v11 = vld [vmem:[#allocation3 + $0x30] sm:$0xf0]  ;;  %v4824_v12 = vld [vmem:[#allocation3 + $0x28] sm:$0xf]  ;;  %v4817_v16 = vor.u32 %v5675_v8, %v4816_v7 }
  0x1d   :  { %v5676_v13 = vld [vmem:[#allocation3 + $0x34] sm:$0xf0]  ;;  %v5674_v14 = vld [vmem:[#allocation3 + $0x2c] sm:$0xf]  ;;  %v4826_v15 = vld [vmem:[#allocation3 + $0x38] sm:$0xf0]  ;;  %v4821_v19 = vor.u32 %v5673_v9, %v4818_v11 }
  0x1e   :  { %276 = vmatpush.bf16.msra.mxu0 %v4849_v56  ;;  %v4800_v17 = vld [vmem:[#allocation3] sm:$0xf]  ;;  %v5671_v18 = vld [vmem:[#allocation3 + $0xc] sm:$0xf0]  ;;  %v4825_v20 = vor.u32 %v5676_v13, %v4824_v12  ;;  %v5669_v21 = vld [vmem:[#allocation3 + $0x4] sm:$0xf]  ;;  %v4829_v24 = vor.u32 %v5674_v14, %v4826_v15 }
  0x1f   :  { %305 = vmatpush.bf16.msra.mxu1 %v4853_v57  ;;  %v4802_v22 = vld [vmem:[#allocation3 + $0x10] sm:$0xf0]  ;;  %v4808_v23 = vld [vmem:[#allocation3 + $0x8] sm:$0xf]  ;;  %v5672_v25 = vld [vmem:[#allocation3 + $0x14] sm:$0xf0]  ;;  %v4801_v31 = vor.u32 %v5671_v18, %v4800_v17 }
  0x20   :  { %334 = vmatpush.bf16.msra.mxu2 %v4857_v58  ;;  %363 = vmatpush.bf16.msra.mxu3 %v4861_v62  ;;  %v5670_v26 = vld [vmem:[#allocation3 + $0xc] sm:$0xf]  ;;  %v4810_v27 = vld [vmem:[#allocation3 + $0x18] sm:$0xf0]  ;;  %v58_v28 = vld [vmem:[%s8148_s0] sm:$0xff]  ;;  %v4805_v35 = vor.u32 %v5669_v21, %v4802_v22  ;;  %v4809_v36 = vor.u32 %v5672_v25, %v4808_v23 }
  0x21   :  { %v5040_v29 = vld [vmem:[#allocation5 + $0xe0] sm:$0xf]  ;;  %v5731_v30 = vld [vmem:[#allocation5 + $0xec] sm:$0xf0]  ;;  %v59_v32 = vld [vmem:[%s8148_s0 + $0x8] sm:$0xff]  ;;  %v4813_v37 = vor.u32 %v5670_v26, %v4810_v27 }
  0x22   :  { %277 = vmatpush.bf16.msra.mxu0 %v4833_v4  ;;  %v5729_v33 = vld [vmem:[#allocation5 + $0xe4] sm:$0xf]  ;;  %v5042_v34 = vld [vmem:[#allocation5 + $0xf0] sm:$0xf0]  ;;  %v6362_v38 = vor.u32 %v5731_v30, %v5040_v29  ;;  %v5730_v39 = vld [vmem:[#allocation5 + $0xec] sm:$0xf]  ;;  %v66_v42 = vpack.c.bf16 %v59_v32, %v58_v28 }
  0x23   :  { %306 = vmatpush.bf16.msra.mxu1 %v4837_v5  ;;  %v5048_v40 = vld [vmem:[#allocation5 + $0xe8] sm:$0xf]  ;;  %v5732_v41 = vld [vmem:[#allocation5 + $0xf4] sm:$0xf0]  ;;  %v6364_v43 = vor.u32 %v5729_v33, %v5042_v34  ;;  %v5050_v44 = vld [vmem:[#allocation5 + $0xf8] sm:$0xf0] }
  0x24   :  { %335 = vmatpush.bf16.msra.mxu2 %v4841_v6  ;;  %364 = vmatpush.bf16.msra.mxu3 %v4845_v10  ;;  %v5024_v45 = vld [vmem:[#allocation5 + $0xc0] sm:$0xf]  ;;  %v5727_v46 = vld [vmem:[#allocation5 + $0xcc] sm:$0xf0]  ;;  %v5725_v47 = vld [vmem:[#allocation5 + $0xc4] sm:$0xf]  ;;  %v6366_v49 = vor.u32 %v5732_v41, %v5048_v40  ;;  %v6369_v50 = vor.u32 %v5730_v39, %v5050_v44 }
  0x25   :  { %v5026_v48 = vld [vmem:[#allocation5 + $0xd0] sm:$0xf0]  ;;  %v6371_v51 = vor.u32 %v5727_v46, %v5024_v45  ;;  %v5726_v52 = vld [vmem:[#allocation5 + $0xcc] sm:$0xf]  ;;  %v5032_v53 = vld [vmem:[#allocation5 + $0xc8] sm:$0xf] }
  0x26   :  { %278 = vmatpush.bf16.msra.mxu0 %v4817_v16  ;;  %v5728_v54 = vld [vmem:[#allocation5 + $0xd4] sm:$0xf0]  ;;  %v6374_v55 = vor.u32 %v5725_v47, %v5026_v48  ;;  %v5034_v56 = vld [vmem:[#allocation5 + $0xd8] sm:$0xf0]  ;;  %v5008_v57 = vld [vmem:[#allocation5 + $0xa0] sm:$0xf] }
  0x27   :  { %307 = vmatpush.bf16.msra.mxu1 %v4821_v19  ;;  %v5723_v58 = vld [vmem:[#allocation5 + $0xac] sm:$0xf0]  ;;  %v5721_v59 = vld [vmem:[#allocation5 + $0xa4] sm:$0xf]  ;;  %v5010_v60 = vld [vmem:[#allocation5 + $0xb0] sm:$0xf0]  ;;  %v6377_v61 = vor.u32 %v5728_v54, %v5032_v53  ;;  %v6381_v62 = vor.u32 %v5726_v52, %v5034_v56 }
  0x28   :  { %336 = vmatpush.bf16.msra.mxu2 %v4825_v20  ;;  %365 = vmatpush.bf16.msra.mxu3 %v4829_v24  ;;  %v6383_v63 = vor.u32 %v5723_v58, %v5008_v57  ;;  %v5722_v0 = vld [vmem:[#allocation5 + $0xac] sm:$0xf]  ;;  %v5016_v1 = vld [vmem:[#allocation5 + $0xa8] sm:$0xf]  ;;  %v5724_v2 = vld [vmem:[#allocation5 + $0xb4] sm:$0xf0]  ;;  %v6386_v3 = vor.u32 %v5721_v59, %v5010_v60 }
  0x29   :  { %v5018_v4 = vld [vmem:[#allocation5 + $0xb8] sm:$0xf0]  ;;  %v4992_v5 = vld [vmem:[#allocation5 + $0x80] sm:$0xf]  ;;  %v5719_v6 = vld [vmem:[#allocation5 + $0x8c] sm:$0xf0]  ;;  %v6389_v9 = vor.u32 %v5724_v2, %v5016_v1 }
  0x2a   :  { %279 = vmatpush.bf16.msra.mxu0 %v4801_v31  ;;  %v5717_v7 = vld [vmem:[#allocation5 + $0x84] sm:$0xf]  ;;  %v4994_v8 = vld [vmem:[#allocation5 + $0x90] sm:$0xf0]  ;;  %v6396_v11 = vor.u32 %v5722_v0, %v5018_v4  ;;  %v6398_v12 = vor.u32 %v5719_v6, %v4992_v5  ;;  %v5718_v13 = vld [vmem:[#allocation5 + $0x8c] sm:$0xf] }
  0x2b   :  { %308 = vmatpush.bf16.msra.mxu1 %v4805_v35  ;;  %v60_v10 = vld [vmem:[%s8148_s0 + $0x10] sm:$0xff]  ;;  %v5000_v14 = vld [vmem:[#allocation5 + $0x88] sm:$0xf]  ;;  %v5720_v15 = vld [vmem:[#allocation5 + $0x94] sm:$0xf0]  ;;  %v6401_v16 = vor.u32 %v5717_v7, %v4994_v8 }
  0x2c   :  { %337 = vmatpush.bf16.msra.mxu2 %v4809_v36  ;;  %366 = vmatpush.bf16.msra.mxu3 %v4813_v37  ;;  %v5002_v17 = vld [vmem:[#allocation5 + $0x98] sm:$0xf0]  ;;  %v4976_v18 = vld [vmem:[#allocation5 + $0x60] sm:$0xf]  ;;  %v5715_v19 = vld [vmem:[#allocation5 + $0x6c] sm:$0xf0]  ;;  %v6407_v23 = vor.u32 %v5720_v15, %v5000_v14 }
  0x2d   :  { %280 = vmatmul.bf16.vlgmr.msra.gmra.mxu0 %v66_v42  ;;  %v61_v20 = vld [vmem:[%s8148_s0 + $0x18] sm:$0xff]  ;;  %v5713_v21 = vld [vmem:[#allocation5 + $0x64] sm:$0xf]  ;;  %v4978_v22 = vld [vmem:[#allocation5 + $0x70] sm:$0xf0]  ;;  %v6411_v24 = vor.u32 %v5718_v13, %v5002_v17  ;;  %v6413_v25 = vor.u32 %v5715_v19, %v4976_v18 }
  0x2e   :  { %622 = vmatpush.bf16.msrb.mxu0 %v6362_v38  ;;  %309 = vmatmul.bf16.vlgmr.msra.gmra.mxu1 %v66_v42  ;;  %v5714_v26 = vld [vmem:[#allocation5 + $0x6c] sm:$0xf]  ;;  %v4984_v27 = vld [vmem:[#allocation5 + $0x68] sm:$0xf]  ;;  %v5716_v28 = vld [vmem:[#allocation5 + $0x74] sm:$0xf0]  ;;  %v67_v29 = vpack.c.bf16 %v61_v20, %v60_v10  ;;  %v6416_v30 = vor.u32 %v5713_v21, %v4978_v22 }
  0x2f   :  { %635 = vmatpush.bf16.msrb.mxu1 %v6364_v43  ;;  %338 = vmatmul.bf16.vlgmr.msra.gmra.mxu2 %v66_v42  ;;  %v4986_v31 = vld [vmem:[#allocation5 + $0x78] sm:$0xf0]  ;;  %v4960_v32 = vld [vmem:[#allocation5 + $0x40] sm:$0xf]  ;;  %v5711_v33 = vld [vmem:[#allocation5 + $0x4c] sm:$0xf0]  ;;  %v6419_v36 = vor.u32 %v5716_v28, %v4984_v27 }
  0x30   :  { %367 = vmatmul.bf16.vlgmr.msra.gmra.mxu3 %v66_v42  ;;  %648 = vmatpush.bf16.msrb.mxu2 %v6366_v49  ;;  %v5709_v34 = vld [vmem:[#allocation5 + $0x44] sm:$0xf]  ;;  %v4962_v35 = vld [vmem:[#allocation5 + $0x50] sm:$0xf0]  ;;  %v6423_v37 = vor.u32 %v5714_v26, %v4986_v31  ;;  %v6425_v39 = vor.u32 %v5711_v33, %v4960_v32  ;;  %v5710_v41 = vld [vmem:[#allocation5 + $0x4c] sm:$0xf] }
  0x31   :  { %661 = vmatpush.bf16.msrb.mxu3 %v6369_v50  ;;  %v6428_v40 = vor.u32 %v5709_v34, %v4962_v35  ;;  %v4970_v42 = vld [vmem:[#allocation5 + $0x58] sm:$0xf0]  ;;  %v4944_v44 = vld [vmem:[#allocation5 + $0x20] sm:$0xf]  ;;  %v5707_v45 = vld [vmem:[#allocation5 + $0x2c] sm:$0xf0] }
  0x32   :  { %623 = vmatpush.bf16.msrb.mxu0 %v6371_v51  ;;  %v5705_v46 = vld [vmem:[#allocation5 + $0x24] sm:$0xf]  ;;  %v6433_v47 = vor.u32 %v5710_v41, %v4970_v42  ;;  %v6435_v48 = vor.u32 %v5707_v45, %v4944_v44  ;;  %v4946_v52 = vld [vmem:[#allocation5 + $0x30] sm:$0xf0]  ;;  %v4968_v53 = vld [vmem:[#allocation5 + $0x48] sm:$0xf] }
  0x33   :  { %636 = vmatpush.bf16.msrb.mxu1 %v6374_v55  ;;  %v5712_v54 = vld [vmem:[#allocation5 + $0x54] sm:$0xf0]  ;;  %v6438_v56 = vor.u32 %v5705_v46, %v4946_v52  ;;  %v5706_v58 = vld [vmem:[#allocation5 + $0x2c] sm:$0xf]  ;;  %v4954_v59 = vld [vmem:[#allocation5 + $0x38] sm:$0xf0] }
  0x34   :  { %649 = vmatpush.bf16.msrb.mxu2 %v6377_v61  ;;  %v6440_v57 = vor.u32 %v5712_v54, %v4968_v53  ;;  %v4928_v60 = vld [vmem:[#allocation5] sm:$0xf]  ;;  %v5703_v0 = vld [vmem:[#allocation5 + $0xc] sm:$0xf0]  ;;  %v5701_v1 = vld [vmem:[#allocation5 + $0x4] sm:$0xf]  ;;  %v6445_v6 = vor.u32 %v5706_v58, %v4954_v59 }
  0x35   :  { %662 = vmatpush.bf16.msrb.mxu3 %v6381_v62  ;;  %v4930_v2 = vld [vmem:[#allocation5 + $0x10] sm:$0xf0]  ;;  %v4952_v4 = vld [vmem:[#allocation5 + $0x28] sm:$0xf]  ;;  %v5708_v5 = vld [vmem:[#allocation5 + $0x34] sm:$0xf0]  ;;  %v6447_v7 = vor.u32 %v5703_v0, %v4928_v60 }
  0x36   :  { %624 = vmatpush.bf16.msrb.mxu0 %v6383_v63  ;;  %v6449_v8 = vor.u32 %v5708_v5, %v4952_v4  ;;  %v4936_v10 = vld [vmem:[#allocation5 + $0x8] sm:$0xf]  ;;  %v5704_v13 = vld [vmem:[#allocation5 + $0x14] sm:$0xf0]  ;;  %v6452_v14 = vor.u32 %v5701_v1, %v4930_v2  ;;  %v5702_v15 = vld [vmem:[#allocation5 + $0xc] sm:$0xf] }
  0x37   :  { %637 = vmatpush.bf16.msrb.mxu1 %v6386_v3  ;;  %v4938_v17 = vld [vmem:[#allocation5 + $0x18] sm:$0xf0]  ;;  %v62_v18 = vld [vmem:[%s8148_s0 + $0x20] sm:$0xff]  ;;  %v63_v19 = vld [vmem:[%s8148_s0 + $0x28] sm:$0xff]  ;;  %v6461_v20 = vor.u32 %v5704_v13, %v4936_v10 }
  0x38   :  { %650 = vmatpush.bf16.msrb.mxu2 %v6389_v9  ;;  %v6465_v21 = vor.u32 %v5702_v15, %v4938_v17  ;;  %v68_v22 = vpack.c.bf16 %v63_v19, %v62_v18  ;;  %v64_v26 = vld [vmem:[%s8148_s0 + $0x30] sm:$0xff]  ;;  %v65_v27 = vld [vmem:[%s8148_s0 + $0x38] sm:$0xff]  ;;  %v102_v44 = vld [vmem:[%s8151_s3] sm:$0xf] }
  0x39   :  { %663 = vmatpush.bf16.msrb.mxu3 %v6396_v11  ;;  %v69_v28 = vpack.c.bf16 %v65_v27, %v64_v26  ;;  %v6552_v45 = vperm.slane %v102_v44, 0  ;;  %v6556_v52 = vperm.slane %v102_v44, 1  ;;  %v6566_v0 = vperm.slane %v102_v44, 2 }
  0x3a   :  { %625 = vmatpush.bf16.msrb.mxu0 %v6398_v12  ;;  %v6568_v1 = vperm.slane %v102_v44, 3 }
  0x3b   :  { %638 = vmatpush.bf16.msrb.mxu1 %v6401_v16 }
  0x3c   :  { %651 = vmatpush.bf16.msrb.mxu2 %v6407_v23 }
  0x3d   :  { %664 = vmatpush.bf16.msrb.mxu3 %v6411_v24  ;;  %285 = vmatmul.bf16.gmra.mxu0 %v67_v29 }
  0x3e   :  { %626 = vmatpush.bf16.msrb.mxu0 %v6413_v25  ;;  %314 = vmatmul.bf16.gmra.mxu1 %v67_v29 }
  0x3f   :  { %639 = vmatpush.bf16.msrb.mxu1 %v6416_v30  ;;  %343 = vmatmul.bf16.gmra.mxu2 %v67_v29 }
  0x40   :  { %372 = vmatmul.bf16.gmra.mxu3 %v67_v29  ;;  %652 = vmatpush.bf16.msrb.mxu2 %v6419_v36  ;;  %v452_v29 = vld [vmem:[%s8152_s4] sm:$0xff] }
  0x41   :  { %665 = vmatpush.bf16.msrb.mxu3 %v6423_v37  ;;  %v461_v31 = vpack.c.bf16 %v452_v29, %v452_v29 }
  0x42   :  { %627 = vmatpush.bf16.msrb.mxu0 %v6425_v39 }
  0x43   :  { %640 = vmatpush.bf16.msrb.mxu1 %v6428_v40 }
  0x44   :  { %653 = vmatpush.bf16.msrb.mxu2 %v6440_v57 }
  0x45   :  { %666 = vmatpush.bf16.msrb.mxu3 %v6433_v47 }
  0x46   :  { %628 = vmatpush.bf16.msrb.mxu0 %v6435_v48 }
  0x47   :  { %641 = vmatpush.bf16.msrb.mxu1 %v6438_v56 }
  0x48   :  { %654 = vmatpush.bf16.msrb.mxu2 %v6449_v8 }
  0x49   :  { %667 = vmatpush.bf16.msrb.mxu3 %v6445_v6 }
  0x4a   :  { %629 = vmatpush.bf16.msrb.mxu0 %v6447_v7 }
  0x4b   :  { %642 = vmatpush.bf16.msrb.mxu1 %v6452_v14 }
  0x4c   :  { %655 = vmatpush.bf16.msrb.mxu2 %v6461_v20 }
  0x4d   :  { %668 = vmatpush.bf16.msrb.mxu3 %v6465_v21  ;;  %290 = vmatmul.bf16.gmra.mxu0 %v68_v22 }
  0x4e   :  { %750 = vmatpush.bf16.msra.mxu0 %v6362_v38  ;;  %319 = vmatmul.bf16.gmra.mxu1 %v68_v22 }
  0x4f   :  { %763 = vmatpush.bf16.msra.mxu1 %v6364_v43  ;;  %348 = vmatmul.bf16.gmra.mxu2 %v68_v22 }
  0x50   :  { %776 = vmatpush.bf16.msra.mxu2 %v6366_v49  ;;  %377 = vmatmul.bf16.gmra.mxu3 %v68_v22 }
  0x51   :  { %789 = vmatpush.bf16.msra.mxu3 %v6369_v50 }
  0x52   :  { %751 = vmatpush.bf16.msra.mxu0 %v6371_v51 }
  0x53   :  { %764 = vmatpush.bf16.msra.mxu1 %v6374_v55 }
  0x54   :  { %777 = vmatpush.bf16.msra.mxu2 %v6377_v61 }
  0x55   :  { %790 = vmatpush.bf16.msra.mxu3 %v6381_v62 }
  0x56   :  { %752 = vmatpush.bf16.msra.mxu0 %v6383_v63 }
  0x57   :  { %765 = vmatpush.bf16.msra.mxu1 %v6386_v3 }
  0x58   :  { %778 = vmatpush.bf16.msra.mxu2 %v6389_v9 }
  0x59   :  { %791 = vmatpush.bf16.msra.mxu3 %v6396_v11 }
  0x5a   :  { %753 = vmatpush.bf16.msra.mxu0 %v6398_v12 }
  0x5b   :  { %766 = vmatpush.bf16.msra.mxu1 %v6401_v16 }
  0x5c   :  { %779 = vmatpush.bf16.msra.mxu2 %v6407_v23 }
  0x5d   :  { %792 = vmatpush.bf16.msra.mxu3 %v6411_v24  ;;  %295 = vmatmul.bf16.gmra.mxu0 %v69_v28 }
  0x5e   :  { %754 = vmatpush.bf16.msra.mxu0 %v6413_v25  ;;  %324 = vmatmul.bf16.gmra.mxu1 %v69_v28 }
  0x5f   :  { %767 = vmatpush.bf16.msra.mxu1 %v6416_v30  ;;  %353 = vmatmul.bf16.gmra.mxu2 %v69_v28 }
  0x60   :  { %780 = vmatpush.bf16.msra.mxu2 %v6419_v36  ;;  %382 = vmatmul.bf16.gmra.mxu3 %v69_v28 }
  0x61   :  { %793 = vmatpush.bf16.msra.mxu3 %v6423_v37 }
  0x62   :  { %755 = vmatpush.bf16.msra.mxu0 %v6425_v39 }
  0x63   :  { %768 = vmatpush.bf16.msra.mxu1 %v6428_v40 }
  0x64   :  { %781 = vmatpush.bf16.msra.mxu2 %v6440_v57 }
  0x65   :  { %794 = vmatpush.bf16.msra.mxu3 %v6433_v47 }
  0x66   :  { %756 = vmatpush.bf16.msra.mxu0 %v6435_v48 }
  0x67   :  { %769 = vmatpush.bf16.msra.mxu1 %v6438_v56 }
  0x68   :  { %782 = vmatpush.bf16.msra.mxu2 %v6449_v8 }
  0x69   :  { %795 = vmatpush.bf16.msra.mxu3 %v6445_v6 }
  0x6a   :  { %757 = vmatpush.bf16.msra.mxu0 %v6447_v7 }
  0x6b   :  { %770 = vmatpush.bf16.msra.mxu1 %v6452_v14 }
  0x6c   :  { %783 = vmatpush.bf16.msra.mxu2 %v6461_v20 }
  0x6d   :  { %796 = vmatpush.bf16.msra.mxu3 %v6465_v21  ;;  %630 = vmatmul.bf16.vlgmr.msrb.gmra.mxu0 %v461_v31 }
  0x6e   :  { %643 = vmatmul.bf16.vlgmr.msrb.gmra.mxu1 %v461_v31  ;;  %879 = vmatpush.bf16.msrb.mxu0 %v6362_v38 }
  0x6f   :  { %656 = vmatmul.bf16.vlgmr.msrb.gmra.mxu2 %v461_v31  ;;  %892 = vmatpush.bf16.msrb.mxu1 %v6364_v43 }
  0x70   :  { %669 = vmatmul.bf16.vlgmr.msrb.gmra.mxu3 %v461_v31  ;;  %905 = vmatpush.bf16.msrb.mxu2 %v6366_v49 }
  0x71   :  { %918 = vmatpush.bf16.msrb.mxu3 %v6369_v50 }
  0x72   :  { %880 = vmatpush.bf16.msrb.mxu0 %v6371_v51 }
  0x73   :  { %893 = vmatpush.bf16.msrb.mxu1 %v6374_v55 }
  0x74   :  { %906 = vmatpush.bf16.msrb.mxu2 %v6377_v61 }
  0x75   :  { %919 = vmatpush.bf16.msrb.mxu3 %v6381_v62 }
  0x76   :  { %881 = vmatpush.bf16.msrb.mxu0 %v6383_v63 }
  0x77   :  { %894 = vmatpush.bf16.msrb.mxu1 %v6386_v3 }
  0x78   :  { %907 = vmatpush.bf16.msrb.mxu2 %v6389_v9 }
  0x79   :  { %920 = vmatpush.bf16.msrb.mxu3 %v6396_v11 }
  0x7a   :  { %882 = vmatpush.bf16.msrb.mxu0 %v6398_v12 }
  0x7b   :  { %895 = vmatpush.bf16.msrb.mxu1 %v6401_v16 }
  0x7c   :  { %908 = vmatpush.bf16.msrb.mxu2 %v6407_v23 }
  0x7d   :  { %921 = vmatpush.bf16.msrb.mxu3 %v6411_v24 }
  0x7e   :  { %883 = vmatpush.bf16.msrb.mxu0 %v6413_v25 }
  0x7f   :  { %896 = vmatpush.bf16.msrb.mxu1 %v6416_v30 }
  0x80   :  { %909 = vmatpush.bf16.msrb.mxu2 %v6419_v36 }
  0x81   :  { %922 = vmatpush.bf16.msrb.mxu3 %v6423_v37 }
  0x82   :  { %884 = vmatpush.bf16.msrb.mxu0 %v6425_v39 }
  0x83   :  { %897 = vmatpush.bf16.msrb.mxu1 %v6428_v40 }
  0x84   :  { %910 = vmatpush.bf16.msrb.mxu2 %v6440_v57 }
  0x85   :  { %923 = vmatpush.bf16.msrb.mxu3 %v6433_v47 }
  0x86   :  { %885 = vmatpush.bf16.msrb.mxu0 %v6435_v48 }
  0x87   :  { %898 = vmatpush.bf16.msrb.mxu1 %v6438_v56 }
  0x88   :  { %911 = vmatpush.bf16.msrb.mxu2 %v6449_v8 }
  0x89   :  { %924 = vmatpush.bf16.msrb.mxu3 %v6445_v6 }
  0x8a   :  { %886 = vmatpush.bf16.msrb.mxu0 %v6447_v7 }
  0x8b   :  { %899 = vmatpush.bf16.msrb.mxu1 %v6452_v14 }
  0x8c   :  { %912 = vmatpush.bf16.msrb.mxu2 %v6461_v20 }
  0x8d   :  { %925 = vmatpush.bf16.msrb.mxu3 %v6465_v21 }
  0xaa   :  { %v281_v32 = vpop.f32.mrf.mxu0 }
  0xab   :  { %v310_v33 = vpop.f32.mrf.mxu1 }
  0xb2   :  { %v6543_v34 = vpop.f32.mrf.mxu2  ;;  %v6545_v41 = vpop.f32.mrf.mxu0 }
  0xb3   :  { %v368_v35 = vpop.f32.mrf.mxu3  ;;  %v6547_v42 = vpop.f32.mrf.mxu1 }
  0xba   :  { %v6554_v46 = vpop.f32.mrf.mxu2  ;;  %v286_v54 = vpop.f32.mrf.mxu0 }
  0xbb   :  { %v6558_v53 = vpop.f32.mrf.mxu3  ;;  %v6561_v58 = vadd.f32 %v286_v54, %v6552_v45  ;;  %v315_v59 = vpop.f32.mrf.mxu1 }
  0xbc   :  { %v6564_v60 = vadd.f32 %v315_v59, %v6556_v52 }
  0xbd   :  { %8157 = vst [vmem:[#allocation9_spill] sm:$0xff] %v6561_v58 }
  0xbe   :  { %8158 = vst [vmem:[#allocation10_spill] sm:$0xff] %v6564_v60 }
  0xc2   :  { %v344_v2 = vpop.f32.mrf.mxu2  ;;  %v6573_v10 = vpop.f32.mrf.mxu0 }
  0xc3   :  { %v6571_v4 = vadd.f32 %v344_v2, %v6566_v0  ;;  %v373_v5 = vpop.f32.mrf.mxu3  ;;  %8160 = vst [vmem:[#allocation12_spill] sm:$0xff] %v6573_v10  ;;  %v6578_v15 = vpop.f32.mrf.mxu1 }
  0xc4   :  { %v6576_v13 = vadd.f32 %v373_v5, %v6568_v1  ;;  %8162 = vst [vmem:[#allocation14_spill] sm:$0xff] %v6578_v15 }
  0xc5   :  { %8159 = vst [vmem:[#allocation11_spill] sm:$0xff] %v6571_v4 }
  0xc6   :  { %8161 = vst [vmem:[#allocation13_spill] sm:$0xff] %v6576_v13 }
  0xca   :  { %v6580_v17 = vpop.f32.mrf.mxu2  ;;  %v291_v19 = vpop.f32.mrf.mxu0 }
  0xcb   :  { %8163 = vst [vmem:[#allocation15_spill] sm:$0xff] %v6580_v17  ;;  %v6582_v18 = vpop.f32.mrf.mxu3  ;;  %v6585_v22 = vadd.f32 %v291_v19, %v6552_v45  ;;  %v320_v26 = vpop.f32.mrf.mxu1 }
  0xcc   :  { %8164 = vst [vmem:[#allocation16_spill] sm:$0xff] %v6582_v18  ;;  %v6588_v27 = vadd.f32 %v320_v26, %v6556_v52 }
  0xcd   :  { %8165 = vst [vmem:[#allocation17_spill] sm:$0xff] %v6585_v22 }
  0xce   :  { %8166 = vst [vmem:[#allocation18_spill] sm:$0xff] %v6588_v27 }
  0xd2   :  { %v349_v28 = vpop.f32.mrf.mxu2  ;;  %v6593_v44 = vpop.f32.mrf.mxu0 }
  0xd3   :  { %v6591_v29 = vadd.f32 %v349_v28, %v6566_v0  ;;  %v378_v31 = vpop.f32.mrf.mxu3  ;;  %8168 = vst [vmem:[#allocation20_spill] sm:$0xff] %v6593_v44  ;;  %v6598_v59 = vpop.f32.mrf.mxu1 }
  0xd4   :  { %v6596_v54 = vadd.f32 %v378_v31, %v6568_v1  ;;  %8170 = vst [vmem:[#allocation22_spill] sm:$0xff] %v6598_v59 }
  0xd5   :  { %8167 = vst [vmem:[#allocation19_spill] sm:$0xff] %v6591_v29 }
  0xd6   :  { %8169 = vst [vmem:[#allocation21_spill] sm:$0xff] %v6596_v54 }
  0xda   :  { %v6600_v2 = vpop.f32.mrf.mxu2  ;;  %v296_v19 = vpop.f32.mrf.mxu0 }
  0xdb   :  { %8171 = vst [vmem:[#allocation23_spill] sm:$0xff] %v6600_v2  ;;  %v6602_v5 = vpop.f32.mrf.mxu3  ;;  %v6605_v26 = vadd.f32 %v296_v19, %v6552_v45  ;;  %v325_v27 = vpop.f32.mrf.mxu1 }
  0xdc   :  { %8172 = vst [vmem:[#allocation24_spill] sm:$0xff] %v6602_v5  ;;  %v6608_v28 = vadd.f32 %v325_v27, %v6556_v52  ;;  %v282_v5 = vadd.f32 %v281_v32, %v6552_v45 }
  0xdd   :  { %8173 = vst [vmem:[#allocation25_spill] sm:$0xff] %v6605_v26  ;;  %v311_v26 = vadd.f32 %v310_v33, %v6556_v52 }
  0xde   :  { %8174 = vst [vmem:[#allocation26_spill] sm:$0xff] %v6608_v28 }
  0xe2   :  { %v354_v29 = vpop.f32.mrf.mxu2  ;;  %v6613_v54 = vpop.f32.mrf.mxu0 }
  0xe3   :  { %v6611_v44 = vadd.f32 %v354_v29, %v6566_v0  ;;  %v383_v31 = vpop.f32.mrf.mxu3  ;;  %8176 = vst [vmem:[#allocation28_spill] sm:$0xff] %v6613_v54  ;;  %v6618_v2 = vpop.f32.mrf.mxu1 }
  0xe4   :  { %v6616_v59 = vadd.f32 %v383_v31, %v6568_v1  ;;  %8178 = vst [vmem:[#allocation30_spill] sm:$0xff] %v6618_v2  ;;  %v369_v31 = vadd.f32 %v368_v35, %v6568_v1 }
  0xe5   :  { %8175 = vst [vmem:[#allocation27_spill] sm:$0xff] %v6611_v44 }
  0xe6   :  { %8177 = vst [vmem:[#allocation29_spill] sm:$0xff] %v6616_v59 }
  0xea   :  { %v6621_v19 = vpop.f32.mrf.mxu2  ;;  %v631_v28 = vpop.f32.mrf.mxu0 }
  0xeb   :  { %8179 = vst [vmem:[#allocation31_spill] sm:$0xff] %v6621_v19  ;;  %v6624_v27 = vpop.f32.mrf.mxu3  ;;  %v674_v22 = vadd.f32 %v631_v28, %v282_v5  ;;  %v644_v29 = vpop.f32.mrf.mxu1 }
  0xec   :  { %8180 = vst [vmem:[#allocation32_spill] sm:$0xff] %v6624_v27  ;;  %v675_v44 = vadd.f32 %v644_v29, %v311_v26 }
  0xed   :  { %v5054_v17 = vmul.f32 -1.442695, %v674_v22 }
  0xee   :  { %v5055_v18 = vmul.f32 -1.442695, %v675_v44 }
  0xef   :  { %5865 = vpow2.f32 %v5054_v17  ;;  %v340_v17 = vadd.f32 %v6543_v34, %v6566_v0 }
  0xf0   :  { %5867 = vpow2.f32 %v5055_v18 }
  0xf2   :  { %v657_v54 = vpop.f32.mrf.mxu2  ;;  %v633_v59 = vpop.f32.mrf.mxu0 }
  0xf3   :  { %v670_v2 = vpop.f32.mrf.mxu3  ;;  %v646_v15 = vpop.f32.mrf.mxu1  ;;  %v676_v44 = vadd.f32 %v657_v54, %v340_v17 }
  0xf4   :  { %v677_v32 = vadd.f32 %v670_v2, %v369_v31 }
  0xf5   :  { %v5866_v19 = vpop.eup %5865 }
  0xf6   :  { %v5056_v10 = vmul.f32 -1.442695, %v677_v32  ;;  %v5868_v33 = vpop.eup %5867  ;;  %v681_v4 = vadd.f32 1.0, %v5866_v19 }
  0xf7   :  { %v700_v27 = vadd.f32 1.0, %v5868_v33 }
  0xf8   :  { %5869 = vpow2.f32 %v5056_v10  ;;  %v693_v19 = vand.u32 2147483648, %v681_v4  ;;  %v691_v32 = vand.u32 2147483647, %v681_v4  ;;  %vm687_vm2 = vweird.f32 %v681_v4 }
  0xf9   :  { %5871 = vrcp.f32 %v681_v4  ;;  %v712_v10 = vand.u32 2147483648, %v700_v27  ;;  %vm706_vm3 = vweird.f32 %v700_v27 }
  0xfa   :  { %5873 = vrcp.f32 %v700_v27  ;;  %v659_v5 = vpop.f32.mrf.mxu2  ;;  %v694_v54 = vor.u32 1.1754944e-38, %v693_v19  ;;  %vm692_vm6 = vcmp.eq.f32.partialorder %v691_v32, 8.507059e+37 }
  0xfb   :  { %v672_v22 = vpop.f32.mrf.mxu3  ;;  %v710_v5 = vand.u32 2147483647, %v700_v27 }
  0xfd   :  { %vm711_vm7 = vcmp.eq.f32.partialorder %v710_v5, 8.507059e+37 }
  0xfe   :  { %v5870_v18 = vpop.eup %5869 }
  0xff   :  { %v5872_v35 = vpop.eup %5871  ;;  %v720_v26 = vadd.f32 1.0, %v5870_v18  ;;  %v713_v18 = vor.u32 1.1754944e-38, %v712_v10 }
 0x100   :  { %v5874_v59 = vpop.eup %5873  ;;  %v683_v2 = vmul.f32 %v5872_v35, %v681_v4  ;;  %vm688_vm0 = vweird.f32 %v5872_v35 }
 0x101   :  { %v702_v15 = vmul.f32 %v5874_v59, %v700_v27  ;;  %5875 = vrcp.f32 %v720_v26  ;;  %vm707_vm1 = vweird.f32 %v5874_v59  ;;  %vm689_vm4 = vmor %vm687_vm2, %vm688_vm0  ;;  %v732_v10 = vand.u32 2147483648, %v720_v26 }
 0x102   :  { %v684_v28 = vsub.f32 1.0, %v683_v2  ;;  %5877 = vtanh.f32 %v676_v44  ;;  %vm708_vm5 = vmor %vm706_vm3, %vm707_vm1  ;;  %v453_v44 = vld [vmem:[%s8153_s5] sm:$0xff]  ;;  %vm726_vm9 = vweird.f32 %v720_v26 }
 0x103   :  { %v703_v29 = vsub.f32 1.0, %v702_v15 }
 0x104   :  { %v685_v31 = vmul.f32 %v5872_v35, %v684_v28 }
 0x105   :  { %v704_v33 = vmul.f32 %v5874_v59, %v703_v29 }
 0x106   :  { %v686_v34 = vadd.f32 %v5872_v35, %v685_v31 }
 0x107   :  { %v5876_v22 = vpop.eup %5875  ;;  %v705_v17 = vadd.f32 %v5874_v59, %v704_v33 }
 0x108   :  { %v690_v2 = vsel %vm689_vm4, %v5872_v35, %v686_v34  ;;  %v722_v15 = vmul.f32 %v5876_v22, %v720_v26  ;;  %v5878_v28 = vpop.eup %5877  ;;  %vm727_vm8 = vweird.f32 %v5876_v22  ;;  %v730_v35 = vand.u32 2147483647, %v720_v26 }
 0x109   :  { %v695_v29 = vsel %vm692_vm6, %v694_v54, %v690_v2  ;;  %v709_v13 = vsel %vm708_vm5, %v5874_v59, %v705_v17  ;;  %vm728_vm10 = vmor %vm726_vm9, %vm727_vm8  ;;  %v733_v34 = vor.u32 1.1754944e-38, %v732_v10  ;;  %v313_v26 = vadd.f32 %v6547_v42, %v6556_v52 }
 0x10a   :  { %v714_v31 = vsel %vm711_vm7, %v713_v18, %v709_v13  ;;  %v737_v4 = vmul.f32 %v5878_v28, %v695_v29  ;;  %v723_v60 = vsub.f32 1.0, %v722_v15  ;;  %vm731_vm11 = vcmp.eq.f32.partialorder %v730_v35, 8.507059e+37 }
 0x10b   :  { %v736_v27 = vmul.f32 %v714_v31, %v453_v44  ;;  %v371_v15 = vadd.f32 %v6558_v53, %v6568_v1  ;;  %v342_v53 = vadd.f32 %v6554_v46, %v6566_v0 }
 0x10c   :  { %v724_v58 = vmul.f32 %v5876_v22, %v723_v60 }
 0x10d   :  { %v6632_v19 = vadd.f32 %v737_v4, %v736_v27 }
 0x10e   :  { %v725_v33 = vadd.f32 %v5876_v22, %v724_v58  ;;  %v284_v58 = vadd.f32 %v6545_v41, %v6552_v45 }
 0x10f   :  { %5879 = vtanh.f32 %v6632_v19 }
 0x110   :  { %v729_v32 = vsel %vm728_vm10, %v5876_v22, %v725_v33 }
 0x111   :  { %v734_v5 = vsel %vm731_vm11, %v733_v34, %v729_v32 }
 0x115   :  { %v5880_v59 = vpop.eup %5879 }
 0x116   :  { %v740_v13 = vmul.f32 %v5880_v59, %v734_v5 }
 0x118   :  { %741 = vst [vmem:[%s8154_s6] sm:$0xff] %v740_v13  ;;  %v749_v60 = vpack.c.bf16 %v740_v13, %v740_v13 }
 0x11a   :  { %758 = vmatmul.bf16.vlgmr.msra.gmra.mxu0 %v749_v60  ;;  %771 = vmatmul.bf16.vlgmr.msra.gmra.mxu1 %v749_v60 }
 0x11b   :  { %784 = vmatmul.bf16.vlgmr.msra.gmra.mxu2 %v749_v60  ;;  %797 = vmatmul.bf16.vlgmr.msra.gmra.mxu3 %v749_v60 }
 0x11c   :  { %1008 = vmatpush.bf16.msra.mxu0 %v6362_v38  ;;  %1021 = vmatpush.bf16.msra.mxu1 %v6364_v43 }
 0x11d   :  { %1034 = vmatpush.bf16.msra.mxu2 %v6366_v49  ;;  %1047 = vmatpush.bf16.msra.mxu3 %v6369_v50 }
 0x120   :  { %1009 = vmatpush.bf16.msra.mxu0 %v6371_v51  ;;  %1022 = vmatpush.bf16.msra.mxu1 %v6374_v55 }
 0x121   :  { %1035 = vmatpush.bf16.msra.mxu2 %v6377_v61  ;;  %1048 = vmatpush.bf16.msra.mxu3 %v6381_v62 }
 0x124   :  { %1010 = vmatpush.bf16.msra.mxu0 %v6383_v63  ;;  %1023 = vmatpush.bf16.msra.mxu1 %v6386_v3 }
 0x125   :  { %1036 = vmatpush.bf16.msra.mxu2 %v6389_v9  ;;  %1049 = vmatpush.bf16.msra.mxu3 %v6396_v11 }
 0x128   :  { %1011 = vmatpush.bf16.msra.mxu0 %v6398_v12  ;;  %1024 = vmatpush.bf16.msra.mxu1 %v6401_v16 }
 0x129   :  { %1037 = vmatpush.bf16.msra.mxu2 %v6407_v23  ;;  %1050 = vmatpush.bf16.msra.mxu3 %v6411_v24 }
 0x12c   :  { %1012 = vmatpush.bf16.msra.mxu0 %v6413_v25  ;;  %1025 = vmatpush.bf16.msra.mxu1 %v6416_v30 }
 0x12d   :  { %1038 = vmatpush.bf16.msra.mxu2 %v6419_v36  ;;  %1051 = vmatpush.bf16.msra.mxu3 %v6423_v37 }
 0x130   :  { %1013 = vmatpush.bf16.msra.mxu0 %v6425_v39  ;;  %1026 = vmatpush.bf16.msra.mxu1 %v6428_v40 }
 0x131   :  { %1039 = vmatpush.bf16.msra.mxu2 %v6440_v57  ;;  %1052 = vmatpush.bf16.msra.mxu3 %v6433_v47 }
 0x134   :  { %1014 = vmatpush.bf16.msra.mxu0 %v6435_v48  ;;  %1027 = vmatpush.bf16.msra.mxu1 %v6438_v56 }
 0x135   :  { %1040 = vmatpush.bf16.msra.mxu2 %v6449_v8  ;;  %1053 = vmatpush.bf16.msra.mxu3 %v6445_v6 }
 0x138   :  { %1015 = vmatpush.bf16.msra.mxu0 %v6447_v7  ;;  %1028 = vmatpush.bf16.msra.mxu1 %v6452_v14 }
 0x139   :  { %1041 = vmatpush.bf16.msra.mxu2 %v6461_v20  ;;  %1054 = vmatpush.bf16.msra.mxu3 %v6465_v21 }
 0x197   :  { %v759_v22 = vpop.f32.mrf.mxu0  ;;  %v772_v54 = vpop.f32.mrf.mxu1 }
 0x198   :  { %v802_v17 = vadd.f32 %v759_v22, %v284_v58  ;;  %v803_v18 = vadd.f32 %v772_v54, %v313_v26 }
 0x19a   :  { %v5057_v44 = vmul.f32 -1.442695, %v802_v17  ;;  %v5058_v2 = vmul.f32 -1.442695, %v803_v18 }
 0x19c   :  { %5881 = vpow2.f32 %v5057_v44 }
 0x19d   :  { %5883 = vpow2.f32 %v5058_v2 }
 0x19e   :  { %v785_v28 = vpop.f32.mrf.mxu2  ;;  %v798_v29 = vpop.f32.mrf.mxu3 }
 0x19f   :  { %v805_v31 = vadd.f32 %v798_v29, %v371_v15  ;;  %v761_v4 = vpop.f32.mrf.mxu0  ;;  %v774_v27 = vpop.f32.mrf.mxu1  ;;  %v804_v60 = vadd.f32 %v785_v28, %v342_v53 }
 0x1a1   :  { %v5059_v41 = vmul.f32 -1.442695, %v805_v31 }
 0x1a2   :  { %v5882_v33 = vpop.eup %5881 }
 0x1a3   :  { %v5884_v10 = vpop.eup %5883  ;;  %v809_v42 = vadd.f32 1.0, %v5882_v33  ;;  %5885 = vpow2.f32 %v5059_v41 }
 0x1a4   :  { %v828_v35 = vadd.f32 1.0, %v5884_v10 }
 0x1a5   :  { %5887 = vrcp.f32 %v809_v42  ;;  %v821_v18 = vand.u32 2147483648, %v809_v42  ;;  %v819_v15 = vand.u32 2147483647, %v809_v42  ;;  %vm815_vm14 = vweird.f32 %v809_v42 }
 0x1a6   :  { %5889 = vrcp.f32 %v828_v35  ;;  %v787_v32 = vpop.f32.mrf.mxu2  ;;  %v800_v34 = vpop.f32.mrf.mxu3  ;;  %v840_v44 = vand.u32 2147483648, %v828_v35  ;;  %v838_v31 = vand.u32 2147483647, %v828_v35  ;;  %vm834_vm15 = vweird.f32 %v828_v35 }
 0x1a7   :  { %v822_v28 = vor.u32 1.1754944e-38, %v821_v18  ;;  %vm820_vm2 = vcmp.eq.f32.partialorder %v819_v15, 8.507059e+37 }
 0x1a8   :  { %v841_v33 = vor.u32 1.1754944e-38, %v840_v44  ;;  %vm839_vm3 = vcmp.eq.f32.partialorder %v838_v31, 8.507059e+37  ;;  %v8181_v31 = vld [vmem:[#allocation9_spill] sm:$0xff] }
 0x1a9   :  { %v5886_v59 = vpop.eup %5885 }
 0x1aa   :  { %v848_v5 = vadd.f32 1.0, %v5886_v59 }
 0x1ab   :  { %v5888_v13 = vpop.eup %5887 }
 0x1ac   :  { %v5890_v58 = vpop.eup %5889  ;;  %v811_v26 = vmul.f32 %v5888_v13, %v809_v42  ;;  %5891 = vrcp.f32 %v848_v5  ;;  %vm816_vm12 = vweird.f32 %v5888_v13  ;;  %vm854_vm5 = vweird.f32 %v848_v5 }
 0x1ad   :  { %v830_v22 = vmul.f32 %v5890_v58, %v828_v35  ;;  %5893 = vtanh.f32 %v804_v60  ;;  %vm835_vm13 = vweird.f32 %v5890_v58  ;;  %vm817_vm0 = vmor %vm815_vm14, %vm816_vm12 }
 0x1ae   :  { %v812_v54 = vsub.f32 1.0, %v811_v26  ;;  %vm836_vm1 = vmor %vm834_vm15, %vm835_vm13 }
 0x1af   :  { %v831_v17 = vsub.f32 1.0, %v830_v22 }
 0x1b0   :  { %v813_v2 = vmul.f32 %v5888_v13, %v812_v54 }
 0x1b1   :  { %v832_v29 = vmul.f32 %v5890_v58, %v831_v17  ;;  %v860_v17 = vand.u32 2147483648, %v848_v5 }
 0x1b2   :  { %v5892_v4 = vpop.eup %5891  ;;  %v814_v46 = vadd.f32 %v5888_v13, %v813_v2 }
 0x1b3   :  { %v833_v27 = vadd.f32 %v5890_v58, %v832_v29  ;;  %v850_v41 = vmul.f32 %v5892_v4, %v848_v5  ;;  %v5894_v32 = vpop.eup %5893  ;;  %vm855_vm4 = vweird.f32 %v5892_v4  ;;  %v861_v44 = vor.u32 1.1754944e-38, %v860_v17 }
 0x1b4   :  { %v818_v10 = vsel %vm817_vm0, %v5888_v13, %v814_v46  ;;  %v858_v13 = vand.u32 2147483647, %v848_v5  ;;  %vm856_vm6 = vmor %vm854_vm5, %vm855_vm4  ;;  %v8182_v46 = vld [vmem:[#allocation10_spill] sm:$0xff] }
 0x1b5   :  { %v823_v34 = vsel %vm820_vm2, %v822_v28, %v818_v10  ;;  %v837_v59 = vsel %vm836_vm1, %v5890_v58, %v833_v27  ;;  %v851_v53 = vsub.f32 1.0, %v850_v41 }
 0x1b6   :  { %v842_v60 = vsel %vm839_vm3, %v841_v33, %v837_v59  ;;  %v865_v26 = vmul.f32 %v5894_v32, %v823_v34  ;;  %vm859_vm7 = vcmp.eq.f32.partialorder %v858_v13, 8.507059e+37  ;;  %v8183_v32 = vld [vmem:[#allocation13_spill] sm:$0xff] }
 0x1b7   :  { %v864_v22 = vmul.f32 %v842_v60, %v6632_v19  ;;  %v852_v54 = vmul.f32 %v5892_v4, %v851_v53 }
 0x1b9   :  { %v6679_v42 = vadd.f32 %v865_v26, %v864_v22  ;;  %v853_v35 = vadd.f32 %v5892_v4, %v852_v54 }
 0x1bb   :  { %5895 = vtanh.f32 %v6679_v42  ;;  %v857_v18 = vsel %vm856_vm6, %v5892_v4, %v853_v35 }
 0x1bc   :  { %v862_v2 = vsel %vm859_vm7, %v861_v44, %v857_v18 }
 0x1c1   :  { %v5896_v58 = vpop.eup %5895 }
 0x1c2   :  { %v868_v15 = vmul.f32 %v5896_v58, %v862_v2  ;;  %v8184_v2 = vld [vmem:[#allocation11_spill] sm:$0xff] }
 0x1c4   :  { %5060 = vst [vmem:[%s8154_s6 + $0x8] sm:$0xff] %v868_v15  ;;  %v878_v19 = vpack.c.bf16 %v868_v15, %v868_v15 }
 0x1c6   :  { %887 = vmatmul.bf16.vlgmr.msrb.gmra.mxu0 %v878_v19  ;;  %900 = vmatmul.bf16.vlgmr.msrb.gmra.mxu1 %v878_v19 }
 0x1c7   :  { %913 = vmatmul.bf16.vlgmr.msrb.gmra.mxu2 %v878_v19  ;;  %926 = vmatmul.bf16.vlgmr.msrb.gmra.mxu3 %v878_v19 }
 0x1c8   :  { %1137 = vmatpush.bf16.msrb.mxu0 %v6362_v38  ;;  %1150 = vmatpush.bf16.msrb.mxu1 %v6364_v43 }
 0x1c9   :  { %1163 = vmatpush.bf16.msrb.mxu2 %v6366_v49  ;;  %1176 = vmatpush.bf16.msrb.mxu3 %v6369_v50 }
 0x1cc   :  { %1138 = vmatpush.bf16.msrb.mxu0 %v6371_v51  ;;  %1151 = vmatpush.bf16.msrb.mxu1 %v6374_v55 }
 0x1cd   :  { %1164 = vmatpush.bf16.msrb.mxu2 %v6377_v61  ;;  %1177 = vmatpush.bf16.msrb.mxu3 %v6381_v62 }
 0x1d0   :  { %1139 = vmatpush.bf16.msrb.mxu0 %v6383_v63  ;;  %1152 = vmatpush.bf16.msrb.mxu1 %v6386_v3 }
 0x1d1   :  { %1165 = vmatpush.bf16.msrb.mxu2 %v6389_v9  ;;  %1178 = vmatpush.bf16.msrb.mxu3 %v6396_v11 }
 0x1d4   :  { %1140 = vmatpush.bf16.msrb.mxu0 %v6398_v12  ;;  %1153 = vmatpush.bf16.msrb.mxu1 %v6401_v16 }
 0x1d5   :  { %1166 = vmatpush.bf16.msrb.mxu2 %v6407_v23  ;;  %1179 = vmatpush.bf16.msrb.mxu3 %v6411_v24 }
 0x1d8   :  { %1141 = vmatpush.bf16.msrb.mxu0 %v6413_v25  ;;  %1154 = vmatpush.bf16.msrb.mxu1 %v6416_v30 }
 0x1d9   :  { %1167 = vmatpush.bf16.msrb.mxu2 %v6419_v36  ;;  %1180 = vmatpush.bf16.msrb.mxu3 %v6423_v37 }
 0x1dc   :  { %1142 = vmatpush.bf16.msrb.mxu0 %v6425_v39  ;;  %1155 = vmatpush.bf16.msrb.mxu1 %v6428_v40 }
 0x1dd   :  { %1168 = vmatpush.bf16.msrb.mxu2 %v6440_v57  ;;  %1181 = vmatpush.bf16.msrb.mxu3 %v6433_v47 }
 0x1e0   :  { %1143 = vmatpush.bf16.msrb.mxu0 %v6435_v48  ;;  %1156 = vmatpush.bf16.msrb.mxu1 %v6438_v56 }
 0x1e1   :  { %1169 = vmatpush.bf16.msrb.mxu2 %v6449_v8  ;;  %1182 = vmatpush.bf16.msrb.mxu3 %v6445_v6 }
 0x1e4   :  { %1144 = vmatpush.bf16.msrb.mxu0 %v6447_v7  ;;  %1157 = vmatpush.bf16.msrb.mxu1 %v6452_v14 }
 0x1e5   :  { %1170 = vmatpush.bf16.msrb.mxu2 %v6461_v20  ;;  %1183 = vmatpush.bf16.msrb.mxu3 %v6465_v21 }
 0x243   :  { %v888_v5 = vpop.f32.mrf.mxu0  ;;  %v901_v29 = vpop.f32.mrf.mxu1 }
 0x244   :  { %v931_v4 = vadd.f32 %v888_v5, %v8181_v31  ;;  %v932_v28 = vadd.f32 %v901_v29, %v8182_v46 }
 0x246   :  { %v5061_v27 = vmul.f32 -1.442695, %v931_v4  ;;  %v5062_v41 = vmul.f32 -1.442695, %v932_v28 }
 0x248   :  { %5897 = vpow2.f32 %v5061_v27 }
 0x249   :  { %5899 = vpow2.f32 %v5062_v41 }
 0x24a   :  { %v914_v33 = vpop.f32.mrf.mxu2  ;;  %v927_v10 = vpop.f32.mrf.mxu3 }
 0x24b   :  { %v934_v34 = vadd.f32 %v927_v10, %v8183_v32  ;;  %v890_v59 = vpop.f32.mrf.mxu0  ;;  %v903_v53 = vpop.f32.mrf.mxu1  ;;  %v933_v15 = vadd.f32 %v914_v33, %v8184_v2 }
 0x24d   :  { %v5063_v60 = vmul.f32 -1.442695, %v934_v34 }
 0x24e   :  { %v5898_v26 = vpop.eup %5897 }
 0x24f   :  { %v5900_v22 = vpop.eup %5899  ;;  %v938_v54 = vadd.f32 1.0, %v5898_v26  ;;  %5901 = vpow2.f32 %v5063_v60 }
 0x250   :  { %v957_v35 = vadd.f32 1.0, %v5900_v22 }
 0x251   :  { %5903 = vrcp.f32 %v938_v54  ;;  %v950_v46 = vand.u32 2147483648, %v938_v54  ;;  %v948_v41 = vand.u32 2147483647, %v938_v54  ;;  %vm944_vm10 = vweird.f32 %v938_v54 }
 0x252   :  { %5905 = vrcp.f32 %v957_v35  ;;  %v916_v17 = vpop.f32.mrf.mxu2  ;;  %v929_v13 = vpop.f32.mrf.mxu3  ;;  %v969_v28 = vand.u32 2147483648, %v957_v35  ;;  %v967_v32 = vand.u32 2147483647, %v957_v35  ;;  %vm963_vm11 = vweird.f32 %v957_v35 }
 0x253   :  { %v951_v33 = vor.u32 1.1754944e-38, %v950_v46  ;;  %vm949_vm14 = vcmp.eq.f32.partialorder %v948_v41, 8.507059e+37 }
 0x254   :  { %v970_v26 = vor.u32 1.1754944e-38, %v969_v28  ;;  %vm968_vm15 = vcmp.eq.f32.partialorder %v967_v32, 8.507059e+37  ;;  %v8186_v32 = vld [vmem:[#allocation14_spill] sm:$0xff] }
 0x255   :  { %v5902_v18 = vpop.eup %5901 }
 0x256   :  { %v977_v44 = vadd.f32 1.0, %v5902_v18 }
 0x257   :  { %v5904_v58 = vpop.eup %5903 }
 0x258   :  { %v5906_v19 = vpop.eup %5905  ;;  %v940_v5 = vmul.f32 %v5904_v58, %v938_v54  ;;  %5907 = vrcp.f32 %v977_v44  ;;  %vm945_vm8 = vweird.f32 %v5904_v58  ;;  %vm983_vm1 = vweird.f32 %v977_v44 }
 0x259   :  { %v959_v29 = vmul.f32 %v5906_v19, %v957_v35  ;;  %5909 = vtanh.f32 %v933_v15  ;;  %vm964_vm9 = vweird.f32 %v5906_v19  ;;  %vm946_vm12 = vmor %vm944_vm10, %vm945_vm8 }
 0x25a   :  { %v941_v31 = vsub.f32 1.0, %v940_v5  ;;  %vm965_vm13 = vmor %vm963_vm11, %vm964_vm9 }
 0x25b   :  { %v960_v4 = vsub.f32 1.0, %v959_v29 }
 0x25c   :  { %v942_v27 = vmul.f32 %v5904_v58, %v941_v31 }
 0x25d   :  { %v961_v10 = vmul.f32 %v5906_v19, %v960_v4  ;;  %v989_v4 = vand.u32 2147483648, %v977_v44 }
 0x25e   :  { %v5908_v34 = vpop.eup %5907  ;;  %v943_v59 = vadd.f32 %v5904_v58, %v942_v27 }
 0x25f   :  { %v962_v53 = vadd.f32 %v5906_v19, %v961_v10  ;;  %v979_v60 = vmul.f32 %v5908_v34, %v977_v44  ;;  %v5910_v17 = vpop.eup %5909  ;;  %vm984_vm0 = vweird.f32 %v5908_v34  ;;  %v990_v28 = vor.u32 1.1754944e-38, %v989_v4 }
 0x260   :  { %v947_v22 = vsel %vm946_vm12, %v5904_v58, %v943_v59  ;;  %v987_v58 = vand.u32 2147483647, %v977_v44  ;;  %vm985_vm2 = vmor %vm983_vm1, %vm984_vm0  ;;  %v8185_v44 = vld [vmem:[#allocation12_spill] sm:$0xff] }
 0x261   :  { %v952_v13 = vsel %vm949_vm14, %v951_v33, %v947_v22  ;;  %v966_v18 = vsel %vm965_vm13, %v5906_v19, %v962_v53  ;;  %v980_v2 = vsub.f32 1.0, %v979_v60  ;;  %v289_v10 = vadd.f32 %v8185_v44, %v6552_v45 }
 0x262   :  { %v971_v15 = vsel %vm968_vm15, %v970_v26, %v966_v18  ;;  %v994_v5 = vmul.f32 %v5910_v17, %v952_v13  ;;  %vm988_vm3 = vcmp.eq.f32.partialorder %v987_v58, 8.507059e+37  ;;  %v8187_v17 = vld [vmem:[#allocation16_spill] sm:$0xff] }
 0x263   :  { %v993_v29 = vmul.f32 %v971_v15, %v6679_v42  ;;  %v981_v31 = vmul.f32 %v5908_v34, %v980_v2  ;;  %v376_v13 = vadd.f32 %v8187_v17, %v6568_v1 }
 0x265   :  { %v6722_v54 = vadd.f32 %v994_v5, %v993_v29  ;;  %v982_v35 = vadd.f32 %v5908_v34, %v981_v31 }
 0x267   :  { %5911 = vtanh.f32 %v6722_v54  ;;  %v986_v46 = vsel %vm985_vm2, %v5908_v34, %v982_v35  ;;  %v318_v34 = vadd.f32 %v8186_v32, %v6556_v52 }
 0x268   :  { %v991_v27 = vsel %vm988_vm3, %v990_v28, %v986_v46 }
 0x26d   :  { %v5912_v19 = vpop.eup %5911 }
 0x26e   :  { %v997_v41 = vmul.f32 %v5912_v19, %v991_v27 }
 0x270   :  { %5064 = vst [vmem:[%s8154_s6 + $0x10] sm:$0xff] %v997_v41  ;;  %v1007_v42 = vpack.c.bf16 %v997_v41, %v997_v41  ;;  %v8188_v41 = vld [vmem:[#allocation15_spill] sm:$0xff] }
 0x272   :  { %1016 = vmatmul.bf16.vlgmr.msra.gmra.mxu0 %v1007_v42  ;;  %1029 = vmatmul.bf16.vlgmr.msra.gmra.mxu1 %v1007_v42 }
 0x273   :  { %1042 = vmatmul.bf16.vlgmr.msra.gmra.mxu2 %v1007_v42  ;;  %1055 = vmatmul.bf16.vlgmr.msra.gmra.mxu3 %v1007_v42  ;;  %v347_v42 = vadd.f32 %v8188_v41, %v6566_v0 }
 0x274   :  { %1266 = vmatpush.bf16.msra.mxu0 %v6362_v38  ;;  %1279 = vmatpush.bf16.msra.mxu1 %v6364_v43 }
 0x275   :  { %1292 = vmatpush.bf16.msra.mxu2 %v6366_v49  ;;  %1305 = vmatpush.bf16.msra.mxu3 %v6369_v50 }
 0x278   :  { %1267 = vmatpush.bf16.msra.mxu0 %v6371_v51  ;;  %1280 = vmatpush.bf16.msra.mxu1 %v6374_v55 }
 0x279   :  { %1293 = vmatpush.bf16.msra.mxu2 %v6377_v61  ;;  %1306 = vmatpush.bf16.msra.mxu3 %v6381_v62 }
 0x27c   :  { %1268 = vmatpush.bf16.msra.mxu0 %v6383_v63  ;;  %1281 = vmatpush.bf16.msra.mxu1 %v6386_v3 }
 0x27d   :  { %1294 = vmatpush.bf16.msra.mxu2 %v6389_v9  ;;  %1307 = vmatpush.bf16.msra.mxu3 %v6396_v11 }
 0x280   :  { %1269 = vmatpush.bf16.msra.mxu0 %v6398_v12  ;;  %1282 = vmatpush.bf16.msra.mxu1 %v6401_v16 }
 0x281   :  { %1295 = vmatpush.bf16.msra.mxu2 %v6407_v23  ;;  %1308 = vmatpush.bf16.msra.mxu3 %v6411_v24 }
 0x284   :  { %1270 = vmatpush.bf16.msra.mxu0 %v6413_v25  ;;  %1283 = vmatpush.bf16.msra.mxu1 %v6416_v30 }
 0x285   :  { %1296 = vmatpush.bf16.msra.mxu2 %v6419_v36  ;;  %1309 = vmatpush.bf16.msra.mxu3 %v6423_v37 }
 0x288   :  { %1271 = vmatpush.bf16.msra.mxu0 %v6425_v39  ;;  %1284 = vmatpush.bf16.msra.mxu1 %v6428_v40 }
 0x289   :  { %1297 = vmatpush.bf16.msra.mxu2 %v6440_v57  ;;  %1310 = vmatpush.bf16.msra.mxu3 %v6433_v47 }
 0x28c   :  { %1272 = vmatpush.bf16.msra.mxu0 %v6435_v48  ;;  %1285 = vmatpush.bf16.msra.mxu1 %v6438_v56 }
 0x28d   :  { %1298 = vmatpush.bf16.msra.mxu2 %v6449_v8  ;;  %1311 = vmatpush.bf16.msra.mxu3 %v6445_v6 }
 0x290   :  { %1273 = vmatpush.bf16.msra.mxu0 %v6447_v7  ;;  %1286 = vmatpush.bf16.msra.mxu1 %v6452_v14 }
 0x291   :  { %1299 = vmatpush.bf16.msra.mxu2 %v6461_v20  ;;  %1312 = vmatpush.bf16.msra.mxu3 %v6465_v21 }
 0x2ef   :  { %v1017_v59 = vpop.f32.mrf.mxu0  ;;  %v1030_v33 = vpop.f32.mrf.mxu1 }
 0x2f0   :  { %v1060_v53 = vadd.f32 %v1017_v59, %v289_v10  ;;  %v1061_v60 = vadd.f32 %v1030_v33, %v318_v34 }
 0x2f2   :  { %v5065_v26 = vmul.f32 -1.442695, %v1060_v53  ;;  %v5066_v22 = vmul.f32 -1.442695, %v1061_v60 }
 0x2f4   :  { %5913 = vpow2.f32 %v5065_v26 }
 0x2f5   :  { %5915 = vpow2.f32 %v5066_v22 }
 0x2f6   :  { %v1043_v18 = vpop.f32.mrf.mxu2  ;;  %v1056_v2 = vpop.f32.mrf.mxu3 }
 0x2f7   :  { %v1063_v15 = vadd.f32 %v1056_v2, %v376_v13  ;;  %v1019_v5 = vpop.f32.mrf.mxu0  ;;  %v1032_v29 = vpop.f32.mrf.mxu1  ;;  %v1062_v32 = vadd.f32 %v1043_v18, %v347_v42 }
 0x2f9   :  { %v5067_v31 = vmul.f32 -1.442695, %v1063_v15 }
 0x2fa   :  { %v5914_v35 = vpop.eup %5913 }
 0x2fb   :  { %v5916_v4 = vpop.eup %5915  ;;  %v1067_v58 = vadd.f32 1.0, %v5914_v35  ;;  %5917 = vpow2.f32 %v5067_v31 }
 0x2fc   :  { %v1086_v46 = vadd.f32 1.0, %v5916_v4 }
 0x2fd   :  { %5919 = vrcp.f32 %v1067_v58  ;;  %v1079_v26 = vand.u32 2147483648, %v1067_v58  ;;  %v1077_v13 = vand.u32 2147483647, %v1067_v58  ;;  %vm1073_vm6 = vweird.f32 %v1067_v58 }
 0x2fe   :  { %5921 = vrcp.f32 %v1086_v46  ;;  %v1045_v28 = vpop.f32.mrf.mxu2  ;;  %v1058_v19 = vpop.f32.mrf.mxu3  ;;  %v1098_v22 = vand.u32 2147483648, %v1086_v46  ;;  %v1096_v15 = vand.u32 2147483647, %v1086_v46  ;;  %vm1092_vm7 = vweird.f32 %v1086_v46 }
 0x2ff   :  { %v1080_v18 = vor.u32 1.1754944e-38, %v1079_v26  ;;  %vm1078_vm10 = vcmp.eq.f32.partialorder %v1077_v13, 8.507059e+37 }
 0x300   :  { %v1099_v4 = vor.u32 1.1754944e-38, %v1098_v22  ;;  %vm1097_vm11 = vcmp.eq.f32.partialorder %v1096_v15, 8.507059e+37  ;;  %v8189_v15 = vld [vmem:[#allocation17_spill] sm:$0xff] }
 0x301   :  { %v5918_v27 = vpop.eup %5917 }
 0x302   :  { %v1106_v44 = vadd.f32 1.0, %v5918_v27 }
 0x303   :  { %v5920_v10 = vpop.eup %5919 }
 0x304   :  { %v5922_v34 = vpop.eup %5921  ;;  %v1069_v59 = vmul.f32 %v5920_v10, %v1067_v58  ;;  %5923 = vrcp.f32 %v1106_v44  ;;  %vm1074_vm4 = vweird.f32 %v5920_v10  ;;  %vm1112_vm13 = vweird.f32 %v1106_v44 }
 0x305   :  { %v1088_v33 = vmul.f32 %v5922_v34, %v1086_v46  ;;  %5925 = vtanh.f32 %v1062_v32  ;;  %vm1093_vm5 = vweird.f32 %v5922_v34  ;;  %vm1075_vm8 = vmor %vm1073_vm6, %vm1074_vm4 }
 0x306   :  { %v1070_v53 = vsub.f32 1.0, %v1069_v59  ;;  %vm1094_vm9 = vmor %vm1092_vm7, %vm1093_vm5 }
 0x307   :  { %v1089_v60 = vsub.f32 1.0, %v1088_v33 }
 0x308   :  { %v1071_v17 = vmul.f32 %v5920_v10, %v1070_v53 }
 0x309   :  { %v1090_v2 = vmul.f32 %v5922_v34, %v1089_v60  ;;  %v1118_v60 = vand.u32 2147483648, %v1106_v44 }
 0x30a   :  { %v5924_v5 = vpop.eup %5923  ;;  %v1072_v29 = vadd.f32 %v5920_v10, %v1071_v17 }
 0x30b   :  { %v1091_v31 = vadd.f32 %v5922_v34, %v1090_v2  ;;  %v1108_v35 = vmul.f32 %v5924_v5, %v1106_v44  ;;  %v5926_v19 = vpop.eup %5925  ;;  %vm1113_vm12 = vweird.f32 %v5924_v5  ;;  %v1119_v22 = vor.u32 1.1754944e-38, %v1118_v60 }
 0x30c   :  { %v1076_v28 = vsel %vm1075_vm8, %v5920_v10, %v1072_v29  ;;  %v1116_v10 = vand.u32 2147483647, %v1106_v44  ;;  %vm1114_vm14 = vmor %vm1112_vm13, %vm1113_vm12  ;;  %v8190_v29 = vld [vmem:[#allocation18_spill] sm:$0xff] }
 0x30d   :  { %v1081_v27 = vsel %vm1078_vm10, %v1080_v18, %v1076_v28  ;;  %v1095_v41 = vsel %vm1094_vm9, %v5922_v34, %v1091_v31  ;;  %v1109_v42 = vsub.f32 1.0, %v1108_v35 }
 0x30e   :  { %v1100_v32 = vsel %vm1097_vm11, %v1099_v4, %v1095_v41  ;;  %v1123_v59 = vmul.f32 %v5926_v19, %v1081_v27  ;;  %vm1117_vm15 = vcmp.eq.f32.partialorder %v1116_v10, 8.507059e+37  ;;  %v8191_v19 = vld [vmem:[#allocation21_spill] sm:$0xff] }
 0x30f   :  { %v1122_v33 = vmul.f32 %v1100_v32, %v6722_v54  ;;  %v1110_v53 = vmul.f32 %v5924_v5, %v1109_v42 }
 0x311   :  { %v6769_v58 = vadd.f32 %v1123_v59, %v1122_v33  ;;  %v1111_v46 = vadd.f32 %v5924_v5, %v1110_v53 }
 0x313   :  { %5927 = vtanh.f32 %v6769_v58  ;;  %v1115_v26 = vsel %vm1114_vm14, %v5924_v5, %v1111_v46 }
 0x314   :  { %v1120_v17 = vsel %vm1117_vm15, %v1119_v22, %v1115_v26 }
 0x319   :  { %v5928_v34 = vpop.eup %5927 }
 0x31a   :  { %v6772_v13 = vmul.f32 %v5928_v34, %v1120_v17  ;;  %v8192_v17 = vld [vmem:[#allocation19_spill] sm:$0xff] }
 0x31c   :  { %v1136_v54 = vpack.c.bf16 %v6772_v13, %v6772_v13 }
 0x31e   :  { %1145 = vmatmul.bf16.vlgmr.msrb.gmra.mxu0 %v1136_v54  ;;  %1158 = vmatmul.bf16.vlgmr.msrb.gmra.mxu1 %v1136_v54 }
 0x31f   :  { %1171 = vmatmul.bf16.vlgmr.msrb.gmra.mxu2 %v1136_v54  ;;  %1184 = vmatmul.bf16.vlgmr.msrb.gmra.mxu3 %v1136_v54 }
 0x320   :  { %1395 = vmatpush.bf16.msrb.mxu0 %v6362_v38  ;;  %1408 = vmatpush.bf16.msrb.mxu1 %v6364_v43 }
 0x321   :  { %1421 = vmatpush.bf16.msrb.mxu2 %v6366_v49  ;;  %1434 = vmatpush.bf16.msrb.mxu3 %v6369_v50 }
 0x324   :  { %1396 = vmatpush.bf16.msrb.mxu0 %v6371_v51  ;;  %1409 = vmatpush.bf16.msrb.mxu1 %v6374_v55 }
 0x325   :  { %1422 = vmatpush.bf16.msrb.mxu2 %v6377_v61  ;;  %1435 = vmatpush.bf16.msrb.mxu3 %v6381_v62 }
 0x328   :  { %1397 = vmatpush.bf16.msrb.mxu0 %v6383_v63  ;;  %1410 = vmatpush.bf16.msrb.mxu1 %v6386_v3 }
 0x329   :  { %1423 = vmatpush.bf16.msrb.mxu2 %v6389_v9  ;;  %1436 = vmatpush.bf16.msrb.mxu3 %v6396_v11 }
 0x32c   :  { %1398 = vmatpush.bf16.msrb.mxu0 %v6398_v12  ;;  %1411 = vmatpush.bf16.msrb.mxu1 %v6401_v16 }
 0x32d   :  { %1424 = vmatpush.bf16.msrb.mxu2 %v6407_v23  ;;  %1437 = vmatpush.bf16.msrb.mxu3 %v6411_v24 }
 0x330   :  { %1399 = vmatpush.bf16.msrb.mxu0 %v6413_v25  ;;  %1412 = vmatpush.bf16.msrb.mxu1 %v6416_v30 }
 0x331   :  { %1425 = vmatpush.bf16.msrb.mxu2 %v6419_v36  ;;  %1438 = vmatpush.bf16.msrb.mxu3 %v6423_v37 }
 0x334   :  { %1400 = vmatpush.bf16.msrb.mxu0 %v6425_v39  ;;  %1413 = vmatpush.bf16.msrb.mxu1 %v6428_v40 }
 0x335   :  { %1426 = vmatpush.bf16.msrb.mxu2 %v6440_v57  ;;  %1439 = vmatpush.bf16.msrb.mxu3 %v6433_v47 }
 0x338   :  { %1401 = vmatpush.bf16.msrb.mxu0 %v6435_v48  ;;  %1414 = vmatpush.bf16.msrb.mxu1 %v6438_v56 }
 0x339   :  { %1427 = vmatpush.bf16.msrb.mxu2 %v6449_v8  ;;  %1440 = vmatpush.bf16.msrb.mxu3 %v6445_v6 }
 0x33c   :  { %1402 = vmatpush.bf16.msrb.mxu0 %v6447_v7  ;;  %1415 = vmatpush.bf16.msrb.mxu1 %v6452_v14 }
 0x33d   :  { %1428 = vmatpush.bf16.msrb.mxu2 %v6461_v20  ;;  %1441 = vmatpush.bf16.msrb.mxu3 %v6465_v21 }
 0x39b   :  { %v1146_v44 = vpop.f32.mrf.mxu0  ;;  %v1159_v2 = vpop.f32.mrf.mxu1 }
 0x39c   :  { %v1189_v5 = vadd.f32 %v1146_v44, %v8189_v15  ;;  %v1190_v18 = vadd.f32 %v1159_v2, %v8190_v29 }
 0x39e   :  { %v5069_v31 = vmul.f32 -1.442695, %v1189_v5  ;;  %v5070_v35 = vmul.f32 -1.442695, %v1190_v18 }
 0x3a0   :  { %5929 = vpow2.f32 %v5069_v31 }
 0x3a1   :  { %5931 = vpow2.f32 %v5070_v35 }
 0x3a2   :  { %v1172_v4 = vpop.f32.mrf.mxu2  ;;  %v1185_v28 = vpop.f32.mrf.mxu3 }
 0x3a3   :  { %v1192_v27 = vadd.f32 %v1185_v28, %v8191_v19  ;;  %v1148_v41 = vpop.f32.mrf.mxu0  ;;  %v1161_v42 = vpop.f32.mrf.mxu1  ;;  %v1191_v54 = vadd.f32 %v1172_v4, %v8192_v17 }
 0x3a5   :  { %v5071_v32 = vmul.f32 -1.442695, %v1192_v27 }
 0x3a6   :  { %v5930_v59 = vpop.eup %5929 }
 0x3a7   :  { %v5932_v33 = vpop.eup %5931  ;;  %v1196_v53 = vadd.f32 1.0, %v5930_v59  ;;  %5933 = vpow2.f32 %v5071_v32 }
 0x3a8   :  { %v1215_v46 = vadd.f32 1.0, %v5932_v33 }
 0x3a9   :  { %5935 = vrcp.f32 %v1196_v53  ;;  %v1208_v18 = vand.u32 2147483648, %v1196_v53  ;;  %v1206_v28 = vand.u32 2147483647, %v1196_v53  ;;  %vm1202_vm2 = vweird.f32 %v1196_v53 }
 0x3aa   :  { %5937 = vrcp.f32 %v1215_v46  ;;  %v1174_v60 = vpop.f32.mrf.mxu2  ;;  %v1187_v10 = vpop.f32.mrf.mxu3  ;;  %v1227_v31 = vand.u32 2147483648, %v1215_v46  ;;  %v1225_v27 = vand.u32 2147483647, %v1215_v46  ;;  %vm1221_vm3 = vweird.f32 %v1215_v46 }
 0x3ab   :  { %v1209_v4 = vor.u32 1.1754944e-38, %v1208_v18  ;;  %vm1207_vm6 = vcmp.eq.f32.partialorder %v1206_v28, 8.507059e+37 }
 0x3ac   :  { %v1228_v33 = vor.u32 1.1754944e-38, %v1227_v31  ;;  %vm1226_vm7 = vcmp.eq.f32.partialorder %v1225_v27, 8.507059e+37 }
 0x3ad   :  { %v5934_v26 = vpop.eup %5933 }
 0x3ae   :  { %v1235_v22 = vadd.f32 1.0, %v5934_v26 }
 0x3af   :  { %v5936_v34 = vpop.eup %5935 }
 0x3b0   :  { %v5938_v44 = vpop.eup %5937  ;;  %v1198_v2 = vmul.f32 %v5936_v34, %v1196_v53  ;;  %5939 = vrcp.f32 %v1235_v22  ;;  %vm1203_vm0 = vweird.f32 %v5936_v34  ;;  %v1247_v18 = vand.u32 2147483648, %v1235_v22 }
 0x3b1   :  { %v1217_v15 = vmul.f32 %v5938_v44, %v1215_v46  ;;  %5941 = vtanh.f32 %v1191_v54  ;;  %vm1222_vm1 = vweird.f32 %v5938_v44  ;;  %vm1204_vm4 = vmor %vm1202_vm2, %vm1203_vm0  ;;  %vm1241_vm9 = vweird.f32 %v1235_v22 }
 0x3b2   :  { %v1199_v5 = vsub.f32 1.0, %v1198_v2  ;;  %vm1223_vm5 = vmor %vm1221_vm3, %vm1222_vm1 }
 0x3b3   :  { %v1218_v29 = vsub.f32 1.0, %v1217_v15 }
 0x3b4   :  { %v1200_v35 = vmul.f32 %v5936_v34, %v1199_v5 }
 0x3b5   :  { %v1219_v19 = vmul.f32 %v5938_v44, %v1218_v29 }
 0x3b6   :  { %v5940_v41 = vpop.eup %5939  ;;  %v1201_v42 = vadd.f32 %v5936_v34, %v1200_v35  ;;  %v1248_v35 = vor.u32 1.1754944e-38, %v1247_v18 }
 0x3b7   :  { %v1220_v32 = vadd.f32 %v5938_v44, %v1219_v19  ;;  %v1237_v59 = vmul.f32 %v5940_v41, %v1235_v22  ;;  %v5942_v10 = vpop.eup %5941  ;;  %vm1242_vm8 = vweird.f32 %v5940_v41 }
 0x3b8   :  { %v1205_v60 = vsel %vm1204_vm4, %v5936_v34, %v1201_v42  ;;  %v1245_v34 = vand.u32 2147483647, %v1235_v22  ;;  %vm1243_vm10 = vmor %vm1241_vm9, %vm1242_vm8 }
 0x3b9   :  { %v1210_v26 = vsel %vm1207_vm6, %v1209_v4, %v1205_v60  ;;  %v1224_v17 = vsel %vm1223_vm5, %v5938_v44, %v1220_v32  ;;  %v1238_v54 = vsub.f32 1.0, %v1237_v59 }
 0x3ba   :  { %v1229_v2 = vsel %vm1226_vm7, %v1228_v33, %v1224_v17  ;;  %v1252_v15 = vmul.f32 %v5942_v10, %v1210_v26  ;;  %vm1246_vm11 = vcmp.eq.f32.partialorder %v1245_v34, 8.507059e+37 }
 0x3bb   :  { %v1251_v5 = vmul.f32 %v1229_v2, %v6769_v58  ;;  %v1239_v29 = vmul.f32 %v5940_v41, %v1238_v54 }
 0x3bd   :  { %v6813_v53 = vadd.f32 %v1252_v15, %v1251_v5  ;;  %v1240_v46 = vadd.f32 %v5940_v41, %v1239_v29 }
 0x3bf   :  { %5943 = vtanh.f32 %v6813_v53  ;;  %v1244_v31 = vsel %vm1243_vm10, %v5940_v41, %v1240_v46 }
 0x3c0   :  { %v1249_v28 = vsel %vm1246_vm11, %v1248_v35, %v1244_v31 }
 0x3c5   :  { %v5944_v44 = vpop.eup %5943 }
 0x3c6   :  { %v6816_v19 = vmul.f32 %v5944_v44, %v1249_v28 }
 0x3c8   :  { %v1265_v58 = vpack.c.bf16 %v6816_v19, %v6816_v19 }
 0x3ca   :  { %1274 = vmatmul.bf16.vlgmr.msra.gmra.mxu0 %v1265_v58  ;;  %1287 = vmatmul.bf16.vlgmr.msra.gmra.mxu1 %v1265_v58 }
 0x3cb   :  { %1300 = vmatmul.bf16.vlgmr.msra.gmra.mxu2 %v1265_v58  ;;  %1313 = vmatmul.bf16.vlgmr.msra.gmra.mxu3 %v1265_v58 }
 0x3cc   :  { %1524 = vmatpush.bf16.msra.mxu0 %v6362_v38  ;;  %1537 = vmatpush.bf16.msra.mxu1 %v6364_v43  ;;  %v8193_v38 = vld [vmem:[#allocation20_spill] sm:$0xff] }
 0x3cd   :  { %1550 = vmatpush.bf16.msra.mxu2 %v6366_v49  ;;  %1563 = vmatpush.bf16.msra.mxu3 %v6369_v50  ;;  %v294_v43 = vadd.f32 %v8193_v38, %v6552_v45  ;;  %v8194_v49 = vld [vmem:[#allocation22_spill] sm:$0xff] }
 0x3ce   :  { %v323_v50 = vadd.f32 %v8194_v49, %v6556_v52 }
 0x3d0   :  { %1525 = vmatpush.bf16.msra.mxu0 %v6371_v51  ;;  %1538 = vmatpush.bf16.msra.mxu1 %v6374_v55 }
 0x3d1   :  { %1551 = vmatpush.bf16.msra.mxu2 %v6377_v61  ;;  %1564 = vmatpush.bf16.msra.mxu3 %v6381_v62 }
 0x3d4   :  { %1526 = vmatpush.bf16.msra.mxu0 %v6383_v63  ;;  %1539 = vmatpush.bf16.msra.mxu1 %v6386_v3 }
 0x3d5   :  { %1552 = vmatpush.bf16.msra.mxu2 %v6389_v9  ;;  %1565 = vmatpush.bf16.msra.mxu3 %v6396_v11  ;;  %v8195_v9 = vld [vmem:[#allocation24_spill] sm:$0xff] }
 0x3d6   :  { %v381_v11 = vadd.f32 %v8195_v9, %v6568_v1  ;;  %v5761_v9 = vld [vmem:[#allocation3 + $0x1e4] sm:$0xf] }
 0x3d8   :  { %1527 = vmatpush.bf16.msra.mxu0 %v6398_v12  ;;  %1540 = vmatpush.bf16.msra.mxu1 %v6401_v16 }
 0x3d9   :  { %1553 = vmatpush.bf16.msra.mxu2 %v6407_v23  ;;  %1566 = vmatpush.bf16.msra.mxu3 %v6411_v24 }
 0x3dc   :  { %1528 = vmatpush.bf16.msra.mxu0 %v6413_v25  ;;  %1541 = vmatpush.bf16.msra.mxu1 %v6416_v30 }
 0x3dd   :  { %1554 = vmatpush.bf16.msra.mxu2 %v6419_v36  ;;  %1567 = vmatpush.bf16.msra.mxu3 %v6423_v37 }
 0x3e0   :  { %1529 = vmatpush.bf16.msra.mxu0 %v6425_v39  ;;  %1542 = vmatpush.bf16.msra.mxu1 %v6428_v40 }
 0x3e1   :  { %1555 = vmatpush.bf16.msra.mxu2 %v6440_v57  ;;  %1568 = vmatpush.bf16.msra.mxu3 %v6433_v47  ;;  %v8196_v57 = vld [vmem:[#allocation23_spill] sm:$0xff] }
 0x3e4   :  { %1530 = vmatpush.bf16.msra.mxu0 %v6435_v48  ;;  %1543 = vmatpush.bf16.msra.mxu1 %v6438_v56 }
 0x3e5   :  { %1556 = vmatpush.bf16.msra.mxu2 %v6449_v8  ;;  %1569 = vmatpush.bf16.msra.mxu3 %v6445_v6  ;;  %v352_v6 = vadd.f32 %v8196_v57, %v6566_v0 }
 0x3e8   :  { %1531 = vmatpush.bf16.msra.mxu0 %v6447_v7  ;;  %1544 = vmatpush.bf16.msra.mxu1 %v6452_v14 }
 0x3e9   :  { %1557 = vmatpush.bf16.msra.mxu2 %v6461_v20  ;;  %1570 = vmatpush.bf16.msra.mxu3 %v6465_v21 }
 0x447   :  { %v1275_v51 = vpop.f32.mrf.mxu0  ;;  %v1288_v55 = vpop.f32.mrf.mxu1 }
 0x448   :  { %v1318_v61 = vadd.f32 %v1275_v51, %v294_v43  ;;  %v1319_v62 = vadd.f32 %v1288_v55, %v323_v50 }
 0x44a   :  { %v5073_v63 = vmul.f32 -1.442695, %v1318_v61  ;;  %v5074_v3 = vmul.f32 -1.442695, %v1319_v62 }
 0x44c   :  { %5945 = vpow2.f32 %v5073_v63  ;;  %v5200_v63 = vld [vmem:[#allocation3 + $0x1e0] sm:$0xf] }
 0x44d   :  { %5947 = vpow2.f32 %v5074_v3  ;;  %v5763_v3 = vld [vmem:[#allocation3 + $0x1ec] sm:$0xf0] }
 0x44e   :  { %v1301_v12 = vpop.f32.mrf.mxu2  ;;  %v1314_v16 = vpop.f32.mrf.mxu3 }
 0x44f   :  { %v1321_v23 = vadd.f32 %v1314_v16, %v381_v11  ;;  %v1277_v24 = vpop.f32.mrf.mxu0  ;;  %v1290_v25 = vpop.f32.mrf.mxu1  ;;  %v1320_v14 = vadd.f32 %v1301_v12, %v352_v6  ;;  %v5201_v11 = vor.u32 %v5763_v3, %v5200_v63  ;;  %v5202_v12 = vld [vmem:[#allocation3 + $0x1f0] sm:$0xf0]  ;;  %v5208_v16 = vld [vmem:[#allocation3 + $0x1e8] sm:$0xf]  ;;  %v5184_v6 = vld [vmem:[#allocation3 + $0x1c0] sm:$0xf] }
 0x450   :  { %v5205_v24 = vor.u32 %v5761_v9, %v5202_v12  ;;  %v5752_v63 = vld [vmem:[#allocation3 + $0x194] sm:$0xf0]  ;;  %v5162_v12 = vld [vmem:[#allocation3 + $0x198] sm:$0xf0] }
 0x451   :  { %v5075_v30 = vmul.f32 -1.442695, %v1321_v23  ;;  %v5764_v23 = vld [vmem:[#allocation3 + $0x1f4] sm:$0xf0] }
 0x452   :  { %v5946_v36 = vpop.eup %5945  ;;  %v5209_v25 = vor.u32 %v5764_v23, %v5208_v16 }
 0x453   :  { %v5948_v37 = vpop.eup %5947  ;;  %v1325_v39 = vadd.f32 1.0, %v5946_v36  ;;  %5949 = vpow2.f32 %v5075_v30  ;;  %v5762_v30 = vld [vmem:[#allocation3 + $0x1ec] sm:$0xf]  ;;  %v5210_v36 = vld [vmem:[#allocation3 + $0x1f8] sm:$0xf0] }
 0x454   :  { %v1344_v40 = vadd.f32 1.0, %v5948_v37 }
 0x455   :  { %5951 = vrcp.f32 %v1325_v39  ;;  %v1337_v42 = vand.u32 2147483648, %v1325_v39  ;;  %v1335_v59 = vand.u32 2147483647, %v1325_v39  ;;  %vm1331_vm14 = vweird.f32 %v1325_v39 }
 0x456   :  { %5953 = vrcp.f32 %v1344_v40  ;;  %v1303_v47 = vpop.f32.mrf.mxu2  ;;  %v1316_v48 = vpop.f32.mrf.mxu3  ;;  %v1356_v4 = vand.u32 2147483648, %v1344_v40  ;;  %v1354_v60 = vand.u32 2147483647, %v1344_v40  ;;  %vm1350_vm15 = vweird.f32 %v1344_v40 }
 0x457   :  { %v1338_v17 = vor.u32 1.1754944e-38, %v1337_v42  ;;  %vm1336_vm2 = vcmp.eq.f32.partialorder %v1335_v59, 8.507059e+37  ;;  %v8197_v47 = vld [vmem:[#allocation25_spill] sm:$0xff]  ;;  %v5194_v59 = vld [vmem:[#allocation3 + $0x1d8] sm:$0xf0] }
 0x458   :  { %v1357_v15 = vor.u32 1.1754944e-38, %v1356_v4  ;;  %vm1355_vm3 = vcmp.eq.f32.partialorder %v1354_v60, 8.507059e+37  ;;  %v5755_v60 = vld [vmem:[#allocation3 + $0x1ac] sm:$0xf0] }
 0x459   :  { %v5950_v56 = vpop.eup %5949 }
 0x45a   :  { %v1364_v7 = vadd.f32 1.0, %v5950_v56  ;;  %v8198_v56 = vld [vmem:[#allocation26_spill] sm:$0xff] }
 0x45b   :  { %v5952_v8 = vpop.eup %5951 }
 0x45c   :  { %v5954_v20 = vpop.eup %5953  ;;  %v1327_v21 = vmul.f32 %v5952_v8, %v1325_v39  ;;  %5955 = vrcp.f32 %v1364_v7  ;;  %vm1332_vm12 = vweird.f32 %v5952_v8  ;;  %v1376_v43 = vand.u32 2147483648, %v1364_v7 }
 0x45d   :  { %v1346_v22 = vmul.f32 %v5954_v20, %v1344_v40  ;;  %5957 = vtanh.f32 %v1320_v14  ;;  %vm1351_vm13 = vweird.f32 %v5954_v20  ;;  %vm1333_vm0 = vmor %vm1331_vm14, %vm1332_vm12  ;;  %vm1370_vm5 = vweird.f32 %v1364_v7 }
 0x45e   :  { %v1328_v27 = vsub.f32 1.0, %v1327_v21  ;;  %vm1352_vm1 = vmor %vm1350_vm15, %vm1351_vm13  ;;  %v1374_v49 = vand.u32 2147483647, %v1364_v7  ;;  %v1377_v51 = vor.u32 1.1754944e-38, %v1376_v43  ;;  %v5213_v40 = vor.u32 %v5762_v30, %v5210_v36  ;;  %v5192_v21 = vld [vmem:[#allocation3 + $0x1c8] sm:$0xf] }
 0x45f   :  { %v1347_v41 = vsub.f32 1.0, %v1346_v22  ;;  %v5760_v22 = vld [vmem:[#allocation3 + $0x1d4] sm:$0xf0]  ;;  %v8199_v43 = vld [vmem:[#allocation29_spill] sm:$0xff] }
 0x460   :  { %v1329_v32 = vmul.f32 %v5952_v8, %v1328_v27  ;;  %vm1375_vm7 = vcmp.eq.f32.partialorder %v1374_v49, 8.507059e+37  ;;  %v5193_v4 = vor.u32 %v5760_v22, %v5192_v21  ;;  %v8200_v21 = vld [vmem:[#allocation27_spill] sm:$0xff] }
 0x461   :  { %v1348_v33 = vmul.f32 %v5954_v20, %v1347_v41 }
 0x462   :  { %v5956_v10 = vpop.eup %5955  ;;  %v1330_v26 = vadd.f32 %v5952_v8, %v1329_v32  ;;  %v5758_v32 = vld [vmem:[#allocation3 + $0x1cc] sm:$0xf] }
 0x463   :  { %v1349_v54 = vadd.f32 %v5954_v20, %v1348_v33  ;;  %v1366_v2 = vmul.f32 %v5956_v10, %v1364_v7  ;;  %v5958_v29 = vpop.eup %5957  ;;  %vm1371_vm4 = vweird.f32 %v5956_v10  ;;  %v5759_v7 = vld [vmem:[#allocation3 + $0x1cc] sm:$0xf0]  ;;  %v5168_v33 = vld [vmem:[#allocation3 + $0x1a0] sm:$0xf] }
 0x464   :  { %v1334_v5 = vsel %vm1333_vm0, %v5952_v8, %v1330_v26  ;;  %vm1372_vm6 = vmor %vm1370_vm5, %vm1371_vm4  ;;  %v5757_v8 = vld [vmem:[#allocation3 + $0x1c4] sm:$0xf]  ;;  %v5185_v14 = vor.u32 %v5759_v7, %v5184_v6  ;;  %v5169_v26 = vor.u32 %v5755_v60, %v5168_v33  ;;  %v5743_v33 = vld [vmem:[#allocation3 + $0x14c] sm:$0xf0] }
 0x465   :  { %v1339_v46 = vsel %vm1336_vm2, %v1338_v17, %v1334_v5  ;;  %v1353_v18 = vsel %vm1352_vm1, %v5954_v20, %v1349_v54  ;;  %v1367_v34 = vsub.f32 1.0, %v1366_v2  ;;  %v5186_v20 = vld [vmem:[#allocation3 + $0x1d0] sm:$0xf0]  ;;  %v5753_v17 = vld [vmem:[#allocation3 + $0x1a4] sm:$0xf] }
 0x466   :  { %v1358_v31 = vsel %vm1355_vm3, %v1357_v15, %v1353_v18  ;;  %v1381_v35 = vmul.f32 %v5958_v29, %v1339_v46  ;;  %v5189_v42 = vor.u32 %v5757_v8, %v5186_v20  ;;  %v5170_v54 = vld [vmem:[#allocation3 + $0x1b0] sm:$0xf0]  ;;  %v5176_v2 = vld [vmem:[#allocation3 + $0x1a8] sm:$0xf]  ;;  %v5756_v5 = vld [vmem:[#allocation3 + $0x1b4] sm:$0xf0] }
 0x467   :  { %v1380_v44 = vmul.f32 %v1358_v31, %v6813_v53  ;;  %v1368_v28 = vmul.f32 %v5956_v10, %v1367_v34  ;;  %v5173_v15 = vor.u32 %v5753_v17, %v5170_v54  ;;  %v5754_v29 = vld [vmem:[#allocation3 + $0x1ac] sm:$0xf]  ;;  %v5178_v46 = vld [vmem:[#allocation3 + $0x1b8] sm:$0xf0]  ;;  %v5177_v31 = vor.u32 %v5756_v5, %v5176_v2  ;;  %v5144_v8 = vld [vmem:[#allocation3 + $0x168] sm:$0xf] }
 0x468   :  { %v5741_v60 = vld [vmem:[#allocation3 + $0x144] sm:$0xf]  ;;  %v5122_v17 = vld [vmem:[#allocation3 + $0x150] sm:$0xf0]  ;;  %v5128_v54 = vld [vmem:[#allocation3 + $0x148] sm:$0xf] }
 0x469   :  { %v6861_v58 = vadd.f32 %v1381_v35, %v1380_v44  ;;  %v1369_v38 = vadd.f32 %v5956_v10, %v1368_v28  ;;  %v5181_v35 = vor.u32 %v5754_v29, %v5178_v46  ;;  %v5152_v44 = vld [vmem:[#allocation3 + $0x180] sm:$0xf]  ;;  %v5751_v28 = vld [vmem:[#allocation3 + $0x18c] sm:$0xf0]  ;;  %v5744_v2 = vld [vmem:[#allocation3 + $0x154] sm:$0xf0] }
 0x46a   :  { %v5742_v29 = vld [vmem:[#allocation3 + $0x14c] sm:$0xf]  ;;  %v5130_v46 = vld [vmem:[#allocation3 + $0x158] sm:$0xf0] }
 0x46b   :  { %5959 = vtanh.f32 %v6861_v58  ;;  %v1373_v50 = vsel %vm1372_vm6, %v5956_v10, %v1369_v38  ;;  %v5197_v10 = vor.u32 %v5758_v32, %v5194_v59  ;;  %v5749_v38 = vld [vmem:[#allocation3 + $0x184] sm:$0xf] }
 0x46c   :  { %v1378_v61 = vsel %vm1375_vm7, %v1377_v51, %v1373_v50 }
 0x471   :  { %v5960_v55 = vpop.eup %5959 }
 0x472   :  { %v6864_v62 = vmul.f32 %v5960_v55, %v1378_v61  ;;  %v5153_v55 = vor.u32 %v5751_v28, %v5152_v44  ;;  %v5154_v61 = vld [vmem:[#allocation3 + $0x190] sm:$0xf0]  ;;  %v5739_v44 = vld [vmem:[#allocation3 + $0x12c] sm:$0xf0] }
 0x473   :  { %v5157_v3 = vor.u32 %v5749_v38, %v5154_v61  ;;  %v5125_v38 = vor.u32 %v5741_v60, %v5122_v17  ;;  %v5793_v61 = vld [vmem:[#allocation5 + $0x1e4] sm:$0xf] }
 0x474   :  { %v1394_v53 = vpack.c.bf16 %v6864_v62, %v6864_v62 }
 0x476   :  { %1403 = vmatmul.bf16.vlgmr.msrb.gmra.mxu0 %v1394_v53  ;;  %1416 = vmatmul.bf16.vlgmr.msrb.gmra.mxu1 %v1394_v53 }
 0x477   :  { %1429 = vmatmul.bf16.vlgmr.msrb.gmra.mxu2 %v1394_v53  ;;  %1442 = vmatmul.bf16.vlgmr.msrb.gmra.mxu3 %v1394_v53  ;;  %v5160_v53 = vld [vmem:[#allocation3 + $0x188] sm:$0xf] }
 0x478   :  { %1863 = vmatpush.bf16.msrb.mxu0 %v5201_v11  ;;  %1892 = vmatpush.bf16.msrb.mxu1 %v5205_v24  ;;  %v5161_v9 = vor.u32 %v5752_v63, %v5160_v53  ;;  %v5750_v11 = vld [vmem:[#allocation3 + $0x18c] sm:$0xf] }
 0x479   :  { %1921 = vmatpush.bf16.msrb.mxu2 %v5209_v25  ;;  %1950 = vmatpush.bf16.msrb.mxu3 %v5213_v40  ;;  %v5165_v24 = vor.u32 %v5750_v11, %v5162_v12  ;;  %v5740_v12 = vld [vmem:[#allocation3 + $0x134] sm:$0xf0] }
 0x47c   :  { %1864 = vmatpush.bf16.msrb.mxu0 %v5185_v14  ;;  %1893 = vmatpush.bf16.msrb.mxu1 %v5189_v42  ;;  %v5748_v14 = vld [vmem:[#allocation3 + $0x174] sm:$0xf0]  ;;  %v5146_v42 = vld [vmem:[#allocation3 + $0x178] sm:$0xf0] }
 0x47d   :  { %1922 = vmatpush.bf16.msrb.mxu2 %v5193_v4  ;;  %1951 = vmatpush.bf16.msrb.mxu3 %v5197_v10  ;;  %v5120_v4 = vld [vmem:[#allocation3 + $0x140] sm:$0xf] }
 0x480   :  { %1865 = vmatpush.bf16.msrb.mxu0 %v5169_v26  ;;  %1894 = vmatpush.bf16.msrb.mxu1 %v5173_v15  ;;  %v5121_v26 = vor.u32 %v5743_v33, %v5120_v4 }
 0x481   :  { %1923 = vmatpush.bf16.msrb.mxu2 %v5177_v31  ;;  %1952 = vmatpush.bf16.msrb.mxu3 %v5181_v35 }
 0x484   :  { %1866 = vmatpush.bf16.msrb.mxu0 %v5153_v55  ;;  %1895 = vmatpush.bf16.msrb.mxu1 %v5157_v3  ;;  %v5112_v3 = vld [vmem:[#allocation3 + $0x128] sm:$0xf] }
 0x485   :  { %1924 = vmatpush.bf16.msrb.mxu2 %v5161_v9  ;;  %1953 = vmatpush.bf16.msrb.mxu3 %v5165_v24 }
 0x4f3   :  { %v1404_v37 = vpop.f32.mrf.mxu0  ;;  %v1417_v39 = vpop.f32.mrf.mxu1 }
 0x4f4   :  { %v1447_v48 = vadd.f32 %v1404_v37, %v8197_v47  ;;  %v1448_v57 = vadd.f32 %v1417_v39, %v8198_v56  ;;  %v5136_v37 = vld [vmem:[#allocation3 + $0x160] sm:$0xf]  ;;  %v5747_v47 = vld [vmem:[#allocation3 + $0x16c] sm:$0xf0]  ;;  %v5745_v56 = vld [vmem:[#allocation3 + $0x164] sm:$0xf] }
 0x4f6   :  { %v5077_v27 = vmul.f32 -1.442695, %v1447_v48  ;;  %v5078_v41 = vmul.f32 -1.442695, %v1448_v57  ;;  %v5137_v48 = vor.u32 %v5747_v47, %v5136_v37  ;;  %v5138_v57 = vld [vmem:[#allocation3 + $0x170] sm:$0xf0] }
 0x4f7   :  { %v5141_v7 = vor.u32 %v5745_v56, %v5138_v57  ;;  %v5733_v47 = vld [vmem:[#allocation3 + $0x104] sm:$0xf] }
 0x4f8   :  { %5961 = vpow2.f32 %v5077_v27  ;;  %1867 = vmatpush.bf16.msrb.mxu0 %v5137_v48  ;;  %v5145_v27 = vor.u32 %v5748_v14, %v5144_v8  ;;  %v5736_v8 = vld [vmem:[#allocation3 + $0x114] sm:$0xf0] }
 0x4f9   :  { %5963 = vpow2.f32 %v5078_v41  ;;  %v5746_v41 = vld [vmem:[#allocation3 + $0x16c] sm:$0xf]  ;;  %1896 = vmatpush.bf16.msrb.mxu1 %v5141_v7  ;;  %v5096_v7 = vld [vmem:[#allocation3 + $0x108] sm:$0xf] }
 0x4fa   :  { %v1430_v18 = vpop.f32.mrf.mxu2  ;;  %v1443_v34 = vpop.f32.mrf.mxu3  ;;  %v5149_v59 = vor.u32 %v5746_v41, %v5146_v42  ;;  %1925 = vmatpush.bf16.msrb.mxu2 %v5145_v27  ;;  %v5734_v41 = vld [vmem:[#allocation3 + $0x10c] sm:$0xf]  ;;  %v5098_v42 = vld [vmem:[#allocation3 + $0x118] sm:$0xf0] }
 0x4fb   :  { %v1450_v49 = vadd.f32 %v1443_v34, %v8199_v43  ;;  %v1406_v50 = vpop.f32.mrf.mxu0  ;;  %v1419_v51 = vpop.f32.mrf.mxu1  ;;  %v1449_v22 = vadd.f32 %v1430_v18, %v8200_v21  ;;  %v5104_v18 = vld [vmem:[#allocation3 + $0x120] sm:$0xf]  ;;  %v5129_v43 = vor.u32 %v5744_v2, %v5128_v54  ;;  %v5101_v17 = vor.u32 %v5734_v41, %v5098_v42  ;;  %v8205_v41 = vld [vmem:[#allocation32_spill] sm:$0xff] }
 0x4fc   :  { %1954 = vmatpush.bf16.msrb.mxu3 %v5149_v59  ;;  %1868 = vmatpush.bf16.msrb.mxu0 %v5121_v26  ;;  %v5737_v50 = vld [vmem:[#allocation3 + $0x124] sm:$0xf]  ;;  %v5106_v51 = vld [vmem:[#allocation3 + $0x130] sm:$0xf0]  ;;  %v5105_v63 = vor.u32 %v5739_v44, %v5104_v18  ;;  %v5097_v59 = vor.u32 %v5736_v8, %v5096_v7  ;;  %v386_v42 = vadd.f32 %v8205_v41, %v6568_v1 }
 0x4fd   :  { %v5079_v16 = vmul.f32 -1.442695, %v1450_v49  ;;  %v5133_v49 = vor.u32 %v5742_v29, %v5130_v46  ;;  %1897 = vmatpush.bf16.msrb.mxu1 %v5125_v38  ;;  %v5109_v11 = vor.u32 %v5737_v50, %v5106_v51  ;;  %v1657_v50 = vpack.c.bf16 %v6864_v62, %v6816_v19  ;;  %v5330_v51 = vld [vmem:[#allocation5 + $0x1e0] sm:$0xf]  ;;  %v5316_v7 = vld [vmem:[#allocation5 + $0x1d0] sm:$0xf0] }
 0x4fe   :  { %v5962_v23 = vpop.eup %5961  ;;  %1926 = vmatpush.bf16.msrb.mxu2 %v5129_v43  ;;  %v1649_v43 = vld [vmem:[%s8154_s6 + $0x10] sm:$0xff] }
 0x4ff   :  { %v5964_v25 = vpop.eup %5963  ;;  %v6871_v30 = vadd.f32 1.0, %v5962_v23  ;;  %5965 = vpow2.f32 %v5079_v16  ;;  %v5738_v16 = vld [vmem:[#allocation3 + $0x12c] sm:$0xf]  ;;  %v5114_v23 = vld [vmem:[#allocation3 + $0x138] sm:$0xf0] }
 0x500   :  { %v6873_v36 = vadd.f32 1.0, %v5964_v25  ;;  %1955 = vmatpush.bf16.msrb.mxu3 %v5133_v49  ;;  %1869 = vmatpush.bf16.msrb.mxu0 %v5105_v63  ;;  %v5113_v25 = vor.u32 %v5740_v12, %v5112_v3  ;;  %v5117_v37 = vor.u32 %v5738_v16, %v5114_v23  ;;  %v1656_v49 = vpack.c.bf16 %v6772_v13, %v1649_v43  ;;  %v8204_v3 = vld [vmem:[#allocation30_spill] sm:$0xff]  ;;  %v5340_v16 = vld [vmem:[#allocation5 + $0x1f8] sm:$0xf0]  ;;  %v5781_v43 = vld [vmem:[#allocation5 + $0x184] sm:$0xf] }
 0x501   :  { %5967 = vrcp.f32 %v6871_v30  ;;  %v1464_v6 = vand.u32 2147483647, %v6871_v30  ;;  %v1466_v35 = vand.u32 2147483648, %v6871_v30  ;;  %vm1460_vm12 = vweird.f32 %v6871_v30  ;;  %1898 = vmatpush.bf16.msrb.mxu1 %v5109_v11  ;;  %v5332_v11 = vld [vmem:[#allocation5 + $0x1f0] sm:$0xf0] }
 0x502   :  { %5969 = vrcp.f32 %v6873_v36  ;;  %v1432_v39 = vpop.f32.mrf.mxu2  ;;  %v1445_v40 = vpop.f32.mrf.mxu3  ;;  %v1485_v31 = vand.u32 2147483648, %v6873_v36  ;;  %v1483_v53 = vand.u32 2147483647, %v6873_v36  ;;  %vm1479_vm11 = vweird.f32 %v6873_v36  ;;  %1927 = vmatpush.bf16.msrb.mxu2 %v5113_v25  ;;  %v5794_v12 = vld [vmem:[#allocation5 + $0x1ec] sm:$0xf] }
 0x503   :  { %vm6892_vm8 = vcmp.eq.f32.partialorder %v1464_v6, 8.507059e+37  ;;  %v5088_v39 = vld [vmem:[#allocation3 + $0x100] sm:$0xf]  ;;  %v5735_v40 = vld [vmem:[#allocation3 + $0x10c] sm:$0xf0]  ;;  %v1467_v21 = vor.u32 1.1754944e-38, %v1466_v35  ;;  %v328_v13 = vadd.f32 %v8204_v3, %v6556_v52  ;;  %v6945_v62 = vor.u32 %v5793_v61, %v5332_v11 }
 0x504   :  { %v5089_v57 = vor.u32 %v5735_v40, %v5088_v39  ;;  %v5090_v6 = vld [vmem:[#allocation3 + $0x110] sm:$0xf0]  ;;  %vm1484_vm15 = vcmp.eq.f32.partialorder %v1483_v53, 8.507059e+37  ;;  %1956 = vmatpush.bf16.msrb.mxu3 %v5117_v37  ;;  %v8203_v53 = vld [vmem:[#allocation28_spill] sm:$0xff]  ;;  %v5338_v25 = vld [vmem:[#allocation5 + $0x1e8] sm:$0xf] }
 0x505   :  { %v5966_v20 = vpop.eup %5965  ;;  %v5093_v4 = vor.u32 %v5733_v47, %v5090_v6  ;;  %v299_v63 = vadd.f32 %v8203_v53, %v6552_v45  ;;  %v5796_v37 = vld [vmem:[#allocation5 + $0x1f4] sm:$0xf0]  ;;  %v5314_v52 = vld [vmem:[#allocation5 + $0x1c0] sm:$0xf]  ;;  %v5791_v47 = vld [vmem:[#allocation5 + $0x1cc] sm:$0xf0] }
 0x506   :  { %v6879_v32 = vadd.f32 1.0, %v5966_v20  ;;  %v1486_v20 = vor.u32 1.1754944e-38, %v1485_v31  ;;  %1870 = vmatpush.bf16.msrb.mxu0 %v5089_v57  ;;  %1928 = vmatpush.bf16.msrb.mxu2 %v5097_v59  ;;  %v6950_v45 = vor.u32 %v5796_v37, %v5338_v25  ;;  %v6954_v6 = vor.u32 %v5791_v47, %v5314_v52  ;;  %v5785_v59 = vld [vmem:[#allocation5 + $0x1a4] sm:$0xf]  ;;  %v5292_v53 = vld [vmem:[#allocation5 + $0x198] sm:$0xf0] }
 0x507   :  { %v6881_v10 = vpop.eup %5967  ;;  %1899 = vmatpush.bf16.msrb.mxu1 %v5093_v4  ;;  %v5787_v4 = vld [vmem:[#allocation5 + $0x1ac] sm:$0xf0]  ;;  %v5290_v25 = vld [vmem:[#allocation5 + $0x188] sm:$0xf]  ;;  %v5276_v52 = vld [vmem:[#allocation5 + $0x178] sm:$0xf0] }
 0x508   :  { %v6883_v15 = vpop.eup %5969  ;;  %v1456_v5 = vmul.f32 %v6881_v10, %v6871_v30  ;;  %5971 = vrcp.f32 %v6879_v32  ;;  %vm1461_vm9 = vweird.f32 %v6881_v10  ;;  %1957 = vmatpush.bf16.msrb.mxu3 %v5101_v17  ;;  %vm1499_vm1 = vweird.f32 %v6879_v32  ;;  %v5779_v11 = vld [vmem:[#allocation5 + $0x16c] sm:$0xf0]  ;;  %v5252_v41 = vld [vmem:[#allocation5 + $0x150] sm:$0xf0] }
 0x509   :  { %v1475_v34 = vmul.f32 %v6883_v15, %v6873_v36  ;;  %5973 = vtanh.f32 %v1449_v22  ;;  %vm1480_vm10 = vweird.f32 %v6883_v15  ;;  %vm1462_vm13 = vmor %vm1460_vm12, %vm1461_vm9  ;;  %v1503_v46 = vand.u32 2147483647, %v6879_v32  ;;  %v8206_v47 = vld [vmem:[#allocation31_spill] sm:$0xff] }
 0x50a   :  { %v1457_v28 = vsub.f32 1.0, %v1456_v5  ;;  %vm1481_vm14 = vmor %vm1479_vm11, %vm1480_vm10 }
 0x50b   :  { %v1476_v55 = vsub.f32 1.0, %v1475_v34  ;;  %vm1504_vm3 = vcmp.eq.f32.partialorder %v1503_v46, 8.507059e+37 }
 0x50c   :  { %v1458_v9 = vmul.f32 %v6881_v10, %v1457_v28  ;;  %v1648_v28 = vld [vmem:[%s8154_s6 + $0x8] sm:$0xff] }
 0x50d   :  { %v1477_v24 = vmul.f32 %v6883_v15, %v1476_v55  ;;  %v5795_v55 = vld [vmem:[#allocation5 + $0x1ec] sm:$0xf0] }
 0x50e   :  { %v5972_v48 = vpop.eup %5971  ;;  %v1459_v56 = vadd.f32 %v6881_v10, %v1458_v9  ;;  %v6943_v9 = vor.u32 %v5795_v55, %v5330_v51 }
 0x50f   :  { %v5974_v14 = vpop.eup %5973  ;;  %v1478_v22 = vadd.f32 %v6883_v15, %v1477_v24  ;;  %v1495_v27 = vmul.f32 %v5972_v48, %v6879_v32  ;;  %vm1500_vm0 = vweird.f32 %v5972_v48  ;;  %v6947_v24 = vor.u32 %v5794_v12, %v5340_v16  ;;  %v5777_v12 = vld [vmem:[#allocation5 + $0x164] sm:$0xf] }
 0x510   :  { %v1463_v30 = vsel %vm1462_vm13, %v6881_v10, %v1459_v56  ;;  %vm1501_vm2 = vmor %vm1499_vm1, %vm1500_vm0 }
 0x511   :  { %v1468_v33 = vsel %vm6892_vm8, %v1467_v21, %v1463_v30  ;;  %v1482_v60 = vsel %vm1481_vm14, %v6883_v15, %v1478_v22  ;;  %v1496_v26 = vsub.f32 1.0, %v1495_v27  ;;  %v1505_v15 = vand.u32 2147483648, %v6879_v32  ;;  %v1647_v32 = vld [vmem:[%s8154_s6] sm:$0xff]  ;;  %v5322_v21 = vld [vmem:[#allocation5 + $0x1c8] sm:$0xf] }
 0x512   :  { %v1487_v54 = vsel %vm1484_vm15, %v1486_v20, %v1482_v60  ;;  %v1510_v2 = vmul.f32 %v5974_v14, %v1468_v33  ;;  %v1655_v38 = vpack.c.bf16 %v1648_v28, %v1647_v32  ;;  %v5790_v14 = vld [vmem:[#allocation5 + $0x1cc] sm:$0xf]  ;;  %v5324_v20 = vld [vmem:[#allocation5 + $0x1d8] sm:$0xf0]  ;;  %v5792_v27 = vld [vmem:[#allocation5 + $0x1d4] sm:$0xf0] }
 0x513   :  { %v1509_v36 = vmul.f32 %v1487_v54, %v6861_v58  ;;  %v1497_v5 = vmul.f32 %v5972_v48, %v1496_v26  ;;  %v1506_v34 = vor.u32 1.1754944e-38, %v1505_v15  ;;  %v6960_v22 = vor.u32 %v5790_v14, %v5324_v20  ;;  %v5298_v30 = vld [vmem:[#allocation5 + $0x1a0] sm:$0xf]  ;;  %v5300_v54 = vld [vmem:[#allocation5 + $0x1b0] sm:$0xf0] }
 0x514   :  { %v6965_v33 = vor.u32 %v5792_v27, %v5322_v21  ;;  %v6968_v17 = vor.u32 %v5787_v4, %v5298_v30  ;;  %v6970_v15 = vor.u32 %v5785_v59, %v5300_v54  ;;  %v5783_v28 = vld [vmem:[#allocation5 + $0x18c] sm:$0xf0]  ;;  %v5773_v27 = vld [vmem:[#allocation5 + $0x144] sm:$0xf]  ;;  %v5774_v59 = vld [vmem:[#allocation5 + $0x14c] sm:$0xf] }
 0x515   :  { %v6917_v10 = vadd.f32 %v1510_v2, %v1509_v36  ;;  %v1498_v29 = vadd.f32 %v5972_v48, %v1497_v5  ;;  %v5786_v2 = vld [vmem:[#allocation5 + $0x1ac] sm:$0xf]  ;;  %v5308_v36 = vld [vmem:[#allocation5 + $0x1b8] sm:$0xf0]  ;;  %v5775_v21 = vld [vmem:[#allocation5 + $0x14c] sm:$0xf0] }
 0x516   :  { %v6972_v46 = vor.u32 %v5786_v2, %v5308_v36  ;;  %v5274_v36 = vld [vmem:[#allocation5 + $0x168] sm:$0xf] }
 0x517   :  { %5975 = vtanh.f32 %v6917_v10  ;;  %v1502_v18 = vsel %vm1501_vm2, %v5972_v48, %v1498_v29  ;;  %v5789_v48 = vld [vmem:[#allocation5 + $0x1c4] sm:$0xf] }
 0x518   :  { %v1507_v31 = vsel %vm1504_vm3, %v1506_v34, %v1502_v18  ;;  %v6957_v8 = vor.u32 %v5789_v48, %v5316_v7  ;;  %v5306_v18 = vld [vmem:[#allocation5 + $0x1a8] sm:$0xf]  ;;  %v5788_v34 = vld [vmem:[#allocation5 + $0x1b4] sm:$0xf0]  ;;  %v357_v48 = vadd.f32 %v8206_v47, %v6566_v0  ;;  %v7012_v0 = vor.u32 %v5773_v27, %v5252_v41 }
 0x51d   :  { %v5976_v58 = vpop.eup %5975 }
 0x51e   :  { %v6923_v35 = vmul.f32 %v5976_v58, %v1507_v31  ;;  %v6976_v58 = vor.u32 %v5788_v34, %v5306_v18  ;;  %v5234_v34 = vld [vmem:[#allocation5 + $0x120] sm:$0xf] }
 0x520   :  { %v1523_v44 = vpack.c.bf16 %v6923_v35, %v6923_v35 }
 0x522   :  { %1532 = vmatmul.bf16.vlgmr.msra.gmra.mxu0 %v1523_v44  ;;  %1545 = vmatmul.bf16.vlgmr.msra.gmra.mxu1 %v1523_v44 }
 0x523   :  { %1558 = vmatmul.bf16.vlgmr.msra.gmra.mxu2 %v1523_v44  ;;  %1571 = vmatmul.bf16.vlgmr.msra.gmra.mxu3 %v1523_v44  ;;  %v5282_v44 = vld [vmem:[#allocation5 + $0x180] sm:$0xf] }
 0x524   :  { %2213 = vmatpush.bf16.msra.mxu0 %v6943_v9  ;;  %2226 = vmatpush.bf16.msra.mxu1 %v6945_v62 }
 0x525   :  { %2252 = vmatpush.bf16.msra.mxu3 %v6947_v24  ;;  %2239 = vmatpush.bf16.msra.mxu2 %v6950_v45 }
 0x528   :  { %2214 = vmatpush.bf16.msra.mxu0 %v6954_v6  ;;  %2227 = vmatpush.bf16.msra.mxu1 %v6957_v8 }
 0x529   :  { %2253 = vmatpush.bf16.msra.mxu3 %v6960_v22  ;;  %2240 = vmatpush.bf16.msra.mxu2 %v6965_v33 }
 0x52c   :  { %2215 = vmatpush.bf16.msra.mxu0 %v6968_v17  ;;  %2228 = vmatpush.bf16.msra.mxu1 %v6970_v15 }
 0x52d   :  { %2254 = vmatpush.bf16.msra.mxu3 %v6972_v46  ;;  %2241 = vmatpush.bf16.msra.mxu2 %v6976_v58 }
 0x532   :  { %1871 = vmatmul.bf16.vlgmr.msrb.gmra.mxu0 %v1655_v38  ;;  %1900 = vmatmul.bf16.vlgmr.msrb.gmra.mxu1 %v1655_v38 }
 0x533   :  { %1929 = vmatmul.bf16.vlgmr.msrb.gmra.mxu2 %v1655_v38  ;;  %1958 = vmatmul.bf16.vlgmr.msrb.gmra.mxu3 %v1655_v38  ;;  %v6980_v38 = vor.u32 %v5783_v28, %v5282_v44  ;;  %v5776_v44 = vld [vmem:[#allocation5 + $0x154] sm:$0xf0] }
 0x535   :  { %2216 = vmatpush.bf16.msra.mxu0 %v6980_v38 }
 0x542   :  { %1876 = vmatmul.bf16.gmra.mxu0 %v1656_v49  ;;  %1905 = vmatmul.bf16.gmra.mxu1 %v1656_v49 }
 0x543   :  { %1934 = vmatmul.bf16.gmra.mxu2 %v1656_v49  ;;  %1963 = vmatmul.bf16.gmra.mxu3 %v1656_v49  ;;  %v5284_v49 = vld [vmem:[#allocation5 + $0x190] sm:$0xf0] }
 0x544   :  { %v6984_v61 = vor.u32 %v5781_v43, %v5284_v49  ;;  %v5771_v49 = vld [vmem:[#allocation5 + $0x12c] sm:$0xf0] }
 0x546   :  { %2229 = vmatpush.bf16.msra.mxu1 %v6984_v61 }
 0x552   :  { %1881 = vmatmul.bf16.gmra.mxu0 %v1657_v50  ;;  %1910 = vmatmul.bf16.gmra.mxu1 %v1657_v50 }
 0x553   :  { %1939 = vmatmul.bf16.gmra.mxu2 %v1657_v50  ;;  %1968 = vmatmul.bf16.gmra.mxu3 %v1657_v50  ;;  %v5782_v50 = vld [vmem:[#allocation5 + $0x18c] sm:$0xf] }
 0x554   :  { %v6990_v3 = vor.u32 %v5782_v50, %v5292_v53  ;;  %v5769_v50 = vld [vmem:[#allocation5 + $0x124] sm:$0xf] }
 0x556   :  { %2255 = vmatpush.bf16.msra.mxu3 %v6990_v3 }
 0x59f   :  { %v1533_v23 = vpop.f32.mrf.mxu0  ;;  %v1546_v19 = vpop.f32.mrf.mxu1 }
 0x5a0   :  { %v1576_v39 = vadd.f32 %v1533_v23, %v299_v63  ;;  %v1577_v40 = vadd.f32 %v1546_v19, %v328_v13  ;;  %v5266_v13 = vld [vmem:[#allocation5 + $0x160] sm:$0xf]  ;;  %v5268_v19 = vld [vmem:[#allocation5 + $0x170] sm:$0xf0] }
 0x5a1   :  { %v6996_v37 = vor.u32 %v5779_v11, %v5266_v13  ;;  %v5236_v11 = vld [vmem:[#allocation5 + $0x130] sm:$0xf0] }
 0x5a2   :  { %v5081_v56 = vmul.f32 -1.442695, %v1576_v39  ;;  %v5082_v57 = vmul.f32 -1.442695, %v1577_v40  ;;  %v6998_v39 = vor.u32 %v5777_v12, %v5268_v19  ;;  %v5778_v40 = vld [vmem:[#allocation5 + $0x16c] sm:$0xf]  ;;  %v7046_v47 = vor.u32 %v5769_v50, %v5236_v11 }
 0x5a3   :  { %2217 = vmatpush.bf16.msra.mxu0 %v6996_v37  ;;  %v7004_v14 = vor.u32 %v5778_v40, %v5276_v52  ;;  %v5244_v19 = vld [vmem:[#allocation5 + $0x138] sm:$0xf0]  ;;  %v7044_v52 = vor.u32 %v5771_v49, %v5234_v34  ;;  %v5766_v34 = vld [vmem:[#allocation5 + $0x10c] sm:$0xf] }
 0x5a4   :  { %5977 = vpow2.f32 %v5081_v56  ;;  %v5784_v56 = vld [vmem:[#allocation5 + $0x194] sm:$0xf0]  ;;  %2230 = vmatpush.bf16.msra.mxu1 %v6998_v39 }
 0x5a5   :  { %5979 = vpow2.f32 %v5082_v57  ;;  %v5250_v57 = vld [vmem:[#allocation5 + $0x140] sm:$0xf]  ;;  %v7006_v20 = vor.u32 %v5784_v56, %v5290_v25  ;;  %2256 = vmatpush.bf16.msra.mxu3 %v7004_v14  ;;  %v5242_v25 = vld [vmem:[#allocation5 + $0x128] sm:$0xf] }
 0x5a6   :  { %v1559_v60 = vpop.f32.mrf.mxu2  ;;  %v1572_v26 = vpop.f32.mrf.mxu3  ;;  %v7010_v4 = vor.u32 %v5775_v21, %v5250_v57  ;;  %v5218_v56 = vld [vmem:[#allocation5 + $0x100] sm:$0xf]  ;;  %v5767_v57 = vld [vmem:[#allocation5 + $0x10c] sm:$0xf0] }
 0x5a7   :  { %v1579_v5 = vadd.f32 %v1572_v26, %v386_v42  ;;  %v1535_v29 = vpop.f32.mrf.mxu0  ;;  %v1548_v1 = vpop.f32.mrf.mxu1  ;;  %v1578_v42 = vadd.f32 %v1559_v60, %v357_v48  ;;  %v5260_v26 = vld [vmem:[#allocation5 + $0x158] sm:$0xf0]  ;;  %2242 = vmatpush.bf16.msra.mxu2 %v7006_v20 }
 0x5a8   :  { %v7018_v2 = vor.u32 %v5774_v59, %v5260_v26  ;;  %2218 = vmatpush.bf16.msra.mxu0 %v7010_v4  ;;  %2231 = vmatpush.bf16.msra.mxu1 %v7012_v0  ;;  %v5220_v59 = vld [vmem:[#allocation5 + $0x110] sm:$0xf0]  ;;  %v5772_v26 = vld [vmem:[#allocation5 + $0x134] sm:$0xf0] }
 0x5a9   :  { %v5083_v31 = vmul.f32 -1.442695, %v1579_v5  ;;  %v5780_v5 = vld [vmem:[#allocation5 + $0x174] sm:$0xf0] }
 0x5aa   :  { %v5978_v32 = vpop.eup %5977  ;;  %v7031_v43 = vor.u32 %v5780_v5, %v5274_v36  ;;  %2257 = vmatpush.bf16.msra.mxu3 %v7018_v2 }
 0x5ab   :  { %v5980_v51 = vpop.eup %5979  ;;  %v6982_v55 = vadd.f32 1.0, %v5978_v32  ;;  %5981 = vpow2.f32 %v5083_v31  ;;  %v5258_v31 = vld [vmem:[#allocation5 + $0x148] sm:$0xf] }
 0x5ac   :  { %v6987_v63 = vadd.f32 1.0, %v5980_v51  ;;  %2243 = vmatpush.bf16.msra.mxu2 %v7031_v43  ;;  %2219 = vmatpush.bf16.msra.mxu0 %v7044_v52 }
 0x5ad   :  { %5983 = vrcp.f32 %v6982_v55  ;;  %v1593_v1 = vand.u32 2147483647, %v6982_v55  ;;  %v1595_v32 = vand.u32 2147483648, %v6982_v55  ;;  %vm1589_vm4 = vweird.f32 %v6982_v55  ;;  %2232 = vmatpush.bf16.msra.mxu1 %v7046_v47 }
 0x5ae   :  { %5985 = vrcp.f32 %v6987_v63  ;;  %v1561_v16 = vpop.f32.mrf.mxu2  ;;  %v1574_v23 = vpop.f32.mrf.mxu3  ;;  %v1614_v53 = vand.u32 2147483648, %v6987_v63  ;;  %v1612_v13 = vand.u32 2147483647, %v6987_v63  ;;  %vm1608_vm7 = vweird.f32 %v6987_v63 }
 0x5af   :  { %v7041_v16 = vor.u32 %v5776_v44, %v5258_v31  ;;  %v5770_v23 = vld [vmem:[#allocation5 + $0x12c] sm:$0xf]  ;;  %vm7052_vm8 = vcmp.eq.f32.partialorder %v1593_v1, 8.507059e+37  ;;  %v7068_v1 = vor.u32 %v5767_v57, %v5218_v56  ;;  %v5228_v31 = vld [vmem:[#allocation5 + $0x118] sm:$0xf0] }
 0x5b0   :  { %v7048_v48 = vor.u32 %v5770_v23, %v5244_v19  ;;  %v1615_v36 = vor.u32 1.1754944e-38, %v1614_v53  ;;  %vm1613_vm11 = vcmp.eq.f32.partialorder %v1612_v13, 8.507059e+37  ;;  %v5768_v53 = vld [vmem:[#allocation5 + $0x114] sm:$0xf0]  ;;  %v7086_v11 = vor.u32 %v5766_v34, %v5228_v31 }
 0x5b1   :  { %v5982_v7 = vpop.eup %5981  ;;  %2244 = vmatpush.bf16.msra.mxu2 %v7041_v16  ;;  %2220 = vmatpush.bf16.msra.mxu0 %v7068_v1 }
 0x5b2   :  { %v7008_v30 = vadd.f32 1.0, %v5982_v7  ;;  %v5765_v7 = vld [vmem:[#allocation5 + $0x104] sm:$0xf]  ;;  %2258 = vmatpush.bf16.msra.mxu3 %v7048_v48 }
 0x5b3   :  { %v7014_v54 = vpop.eup %5983 }
 0x5b4   :  { %v7020_v29 = vpop.eup %5985  ;;  %v1585_v60 = vmul.f32 %v7014_v54, %v6982_v55  ;;  %5987 = vrcp.f32 %v7008_v30  ;;  %vm1590_vm6 = vweird.f32 %v7014_v54  ;;  %vm1628_vm13 = vweird.f32 %v7008_v30 }
 0x5b5   :  { %v1604_v18 = vmul.f32 %v7020_v29, %v6987_v63  ;;  %5989 = vtanh.f32 %v1578_v42  ;;  %vm1609_vm5 = vweird.f32 %v7020_v29  ;;  %v1596_v42 = vor.u32 1.1754944e-38, %v1595_v32  ;;  %vm7060_vm9 = vmor %vm1589_vm4, %vm1590_vm6  ;;  %2338 = vmatpush.bf16.msrb.mxu0 %v6943_v9 }
 0x5b6   :  { %v1586_v28 = vsub.f32 1.0, %v1585_v60  ;;  %vm1610_vm10 = vmor %vm1608_vm7, %vm1609_vm5  ;;  %v7081_v32 = vor.u32 %v5772_v26, %v5242_v25  ;;  %2259 = vmatpush.bf16.msra.mxu3 %v7086_v11  ;;  %v1930_v26 = vpop.f32.mrf.mxu2 }
 0x5b7   :  { %v1605_v51 = vsub.f32 1.0, %v1604_v18 }
 0x5b8   :  { %v1587_v12 = vmul.f32 %v7014_v54, %v1586_v28  ;;  %v7079_v28 = vor.u32 %v5765_v7, %v5220_v59  ;;  %2245 = vmatpush.bf16.msra.mxu2 %v7081_v32  ;;  %v1901_v59 = vpop.f32.mrf.mxu1 }
 0x5b9   :  { %v1606_v40 = vmul.f32 %v7020_v29, %v1605_v51  ;;  %v5226_v51 = vld [vmem:[#allocation5 + $0x108] sm:$0xf]  ;;  %2339 = vmatpush.bf16.msrb.mxu0 %v6954_v6 }
 0x5ba   :  { %v5988_v21 = vpop.eup %5987  ;;  %v1588_v27 = vadd.f32 %v7014_v54, %v1587_v12  ;;  %2233 = vmatpush.bf16.msra.mxu1 %v7079_v28  ;;  %v7092_v19 = vor.u32 %v5768_v53, %v5226_v51  ;;  %2377 = vmatpush.bf16.msrb.mxu3 %v6947_v24 }
 0x5bb   :  { %v1607_v60 = vadd.f32 %v7020_v29, %v1606_v40  ;;  %v1624_v18 = vmul.f32 %v5988_v21, %v7008_v30  ;;  %v5990_v44 = vpop.eup %5989  ;;  %vm1629_vm12 = vweird.f32 %v5988_v21  ;;  %v1632_v40 = vand.u32 2147483647, %v7008_v30 }
 0x5bc   :  { %v1592_v55 = vsel %vm7060_vm9, %v7014_v54, %v1588_v27  ;;  %2246 = vmatpush.bf16.msra.mxu2 %v7092_v19  ;;  %vm1630_vm14 = vmor %vm1628_vm13, %vm1629_vm12 }
 0x5bd   :  { %v1597_v49 = vsel %vm7052_vm8, %v1596_v42, %v1592_v55  ;;  %v1611_v50 = vsel %vm1610_vm10, %v7020_v29, %v1607_v60  ;;  %v1625_v63 = vsub.f32 1.0, %v1624_v18  ;;  %vm1633_vm15 = vcmp.eq.f32.partialorder %v1632_v40, 8.507059e+37  ;;  %2340 = vmatpush.bf16.msrb.mxu0 %v6968_v17  ;;  %v1872_v42 = vpop.f32.mrf.mxu0 }
 0x5be   :  { %v1616_v54 = vsel %vm1613_vm11, %v1615_v36, %v1611_v50  ;;  %v1639_v13 = vmul.f32 %v5990_v44, %v1597_v49  ;;  %2351 = vmatpush.bf16.msrb.mxu1 %v6945_v62  ;;  %2378 = vmatpush.bf16.msrb.mxu3 %v6960_v22  ;;  %v1959_v36 = vpop.f32.mrf.mxu3  ;;  %v7177_v18 = vpop.f32.mrf.mxu2 }
 0x5bf   :  { %v1638_v12 = vmul.f32 %v1616_v54, %v6917_v10  ;;  %v1626_v23 = vmul.f32 %v5988_v21, %v1625_v63  ;;  %v1634_v10 = vand.u32 2147483648, %v7008_v30  ;;  %8211 = vst [vmem:[#allocation9_spill] sm:$0xff] %v7177_v18 }
 0x5c0   :  { %2364 = vmatpush.bf16.msrb.mxu2 %v6950_v45  ;;  %v7175_v60 = vpop.f32.mrf.mxu1 }
 0x5c1   :  { %v1640_v25 = vadd.f32 %v1639_v13, %v1638_v12  ;;  %v1627_v29 = vadd.f32 %v5988_v21, %v1626_v23  ;;  %v1635_v57 = vor.u32 1.1754944e-38, %v1634_v10  ;;  %2341 = vmatpush.bf16.msrb.mxu0 %v6980_v38 }
 0x5c2   :  { %2352 = vmatpush.bf16.msrb.mxu1 %v6957_v8  ;;  %2379 = vmatpush.bf16.msrb.mxu3 %v6972_v46 }
 0x5c3   :  { %5991 = vtanh.f32 %v1640_v25  ;;  %1646 = vst [vmem:[%s8156_s8] sm:$0xff] %v1640_v25  ;;  %v1631_v56 = vsel %vm1630_vm14, %v5988_v21, %v1627_v29 }
 0x5c4   :  { %v1636_v27 = vsel %vm1633_vm15, %v1635_v57, %v1631_v56  ;;  %2365 = vmatpush.bf16.msrb.mxu2 %v6965_v33 }
 0x5c5   :  { %2342 = vmatpush.bf16.msrb.mxu0 %v6996_v37  ;;  %v7173_v5 = vpop.f32.mrf.mxu0 }
 0x5c6   :  { %2353 = vmatpush.bf16.msrb.mxu1 %v6970_v15  ;;  %2380 = vmatpush.bf16.msrb.mxu3 %v6990_v3  ;;  %v7179_v34 = vpop.f32.mrf.mxu3  ;;  %v7185_v55 = vpop.f32.mrf.mxu2 }
 0x5c7   :  { %8214 = vst [vmem:[#allocation11_spill] sm:$0xff] %v7185_v55 }
 0x5c8   :  { %2366 = vmatpush.bf16.msrb.mxu2 %v6976_v58  ;;  %v7183_v44 = vpop.f32.mrf.mxu1 }
 0x5c9   :  { %v5992_v7 = vpop.eup %5991  ;;  %2343 = vmatpush.bf16.msrb.mxu0 %v7010_v4  ;;  %8213 = vst [vmem:[#allocation13_spill] sm:$0xff] %v7183_v44 }
 0x5ca   :  { %v1642_v30 = vmul.f32 %v5992_v7, %v1636_v27  ;;  %2354 = vmatpush.bf16.msrb.mxu1 %v6984_v61  ;;  %2381 = vmatpush.bf16.msrb.mxu3 %v7004_v14 }
 0x5cc   :  { %1645 = vst [vmem:[%s8155_s7] sm:$0xff] %v1642_v30  ;;  %v1658_v21 = vpack.c.bf16 %v1642_v30, %v6923_v35  ;;  %2367 = vmatpush.bf16.msrb.mxu2 %v7006_v20  ;;  %v5214_v35 = vld [vmem:[%s8152_s4 + $0x8] sm:$0xff]  ;;  %v5085_v30 = vld [vmem:[%s8151_s3 + $0x4] sm:$0xf] }
 0x5cd   :  { %2344 = vmatpush.bf16.msrb.mxu0 %v7044_v52  ;;  %v2052_v41 = vpack.c.bf16 %v5214_v35, %v5214_v35  ;;  %v7181_v31 = vpop.f32.mrf.mxu0 }
 0x5ce   :  { %1886 = vmatmul.bf16.gmra.mxu0 %v1658_v21  ;;  %1915 = vmatmul.bf16.gmra.mxu1 %v1658_v21  ;;  %8212 = vst [vmem:[#allocation10_spill] sm:$0xff] %v7181_v31  ;;  %v7187_v49 = vpop.f32.mrf.mxu3  ;;  %v7193_v51 = vpop.f32.mrf.mxu2 }
 0x5cf   :  { %1944 = vmatmul.bf16.gmra.mxu2 %v1658_v21  ;;  %1973 = vmatmul.bf16.gmra.mxu3 %v1658_v21  ;;  %8215 = vst [vmem:[#allocation12_spill] sm:$0xff] %v7187_v49 }
 0x5d0   :  { %2355 = vmatpush.bf16.msrb.mxu1 %v6998_v39  ;;  %2368 = vmatpush.bf16.msrb.mxu2 %v7031_v43  ;;  %v7191_v63 = vpop.f32.mrf.mxu1  ;;  %8218 = vst [vmem:[#allocation15_spill] sm:$0xff] %v7193_v51 }
 0x5d1   :  { %2382 = vmatpush.bf16.msrb.mxu3 %v7018_v2  ;;  %2345 = vmatpush.bf16.msrb.mxu0 %v7068_v1  ;;  %8217 = vst [vmem:[#allocation16_spill] sm:$0xff] %v7191_v63 }
 0x5d4   :  { %2356 = vmatpush.bf16.msrb.mxu1 %v7012_v0  ;;  %2369 = vmatpush.bf16.msrb.mxu2 %v7041_v16 }
 0x5d5   :  { %2383 = vmatpush.bf16.msrb.mxu3 %v7048_v48  ;;  %v7189_v50 = vpop.f32.mrf.mxu0 }
 0x5d6   :  { %8216 = vst [vmem:[#allocation14_spill] sm:$0xff] %v7189_v50  ;;  %v7195_v53 = vpop.f32.mrf.mxu3  ;;  %v7201_v12 = vpop.f32.mrf.mxu2 }
 0x5d7   :  { %8219 = vst [vmem:[#allocation17_spill] sm:$0xff] %v7195_v53 }
 0x5d8   :  { %2357 = vmatpush.bf16.msrb.mxu1 %v7046_v47  ;;  %2370 = vmatpush.bf16.msrb.mxu2 %v7081_v32  ;;  %v7199_v13 = vpop.f32.mrf.mxu1  ;;  %8222 = vst [vmem:[#allocation19_spill] sm:$0xff] %v7201_v12 }
 0x5d9   :  { %2384 = vmatpush.bf16.msrb.mxu3 %v7086_v11  ;;  %8221 = vst [vmem:[#allocation21_spill] sm:$0xff] %v7199_v13 }
 0x5dc   :  { %2358 = vmatpush.bf16.msrb.mxu1 %v7079_v28  ;;  %2371 = vmatpush.bf16.msrb.mxu2 %v7092_v19 }
 0x5dd   :  { %v7197_v54 = vpop.f32.mrf.mxu0 }
 0x5de   :  { %2221 = vmatmul.bf16.vlgmr.msra.gmra.mxu0 %v2052_v41  ;;  %2234 = vmatmul.bf16.vlgmr.msra.gmra.mxu1 %v2052_v41  ;;  %8220 = vst [vmem:[#allocation18_spill] sm:$0xff] %v7197_v54  ;;  %v7203_v23 = vpop.f32.mrf.mxu3  ;;  %v7209_v10 = vpop.f32.mrf.mxu2 }
 0x5df   :  { %2247 = vmatmul.bf16.vlgmr.msra.gmra.mxu2 %v2052_v41  ;;  %2260 = vmatmul.bf16.vlgmr.msra.gmra.mxu3 %v2052_v41  ;;  %8223 = vst [vmem:[#allocation20_spill] sm:$0xff] %v7203_v23  ;;  %v7228_v41 = vperm.slane %v5085_v30, 0  ;;  %v7238_v23 = vperm.slane %v5085_v30, 3 }
 0x5e0   :  { %2463 = vmatpush.bf16.msra.mxu0 %v6943_v9  ;;  %2476 = vmatpush.bf16.msra.mxu1 %v6945_v62  ;;  %v7207_v29 = vpop.f32.mrf.mxu1  ;;  %8226 = vst [vmem:[#allocation23_spill] sm:$0xff] %v7209_v10  ;;  %v7230_v10 = vperm.slane %v5085_v30, 1 }
 0x5e1   :  { %2489 = vmatpush.bf16.msra.mxu2 %v6950_v45  ;;  %2502 = vmatpush.bf16.msra.mxu3 %v6947_v24  ;;  %8225 = vst [vmem:[#allocation24_spill] sm:$0xff] %v7207_v29  ;;  %v1960_v13 = vadd.f32 %v1959_v36, %v7238_v23 }
 0x5e4   :  { %2464 = vmatpush.bf16.msra.mxu0 %v6954_v6  ;;  %2477 = vmatpush.bf16.msra.mxu1 %v6957_v8 }
 0x5e5   :  { %2490 = vmatpush.bf16.msra.mxu2 %v6965_v33  ;;  %2503 = vmatpush.bf16.msra.mxu3 %v6960_v22  ;;  %v7205_v25 = vpop.f32.mrf.mxu0 }
 0x5e6   :  { %8224 = vst [vmem:[#allocation22_spill] sm:$0xff] %v7205_v25  ;;  %v7211_v40 = vpop.f32.mrf.mxu3 }
 0x5e7   :  { %8227 = vst [vmem:[#allocation25_spill] sm:$0xff] %v7211_v40 }
 0x5e8   :  { %2465 = vmatpush.bf16.msra.mxu0 %v6968_v17  ;;  %2478 = vmatpush.bf16.msra.mxu1 %v6970_v15 }
 0x5e9   :  { %2491 = vmatpush.bf16.msra.mxu2 %v6976_v58  ;;  %2504 = vmatpush.bf16.msra.mxu3 %v6972_v46 }
 0x5ec   :  { %2466 = vmatpush.bf16.msra.mxu0 %v6980_v38  ;;  %2479 = vmatpush.bf16.msra.mxu1 %v6984_v61 }
 0x5ed   :  { %2492 = vmatpush.bf16.msra.mxu2 %v7006_v20  ;;  %2505 = vmatpush.bf16.msra.mxu3 %v6990_v3 }
 0x5f0   :  { %2467 = vmatpush.bf16.msra.mxu0 %v6996_v37  ;;  %2480 = vmatpush.bf16.msra.mxu1 %v6998_v39 }
 0x5f1   :  { %2493 = vmatpush.bf16.msra.mxu2 %v7031_v43  ;;  %2506 = vmatpush.bf16.msra.mxu3 %v7004_v14 }
 0x5f4   :  { %2468 = vmatpush.bf16.msra.mxu0 %v7010_v4  ;;  %2481 = vmatpush.bf16.msra.mxu1 %v7012_v0 }
 0x5f5   :  { %2494 = vmatpush.bf16.msra.mxu2 %v7041_v16  ;;  %2507 = vmatpush.bf16.msra.mxu3 %v7018_v2 }
 0x5f8   :  { %2469 = vmatpush.bf16.msra.mxu0 %v7044_v52  ;;  %2482 = vmatpush.bf16.msra.mxu1 %v7046_v47 }
 0x5f9   :  { %2495 = vmatpush.bf16.msra.mxu2 %v7081_v32  ;;  %2508 = vmatpush.bf16.msra.mxu3 %v7048_v48 }
 0x5fc   :  { %2470 = vmatpush.bf16.msra.mxu0 %v7068_v1  ;;  %2483 = vmatpush.bf16.msra.mxu1 %v7079_v28 }
 0x5fd   :  { %2496 = vmatpush.bf16.msra.mxu2 %v7092_v19  ;;  %2509 = vmatpush.bf16.msra.mxu3 %v7086_v11 }
 0x64b   :  { %v7213_v56 = vpop.f32.mrf.mxu0  ;;  %v7215_v57 = vpop.f32.mrf.mxu1 }
 0x64c   :  { %8228 = vst [vmem:[#allocation26_spill] sm:$0xff] %v7213_v56  ;;  %v1873_v56 = vadd.f32 %v1872_v42, %v7228_v41 }
 0x64d   :  { %8229 = vst [vmem:[#allocation29_spill] sm:$0xff] %v7215_v57  ;;  %v1902_v57 = vadd.f32 %v1901_v59, %v7230_v10 }
 0x652   :  { %v7217_v7 = vpop.f32.mrf.mxu2  ;;  %v7219_v27 = vpop.f32.mrf.mxu3 }
 0x653   :  { %8230 = vst [vmem:[#allocation27_spill] sm:$0xff] %v7217_v7  ;;  %v7224_v21 = vpop.f32.mrf.mxu0  ;;  %v7226_v35 = vpop.f32.mrf.mxu1 }
 0x654   :  { %8231 = vst [vmem:[#allocation28_spill] sm:$0xff] %v7219_v27 }
 0x655   :  { %8232 = vst [vmem:[#allocation30_spill] sm:$0xff] %v7224_v21 }
 0x656   :  { %8233 = vst [vmem:[#allocation32_spill] sm:$0xff] %v7226_v35 }
 0x65a   :  { %v7234_v40 = vpop.f32.mrf.mxu2  ;;  %v7236_v7 = vpop.f32.mrf.mxu3 }
 0x65b   :  { %8234 = vst [vmem:[#allocation31_spill] sm:$0xff] %v7234_v40  ;;  %v2222_v27 = vpop.f32.mrf.mxu0  ;;  %v2235_v29 = vpop.f32.mrf.mxu1 }
 0x65c   :  { %8235 = vst [vmem:[#allocation33_spill] sm:$0xff] %v7236_v7  ;;  %v2265_v25 = vadd.f32 %v2222_v27, %v1873_v56  ;;  %v2266_v12 = vadd.f32 %v2235_v29, %v1902_v57  ;;  %v7241_v29 = vperm.slane %v5085_v30, 2 }
 0x65e   :  { %v5344_v21 = vmul.f32 -1.442695, %v2265_v25  ;;  %v5345_v35 = vmul.f32 -1.442695, %v2266_v12  ;;  %v1931_v36 = vadd.f32 %v1930_v26, %v7241_v29 }
 0x660   :  { %5993 = vpow2.f32 %v5344_v21 }
 0x661   :  { %5995 = vpow2.f32 %v5345_v35 }
 0x662   :  { %v2248_v54 = vpop.f32.mrf.mxu2  ;;  %v2261_v42 = vpop.f32.mrf.mxu3 }
 0x663   :  { %v2268_v51 = vadd.f32 %v2261_v42, %v1960_v13  ;;  %v2224_v59 = vpop.f32.mrf.mxu0  ;;  %v2237_v53 = vpop.f32.mrf.mxu1  ;;  %v2267_v13 = vadd.f32 %v2248_v54, %v1931_v36 }
 0x665   :  { %v5346_v40 = vmul.f32 -1.442695, %v2268_v51 }
 0x666   :  { %v5994_v63 = vpop.eup %5993 }
 0x667   :  { %v5996_v7 = vpop.eup %5995  ;;  %v2272_v50 = vadd.f32 1.0, %v5994_v63  ;;  %5997 = vpow2.f32 %v5346_v40 }
 0x668   :  { %v2291_v56 = vadd.f32 1.0, %v5996_v7 }
 0x669   :  { %5999 = vrcp.f32 %v2272_v50  ;;  %v2284_v40 = vand.u32 2147483648, %v2272_v50  ;;  %v2282_v59 = vand.u32 2147483647, %v2272_v50  ;;  %vm2278_vm2 = vweird.f32 %v2272_v50 }
 0x66a   :  { %6001 = vrcp.f32 %v2291_v56  ;;  %v2263_v12 = vpop.f32.mrf.mxu3  ;;  %v2250_v25 = vpop.f32.mrf.mxu2  ;;  %v2303_v7 = vand.u32 2147483648, %v2291_v56  ;;  %vm2297_vm3 = vweird.f32 %v2291_v56 }
 0x66b   :  { %v2301_v25 = vand.u32 2147483647, %v2291_v56  ;;  %v2285_v54 = vor.u32 1.1754944e-38, %v2284_v40  ;;  %vm2283_vm6 = vcmp.eq.f32.partialorder %v2282_v59, 8.507059e+37 }
 0x66d   :  { %v5998_v57 = vpop.eup %5997  ;;  %vm2302_vm7 = vcmp.eq.f32.partialorder %v2301_v25, 8.507059e+37 }
 0x66e   :  { %v2311_v27 = vadd.f32 1.0, %v5998_v57 }
 0x66f   :  { %v6000_v21 = vpop.eup %5999 }
 0x670   :  { %v6002_v35 = vpop.eup %6001  ;;  %v2274_v53 = vmul.f32 %v6000_v21, %v2272_v50  ;;  %6003 = vrcp.f32 %v2311_v27  ;;  %vm2279_vm0 = vweird.f32 %v6000_v21  ;;  %vm2317_vm9 = vweird.f32 %v2311_v27 }
 0x671   :  { %v2293_v51 = vmul.f32 %v6002_v35, %v2291_v56  ;;  %6005 = vtanh.f32 %v2267_v13  ;;  %vm2298_vm1 = vweird.f32 %v6002_v35  ;;  %vm2280_vm4 = vmor %vm2278_vm2, %vm2279_vm0  ;;  %v5215_v13 = vld [vmem:[%s8153_s5 + $0x8] sm:$0xff]  ;;  %v2321_v18 = vand.u32 2147483647, %v2311_v27 }
 0x672   :  { %v2275_v42 = vsub.f32 1.0, %v2274_v53  ;;  %vm2299_vm5 = vmor %vm2297_vm3, %vm2298_vm1  ;;  %v2304_v53 = vor.u32 1.1754944e-38, %v2303_v7  ;;  %v2323_v7 = vand.u32 2147483648, %v2311_v27 }
 0x673   :  { %v2294_v63 = vsub.f32 1.0, %v2293_v51  ;;  %vm2322_vm11 = vcmp.eq.f32.partialorder %v2321_v18, 8.507059e+37  ;;  %v1875_v18 = vadd.f32 %v7173_v5, %v7228_v41 }
 0x674   :  { %v2276_v30 = vmul.f32 %v6000_v21, %v2275_v42  ;;  %v2324_v59 = vor.u32 1.1754944e-38, %v2323_v7 }
 0x675   :  { %v2295_v12 = vmul.f32 %v6002_v35, %v2294_v63 }
 0x676   :  { %v6004_v55 = vpop.eup %6003  ;;  %v2277_v26 = vadd.f32 %v6000_v21, %v2276_v30 }
 0x677   :  { %v2296_v57 = vadd.f32 %v6002_v35, %v2295_v12  ;;  %v2313_v36 = vmul.f32 %v6004_v55, %v2311_v27  ;;  %v6006_v42 = vpop.eup %6005  ;;  %vm2318_vm8 = vweird.f32 %v6004_v55 }
 0x678   :  { %v2281_v51 = vsel %vm2280_vm4, %v6000_v21, %v2277_v26  ;;  %vm2319_vm10 = vmor %vm2317_vm9, %vm2318_vm8 }
 0x679   :  { %v2286_v63 = vsel %vm2283_vm6, %v2285_v54, %v2281_v51  ;;  %v2300_v49 = vsel %vm2299_vm5, %v6002_v35, %v2296_v57  ;;  %v2314_v44 = vsub.f32 1.0, %v2313_v36 }
 0x67a   :  { %v2305_v30 = vsel %vm2302_vm7, %v2304_v53, %v2300_v49  ;;  %v2328_v50 = vmul.f32 %v6006_v42, %v2286_v63  ;;  %v1962_v53 = vadd.f32 %v7179_v34, %v7238_v23 }
 0x67b   :  { %v2327_v56 = vmul.f32 %v5215_v13, %v2305_v30  ;;  %v2315_v31 = vmul.f32 %v6004_v55, %v2314_v44 }
 0x67d   :  { %v7247_v40 = vadd.f32 %v2328_v50, %v2327_v56  ;;  %v2316_v12 = vadd.f32 %v6004_v55, %v2315_v31  ;;  %v1904_v31 = vadd.f32 %v7175_v60, %v7230_v10 }
 0x67f   :  { %6007 = vtanh.f32 %v7247_v40  ;;  %v2320_v21 = vsel %vm2319_vm10, %v6004_v55, %v2316_v12 }
 0x680   :  { %v2325_v25 = vsel %vm2322_vm11, %v2324_v59, %v2320_v21 }
 0x685   :  { %v6008_v35 = vpop.eup %6007 }
 0x686   :  { %v2331_v26 = vmul.f32 %v6008_v35, %v2325_v25  ;;  %v8236_v35 = vld [vmem:[#allocation9_spill] sm:$0xff] }
 0x687   :  { %v1933_v34 = vadd.f32 %v8236_v35, %v7241_v29 }
 0x688   :  { %2332 = vst [vmem:[%s8154_s6] sm:$0xff] %v2331_v26  ;;  %v2337_v44 = vpack.c.bf16 %v2331_v26, %v2331_v26 }
 0x68a   :  { %2346 = vmatmul.bf16.vlgmr.msrb.gmra.mxu0 %v2337_v44  ;;  %2359 = vmatmul.bf16.vlgmr.msrb.gmra.mxu1 %v2337_v44 }
 0x68b   :  { %2372 = vmatmul.bf16.vlgmr.msrb.gmra.mxu2 %v2337_v44  ;;  %2385 = vmatmul.bf16.vlgmr.msrb.gmra.mxu3 %v2337_v44 }
 0x68c   :  { %2588 = vmatpush.bf16.msrb.mxu0 %v6943_v9  ;;  %2601 = vmatpush.bf16.msrb.mxu1 %v6945_v62 }
 0x68d   :  { %2614 = vmatpush.bf16.msrb.mxu2 %v6950_v45  ;;  %2627 = vmatpush.bf16.msrb.mxu3 %v6947_v24 }
 0x690   :  { %2589 = vmatpush.bf16.msrb.mxu0 %v6954_v6  ;;  %2602 = vmatpush.bf16.msrb.mxu1 %v6957_v8 }
 0x691   :  { %2615 = vmatpush.bf16.msrb.mxu2 %v6965_v33  ;;  %2628 = vmatpush.bf16.msrb.mxu3 %v6960_v22 }
 0x694   :  { %2590 = vmatpush.bf16.msrb.mxu0 %v6968_v17  ;;  %2603 = vmatpush.bf16.msrb.mxu1 %v6970_v15 }
 0x695   :  { %2616 = vmatpush.bf16.msrb.mxu2 %v6976_v58  ;;  %2629 = vmatpush.bf16.msrb.mxu3 %v6972_v46 }
 0x698   :  { %2591 = vmatpush.bf16.msrb.mxu0 %v6980_v38  ;;  %2604 = vmatpush.bf16.msrb.mxu1 %v6984_v61 }
 0x699   :  { %2617 = vmatpush.bf16.msrb.mxu2 %v7006_v20  ;;  %2630 = vmatpush.bf16.msrb.mxu3 %v6990_v3 }
 0x69c   :  { %2592 = vmatpush.bf16.msrb.mxu0 %v6996_v37  ;;  %2605 = vmatpush.bf16.msrb.mxu1 %v6998_v39 }
 0x69d   :  { %2618 = vmatpush.bf16.msrb.mxu2 %v7031_v43  ;;  %2631 = vmatpush.bf16.msrb.mxu3 %v7004_v14 }
 0x6a0   :  { %2593 = vmatpush.bf16.msrb.mxu0 %v7010_v4  ;;  %2606 = vmatpush.bf16.msrb.mxu1 %v7012_v0 }
 0x6a1   :  { %2619 = vmatpush.bf16.msrb.mxu2 %v7041_v16  ;;  %2632 = vmatpush.bf16.msrb.mxu3 %v7018_v2 }
 0x6a4   :  { %2594 = vmatpush.bf16.msrb.mxu0 %v7044_v52  ;;  %2607 = vmatpush.bf16.msrb.mxu1 %v7046_v47 }
 0x6a5   :  { %2620 = vmatpush.bf16.msrb.mxu2 %v7081_v32  ;;  %2633 = vmatpush.bf16.msrb.mxu3 %v7048_v48 }
 0x6a8   :  { %2595 = vmatpush.bf16.msrb.mxu0 %v7068_v1  ;;  %2608 = vmatpush.bf16.msrb.mxu1 %v7079_v28 }
 0x6a9   :  { %2621 = vmatpush.bf16.msrb.mxu2 %v7092_v19  ;;  %2634 = vmatpush.bf16.msrb.mxu3 %v7086_v11 }
 0x707   :  { %v2347_v55 = vpop.f32.mrf.mxu0  ;;  %v2360_v49 = vpop.f32.mrf.mxu1 }
 0x708   :  { %v2390_v27 = vadd.f32 %v2347_v55, %v1875_v18  ;;  %v2391_v54 = vadd.f32 %v2360_v49, %v1904_v31 }
 0x70a   :  { %v5347_v57 = vmul.f32 -1.442695, %v2390_v27  ;;  %v5348_v36 = vmul.f32 -1.442695, %v2391_v54 }
 0x70c   :  { %6009 = vpow2.f32 %v5347_v57 }
 0x70d   :  { %6011 = vpow2.f32 %v5348_v36 }
 0x70e   :  { %v2373_v13 = vpop.f32.mrf.mxu2  ;;  %v2386_v51 = vpop.f32.mrf.mxu3 }
 0x70f   :  { %v2393_v42 = vadd.f32 %v2386_v51, %v1962_v53  ;;  %v2349_v63 = vpop.f32.mrf.mxu0  ;;  %v2362_v30 = vpop.f32.mrf.mxu1  ;;  %v2392_v44 = vadd.f32 %v2373_v13, %v1933_v34 }
 0x711   :  { %v5349_v5 = vmul.f32 -1.442695, %v2393_v42 }
 0x712   :  { %v6010_v50 = vpop.eup %6009 }
 0x713   :  { %v6012_v56 = vpop.eup %6011  ;;  %v2397_v60 = vadd.f32 1.0, %v6010_v50  ;;  %6013 = vpow2.f32 %v5349_v5 }
 0x714   :  { %v2416_v12 = vadd.f32 1.0, %v6012_v56 }
 0x715   :  { %6015 = vrcp.f32 %v2397_v60  ;;  %v2409_v54 = vand.u32 2147483648, %v2397_v60  ;;  %v2407_v53 = vand.u32 2147483647, %v2397_v60  ;;  %vm2403_vm14 = vweird.f32 %v2397_v60 }
 0x716   :  { %6017 = vrcp.f32 %v2416_v12  ;;  %v2375_v7 = vpop.f32.mrf.mxu2  ;;  %v2388_v21 = vpop.f32.mrf.mxu3  ;;  %v2428_v57 = vand.u32 2147483648, %v2416_v12  ;;  %v2426_v42 = vand.u32 2147483647, %v2416_v12  ;;  %vm2422_vm15 = vweird.f32 %v2416_v12 }
 0x717   :  { %v2410_v13 = vor.u32 1.1754944e-38, %v2409_v54  ;;  %vm2408_vm2 = vcmp.eq.f32.partialorder %v2407_v53, 8.507059e+37 }
 0x718   :  { %v2429_v56 = vor.u32 1.1754944e-38, %v2428_v57  ;;  %vm2427_vm3 = vcmp.eq.f32.partialorder %v2426_v42, 8.507059e+37  ;;  %v8238_v42 = vld [vmem:[#allocation13_spill] sm:$0xff] }
 0x719   :  { %v6014_v59 = vpop.eup %6013 }
 0x71a   :  { %v2436_v25 = vadd.f32 1.0, %v6014_v59 }
 0x71b   :  { %v6016_v26 = vpop.eup %6015 }
 0x71c   :  { %v6018_v18 = vpop.eup %6017  ;;  %v2399_v31 = vmul.f32 %v6016_v26, %v2397_v60  ;;  %6019 = vrcp.f32 %v2436_v25  ;;  %vm2404_vm12 = vweird.f32 %v6016_v26  ;;  %vm2442_vm5 = vweird.f32 %v2436_v25 }
 0x71d   :  { %v2418_v55 = vmul.f32 %v6018_v18, %v2416_v12  ;;  %6021 = vtanh.f32 %v2392_v44  ;;  %vm2423_vm13 = vweird.f32 %v6018_v18  ;;  %vm2405_vm0 = vmor %vm2403_vm14, %vm2404_vm12 }
 0x71e   :  { %v2400_v49 = vsub.f32 1.0, %v2399_v31  ;;  %vm2424_vm1 = vmor %vm2422_vm15, %vm2423_vm13 }
 0x71f   :  { %v2419_v27 = vsub.f32 1.0, %v2418_v55 }
 0x720   :  { %v2401_v36 = vmul.f32 %v6016_v26, %v2400_v49 }
 0x721   :  { %v2420_v51 = vmul.f32 %v6018_v18, %v2419_v27  ;;  %v2448_v27 = vand.u32 2147483648, %v2436_v25 }
 0x722   :  { %v6020_v63 = vpop.eup %6019  ;;  %v2402_v30 = vadd.f32 %v6016_v26, %v2401_v36 }
 0x723   :  { %v2421_v5 = vadd.f32 %v6018_v18, %v2420_v51  ;;  %v2438_v50 = vmul.f32 %v6020_v63, %v2436_v25  ;;  %v6022_v21 = vpop.eup %6021  ;;  %vm2443_vm4 = vweird.f32 %v6020_v63  ;;  %v2449_v57 = vor.u32 1.1754944e-38, %v2448_v27 }
 0x724   :  { %v2406_v7 = vsel %vm2405_vm0, %v6016_v26, %v2402_v30  ;;  %v2446_v26 = vand.u32 2147483647, %v2436_v25  ;;  %vm2444_vm6 = vmor %vm2442_vm5, %vm2443_vm4  ;;  %v8237_v25 = vld [vmem:[#allocation10_spill] sm:$0xff] }
 0x725   :  { %v2411_v59 = vsel %vm2408_vm2, %v2410_v13, %v2406_v7  ;;  %v2425_v35 = vsel %vm2424_vm1, %v6018_v18, %v2421_v5  ;;  %v2439_v34 = vsub.f32 1.0, %v2438_v50  ;;  %v1878_v51 = vadd.f32 %v8237_v25, %v7228_v41 }
 0x726   :  { %v2430_v44 = vsel %vm2427_vm3, %v2429_v56, %v2425_v35  ;;  %v2453_v31 = vmul.f32 %v6022_v21, %v2411_v59  ;;  %vm2447_vm7 = vcmp.eq.f32.partialorder %v2446_v26, 8.507059e+37  ;;  %v8239_v21 = vld [vmem:[#allocation12_spill] sm:$0xff] }
 0x727   :  { %v2452_v55 = vmul.f32 %v2430_v44, %v7247_v40  ;;  %v2440_v49 = vmul.f32 %v6020_v63, %v2439_v34  ;;  %v1965_v59 = vadd.f32 %v8239_v21, %v7238_v23 }
 0x729   :  { %v7294_v60 = vadd.f32 %v2453_v31, %v2452_v55  ;;  %v2441_v12 = vadd.f32 %v6020_v63, %v2440_v49 }
 0x72b   :  { %6023 = vtanh.f32 %v7294_v60  ;;  %v2445_v54 = vsel %vm2444_vm6, %v6020_v63, %v2441_v12  ;;  %v1907_v63 = vadd.f32 %v8238_v42, %v7230_v10 }
 0x72c   :  { %v2450_v36 = vsel %vm2447_vm7, %v2449_v57, %v2445_v54 }
 0x731   :  { %v6024_v18 = vpop.eup %6023 }
 0x732   :  { %v2456_v53 = vmul.f32 %v6024_v18, %v2450_v36 }
 0x734   :  { %5350 = vst [vmem:[%s8154_s6 + $0x8] sm:$0xff] %v2456_v53  ;;  %v2462_v40 = vpack.c.bf16 %v2456_v53, %v2456_v53  ;;  %v8240_v53 = vld [vmem:[#allocation11_spill] sm:$0xff] }
 0x736   :  { %2471 = vmatmul.bf16.vlgmr.msra.gmra.mxu0 %v2462_v40  ;;  %2484 = vmatmul.bf16.vlgmr.msra.gmra.mxu1 %v2462_v40 }
 0x737   :  { %2497 = vmatmul.bf16.vlgmr.msra.gmra.mxu2 %v2462_v40  ;;  %2510 = vmatmul.bf16.vlgmr.msra.gmra.mxu3 %v2462_v40  ;;  %v1936_v40 = vadd.f32 %v8240_v53, %v7241_v29 }
 0x738   :  { %2713 = vmatpush.bf16.msra.mxu0 %v6943_v9  ;;  %2726 = vmatpush.bf16.msra.mxu1 %v6945_v62 }
 0x739   :  { %2739 = vmatpush.bf16.msra.mxu2 %v6950_v45  ;;  %2752 = vmatpush.bf16.msra.mxu3 %v6947_v24 }
 0x73c   :  { %2714 = vmatpush.bf16.msra.mxu0 %v6954_v6  ;;  %2727 = vmatpush.bf16.msra.mxu1 %v6957_v8 }
 0x73d   :  { %2740 = vmatpush.bf16.msra.mxu2 %v6965_v33  ;;  %2753 = vmatpush.bf16.msra.mxu3 %v6960_v22 }
 0x740   :  { %2715 = vmatpush.bf16.msra.mxu0 %v6968_v17  ;;  %2728 = vmatpush.bf16.msra.mxu1 %v6970_v15 }
 0x741   :  { %2741 = vmatpush.bf16.msra.mxu2 %v6976_v58  ;;  %2754 = vmatpush.bf16.msra.mxu3 %v6972_v46 }
 0x744   :  { %2716 = vmatpush.bf16.msra.mxu0 %v6980_v38  ;;  %2729 = vmatpush.bf16.msra.mxu1 %v6984_v61 }
 0x745   :  { %2742 = vmatpush.bf16.msra.mxu2 %v7006_v20  ;;  %2755 = vmatpush.bf16.msra.mxu3 %v6990_v3 }
 0x748   :  { %2717 = vmatpush.bf16.msra.mxu0 %v6996_v37  ;;  %2730 = vmatpush.bf16.msra.mxu1 %v6998_v39 }
 0x749   :  { %2743 = vmatpush.bf16.msra.mxu2 %v7031_v43  ;;  %2756 = vmatpush.bf16.msra.mxu3 %v7004_v14 }
 0x74c   :  { %2718 = vmatpush.bf16.msra.mxu0 %v7010_v4  ;;  %2731 = vmatpush.bf16.msra.mxu1 %v7012_v0 }
 0x74d   :  { %2744 = vmatpush.bf16.msra.mxu2 %v7041_v16  ;;  %2757 = vmatpush.bf16.msra.mxu3 %v7018_v2 }
 0x750   :  { %2719 = vmatpush.bf16.msra.mxu0 %v7044_v52  ;;  %2732 = vmatpush.bf16.msra.mxu1 %v7046_v47 }
 0x751   :  { %2745 = vmatpush.bf16.msra.mxu2 %v7081_v32  ;;  %2758 = vmatpush.bf16.msra.mxu3 %v7048_v48 }
 0x754   :  { %2720 = vmatpush.bf16.msra.mxu0 %v7068_v1  ;;  %2733 = vmatpush.bf16.msra.mxu1 %v7079_v28 }
 0x755   :  { %2746 = vmatpush.bf16.msra.mxu2 %v7092_v19  ;;  %2759 = vmatpush.bf16.msra.mxu3 %v7086_v11 }
 0x7b3   :  { %v2472_v30 = vpop.f32.mrf.mxu0  ;;  %v2485_v13 = vpop.f32.mrf.mxu1 }
 0x7b4   :  { %v2515_v5 = vadd.f32 %v2472_v30, %v1878_v51  ;;  %v2516_v50 = vadd.f32 %v2485_v13, %v1907_v63 }
 0x7b6   :  { %v5351_v56 = vmul.f32 -1.442695, %v2515_v5  ;;  %v5352_v7 = vmul.f32 -1.442695, %v2516_v50 }
 0x7b8   :  { %6025 = vpow2.f32 %v5351_v56 }
 0x7b9   :  { %6027 = vpow2.f32 %v5352_v7 }
 0x7ba   :  { %v2498_v35 = vpop.f32.mrf.mxu2  ;;  %v2511_v34 = vpop.f32.mrf.mxu3 }
 0x7bb   :  { %v2518_v44 = vadd.f32 %v2511_v34, %v1965_v59  ;;  %v2474_v31 = vpop.f32.mrf.mxu0  ;;  %v2487_v55 = vpop.f32.mrf.mxu1  ;;  %v2517_v42 = vadd.f32 %v2498_v35, %v1936_v40 }
 0x7bd   :  { %v5353_v49 = vmul.f32 -1.442695, %v2518_v44 }
 0x7be   :  { %v6026_v12 = vpop.eup %6025 }
 0x7bf   :  { %v6028_v27 = vpop.eup %6027  ;;  %v2522_v26 = vadd.f32 1.0, %v6026_v12  ;;  %6029 = vpow2.f32 %v5353_v49 }
 0x7c0   :  { %v2541_v54 = vadd.f32 1.0, %v6028_v27 }
 0x7c1   :  { %6031 = vrcp.f32 %v2522_v26  ;;  %v2534_v56 = vand.u32 2147483648, %v2522_v26  ;;  %v2532_v59 = vand.u32 2147483647, %v2522_v26  ;;  %vm2528_vm10 = vweird.f32 %v2522_v26 }
 0x7c2   :  { %6033 = vrcp.f32 %v2541_v54  ;;  %v2500_v57 = vpop.f32.mrf.mxu2  ;;  %v2513_v18 = vpop.f32.mrf.mxu3  ;;  %v2553_v7 = vand.u32 2147483648, %v2541_v54  ;;  %v2551_v44 = vand.u32 2147483647, %v2541_v54  ;;  %vm2547_vm11 = vweird.f32 %v2541_v54 }
 0x7c3   :  { %v2535_v35 = vor.u32 1.1754944e-38, %v2534_v56  ;;  %vm2533_vm14 = vcmp.eq.f32.partialorder %v2532_v59, 8.507059e+37 }
 0x7c4   :  { %v2554_v27 = vor.u32 1.1754944e-38, %v2553_v7  ;;  %vm2552_vm15 = vcmp.eq.f32.partialorder %v2551_v44, 8.507059e+37  ;;  %v8242_v44 = vld [vmem:[#allocation16_spill] sm:$0xff] }
 0x7c5   :  { %v6030_v36 = vpop.eup %6029 }
 0x7c6   :  { %v2561_v25 = vadd.f32 1.0, %v6030_v36 }
 0x7c7   :  { %v6032_v51 = vpop.eup %6031 }
 0x7c8   :  { %v6034_v63 = vpop.eup %6033  ;;  %v2524_v30 = vmul.f32 %v6032_v51, %v2522_v26  ;;  %6035 = vrcp.f32 %v2561_v25  ;;  %vm2529_vm8 = vweird.f32 %v6032_v51  ;;  %vm2567_vm1 = vweird.f32 %v2561_v25 }
 0x7c9   :  { %v2543_v13 = vmul.f32 %v6034_v63, %v2541_v54  ;;  %6037 = vtanh.f32 %v2517_v42  ;;  %vm2548_vm9 = vweird.f32 %v6034_v63  ;;  %vm2530_vm12 = vmor %vm2528_vm10, %vm2529_vm8 }
 0x7ca   :  { %v2525_v5 = vsub.f32 1.0, %v2524_v30  ;;  %vm2549_vm13 = vmor %vm2547_vm11, %vm2548_vm9 }
 0x7cb   :  { %v2544_v50 = vsub.f32 1.0, %v2543_v13 }
 0x7cc   :  { %v2526_v21 = vmul.f32 %v6032_v51, %v2525_v5 }
 0x7cd   :  { %v2545_v34 = vmul.f32 %v6034_v63, %v2544_v50  ;;  %v2573_v50 = vand.u32 2147483648, %v2561_v25 }
 0x7ce   :  { %v6036_v31 = vpop.eup %6035  ;;  %v2527_v55 = vadd.f32 %v6032_v51, %v2526_v21 }
 0x7cf   :  { %v2546_v49 = vadd.f32 %v6034_v63, %v2545_v34  ;;  %v2563_v12 = vmul.f32 %v6036_v31, %v2561_v25  ;;  %v6038_v18 = vpop.eup %6037  ;;  %vm2568_vm0 = vweird.f32 %v6036_v31  ;;  %v2574_v7 = vor.u32 1.1754944e-38, %v2573_v50 }
 0x7d0   :  { %v2531_v57 = vsel %vm2530_vm12, %v6032_v51, %v2527_v55  ;;  %v2571_v51 = vand.u32 2147483647, %v2561_v25  ;;  %vm2569_vm2 = vmor %vm2567_vm1, %vm2568_vm0  ;;  %v8241_v25 = vld [vmem:[#allocation14_spill] sm:$0xff] }
 0x7d1   :  { %v2536_v36 = vsel %vm2533_vm14, %v2535_v35, %v2531_v57  ;;  %v2550_v53 = vsel %vm2549_vm13, %v6034_v63, %v2546_v49  ;;  %v2564_v40 = vsub.f32 1.0, %v2563_v12  ;;  %v1880_v34 = vadd.f32 %v8241_v25, %v7228_v41 }
 0x7d2   :  { %v2555_v42 = vsel %vm2552_vm15, %v2554_v27, %v2550_v53  ;;  %v2578_v30 = vmul.f32 %v6038_v18, %v2536_v36  ;;  %vm2572_vm3 = vcmp.eq.f32.partialorder %v2571_v51, 8.507059e+37  ;;  %v8243_v18 = vld [vmem:[#allocation17_spill] sm:$0xff] }
 0x7d3   :  { %v2577_v13 = vmul.f32 %v2555_v42, %v7294_v60  ;;  %v2565_v5 = vmul.f32 %v6036_v31, %v2564_v40  ;;  %v1967_v36 = vadd.f32 %v8243_v18, %v7238_v23 }
 0x7d5   :  { %v7341_v26 = vadd.f32 %v2578_v30, %v2577_v13  ;;  %v2566_v54 = vadd.f32 %v6036_v31, %v2565_v5 }
 0x7d7   :  { %6039 = vtanh.f32 %v7341_v26  ;;  %v2570_v56 = vsel %vm2569_vm2, %v6036_v31, %v2566_v54  ;;  %v1909_v31 = vadd.f32 %v8242_v44, %v7230_v10 }
 0x7d8   :  { %v2575_v21 = vsel %vm2572_vm3, %v2574_v7, %v2570_v56 }
 0x7dd   :  { %v6040_v63 = vpop.eup %6039 }
 0x7de   :  { %v2581_v59 = vmul.f32 %v6040_v63, %v2575_v21 }
 0x7e0   :  { %5354 = vst [vmem:[%s8154_s6 + $0x10] sm:$0xff] %v2581_v59  ;;  %v2587_v60 = vpack.c.bf16 %v2581_v59, %v2581_v59  ;;  %v8244_v59 = vld [vmem:[#allocation15_spill] sm:$0xff] }
 0x7e2   :  { %2596 = vmatmul.bf16.vlgmr.msrb.gmra.mxu0 %v2587_v60  ;;  %2609 = vmatmul.bf16.vlgmr.msrb.gmra.mxu1 %v2587_v60 }
 0x7e3   :  { %2622 = vmatmul.bf16.vlgmr.msrb.gmra.mxu2 %v2587_v60  ;;  %2635 = vmatmul.bf16.vlgmr.msrb.gmra.mxu3 %v2587_v60  ;;  %v1938_v60 = vadd.f32 %v8244_v59, %v7241_v29 }
 0x7e4   :  { %2838 = vmatpush.bf16.msrb.mxu0 %v6943_v9  ;;  %2851 = vmatpush.bf16.msrb.mxu1 %v6945_v62 }
 0x7e5   :  { %2864 = vmatpush.bf16.msrb.mxu2 %v6950_v45  ;;  %2877 = vmatpush.bf16.msrb.mxu3 %v6947_v24 }
 0x7e8   :  { %2839 = vmatpush.bf16.msrb.mxu0 %v6954_v6  ;;  %2852 = vmatpush.bf16.msrb.mxu1 %v6957_v8 }
 0x7e9   :  { %2865 = vmatpush.bf16.msrb.mxu2 %v6965_v33  ;;  %2878 = vmatpush.bf16.msrb.mxu3 %v6960_v22 }
 0x7ec   :  { %2840 = vmatpush.bf16.msrb.mxu0 %v6968_v17  ;;  %2853 = vmatpush.bf16.msrb.mxu1 %v6970_v15 }
 0x7ed   :  { %2866 = vmatpush.bf16.msrb.mxu2 %v6976_v58  ;;  %2879 = vmatpush.bf16.msrb.mxu3 %v6972_v46 }
 0x7f0   :  { %2841 = vmatpush.bf16.msrb.mxu0 %v6980_v38  ;;  %2854 = vmatpush.bf16.msrb.mxu1 %v6984_v61 }
 0x7f1   :  { %2867 = vmatpush.bf16.msrb.mxu2 %v7006_v20  ;;  %2880 = vmatpush.bf16.msrb.mxu3 %v6990_v3 }
 0x7f4   :  { %2842 = vmatpush.bf16.msrb.mxu0 %v6996_v37  ;;  %2855 = vmatpush.bf16.msrb.mxu1 %v6998_v39 }
 0x7f5   :  { %2868 = vmatpush.bf16.msrb.mxu2 %v7031_v43  ;;  %2881 = vmatpush.bf16.msrb.mxu3 %v7004_v14 }
 0x7f8   :  { %2843 = vmatpush.bf16.msrb.mxu0 %v7010_v4  ;;  %2856 = vmatpush.bf16.msrb.mxu1 %v7012_v0 }
 0x7f9   :  { %2869 = vmatpush.bf16.msrb.mxu2 %v7041_v16  ;;  %2882 = vmatpush.bf16.msrb.mxu3 %v7018_v2 }
 0x7fc   :  { %2844 = vmatpush.bf16.msrb.mxu0 %v7044_v52  ;;  %2857 = vmatpush.bf16.msrb.mxu1 %v7046_v47 }
 0x7fd   :  { %2870 = vmatpush.bf16.msrb.mxu2 %v7081_v32  ;;  %2883 = vmatpush.bf16.msrb.mxu3 %v7048_v48 }
 0x800   :  { %2845 = vmatpush.bf16.msrb.mxu0 %v7068_v1  ;;  %2858 = vmatpush.bf16.msrb.mxu1 %v7079_v28 }
 0x801   :  { %2871 = vmatpush.bf16.msrb.mxu2 %v7092_v19  ;;  %2884 = vmatpush.bf16.msrb.mxu3 %v7086_v11 }
 0x85f   :  { %v2597_v55 = vpop.f32.mrf.mxu0  ;;  %v2610_v35 = vpop.f32.mrf.mxu1 }
 0x860   :  { %v2640_v49 = vadd.f32 %v2597_v55, %v1880_v34  ;;  %v2641_v12 = vadd.f32 %v2610_v35, %v1909_v31 }
 0x862   :  { %v5355_v27 = vmul.f32 -1.442695, %v2640_v49  ;;  %v5356_v57 = vmul.f32 -1.442695, %v2641_v12 }
 0x864   :  { %6041 = vpow2.f32 %v5355_v27 }
 0x865   :  { %6043 = vpow2.f32 %v5356_v57 }
 0x866   :  { %v2623_v53 = vpop.f32.mrf.mxu2  ;;  %v2636_v40 = vpop.f32.mrf.mxu3 }
 0x867   :  { %v2643_v42 = vadd.f32 %v2636_v40, %v1967_v36  ;;  %v2599_v30 = vpop.f32.mrf.mxu0  ;;  %v2612_v13 = vpop.f32.mrf.mxu1  ;;  %v2642_v44 = vadd.f32 %v2623_v53, %v1938_v60 }
 0x869   :  { %v5357_v5 = vmul.f32 -1.442695, %v2643_v42 }
 0x86a   :  { %v6042_v54 = vpop.eup %6041 }
 0x86b   :  { %v6044_v50 = vpop.eup %6043  ;;  %v2647_v51 = vadd.f32 1.0, %v6042_v54  ;;  %6045 = vpow2.f32 %v5357_v5 }
 0x86c   :  { %v2666_v56 = vadd.f32 1.0, %v6044_v50 }
 0x86d   :  { %6047 = vrcp.f32 %v2647_v51  ;;  %v2659_v27 = vand.u32 2147483648, %v2647_v51  ;;  %v2657_v36 = vand.u32 2147483647, %v2647_v51  ;;  %vm2653_vm6 = vweird.f32 %v2647_v51 }
 0x86e   :  { %6049 = vrcp.f32 %v2666_v56  ;;  %v2625_v7 = vpop.f32.mrf.mxu2  ;;  %v2638_v63 = vpop.f32.mrf.mxu3  ;;  %v2678_v57 = vand.u32 2147483648, %v2666_v56  ;;  %v2676_v42 = vand.u32 2147483647, %v2666_v56  ;;  %vm2672_vm7 = vweird.f32 %v2666_v56 }
 0x86f   :  { %v2660_v53 = vor.u32 1.1754944e-38, %v2659_v27  ;;  %vm2658_vm10 = vcmp.eq.f32.partialorder %v2657_v36, 8.507059e+37 }
 0x870   :  { %v2679_v50 = vor.u32 1.1754944e-38, %v2678_v57  ;;  %vm2677_vm11 = vcmp.eq.f32.partialorder %v2676_v42, 8.507059e+37  ;;  %v8246_v42 = vld [vmem:[#allocation21_spill] sm:$0xff] }
 0x871   :  { %v6046_v21 = vpop.eup %6045 }
 0x872   :  { %v2686_v25 = vadd.f32 1.0, %v6046_v21 }
 0x873   :  { %v6048_v34 = vpop.eup %6047 }
 0x874   :  { %v6050_v31 = vpop.eup %6049  ;;  %v2649_v55 = vmul.f32 %v6048_v34, %v2647_v51  ;;  %6051 = vrcp.f32 %v2686_v25  ;;  %vm2654_vm4 = vweird.f32 %v6048_v34  ;;  %vm2692_vm13 = vweird.f32 %v2686_v25 }
 0x875   :  { %v2668_v35 = vmul.f32 %v6050_v31, %v2666_v56  ;;  %6053 = vtanh.f32 %v2642_v44  ;;  %vm2673_vm5 = vweird.f32 %v6050_v31  ;;  %vm2655_vm8 = vmor %vm2653_vm6, %vm2654_vm4 }
 0x876   :  { %v2650_v49 = vsub.f32 1.0, %v2649_v55  ;;  %vm2674_vm9 = vmor %vm2672_vm7, %vm2673_vm5 }
 0x877   :  { %v2669_v12 = vsub.f32 1.0, %v2668_v35 }
 0x878   :  { %v2651_v18 = vmul.f32 %v6048_v34, %v2650_v49 }
 0x879   :  { %v2670_v40 = vmul.f32 %v6050_v31, %v2669_v12  ;;  %v2698_v12 = vand.u32 2147483648, %v2686_v25 }
 0x87a   :  { %v6052_v30 = vpop.eup %6051  ;;  %v2652_v13 = vadd.f32 %v6048_v34, %v2651_v18 }
 0x87b   :  { %v2671_v5 = vadd.f32 %v6050_v31, %v2670_v40  ;;  %v2688_v54 = vmul.f32 %v6052_v30, %v2686_v25  ;;  %v6054_v63 = vpop.eup %6053  ;;  %vm2693_vm12 = vweird.f32 %v6052_v30  ;;  %v2699_v57 = vor.u32 1.1754944e-38, %v2698_v12 }
 0x87c   :  { %v2656_v7 = vsel %vm2655_vm8, %v6048_v34, %v2652_v13  ;;  %v2696_v34 = vand.u32 2147483647, %v2686_v25  ;;  %vm2694_vm14 = vmor %vm2692_vm13, %vm2693_vm12  ;;  %v8245_v25 = vld [vmem:[#allocation18_spill] sm:$0xff] }
 0x87d   :  { %v2661_v21 = vsel %vm2658_vm10, %v2660_v53, %v2656_v7  ;;  %v2675_v59 = vsel %vm2674_vm9, %v6050_v31, %v2671_v5  ;;  %v2689_v60 = vsub.f32 1.0, %v2688_v54  ;;  %v1883_v40 = vadd.f32 %v8245_v25, %v7228_v41 }
 0x87e   :  { %v2680_v44 = vsel %vm2677_vm11, %v2679_v50, %v2675_v59  ;;  %v2703_v55 = vmul.f32 %v6054_v63, %v2661_v21  ;;  %vm2697_vm15 = vcmp.eq.f32.partialorder %v2696_v34, 8.507059e+37  ;;  %v8247_v63 = vld [vmem:[#allocation20_spill] sm:$0xff] }
 0x87f   :  { %v2702_v35 = vmul.f32 %v2680_v44, %v7341_v26  ;;  %v2690_v49 = vmul.f32 %v6052_v30, %v2689_v60  ;;  %v1970_v21 = vadd.f32 %v8247_v63, %v7238_v23 }
 0x881   :  { %v7388_v51 = vadd.f32 %v2703_v55, %v2702_v35  ;;  %v2691_v56 = vadd.f32 %v6052_v30, %v2690_v49 }
 0x883   :  { %6055 = vtanh.f32 %v7388_v51  ;;  %v2695_v27 = vsel %vm2694_vm14, %v6052_v30, %v2691_v56  ;;  %v1912_v30 = vadd.f32 %v8246_v42, %v7230_v10 }
 0x884   :  { %v2700_v18 = vsel %vm2697_vm15, %v2699_v57, %v2695_v27 }
 0x889   :  { %v6056_v31 = vpop.eup %6055 }
 0x88a   :  { %v7391_v36 = vmul.f32 %v6056_v31, %v2700_v18 }
 0x88c   :  { %v2712_v26 = vpack.c.bf16 %v7391_v36, %v7391_v36 }
 0x88e   :  { %2721 = vmatmul.bf16.vlgmr.msra.gmra.mxu0 %v2712_v26  ;;  %2734 = vmatmul.bf16.vlgmr.msra.gmra.mxu1 %v2712_v26 }
 0x88f   :  { %2747 = vmatmul.bf16.vlgmr.msra.gmra.mxu2 %v2712_v26  ;;  %2760 = vmatmul.bf16.vlgmr.msra.gmra.mxu3 %v2712_v26  ;;  %v8248_v26 = vld [vmem:[#allocation19_spill] sm:$0xff] }
 0x890   :  { %2963 = vmatpush.bf16.msra.mxu0 %v6943_v9  ;;  %2976 = vmatpush.bf16.msra.mxu1 %v6945_v62  ;;  %v1941_v25 = vadd.f32 %v8248_v26, %v7241_v29 }
 0x891   :  { %2989 = vmatpush.bf16.msra.mxu2 %v6950_v45  ;;  %3002 = vmatpush.bf16.msra.mxu3 %v6947_v24 }
 0x894   :  { %2964 = vmatpush.bf16.msra.mxu0 %v6954_v6  ;;  %2977 = vmatpush.bf16.msra.mxu1 %v6957_v8 }
 0x895   :  { %2990 = vmatpush.bf16.msra.mxu2 %v6965_v33  ;;  %3003 = vmatpush.bf16.msra.mxu3 %v6960_v22 }
 0x898   :  { %2965 = vmatpush.bf16.msra.mxu0 %v6968_v17  ;;  %2978 = vmatpush.bf16.msra.mxu1 %v6970_v15 }
 0x899   :  { %2991 = vmatpush.bf16.msra.mxu2 %v6976_v58  ;;  %3004 = vmatpush.bf16.msra.mxu3 %v6972_v46 }
 0x89c   :  { %2966 = vmatpush.bf16.msra.mxu0 %v6980_v38  ;;  %2979 = vmatpush.bf16.msra.mxu1 %v6984_v61 }
 0x89d   :  { %2992 = vmatpush.bf16.msra.mxu2 %v7006_v20  ;;  %3005 = vmatpush.bf16.msra.mxu3 %v6990_v3 }
 0x8a0   :  { %2967 = vmatpush.bf16.msra.mxu0 %v6996_v37  ;;  %2980 = vmatpush.bf16.msra.mxu1 %v6998_v39 }
 0x8a1   :  { %2993 = vmatpush.bf16.msra.mxu2 %v7031_v43  ;;  %3006 = vmatpush.bf16.msra.mxu3 %v7004_v14 }
 0x8a4   :  { %2968 = vmatpush.bf16.msra.mxu0 %v7010_v4  ;;  %2981 = vmatpush.bf16.msra.mxu1 %v7012_v0 }
 0x8a5   :  { %2994 = vmatpush.bf16.msra.mxu2 %v7041_v16  ;;  %3007 = vmatpush.bf16.msra.mxu3 %v7018_v2 }
 0x8a8   :  { %2969 = vmatpush.bf16.msra.mxu0 %v7044_v52  ;;  %2982 = vmatpush.bf16.msra.mxu1 %v7046_v47 }
 0x8a9   :  { %2995 = vmatpush.bf16.msra.mxu2 %v7081_v32  ;;  %3008 = vmatpush.bf16.msra.mxu3 %v7048_v48 }
 0x8ac   :  { %2970 = vmatpush.bf16.msra.mxu0 %v7068_v1  ;;  %2983 = vmatpush.bf16.msra.mxu1 %v7079_v28 }
 0x8ad   :  { %2996 = vmatpush.bf16.msra.mxu2 %v7092_v19  ;;  %3009 = vmatpush.bf16.msra.mxu3 %v7086_v11 }
 0x90b   :  { %v2722_v13 = vpop.f32.mrf.mxu0  ;;  %v2735_v53 = vpop.f32.mrf.mxu1 }
 0x90c   :  { %v2765_v5 = vadd.f32 %v2722_v13, %v1883_v40  ;;  %v2766_v54 = vadd.f32 %v2735_v53, %v1912_v30 }
 0x90e   :  { %v5359_v50 = vmul.f32 -1.442695, %v2765_v5  ;;  %v5360_v7 = vmul.f32 -1.442695, %v2766_v54 }
 0x910   :  { %6057 = vpow2.f32 %v5359_v50 }
 0x911   :  { %6059 = vpow2.f32 %v5360_v7 }
 0x912   :  { %v2748_v59 = vpop.f32.mrf.mxu2  ;;  %v2761_v60 = vpop.f32.mrf.mxu3 }
 0x913   :  { %v2768_v44 = vadd.f32 %v2761_v60, %v1970_v21  ;;  %v2724_v55 = vpop.f32.mrf.mxu0  ;;  %v2737_v35 = vpop.f32.mrf.mxu1  ;;  %v2767_v30 = vadd.f32 %v2748_v59, %v1941_v25 }
 0x915   :  { %v5361_v49 = vmul.f32 -1.442695, %v2768_v44 }
 0x916   :  { %v6058_v56 = vpop.eup %6057 }
 0x917   :  { %v6060_v12 = vpop.eup %6059  ;;  %v2772_v34 = vadd.f32 1.0, %v6058_v56  ;;  %6061 = vpow2.f32 %v5361_v49 }
 0x918   :  { %v2791_v27 = vadd.f32 1.0, %v6060_v12 }
 0x919   :  { %6063 = vrcp.f32 %v2772_v34  ;;  %v2784_v7 = vand.u32 2147483648, %v2772_v34  ;;  %v2782_v60 = vand.u32 2147483647, %v2772_v34  ;;  %vm2778_vm2 = vweird.f32 %v2772_v34 }
 0x91a   :  { %6065 = vrcp.f32 %v2791_v27  ;;  %v2750_v57 = vpop.f32.mrf.mxu2  ;;  %v2763_v31 = vpop.f32.mrf.mxu3  ;;  %v2803_v63 = vand.u32 2147483648, %v2791_v27  ;;  %v2801_v55 = vand.u32 2147483647, %v2791_v27  ;;  %vm2797_vm3 = vweird.f32 %v2791_v27 }
 0x91b   :  { %v2785_v59 = vor.u32 1.1754944e-38, %v2784_v7  ;;  %vm2783_vm6 = vcmp.eq.f32.partialorder %v2782_v60, 8.507059e+37 }
 0x91c   :  { %v2804_v57 = vor.u32 1.1754944e-38, %v2803_v63  ;;  %vm2802_vm7 = vcmp.eq.f32.partialorder %v2801_v55, 8.507059e+37 }
 0x91d   :  { %v6062_v18 = vpop.eup %6061 }
 0x91e   :  { %v2811_v40 = vadd.f32 1.0, %v6062_v18 }
 0x91f   :  { %v6064_v42 = vpop.eup %6063 }
 0x920   :  { %v6066_v13 = vpop.eup %6065  ;;  %v2774_v53 = vmul.f32 %v6064_v42, %v2772_v34  ;;  %6067 = vrcp.f32 %v2811_v40  ;;  %vm2779_vm0 = vweird.f32 %v6064_v42  ;;  %v2823_v7 = vand.u32 2147483648, %v2811_v40 }
 0x921   :  { %v2793_v5 = vmul.f32 %v6066_v13, %v2791_v27  ;;  %6069 = vtanh.f32 %v2767_v30  ;;  %vm2798_vm1 = vweird.f32 %v6066_v13  ;;  %vm2780_vm4 = vmor %vm2778_vm2, %vm2779_vm0  ;;  %vm2817_vm9 = vweird.f32 %v2811_v40 }
 0x922   :  { %v2775_v54 = vsub.f32 1.0, %v2774_v53  ;;  %vm2799_vm5 = vmor %vm2797_vm3, %vm2798_vm1 }
 0x923   :  { %v2794_v50 = vsub.f32 1.0, %v2793_v5 }
 0x924   :  { %v2776_v21 = vmul.f32 %v6064_v42, %v2775_v54 }
 0x925   :  { %v2795_v44 = vmul.f32 %v6066_v13, %v2794_v50 }
 0x926   :  { %v6068_v35 = vpop.eup %6067  ;;  %v2777_v49 = vadd.f32 %v6064_v42, %v2776_v21  ;;  %v2824_v21 = vor.u32 1.1754944e-38, %v2823_v7 }
 0x927   :  { %v2796_v56 = vadd.f32 %v6066_v13, %v2795_v44  ;;  %v2813_v12 = vmul.f32 %v6068_v35, %v2811_v40  ;;  %v6070_v18 = vpop.eup %6069  ;;  %vm2818_vm8 = vweird.f32 %v6068_v35 }
 0x928   :  { %v2781_v31 = vsel %vm2780_vm4, %v6064_v42, %v2777_v49  ;;  %v2821_v42 = vand.u32 2147483647, %v2811_v40  ;;  %vm2819_vm10 = vmor %vm2817_vm9, %vm2818_vm8 }
 0x929   :  { %v2786_v26 = vsel %vm2783_vm6, %v2785_v59, %v2781_v31  ;;  %v2800_v25 = vsel %vm2799_vm5, %v6066_v13, %v2796_v56  ;;  %v2814_v30 = vsub.f32 1.0, %v2813_v12 }
 0x92a   :  { %v2805_v53 = vsel %vm2802_vm7, %v2804_v57, %v2800_v25  ;;  %v2828_v5 = vmul.f32 %v6070_v18, %v2786_v26  ;;  %vm2822_vm11 = vcmp.eq.f32.partialorder %v2821_v42, 8.507059e+37 }
 0x92b   :  { %v2827_v54 = vmul.f32 %v2805_v53, %v7388_v51  ;;  %v2815_v50 = vmul.f32 %v6068_v35, %v2814_v30 }
 0x92d   :  { %v7436_v34 = vadd.f32 %v2828_v5, %v2827_v54  ;;  %v2816_v27 = vadd.f32 %v6068_v35, %v2815_v50 }
 0x92f   :  { %6071 = vtanh.f32 %v7436_v34  ;;  %v2820_v63 = vsel %vm2819_vm10, %v6068_v35, %v2816_v27 }
 0x930   :  { %v2825_v60 = vsel %vm2822_vm11, %v2824_v21, %v2820_v63 }
 0x935   :  { %v6072_v13 = vpop.eup %6071 }
 0x936   :  { %v7439_v44 = vmul.f32 %v6072_v13, %v2825_v60 }
 0x938   :  { %v2837_v51 = vpack.c.bf16 %v7439_v44, %v7439_v44 }
 0x93a   :  { %2846 = vmatmul.bf16.vlgmr.msrb.gmra.mxu0 %v2837_v51  ;;  %2859 = vmatmul.bf16.vlgmr.msrb.gmra.mxu1 %v2837_v51 }
 0x93b   :  { %2872 = vmatmul.bf16.vlgmr.msrb.gmra.mxu2 %v2837_v51  ;;  %2885 = vmatmul.bf16.vlgmr.msrb.gmra.mxu3 %v2837_v51 }
 0x93c   :  { %3088 = vmatpush.bf16.msrb.mxu0 %v6943_v9  ;;  %3101 = vmatpush.bf16.msrb.mxu1 %v6945_v62  ;;  %v8249_v9 = vld [vmem:[#allocation22_spill] sm:$0xff] }
 0x93d   :  { %3114 = vmatpush.bf16.msrb.mxu2 %v6950_v45  ;;  %3127 = vmatpush.bf16.msrb.mxu3 %v6947_v24  ;;  %v1885_v62 = vadd.f32 %v8249_v9, %v7228_v41  ;;  %v8250_v24 = vld [vmem:[#allocation24_spill] sm:$0xff] }
 0x93e   :  { %v1914_v45 = vadd.f32 %v8250_v24, %v7230_v10 }
 0x940   :  { %3089 = vmatpush.bf16.msrb.mxu0 %v6954_v6  ;;  %3102 = vmatpush.bf16.msrb.mxu1 %v6957_v8 }
 0x941   :  { %3115 = vmatpush.bf16.msrb.mxu2 %v6965_v33  ;;  %3128 = vmatpush.bf16.msrb.mxu3 %v6960_v22 }
 0x944   :  { %3090 = vmatpush.bf16.msrb.mxu0 %v6968_v17  ;;  %3103 = vmatpush.bf16.msrb.mxu1 %v6970_v15 }
 0x945   :  { %3116 = vmatpush.bf16.msrb.mxu2 %v6976_v58  ;;  %3129 = vmatpush.bf16.msrb.mxu3 %v6972_v46  ;;  %v8251_v46 = vld [vmem:[#allocation25_spill] sm:$0xff] }
 0x946   :  { %v1972_v58 = vadd.f32 %v8251_v46, %v7238_v23  ;;  %v5825_v46 = vld [vmem:[#allocation3 + $0x2e4] sm:$0xf] }
 0x948   :  { %3091 = vmatpush.bf16.msrb.mxu0 %v6980_v38  ;;  %3104 = vmatpush.bf16.msrb.mxu1 %v6984_v61 }
 0x949   :  { %3117 = vmatpush.bf16.msrb.mxu2 %v7006_v20  ;;  %3130 = vmatpush.bf16.msrb.mxu3 %v6990_v3 }
 0x94c   :  { %3092 = vmatpush.bf16.msrb.mxu0 %v6996_v37  ;;  %3105 = vmatpush.bf16.msrb.mxu1 %v6998_v39 }
 0x94d   :  { %3118 = vmatpush.bf16.msrb.mxu2 %v7031_v43  ;;  %3131 = vmatpush.bf16.msrb.mxu3 %v7004_v14 }
 0x950   :  { %3093 = vmatpush.bf16.msrb.mxu0 %v7010_v4  ;;  %3106 = vmatpush.bf16.msrb.mxu1 %v7012_v0 }
 0x951   :  { %3119 = vmatpush.bf16.msrb.mxu2 %v7041_v16  ;;  %3132 = vmatpush.bf16.msrb.mxu3 %v7018_v2 }
 0x954   :  { %3094 = vmatpush.bf16.msrb.mxu0 %v7044_v52  ;;  %3107 = vmatpush.bf16.msrb.mxu1 %v7046_v47  ;;  %v8252_v47 = vld [vmem:[#allocation23_spill] sm:$0xff] }
 0x955   :  { %3120 = vmatpush.bf16.msrb.mxu2 %v7081_v32  ;;  %3133 = vmatpush.bf16.msrb.mxu3 %v7048_v48  ;;  %v1943_v48 = vadd.f32 %v8252_v47, %v7241_v29 }
 0x958   :  { %3095 = vmatpush.bf16.msrb.mxu0 %v7068_v1  ;;  %3108 = vmatpush.bf16.msrb.mxu1 %v7079_v28 }
 0x959   :  { %3121 = vmatpush.bf16.msrb.mxu2 %v7092_v19  ;;  %3134 = vmatpush.bf16.msrb.mxu3 %v7086_v11 }
 0x9b7   :  { %v2847_v6 = vpop.f32.mrf.mxu0  ;;  %v2860_v8 = vpop.f32.mrf.mxu1 }
 0x9b8   :  { %v2890_v22 = vadd.f32 %v2847_v6, %v1885_v62  ;;  %v2891_v33 = vadd.f32 %v2860_v8, %v1914_v45 }
 0x9ba   :  { %v5363_v17 = vmul.f32 -1.442695, %v2890_v22  ;;  %v5364_v15 = vmul.f32 -1.442695, %v2891_v33 }
 0x9bc   :  { %6073 = vpow2.f32 %v5363_v17  ;;  %v5492_v17 = vld [vmem:[#allocation3 + $0x2e0] sm:$0xf] }
 0x9bd   :  { %6075 = vpow2.f32 %v5364_v15  ;;  %v5827_v15 = vld [vmem:[#allocation3 + $0x2ec] sm:$0xf0] }
 0x9be   :  { %v2873_v38 = vpop.f32.mrf.mxu2  ;;  %v2886_v61 = vpop.f32.mrf.mxu3 }
 0x9bf   :  { %v2893_v3 = vadd.f32 %v2886_v61, %v1972_v58  ;;  %v2849_v37 = vpop.f32.mrf.mxu0  ;;  %v2862_v39 = vpop.f32.mrf.mxu1  ;;  %v2892_v32 = vadd.f32 %v2873_v38, %v1943_v48  ;;  %v8253_v58 = vld [vmem:[#allocation26_spill] sm:$0xff]  ;;  %v8254_v61 = vld [vmem:[#allocation29_spill] sm:$0xff] }
 0x9c0   :  { %v1888_v38 = vadd.f32 %v8253_v58, %v7228_v41  ;;  %v5493_v37 = vor.u32 %v5827_v15, %v5492_v17  ;;  %v5494_v39 = vld [vmem:[#allocation3 + $0x2f0] sm:$0xf0]  ;;  %v5816_v58 = vld [vmem:[#allocation3 + $0x294] sm:$0xf0] }
 0x9c1   :  { %v5365_v14 = vmul.f32 -1.442695, %v2893_v3  ;;  %v1917_v3 = vadd.f32 %v8254_v61, %v7230_v10  ;;  %v5446_v15 = vld [vmem:[#allocation3 + $0x290] sm:$0xf0] }
 0x9c2   :  { %v6074_v20 = vpop.eup %6073 }
 0x9c3   :  { %v6076_v4 = vpop.eup %6075  ;;  %v2897_v0 = vadd.f32 1.0, %v6074_v20  ;;  %6077 = vpow2.f32 %v5365_v14  ;;  %v5500_v14 = vld [vmem:[#allocation3 + $0x2e8] sm:$0xf]  ;;  %v5828_v20 = vld [vmem:[#allocation3 + $0x2f4] sm:$0xf0] }
 0x9c4   :  { %v2916_v2 = vadd.f32 1.0, %v6076_v4 }
 0x9c5   :  { %6079 = vrcp.f32 %v2897_v0  ;;  %v2909_v49 = vand.u32 2147483648, %v2897_v0  ;;  %v2907_v12 = vand.u32 2147483647, %v2897_v0  ;;  %vm2903_vm14 = vweird.f32 %v2897_v0 }
 0x9c6   :  { %6081 = vrcp.f32 %v2916_v2  ;;  %v2875_v43 = vpop.f32.mrf.mxu2  ;;  %v2888_v16 = vpop.f32.mrf.mxu3  ;;  %v2928_v59 = vand.u32 2147483648, %v2916_v2  ;;  %v2926_v31 = vand.u32 2147483647, %v2916_v2  ;;  %vm2922_vm15 = vweird.f32 %v2916_v2 }
 0x9c7   :  { %v2910_v25 = vor.u32 1.1754944e-38, %v2909_v49  ;;  %vm2908_vm2 = vcmp.eq.f32.partialorder %v2907_v12, 8.507059e+37  ;;  %v5501_v43 = vor.u32 %v5828_v20, %v5500_v14  ;;  %v5826_v16 = vld [vmem:[#allocation3 + $0x2ec] sm:$0xf] }
 0x9c8   :  { %v2929_v5 = vor.u32 1.1754944e-38, %v2928_v59  ;;  %vm2927_vm3 = vcmp.eq.f32.partialorder %v2926_v31, 8.507059e+37  ;;  %v5484_v59 = vld [vmem:[#allocation3 + $0x2c8] sm:$0xf]  ;;  %v5822_v12 = vld [vmem:[#allocation3 + $0x2cc] sm:$0xf] }
 0x9c9   :  { %v6078_v52 = vpop.eup %6077  ;;  %v5486_v31 = vld [vmem:[#allocation3 + $0x2d8] sm:$0xf0] }
 0x9ca   :  { %v2936_v1 = vadd.f32 1.0, %v6078_v52  ;;  %v5502_v52 = vld [vmem:[#allocation3 + $0x2f8] sm:$0xf0] }
 0x9cb   :  { %v6080_v28 = vpop.eup %6079 }
 0x9cc   :  { %v6082_v11 = vpop.eup %6081  ;;  %v2899_v19 = vmul.f32 %v6080_v28, %v2897_v0  ;;  %6083 = vrcp.f32 %v2936_v1  ;;  %vm2904_vm12 = vweird.f32 %v6080_v28  ;;  %v2948_v62 = vand.u32 2147483648, %v2936_v1 }
 0x9cd   :  { %v2918_v40 = vmul.f32 %v6082_v11, %v2916_v2  ;;  %6085 = vtanh.f32 %v2892_v32  ;;  %vm2923_vm13 = vweird.f32 %v6082_v11  ;;  %vm2905_vm0 = vmor %vm2903_vm14, %vm2904_vm12  ;;  %vm2942_vm5 = vweird.f32 %v2936_v1  ;;  %v5823_v32 = vld [vmem:[#allocation3 + $0x2cc] sm:$0xf0] }
 0x9ce   :  { %v2900_v55 = vsub.f32 1.0, %v2899_v19  ;;  %vm2924_vm1 = vmor %vm2922_vm15, %vm2923_vm13  ;;  %v2946_v24 = vand.u32 2147483647, %v2936_v1  ;;  %v2949_v6 = vor.u32 1.1754944e-38, %v2948_v62  ;;  %v5497_v2 = vor.u32 %v5825_v46, %v5494_v39  ;;  %v5452_v46 = vld [vmem:[#allocation3 + $0x288] sm:$0xf] }
 0x9cf   :  { %v2919_v35 = vsub.f32 1.0, %v2918_v40  ;;  %v5453_v14 = vor.u32 %v5816_v58, %v5452_v46  ;;  %v5857_v46 = vld [vmem:[#allocation5 + $0x2e4] sm:$0xf] }
 0x9d0   :  { %v2901_v56 = vmul.f32 %v6080_v28, %v2900_v55  ;;  %vm2947_vm7 = vcmp.eq.f32.partialorder %v2946_v24, 8.507059e+37 }
 0x9d1   :  { %v2920_v57 = vmul.f32 %v6082_v11, %v2919_v35  ;;  %v5478_v35 = vld [vmem:[#allocation3 + $0x2d0] sm:$0xf0] }
 0x9d2   :  { %v6084_v18 = vpop.eup %6083  ;;  %v2902_v26 = vadd.f32 %v6080_v28, %v2901_v56  ;;  %v5824_v56 = vld [vmem:[#allocation3 + $0x2d4] sm:$0xf0] }
 0x9d3   :  { %v2921_v30 = vadd.f32 %v6082_v11, %v2920_v57  ;;  %v2938_v53 = vmul.f32 %v6084_v18, %v2936_v1  ;;  %v6086_v50 = vpop.eup %6085  ;;  %vm2943_vm4 = vweird.f32 %v6084_v18  ;;  %v5505_v1 = vor.u32 %v5826_v16, %v5502_v52 }
 0x9d4   :  { %v2906_v54 = vsel %vm2905_vm0, %v6080_v28, %v2902_v26  ;;  %vm2944_vm6 = vmor %vm2942_vm5, %vm2943_vm4  ;;  %v5476_v28 = vld [vmem:[#allocation3 + $0x2c0] sm:$0xf]  ;;  %v5485_v57 = vor.u32 %v5824_v56, %v5484_v59  ;;  %v5819_v26 = vld [vmem:[#allocation3 + $0x2ac] sm:$0xf0] }
 0x9d5   :  { %v2911_v27 = vsel %vm2908_vm2, %v2910_v25, %v2906_v54  ;;  %v2925_v7 = vsel %vm2924_vm1, %v6082_v11, %v2921_v30  ;;  %v2939_v42 = vsub.f32 1.0, %v2938_v53  ;;  %v5821_v11 = vld [vmem:[#allocation3 + $0x2c4] sm:$0xf]  ;;  %v5477_v55 = vor.u32 %v5823_v32, %v5476_v28  ;;  %v8255_v25 = vld [vmem:[#allocation28_spill] sm:$0xff] }
 0x9d6   :  { %v2930_v63 = vsel %vm2927_vm3, %v2929_v5, %v2925_v7  ;;  %v2953_v21 = vmul.f32 %v6086_v50, %v2911_v27  ;;  %v5481_v49 = vor.u32 %v5821_v11, %v5478_v35  ;;  %v1975_v30 = vadd.f32 %v8255_v25, %v7238_v23  ;;  %v5817_v54 = vld [vmem:[#allocation3 + $0x2a4] sm:$0xf]  ;;  %v5462_v50 = vld [vmem:[#allocation3 + $0x2b0] sm:$0xf0]  ;;  %v5468_v27 = vld [vmem:[#allocation3 + $0x2a8] sm:$0xf] }
 0x9d7   :  { %v2952_v13 = vmul.f32 %v2930_v63, %v7436_v34  ;;  %v2940_v60 = vmul.f32 %v6084_v18, %v2939_v42  ;;  %v5489_v53 = vor.u32 %v5822_v12, %v5486_v31  ;;  %v5465_v63 = vor.u32 %v5817_v54, %v5462_v50  ;;  %v5809_v32 = vld [vmem:[#allocation3 + $0x264] sm:$0xf]  ;;  %v5430_v11 = vld [vmem:[#allocation3 + $0x270] sm:$0xf0]  ;;  %v5812_v35 = vld [vmem:[#allocation3 + $0x274] sm:$0xf0] }
 0x9d8   :  { %v5810_v12 = vld [vmem:[#allocation3 + $0x26c] sm:$0xf]  ;;  %v5412_v31 = vld [vmem:[#allocation3 + $0x240] sm:$0xf]  ;;  %v5807_v25 = vld [vmem:[#allocation3 + $0x24c] sm:$0xf0] }
 0x9d9   :  { %v7484_v51 = vadd.f32 %v2953_v21, %v2952_v13  ;;  %v2941_v9 = vadd.f32 %v6084_v18, %v2940_v60  ;;  %v5820_v21 = vld [vmem:[#allocation3 + $0x2b4] sm:$0xf0]  ;;  %v5818_v13 = vld [vmem:[#allocation3 + $0x2ac] sm:$0xf]  ;;  %v5470_v60 = vld [vmem:[#allocation3 + $0x2b8] sm:$0xf0] }
 0x9da   :  { %v5414_v54 = vld [vmem:[#allocation3 + $0x250] sm:$0xf0]  ;;  %v5420_v50 = vld [vmem:[#allocation3 + $0x248] sm:$0xf] }
 0x9db   :  { %6087 = vtanh.f32 %v7484_v51  ;;  %v2945_v45 = vsel %vm2944_vm6, %v6084_v18, %v2941_v9  ;;  %v5460_v18 = vld [vmem:[#allocation3 + $0x2a0] sm:$0xf] }
 0x9dc   :  { %v2950_v22 = vsel %vm2947_vm7, %v2949_v6, %v2945_v45  ;;  %v5461_v5 = vor.u32 %v5819_v26, %v5460_v18  ;;  %v5469_v45 = vor.u32 %v5820_v21, %v5468_v27  ;;  %v5473_v6 = vor.u32 %v5818_v13, %v5470_v60  ;;  %v5808_v27 = vld [vmem:[#allocation3 + $0x254] sm:$0xf0]  ;;  %v5422_v21 = vld [vmem:[#allocation3 + $0x258] sm:$0xf0]  ;;  %v5396_v13 = vld [vmem:[#allocation3 + $0x220] sm:$0xf] }
 0x9e1   :  { %v6088_v8 = vpop.eup %6087 }
 0x9e2   :  { %v7487_v33 = vmul.f32 %v6088_v8, %v2950_v22  ;;  %v5444_v8 = vld [vmem:[#allocation3 + $0x280] sm:$0xf]  ;;  %v5815_v22 = vld [vmem:[#allocation3 + $0x28c] sm:$0xf0] }
 0x9e3   :  { %v5445_v17 = vor.u32 %v5815_v22, %v5444_v8  ;;  %v5421_v8 = vor.u32 %v5808_v27, %v5420_v50 }
 0x9e4   :  { %v2962_v34 = vpack.c.bf16 %v7487_v33, %v7487_v33 }
 0x9e6   :  { %2971 = vmatmul.bf16.vlgmr.msra.gmra.mxu0 %v2962_v34  ;;  %2984 = vmatmul.bf16.vlgmr.msra.gmra.mxu1 %v2962_v34 }
 0x9e7   :  { %2997 = vmatmul.bf16.vlgmr.msra.gmra.mxu2 %v2962_v34  ;;  %3010 = vmatmul.bf16.vlgmr.msra.gmra.mxu3 %v2962_v34  ;;  %v5813_v34 = vld [vmem:[#allocation3 + $0x284] sm:$0xf] }
 0x9e8   :  { %3428 = vmatpush.bf16.msra.mxu0 %v5493_v37  ;;  %3457 = vmatpush.bf16.msra.mxu1 %v5497_v2  ;;  %v5449_v61 = vor.u32 %v5813_v34, %v5446_v15  ;;  %v5454_v37 = vld [vmem:[#allocation3 + $0x298] sm:$0xf0]  ;;  %v5801_v34 = vld [vmem:[#allocation3 + $0x224] sm:$0xf] }
 0x9e9   :  { %3486 = vmatpush.bf16.msra.mxu2 %v5501_v43  ;;  %3515 = vmatpush.bf16.msra.mxu3 %v5505_v1  ;;  %v5428_v43 = vld [vmem:[#allocation3 + $0x260] sm:$0xf] }
 0x9ec   :  { %3429 = vmatpush.bf16.msra.mxu0 %v5477_v55  ;;  %3458 = vmatpush.bf16.msra.mxu1 %v5481_v49  ;;  %v5436_v55 = vld [vmem:[#allocation3 + $0x268] sm:$0xf] }
 0x9ed   :  { %3487 = vmatpush.bf16.msra.mxu2 %v5485_v57  ;;  %3516 = vmatpush.bf16.msra.mxu3 %v5489_v53  ;;  %v5437_v56 = vor.u32 %v5812_v35, %v5436_v55  ;;  %v5438_v57 = vld [vmem:[#allocation3 + $0x278] sm:$0xf0] }
 0x9ee   :  { %v5441_v26 = vor.u32 %v5810_v12, %v5438_v57  ;;  %v5798_v12 = vld [vmem:[#allocation3 + $0x20c] sm:$0xf]  ;;  %v5390_v57 = vld [vmem:[#allocation3 + $0x218] sm:$0xf0] }
 0x9f0   :  { %3430 = vmatpush.bf16.msra.mxu0 %v5461_v5  ;;  %3459 = vmatpush.bf16.msra.mxu1 %v5465_v63  ;;  %v5413_v5 = vor.u32 %v5807_v25, %v5412_v31  ;;  %v5806_v63 = vld [vmem:[#allocation3 + $0x24c] sm:$0xf] }
 0x9f1   :  { %3488 = vmatpush.bf16.msra.mxu2 %v5469_v45  ;;  %3517 = vmatpush.bf16.msra.mxu3 %v5473_v6  ;;  %v5425_v22 = vor.u32 %v5806_v63, %v5422_v21 }
 0x9f4   :  { %3431 = vmatpush.bf16.msra.mxu0 %v5445_v17  ;;  %3460 = vmatpush.bf16.msra.mxu1 %v5449_v61  ;;  %v5398_v17 = vld [vmem:[#allocation3 + $0x230] sm:$0xf0]  ;;  %v5404_v61 = vld [vmem:[#allocation3 + $0x228] sm:$0xf] }
 0x9f5   :  { %3489 = vmatpush.bf16.msra.mxu2 %v5453_v14  ;;  %v5802_v14 = vld [vmem:[#allocation3 + $0x22c] sm:$0xf] }
 0x9f9   :  { %3490 = vmatpush.bf16.msra.mxu2 %v5437_v56 }
 0x9fd   :  { %3491 = vmatpush.bf16.msra.mxu2 %v5421_v8  ;;  %v3214_v8 = vld [vmem:[%s8154_s6 + $0x10] sm:$0xff] }
 0xa63   :  { %v2972_v4 = vpop.f32.mrf.mxu0  ;;  %v2985_v0 = vpop.f32.mrf.mxu1 }
 0xa64   :  { %v3015_v47 = vadd.f32 %v2972_v4, %v1888_v38  ;;  %v3016_v48 = vadd.f32 %v2985_v0, %v1917_v3  ;;  %v5814_v3 = vld [vmem:[#allocation3 + $0x28c] sm:$0xf] }
 0xa65   :  { %v5457_v0 = vor.u32 %v5814_v3, %v5454_v37  ;;  %v5401_v37 = vor.u32 %v5801_v34, %v5398_v17  ;;  %v3222_v34 = vpack.c.bf16 %v7487_v33, %v7439_v44  ;;  %v5622_v17 = vld [vmem:[#allocation5 + $0x2e0] sm:$0xf] }
 0xa66   :  { %v5367_v19 = vmul.f32 -1.442695, %v3015_v47  ;;  %v5368_v40 = vmul.f32 -1.442695, %v3016_v48  ;;  %v5811_v47 = vld [vmem:[#allocation3 + $0x26c] sm:$0xf0] }
 0xa67   :  { %v8256_v48 = vld [vmem:[#allocation27_spill] sm:$0xff]  ;;  %3518 = vmatpush.bf16.msra.mxu3 %v5457_v0  ;;  %v5429_v28 = vor.u32 %v5811_v47, %v5428_v43 }
 0xa68   :  { %6089 = vpow2.f32 %v5367_v19  ;;  %v1946_v1 = vadd.f32 %v8256_v48, %v7241_v29  ;;  %v5799_v47 = vld [vmem:[#allocation3 + $0x20c] sm:$0xf0]  ;;  %v5797_v48 = vld [vmem:[#allocation3 + $0x204] sm:$0xf] }
 0xa69   :  { %6091 = vpow2.f32 %v5368_v40  ;;  %v5433_v40 = vor.u32 %v5809_v32, %v5430_v11  ;;  %3432 = vmatpush.bf16.msra.mxu0 %v5429_v28  ;;  %v5382_v11 = vld [vmem:[#allocation3 + $0x210] sm:$0xf0] }
 0xa6a   :  { %v2998_v7 = vpop.f32.mrf.mxu2  ;;  %v3011_v42 = vpop.f32.mrf.mxu3  ;;  %v5385_v31 = vor.u32 %v5797_v48, %v5382_v11  ;;  %v5855_v48 = vld [vmem:[#allocation5 + $0x2cc] sm:$0xf0] }
 0xa6b   :  { %v3018_v9 = vadd.f32 %v3011_v42, %v1975_v30  ;;  %v2974_v62 = vpop.f32.mrf.mxu0  ;;  %v2987_v24 = vpop.f32.mrf.mxu1  ;;  %v3017_v59 = vadd.f32 %v2998_v7, %v1946_v1  ;;  %3461 = vmatpush.bf16.msra.mxu1 %v5433_v40  ;;  %v5805_v30 = vld [vmem:[#allocation3 + $0x244] sm:$0xf]  ;;  %3519 = vmatpush.bf16.msra.mxu3 %v5441_v26  ;;  %v5800_v40 = vld [vmem:[#allocation3 + $0x214] sm:$0xf0] }
 0xa6c   :  { %v5803_v24 = vld [vmem:[#allocation3 + $0x22c] sm:$0xf0]  ;;  %v5417_v6 = vor.u32 %v5805_v30, %v5414_v54  ;;  %v5393_v54 = vor.u32 %v5798_v12, %v5390_v57  ;;  %v8261_v12 = vld [vmem:[#allocation33_spill] sm:$0xff] }
 0xa6d   :  { %v5369_v38 = vmul.f32 -1.442695, %v3018_v9  ;;  %3433 = vmatpush.bf16.msra.mxu0 %v5413_v5  ;;  %v1977_v57 = vadd.f32 %v8261_v12, %v7238_v23  ;;  %v5544_v12 = vld [vmem:[#allocation5 + $0x250] sm:$0xf0] }
 0xa6e   :  { %v6090_v39 = vpop.eup %6089 }
 0xa6f   :  { %v6092_v20 = vpop.eup %6091  ;;  %v7497_v4 = vadd.f32 1.0, %v6090_v39  ;;  %6093 = vpow2.f32 %v5369_v38  ;;  %v5397_v38 = vor.u32 %v5803_v24, %v5396_v13  ;;  %3462 = vmatpush.bf16.msra.mxu1 %v5417_v6  ;;  %v5804_v39 = vld [vmem:[#allocation3 + $0x234] sm:$0xf0]  ;;  %3520 = vmatpush.bf16.msra.mxu3 %v5425_v22  ;;  %v3221_v22 = vpack.c.bf16 %v7391_v36, %v3214_v8  ;;  %v5845_v8 = vld [vmem:[#allocation5 + $0x284] sm:$0xf] }
 0xa70   :  { %v7499_v2 = vadd.f32 1.0, %v6092_v20  ;;  %v5406_v20 = vld [vmem:[#allocation3 + $0x238] sm:$0xf0]  ;;  %v5405_v43 = vor.u32 %v5804_v39, %v5404_v61  ;;  %v5858_v39 = vld [vmem:[#allocation5 + $0x2ec] sm:$0xf] }
 0xa71   :  { %6095 = vrcp.f32 %v7497_v4  ;;  %v3032_v19 = vand.u32 2147483647, %v7497_v4  ;;  %v3034_v62 = vand.u32 2147483648, %v7497_v4  ;;  %3434 = vmatpush.bf16.msra.mxu0 %v5397_v38  ;;  %vm3028_vm12 = vweird.f32 %v7497_v4  ;;  %v8260_v61 = vld [vmem:[#allocation32_spill] sm:$0xff] }
 0xa72   :  { %6097 = vrcp.f32 %v7499_v2  ;;  %v3000_v16 = vpop.f32.mrf.mxu2  ;;  %v3013_v52 = vpop.f32.mrf.mxu3  ;;  %v3053_v9 = vand.u32 2147483648, %v7499_v2  ;;  %v3051_v58 = vand.u32 2147483647, %v7499_v2  ;;  %vm3047_vm11 = vweird.f32 %v7499_v2  ;;  %3492 = vmatpush.bf16.msra.mxu2 %v5405_v43  ;;  %v5630_v43 = vld [vmem:[#allocation5 + $0x2e8] sm:$0xf] }
 0xa73   :  { %vm7519_vm8 = vcmp.eq.f32.partialorder %v3032_v19, 8.507059e+37  ;;  %v5409_v16 = vor.u32 %v5802_v14, %v5406_v20  ;;  %v5380_v52 = vld [vmem:[#allocation3 + $0x200] sm:$0xf]  ;;  %v5388_v19 = vld [vmem:[#allocation3 + $0x208] sm:$0xf]  ;;  %3463 = vmatpush.bf16.msra.mxu1 %v5401_v37  ;;  %v1919_v36 = vadd.f32 %v8260_v61, %v7230_v10 }
 0xa74   :  { %v5381_v32 = vor.u32 %v5799_v47, %v5380_v52  ;;  %v3054_v35 = vor.u32 1.1754944e-38, %v3053_v9  ;;  %vm3052_vm15 = vcmp.eq.f32.partialorder %v3051_v58, 8.507059e+37  ;;  %v5389_v26 = vor.u32 %v5800_v40, %v5388_v19  ;;  %v8259_v58 = vld [vmem:[#allocation30_spill] sm:$0xff]  ;;  %v5624_v37 = vld [vmem:[#allocation5 + $0x2f0] sm:$0xf0] }
 0xa75   :  { %v6094_v49 = vpop.eup %6093  ;;  %3521 = vmatpush.bf16.msra.mxu3 %v5409_v16  ;;  %v1890_v38 = vadd.f32 %v8259_v58, %v7228_v41  ;;  %v5632_v14 = vld [vmem:[#allocation5 + $0x2f8] sm:$0xf0]  ;;  %v7572_v33 = vor.u32 %v5857_v46, %v5624_v37  ;;  %v5860_v16 = vld [vmem:[#allocation5 + $0x2f4] sm:$0xf0]  ;;  %v5606_v10 = vld [vmem:[#allocation5 + $0x2c0] sm:$0xf] }
 0xa76   :  { %v7506_v18 = vadd.f32 1.0, %v6094_v49  ;;  %v3035_v49 = vor.u32 1.1754944e-38, %v3034_v62  ;;  %3435 = vmatpush.bf16.msra.mxu0 %v5381_v32  ;;  %3493 = vmatpush.bf16.msra.mxu2 %v5389_v26  ;;  %v7577_v41 = vor.u32 %v5860_v16, %v5630_v43  ;;  %v7581_v11 = vor.u32 %v5855_v48, %v5606_v10  ;;  %v5608_v19 = vld [vmem:[#allocation5 + $0x2d0] sm:$0xf0]  ;;  %v5849_v26 = vld [vmem:[#allocation5 + $0x2a4] sm:$0xf] }
 0xa77   :  { %v7508_v53 = vpop.eup %6095  ;;  %3464 = vmatpush.bf16.msra.mxu1 %v5385_v31  ;;  %v5851_v31 = vld [vmem:[#allocation5 + $0x2ac] sm:$0xf0]  ;;  %v5584_v58 = vld [vmem:[#allocation5 + $0x298] sm:$0xf0]  ;;  %v5582_v43 = vld [vmem:[#allocation5 + $0x288] sm:$0xf] }
 0xa78   :  { %v7510_v42 = vpop.eup %6097  ;;  %v3024_v7 = vmul.f32 %v7508_v53, %v7497_v4  ;;  %6099 = vrcp.f32 %v7506_v18  ;;  %vm3029_vm9 = vweird.f32 %v7508_v53  ;;  %vm3067_vm1 = vweird.f32 %v7506_v18  ;;  %v5843_v37 = vld [vmem:[#allocation5 + $0x26c] sm:$0xf0]  ;;  %v5568_v10 = vld [vmem:[#allocation5 + $0x278] sm:$0xf0] }
 0xa79   :  { %v3043_v60 = vmul.f32 %v7510_v42, %v7499_v2  ;;  %6101 = vtanh.f32 %v3017_v59  ;;  %vm3048_vm10 = vweird.f32 %v7510_v42  ;;  %vm3030_vm13 = vmor %vm3028_vm12, %vm3029_vm9  ;;  %3522 = vmatpush.bf16.msra.mxu3 %v5393_v54  ;;  %v3071_v21 = vand.u32 2147483647, %v7506_v18  ;;  %v8262_v48 = vld [vmem:[#allocation31_spill] sm:$0xff] }
 0xa7a   :  { %v3025_v45 = vsub.f32 1.0, %v3024_v7  ;;  %vm3049_vm14 = vmor %vm3047_vm11, %vm3048_vm10 }
 0xa7b   :  { %v3044_v15 = vsub.f32 1.0, %v3043_v60  ;;  %vm3072_vm3 = vcmp.eq.f32.partialorder %v3071_v21, 8.507059e+37 }
 0xa7c   :  { %v3026_v3 = vmul.f32 %v7508_v53, %v3025_v45  ;;  %v3213_v45 = vld [vmem:[%s8154_s6 + $0x8] sm:$0xff] }
 0xa7d   :  { %v3045_v0 = vmul.f32 %v7510_v42, %v3044_v15  ;;  %v5859_v15 = vld [vmem:[#allocation5 + $0x2ec] sm:$0xf0] }
 0xa7e   :  { %v6100_v1 = vpop.eup %6099  ;;  %v3027_v28 = vadd.f32 %v7508_v53, %v3026_v3  ;;  %v7570_v3 = vor.u32 %v5859_v15, %v5622_v17 }
 0xa7f   :  { %v6102_v55 = vpop.eup %6101  ;;  %v3046_v59 = vadd.f32 %v7510_v42, %v3045_v0  ;;  %v3063_v56 = vmul.f32 %v6100_v1, %v7506_v18  ;;  %vm3068_vm0 = vweird.f32 %v6100_v1  ;;  %v7574_v0 = vor.u32 %v5858_v39, %v5632_v14  ;;  %v5841_v39 = vld [vmem:[#allocation5 + $0x264] sm:$0xf] }
 0xa80   :  { %v3031_v4 = vsel %vm3030_vm13, %v7508_v53, %v3027_v28  ;;  %vm3069_vm2 = vmor %vm3067_vm1, %vm3068_vm0 }
 0xa81   :  { %v3036_v25 = vsel %vm7519_vm8, %v3035_v49, %v3031_v4  ;;  %v3050_v30 = vsel %vm3049_vm14, %v7510_v42, %v3046_v59  ;;  %v3064_v5 = vsub.f32 1.0, %v3063_v56  ;;  %v3073_v42 = vand.u32 2147483648, %v7506_v18  ;;  %v3212_v18 = vld [vmem:[%s8154_s6] sm:$0xff]  ;;  %v5614_v49 = vld [vmem:[#allocation5 + $0x2c8] sm:$0xf] }
 0xa82   :  { %v3055_v50 = vsel %vm3052_vm15, %v3054_v35, %v3050_v30  ;;  %v3078_v27 = vmul.f32 %v6102_v55, %v3036_v25  ;;  %v3220_v6 = vpack.c.bf16 %v3213_v45, %v3212_v18  ;;  %v5854_v55 = vld [vmem:[#allocation5 + $0x2cc] sm:$0xf]  ;;  %v5616_v35 = vld [vmem:[#allocation5 + $0x2d8] sm:$0xf0]  ;;  %v5856_v56 = vld [vmem:[#allocation5 + $0x2d4] sm:$0xf0] }
 0xa83   :  { %v3077_v2 = vmul.f32 %v3055_v50, %v7484_v51  ;;  %v3065_v7 = vmul.f32 %v6100_v1, %v3064_v5  ;;  %v3074_v60 = vor.u32 1.1754944e-38, %v3073_v42  ;;  %v7587_v59 = vor.u32 %v5854_v55, %v5616_v35  ;;  %v5590_v4 = vld [vmem:[#allocation5 + $0x2a0] sm:$0xf]  ;;  %v5592_v50 = vld [vmem:[#allocation5 + $0x2b0] sm:$0xf0] }
 0xa84   :  { %v7592_v25 = vor.u32 %v5856_v56, %v5614_v49  ;;  %v7595_v54 = vor.u32 %v5851_v31, %v5590_v4  ;;  %v7597_v42 = vor.u32 %v5849_v26, %v5592_v50  ;;  %v5847_v45 = vld [vmem:[#allocation5 + $0x28c] sm:$0xf0]  ;;  %v5837_v56 = vld [vmem:[#allocation5 + $0x244] sm:$0xf]  ;;  %v5838_v26 = vld [vmem:[#allocation5 + $0x24c] sm:$0xf] }
 0xa85   :  { %v7544_v53 = vadd.f32 %v3078_v27, %v3077_v2  ;;  %v3066_v63 = vadd.f32 %v6100_v1, %v3065_v7  ;;  %v5850_v27 = vld [vmem:[#allocation5 + $0x2ac] sm:$0xf]  ;;  %v5600_v2 = vld [vmem:[#allocation5 + $0x2b8] sm:$0xf0]  ;;  %v5839_v49 = vld [vmem:[#allocation5 + $0x24c] sm:$0xf0] }
 0xa86   :  { %v7599_v21 = vor.u32 %v5850_v27, %v5600_v2  ;;  %v5566_v2 = vld [vmem:[#allocation5 + $0x268] sm:$0xf] }
 0xa87   :  { %6103 = vtanh.f32 %v7544_v53  ;;  %v3070_v13 = vsel %vm3069_vm2, %v6100_v1, %v3066_v63  ;;  %v5853_v1 = vld [vmem:[#allocation5 + $0x2c4] sm:$0xf] }
 0xa88   :  { %v3075_v9 = vsel %vm3072_vm3, %v3074_v60, %v3070_v13  ;;  %v7584_v40 = vor.u32 %v5853_v1, %v5608_v19  ;;  %v5598_v13 = vld [vmem:[#allocation5 + $0x2a8] sm:$0xf]  ;;  %v5852_v60 = vld [vmem:[#allocation5 + $0x2b4] sm:$0xf0]  ;;  %v1948_v1 = vadd.f32 %v8262_v48, %v7241_v29  ;;  %v7639_v29 = vor.u32 %v5837_v56, %v5544_v12 }
 0xa8d   :  { %v6104_v51 = vpop.eup %6103 }
 0xa8e   :  { %v7550_v62 = vmul.f32 %v6104_v51, %v3075_v9  ;;  %v7603_v51 = vor.u32 %v5852_v60, %v5598_v13  ;;  %v5526_v60 = vld [vmem:[#allocation5 + $0x220] sm:$0xf] }
 0xa90   :  { %v3087_v24 = vpack.c.bf16 %v7550_v62, %v7550_v62 }
 0xa92   :  { %3096 = vmatmul.bf16.vlgmr.msrb.gmra.mxu0 %v3087_v24  ;;  %3109 = vmatmul.bf16.vlgmr.msrb.gmra.mxu1 %v3087_v24 }
 0xa93   :  { %3122 = vmatmul.bf16.vlgmr.msrb.gmra.mxu2 %v3087_v24  ;;  %3135 = vmatmul.bf16.vlgmr.msrb.gmra.mxu3 %v3087_v24  ;;  %v5574_v24 = vld [vmem:[#allocation5 + $0x280] sm:$0xf] }
 0xa94   :  { %3778 = vmatpush.bf16.msrb.mxu0 %v7570_v3  ;;  %3791 = vmatpush.bf16.msrb.mxu1 %v7572_v33 }
 0xa95   :  { %3817 = vmatpush.bf16.msrb.mxu3 %v7574_v0  ;;  %3804 = vmatpush.bf16.msrb.mxu2 %v7577_v41 }
 0xa98   :  { %3779 = vmatpush.bf16.msrb.mxu0 %v7581_v11  ;;  %3792 = vmatpush.bf16.msrb.mxu1 %v7584_v40 }
 0xa99   :  { %3818 = vmatpush.bf16.msrb.mxu3 %v7587_v59  ;;  %3805 = vmatpush.bf16.msrb.mxu2 %v7592_v25 }
 0xa9c   :  { %3780 = vmatpush.bf16.msrb.mxu0 %v7595_v54  ;;  %3793 = vmatpush.bf16.msrb.mxu1 %v7597_v42 }
 0xa9d   :  { %3819 = vmatpush.bf16.msrb.mxu3 %v7599_v21  ;;  %3806 = vmatpush.bf16.msrb.mxu2 %v7603_v51 }
 0xaa2   :  { %3436 = vmatmul.bf16.vlgmr.msra.gmra.mxu0 %v3220_v6  ;;  %3465 = vmatmul.bf16.vlgmr.msra.gmra.mxu1 %v3220_v6 }
 0xaa3   :  { %3494 = vmatmul.bf16.vlgmr.msra.gmra.mxu2 %v3220_v6  ;;  %3523 = vmatmul.bf16.vlgmr.msra.gmra.mxu3 %v3220_v6  ;;  %v7607_v6 = vor.u32 %v5847_v45, %v5574_v24  ;;  %v5840_v24 = vld [vmem:[#allocation5 + $0x254] sm:$0xf0] }
 0xaa5   :  { %3781 = vmatpush.bf16.msrb.mxu0 %v7607_v6 }
 0xab2   :  { %3441 = vmatmul.bf16.gmra.mxu0 %v3221_v22  ;;  %3470 = vmatmul.bf16.gmra.mxu1 %v3221_v22 }
 0xab3   :  { %3499 = vmatmul.bf16.gmra.mxu2 %v3221_v22  ;;  %3528 = vmatmul.bf16.gmra.mxu3 %v3221_v22  ;;  %v5576_v22 = vld [vmem:[#allocation5 + $0x290] sm:$0xf0] }
 0xab4   :  { %v7611_v46 = vor.u32 %v5845_v8, %v5576_v22  ;;  %v5835_v22 = vld [vmem:[#allocation5 + $0x22c] sm:$0xf0] }
 0xab6   :  { %3794 = vmatpush.bf16.msrb.mxu1 %v7611_v46 }
 0xac2   :  { %3446 = vmatmul.bf16.gmra.mxu0 %v3222_v34  ;;  %3475 = vmatmul.bf16.gmra.mxu1 %v3222_v34 }
 0xac3   :  { %3504 = vmatmul.bf16.gmra.mxu2 %v3222_v34  ;;  %3533 = vmatmul.bf16.gmra.mxu3 %v3222_v34  ;;  %v5846_v34 = vld [vmem:[#allocation5 + $0x28c] sm:$0xf] }
 0xac4   :  { %v7617_v61 = vor.u32 %v5846_v34, %v5584_v58  ;;  %v5833_v34 = vld [vmem:[#allocation5 + $0x224] sm:$0xf] }
 0xac6   :  { %3820 = vmatpush.bf16.msrb.mxu3 %v7617_v61 }
 0xb0f   :  { %v3097_v20 = vpop.f32.mrf.mxu0  ;;  %v3110_v44 = vpop.f32.mrf.mxu1 }
 0xb10   :  { %v3140_v52 = vadd.f32 %v3097_v20, %v1890_v38  ;;  %v3141_v47 = vadd.f32 %v3110_v44, %v1919_v36  ;;  %v5558_v36 = vld [vmem:[#allocation5 + $0x260] sm:$0xf]  ;;  %v5560_v44 = vld [vmem:[#allocation5 + $0x270] sm:$0xf0] }
 0xb11   :  { %v7623_v16 = vor.u32 %v5843_v37, %v5558_v36  ;;  %v5528_v37 = vld [vmem:[#allocation5 + $0x230] sm:$0xf0] }
 0xb12   :  { %v5371_v28 = vmul.f32 -1.442695, %v3140_v52  ;;  %v5372_v32 = vmul.f32 -1.442695, %v3141_v47  ;;  %v7625_v52 = vor.u32 %v5841_v39, %v5560_v44  ;;  %v5842_v47 = vld [vmem:[#allocation5 + $0x26c] sm:$0xf]  ;;  %v7673_v48 = vor.u32 %v5833_v34, %v5528_v37 }
 0xb13   :  { %3782 = vmatpush.bf16.msrb.mxu0 %v7623_v16  ;;  %v7631_v55 = vor.u32 %v5842_v47, %v5568_v10  ;;  %v5536_v44 = vld [vmem:[#allocation5 + $0x238] sm:$0xf0]  ;;  %v7671_v10 = vor.u32 %v5835_v22, %v5526_v60  ;;  %v5830_v60 = vld [vmem:[#allocation5 + $0x20c] sm:$0xf] }
 0xb14   :  { %6105 = vpow2.f32 %v5371_v28  ;;  %v5848_v28 = vld [vmem:[#allocation5 + $0x294] sm:$0xf0]  ;;  %3795 = vmatpush.bf16.msrb.mxu1 %v7625_v52 }
 0xb15   :  { %6107 = vpow2.f32 %v5372_v32  ;;  %v5542_v32 = vld [vmem:[#allocation5 + $0x240] sm:$0xf]  ;;  %v7633_v35 = vor.u32 %v5848_v28, %v5582_v43  ;;  %3821 = vmatpush.bf16.msrb.mxu3 %v7631_v55  ;;  %v5534_v43 = vld [vmem:[#allocation5 + $0x228] sm:$0xf] }
 0xb16   :  { %v3123_v30 = vpop.f32.mrf.mxu2  ;;  %v3136_v5 = vpop.f32.mrf.mxu3  ;;  %v7637_v31 = vor.u32 %v5839_v49, %v5542_v32  ;;  %v5510_v28 = vld [vmem:[#allocation5 + $0x200] sm:$0xf]  ;;  %v5831_v32 = vld [vmem:[#allocation5 + $0x20c] sm:$0xf0] }
 0xb17   :  { %v3143_v7 = vadd.f32 %v3136_v5, %v1977_v57  ;;  %v3099_v63 = vpop.f32.mrf.mxu0  ;;  %v3112_v23 = vpop.f32.mrf.mxu1  ;;  %v3142_v57 = vadd.f32 %v3123_v30, %v1948_v1  ;;  %v5552_v5 = vld [vmem:[#allocation5 + $0x258] sm:$0xf0]  ;;  %3807 = vmatpush.bf16.msrb.mxu2 %v7633_v35 }
 0xb18   :  { %v7645_v27 = vor.u32 %v5838_v26, %v5552_v5  ;;  %3783 = vmatpush.bf16.msrb.mxu0 %v7637_v31  ;;  %3796 = vmatpush.bf16.msrb.mxu1 %v7639_v29  ;;  %v5512_v26 = vld [vmem:[#allocation5 + $0x210] sm:$0xf0]  ;;  %v5836_v5 = vld [vmem:[#allocation5 + $0x234] sm:$0xf0] }
 0xb19   :  { %v5373_v9 = vmul.f32 -1.442695, %v3143_v7  ;;  %v5844_v7 = vld [vmem:[#allocation5 + $0x274] sm:$0xf0] }
 0xb1a   :  { %v6106_v18 = vpop.eup %6105  ;;  %v7658_v8 = vor.u32 %v5844_v7, %v5566_v2  ;;  %3822 = vmatpush.bf16.msrb.mxu3 %v7645_v27 }
 0xb1b   :  { %v6108_v17 = vpop.eup %6107  ;;  %v7609_v15 = vadd.f32 1.0, %v6106_v18  ;;  %6109 = vpow2.f32 %v5373_v9  ;;  %v5550_v9 = vld [vmem:[#allocation5 + $0x248] sm:$0xf] }
 0xb1c   :  { %v7614_v38 = vadd.f32 1.0, %v6108_v17  ;;  %3808 = vmatpush.bf16.msrb.mxu2 %v7658_v8  ;;  %3784 = vmatpush.bf16.msrb.mxu0 %v7671_v10 }
 0xb1d   :  { %6111 = vrcp.f32 %v7609_v15  ;;  %v3157_v23 = vand.u32 2147483647, %v7609_v15  ;;  %v3159_v18 = vand.u32 2147483648, %v7609_v15  ;;  %vm3153_vm4 = vweird.f32 %v7609_v15  ;;  %3797 = vmatpush.bf16.msrb.mxu1 %v7673_v48 }
 0xb1e   :  { %6113 = vrcp.f32 %v7614_v38  ;;  %v3125_v14 = vpop.f32.mrf.mxu2  ;;  %v3138_v20 = vpop.f32.mrf.mxu3  ;;  %v3178_v58 = vand.u32 2147483648, %v7614_v38  ;;  %v3176_v36 = vand.u32 2147483647, %v7614_v38  ;;  %vm3172_vm7 = vweird.f32 %v7614_v38 }
 0xb1f   :  { %v7668_v14 = vor.u32 %v5840_v24, %v5550_v9  ;;  %v5834_v20 = vld [vmem:[#allocation5 + $0x22c] sm:$0xf]  ;;  %vm7679_vm8 = vcmp.eq.f32.partialorder %v3157_v23, 8.507059e+37  ;;  %v7695_v23 = vor.u32 %v5831_v32, %v5510_v28  ;;  %v5520_v9 = vld [vmem:[#allocation5 + $0x218] sm:$0xf0] }
 0xb20   :  { %v7675_v1 = vor.u32 %v5834_v20, %v5536_v44  ;;  %v3179_v2 = vor.u32 1.1754944e-38, %v3178_v58  ;;  %vm3177_vm11 = vcmp.eq.f32.partialorder %v3176_v36, 8.507059e+37  ;;  %v5832_v58 = vld [vmem:[#allocation5 + $0x214] sm:$0xf0]  ;;  %v7713_v37 = vor.u32 %v5830_v60, %v5520_v9 }
 0xb21   :  { %v6110_v19 = vpop.eup %6109  ;;  %3809 = vmatpush.bf16.msrb.mxu2 %v7668_v14  ;;  %3785 = vmatpush.bf16.msrb.mxu0 %v7695_v23 }
 0xb22   :  { %v7635_v4 = vadd.f32 1.0, %v6110_v19  ;;  %v5829_v19 = vld [vmem:[#allocation5 + $0x204] sm:$0xf]  ;;  %3823 = vmatpush.bf16.msrb.mxu3 %v7675_v1 }
 0xb23   :  { %v7641_v50 = vpop.eup %6111 }
 0xb24   :  { %v7647_v63 = vpop.eup %6113  ;;  %v3149_v30 = vmul.f32 %v7641_v50, %v7609_v15  ;;  %6115 = vrcp.f32 %v7635_v4  ;;  %vm3154_vm6 = vweird.f32 %v7641_v50  ;;  %vm3192_vm13 = vweird.f32 %v7635_v4 }
 0xb25   :  { %v3168_v13 = vmul.f32 %v7647_v63, %v7614_v38  ;;  %6117 = vtanh.f32 %v3142_v57  ;;  %vm3173_vm5 = vweird.f32 %v7647_v63  ;;  %v3160_v57 = vor.u32 1.1754944e-38, %v3159_v18  ;;  %vm7687_vm9 = vmor %vm3153_vm4, %vm3154_vm6  ;;  %3903 = vmatpush.bf16.msra.mxu0 %v7570_v3 }
 0xb26   :  { %v3150_v45 = vsub.f32 1.0, %v3149_v30  ;;  %vm3174_vm10 = vmor %vm3172_vm7, %vm3173_vm5  ;;  %v7708_v18 = vor.u32 %v5836_v5, %v5534_v43  ;;  %3824 = vmatpush.bf16.msrb.mxu3 %v7713_v37  ;;  %v3495_v5 = vpop.f32.mrf.mxu2 }
 0xb27   :  { %v3169_v17 = vsub.f32 1.0, %v3168_v13 }
 0xb28   :  { %v3151_v39 = vmul.f32 %v7641_v50, %v3150_v45  ;;  %v7706_v45 = vor.u32 %v5829_v19, %v5512_v26  ;;  %3810 = vmatpush.bf16.msrb.mxu2 %v7708_v18  ;;  %v3466_v26 = vpop.f32.mrf.mxu1 }
 0xb29   :  { %v3170_v47 = vmul.f32 %v7647_v63, %v3169_v17  ;;  %v5518_v17 = vld [vmem:[#allocation5 + $0x208] sm:$0xf]  ;;  %3904 = vmatpush.bf16.msra.mxu0 %v7581_v11 }
 0xb2a   :  { %v6116_v49 = vpop.eup %6115  ;;  %v3152_v56 = vadd.f32 %v7641_v50, %v3151_v39  ;;  %3798 = vmatpush.bf16.msrb.mxu1 %v7706_v45  ;;  %v7719_v44 = vor.u32 %v5832_v58, %v5518_v17  ;;  %3942 = vmatpush.bf16.msra.mxu3 %v7574_v0 }
 0xb2b   :  { %v3171_v30 = vadd.f32 %v7647_v63, %v3170_v47  ;;  %v3188_v13 = vmul.f32 %v6116_v49, %v7635_v4  ;;  %v6118_v24 = vpop.eup %6117  ;;  %vm3193_vm12 = vweird.f32 %v6116_v49  ;;  %v3196_v47 = vand.u32 2147483647, %v7635_v4 }
 0xb2c   :  { %v3156_v15 = vsel %vm7687_vm9, %v7641_v50, %v3152_v56  ;;  %3811 = vmatpush.bf16.msrb.mxu2 %v7719_v44  ;;  %vm3194_vm14 = vmor %vm3192_vm13, %vm3193_vm12 }
 0xb2d   :  { %v3161_v22 = vsel %vm7679_vm8, %v3160_v57, %v3156_v15  ;;  %v3175_v34 = vsel %vm3174_vm10, %v7647_v63, %v3171_v30  ;;  %v3189_v38 = vsub.f32 1.0, %v3188_v13  ;;  %vm3197_vm15 = vcmp.eq.f32.partialorder %v3196_v47, 8.507059e+37  ;;  %3905 = vmatpush.bf16.msra.mxu0 %v7595_v54  ;;  %v3437_v57 = vpop.f32.mrf.mxu0 }
 0xb2e   :  { %v3180_v50 = vsel %vm3177_vm11, %v3179_v2, %v3175_v34  ;;  %v3203_v36 = vmul.f32 %v6118_v24, %v3161_v22  ;;  %3916 = vmatpush.bf16.msra.mxu1 %v7572_v33  ;;  %3943 = vmatpush.bf16.msra.mxu3 %v7587_v59  ;;  %v3524_v2 = vpop.f32.mrf.mxu3  ;;  %v7804_v13 = vpop.f32.mrf.mxu2 }
 0xb2f   :  { %v3202_v39 = vmul.f32 %v3180_v50, %v7544_v53  ;;  %v3190_v20 = vmul.f32 %v6116_v49, %v3189_v38  ;;  %v3198_v53 = vand.u32 2147483648, %v7635_v4  ;;  %8267 = vst [vmem:[#allocation9_spill] sm:$0xff] %v7804_v13 }
 0xb30   :  { %3929 = vmatpush.bf16.msra.mxu2 %v7577_v41  ;;  %v7802_v30 = vpop.f32.mrf.mxu1 }
 0xb31   :  { %v3204_v43 = vadd.f32 %v3203_v36, %v3202_v39  ;;  %v3191_v63 = vadd.f32 %v6116_v49, %v3190_v20  ;;  %v3199_v32 = vor.u32 1.1754944e-38, %v3198_v53  ;;  %3906 = vmatpush.bf16.msra.mxu0 %v7607_v6 }
 0xb32   :  { %3917 = vmatpush.bf16.msra.mxu1 %v7584_v40  ;;  %3944 = vmatpush.bf16.msra.mxu3 %v7599_v21 }
 0xb33   :  { %6119 = vtanh.f32 %v3204_v43  ;;  %5376 = vst [vmem:[%s8156_s8 + $0x8] sm:$0xff] %v3204_v43  ;;  %v3195_v28 = vsel %vm3194_vm14, %v6116_v49, %v3191_v63 }
 0xb34   :  { %v3200_v56 = vsel %vm3197_vm15, %v3199_v32, %v3195_v28  ;;  %3930 = vmatpush.bf16.msra.mxu2 %v7592_v25 }
 0xb35   :  { %3907 = vmatpush.bf16.msra.mxu0 %v7623_v16  ;;  %v7800_v7 = vpop.f32.mrf.mxu0 }
 0xb36   :  { %3918 = vmatpush.bf16.msra.mxu1 %v7597_v42  ;;  %3945 = vmatpush.bf16.msra.mxu3 %v7617_v61  ;;  %v7806_v60 = vpop.f32.mrf.mxu3  ;;  %v7812_v15 = vpop.f32.mrf.mxu2 }
 0xb37   :  { %8270 = vst [vmem:[#allocation12_spill] sm:$0xff] %v7812_v15 }
 0xb38   :  { %3931 = vmatpush.bf16.msra.mxu2 %v7603_v51  ;;  %v7810_v24 = vpop.f32.mrf.mxu1 }
 0xb39   :  { %v6120_v19 = vpop.eup %6119  ;;  %3908 = vmatpush.bf16.msra.mxu0 %v7637_v31  ;;  %8269 = vst [vmem:[#allocation13_spill] sm:$0xff] %v7810_v24 }
 0xb3a   :  { %v3206_v4 = vmul.f32 %v6120_v19, %v3200_v56  ;;  %3919 = vmatpush.bf16.msra.mxu1 %v7611_v46  ;;  %3946 = vmatpush.bf16.msra.mxu3 %v7631_v55 }
 0xb3c   :  { %5375 = vst [vmem:[%s8155_s7 + $0x8] sm:$0xff] %v3206_v4  ;;  %v3223_v49 = vpack.c.bf16 %v3206_v4, %v7550_v62  ;;  %3932 = vmatpush.bf16.msra.mxu2 %v7633_v35  ;;  %v5506_v62 = vld [vmem:[%s8152_s4 + $0x10] sm:$0xff]  ;;  %v5377_v4 = vld [vmem:[%s8151_s3 + $0x8] sm:$0xf] }
 0xb3d   :  { %3909 = vmatpush.bf16.msra.mxu0 %v7671_v10  ;;  %v3617_v12 = vpack.c.bf16 %v5506_v62, %v5506_v62  ;;  %v7808_v9 = vpop.f32.mrf.mxu0 }
 0xb3e   :  { %3451 = vmatmul.bf16.gmra.mxu0 %v3223_v49  ;;  %3480 = vmatmul.bf16.gmra.mxu1 %v3223_v49  ;;  %8268 = vst [vmem:[#allocation10_spill] sm:$0xff] %v7808_v9  ;;  %v7814_v22 = vpop.f32.mrf.mxu3  ;;  %v7820_v17 = vpop.f32.mrf.mxu2 }
 0xb3f   :  { %3509 = vmatmul.bf16.gmra.mxu2 %v3223_v49  ;;  %3538 = vmatmul.bf16.gmra.mxu3 %v3223_v49  ;;  %8271 = vst [vmem:[#allocation11_spill] sm:$0xff] %v7814_v22 }
 0xb40   :  { %3920 = vmatpush.bf16.msra.mxu1 %v7625_v52  ;;  %3933 = vmatpush.bf16.msra.mxu2 %v7658_v8  ;;  %v7818_v38 = vpop.f32.mrf.mxu1  ;;  %8274 = vst [vmem:[#allocation17_spill] sm:$0xff] %v7820_v17 }
 0xb41   :  { %3947 = vmatpush.bf16.msra.mxu3 %v7645_v27  ;;  %3910 = vmatpush.bf16.msra.mxu0 %v7695_v23  ;;  %8273 = vst [vmem:[#allocation16_spill] sm:$0xff] %v7818_v38 }
 0xb44   :  { %3921 = vmatpush.bf16.msra.mxu1 %v7639_v29  ;;  %3934 = vmatpush.bf16.msra.mxu2 %v7668_v14 }
 0xb45   :  { %3948 = vmatpush.bf16.msra.mxu3 %v7675_v1  ;;  %v7816_v34 = vpop.f32.mrf.mxu0 }
 0xb46   :  { %8272 = vst [vmem:[#allocation14_spill] sm:$0xff] %v7816_v34  ;;  %v7822_v58 = vpop.f32.mrf.mxu3  ;;  %v7828_v39 = vpop.f32.mrf.mxu2 }
 0xb47   :  { %8275 = vst [vmem:[#allocation15_spill] sm:$0xff] %v7822_v58 }
 0xb48   :  { %3922 = vmatpush.bf16.msra.mxu1 %v7673_v48  ;;  %3935 = vmatpush.bf16.msra.mxu2 %v7708_v18  ;;  %v7826_v36 = vpop.f32.mrf.mxu1  ;;  %8278 = vst [vmem:[#allocation20_spill] sm:$0xff] %v7828_v39 }
 0xb49   :  { %3949 = vmatpush.bf16.msra.mxu3 %v7713_v37  ;;  %8277 = vst [vmem:[#allocation21_spill] sm:$0xff] %v7826_v36 }
 0xb4c   :  { %3923 = vmatpush.bf16.msra.mxu1 %v7706_v45  ;;  %3936 = vmatpush.bf16.msra.mxu2 %v7719_v44 }
 0xb4d   :  { %v7824_v50 = vpop.f32.mrf.mxu0 }
 0xb4e   :  { %3786 = vmatmul.bf16.vlgmr.msrb.gmra.mxu0 %v3617_v12  ;;  %3799 = vmatmul.bf16.vlgmr.msrb.gmra.mxu1 %v3617_v12  ;;  %8276 = vst [vmem:[#allocation18_spill] sm:$0xff] %v7824_v50  ;;  %v7830_v20 = vpop.f32.mrf.mxu3  ;;  %v7836_v53 = vpop.f32.mrf.mxu2 }
 0xb4f   :  { %3812 = vmatmul.bf16.vlgmr.msrb.gmra.mxu2 %v3617_v12  ;;  %3825 = vmatmul.bf16.vlgmr.msrb.gmra.mxu3 %v3617_v12  ;;  %8279 = vst [vmem:[#allocation19_spill] sm:$0xff] %v7830_v20  ;;  %v7855_v12 = vperm.slane %v5377_v4, 0  ;;  %v7865_v20 = vperm.slane %v5377_v4, 3 }
 0xb50   :  { %4028 = vmatpush.bf16.msrb.mxu0 %v7570_v3  ;;  %4041 = vmatpush.bf16.msrb.mxu1 %v7572_v33  ;;  %v7834_v63 = vpop.f32.mrf.mxu1  ;;  %8282 = vst [vmem:[#allocation25_spill] sm:$0xff] %v7836_v53  ;;  %v7857_v53 = vperm.slane %v5377_v4, 1 }
 0xb51   :  { %4054 = vmatpush.bf16.msrb.mxu2 %v7577_v41  ;;  %4067 = vmatpush.bf16.msrb.mxu3 %v7574_v0  ;;  %8281 = vst [vmem:[#allocation24_spill] sm:$0xff] %v7834_v63  ;;  %v3525_v36 = vadd.f32 %v3524_v2, %v7865_v20 }
 0xb54   :  { %4029 = vmatpush.bf16.msrb.mxu0 %v7581_v11  ;;  %4042 = vmatpush.bf16.msrb.mxu1 %v7584_v40 }
 0xb55   :  { %4055 = vmatpush.bf16.msrb.mxu2 %v7592_v25  ;;  %4068 = vmatpush.bf16.msrb.mxu3 %v7587_v59  ;;  %v7832_v43 = vpop.f32.mrf.mxu0 }
 0xb56   :  { %8280 = vst [vmem:[#allocation22_spill] sm:$0xff] %v7832_v43  ;;  %v7838_v47 = vpop.f32.mrf.mxu3 }
 0xb57   :  { %8283 = vst [vmem:[#allocation23_spill] sm:$0xff] %v7838_v47 }
 0xb58   :  { %4030 = vmatpush.bf16.msrb.mxu0 %v7595_v54  ;;  %4043 = vmatpush.bf16.msrb.mxu1 %v7597_v42 }
 0xb59   :  { %4056 = vmatpush.bf16.msrb.mxu2 %v7603_v51  ;;  %4069 = vmatpush.bf16.msrb.mxu3 %v7599_v21 }
 0xb5c   :  { %4031 = vmatpush.bf16.msrb.mxu0 %v7607_v6  ;;  %4044 = vmatpush.bf16.msrb.mxu1 %v7611_v46 }
 0xb5d   :  { %4057 = vmatpush.bf16.msrb.mxu2 %v7633_v35  ;;  %4070 = vmatpush.bf16.msrb.mxu3 %v7617_v61 }
 0xb60   :  { %4032 = vmatpush.bf16.msrb.mxu0 %v7623_v16  ;;  %4045 = vmatpush.bf16.msrb.mxu1 %v7625_v52 }
 0xb61   :  { %4058 = vmatpush.bf16.msrb.mxu2 %v7658_v8  ;;  %4071 = vmatpush.bf16.msrb.mxu3 %v7631_v55 }
 0xb64   :  { %4033 = vmatpush.bf16.msrb.mxu0 %v7637_v31  ;;  %4046 = vmatpush.bf16.msrb.mxu1 %v7639_v29 }
 0xb65   :  { %4059 = vmatpush.bf16.msrb.mxu2 %v7668_v14  ;;  %4072 = vmatpush.bf16.msrb.mxu3 %v7645_v27 }
 0xb68   :  { %4034 = vmatpush.bf16.msrb.mxu0 %v7671_v10  ;;  %4047 = vmatpush.bf16.msrb.mxu1 %v7673_v48 }
 0xb69   :  { %4060 = vmatpush.bf16.msrb.mxu2 %v7708_v18  ;;  %4073 = vmatpush.bf16.msrb.mxu3 %v7675_v1 }
 0xb6c   :  { %4035 = vmatpush.bf16.msrb.mxu0 %v7695_v23  ;;  %4048 = vmatpush.bf16.msrb.mxu1 %v7706_v45 }
 0xb6d   :  { %4061 = vmatpush.bf16.msrb.mxu2 %v7719_v44  ;;  %4074 = vmatpush.bf16.msrb.mxu3 %v7713_v37 }
 0xbbb   :  { %v7840_v28 = vpop.f32.mrf.mxu0  ;;  %v7842_v32 = vpop.f32.mrf.mxu1 }
 0xbbc   :  { %8284 = vst [vmem:[#allocation26_spill] sm:$0xff] %v7840_v28  ;;  %v3438_v28 = vadd.f32 %v3437_v57, %v7855_v12 }
 0xbbd   :  { %8285 = vst [vmem:[#allocation29_spill] sm:$0xff] %v7842_v32  ;;  %v3467_v32 = vadd.f32 %v3466_v26, %v7857_v53 }
 0xbc2   :  { %v7844_v19 = vpop.f32.mrf.mxu2  ;;  %v7846_v56 = vpop.f32.mrf.mxu3 }
 0xbc3   :  { %8286 = vst [vmem:[#allocation28_spill] sm:$0xff] %v7844_v19  ;;  %v7851_v49 = vpop.f32.mrf.mxu0  ;;  %v7853_v62 = vpop.f32.mrf.mxu1 }
 0xbc4   :  { %8287 = vst [vmem:[#allocation27_spill] sm:$0xff] %v7846_v56 }
 0xbc5   :  { %8288 = vst [vmem:[#allocation30_spill] sm:$0xff] %v7851_v49 }
 0xbc6   :  { %8289 = vst [vmem:[#allocation32_spill] sm:$0xff] %v7853_v62 }
 0xbca   :  { %v7861_v47 = vpop.f32.mrf.mxu2  ;;  %v7863_v19 = vpop.f32.mrf.mxu3 }
 0xbcb   :  { %8290 = vst [vmem:[#allocation33_spill] sm:$0xff] %v7861_v47  ;;  %v3787_v56 = vpop.f32.mrf.mxu0  ;;  %v3800_v63 = vpop.f32.mrf.mxu1 }
 0xbcc   :  { %8291 = vst [vmem:[#allocation31_spill] sm:$0xff] %v7863_v19  ;;  %v3830_v43 = vadd.f32 %v3787_v56, %v3438_v28  ;;  %v3831_v39 = vadd.f32 %v3800_v63, %v3467_v32  ;;  %v7868_v63 = vperm.slane %v5377_v4, 2 }
 0xbce   :  { %v5636_v49 = vmul.f32 -1.442695, %v3830_v43  ;;  %v5637_v62 = vmul.f32 -1.442695, %v3831_v39  ;;  %v3496_v2 = vadd.f32 %v3495_v5, %v7868_v63 }
 0xbd0   :  { %6121 = vpow2.f32 %v5636_v49 }
 0xbd1   :  { %6123 = vpow2.f32 %v5637_v62 }
 0xbd2   :  { %v3813_v50 = vpop.f32.mrf.mxu2  ;;  %v3826_v57 = vpop.f32.mrf.mxu3 }
 0xbd3   :  { %v3833_v17 = vadd.f32 %v3826_v57, %v3525_v36  ;;  %v3789_v26 = vpop.f32.mrf.mxu0  ;;  %v3802_v58 = vpop.f32.mrf.mxu1  ;;  %v3832_v36 = vadd.f32 %v3813_v50, %v3496_v2 }
 0xbd5   :  { %v5638_v47 = vmul.f32 -1.442695, %v3833_v17 }
 0xbd6   :  { %v6122_v38 = vpop.eup %6121 }
 0xbd7   :  { %v6124_v19 = vpop.eup %6123  ;;  %v3837_v34 = vadd.f32 1.0, %v6122_v38  ;;  %6125 = vpow2.f32 %v5638_v47 }
 0xbd8   :  { %v3856_v28 = vadd.f32 1.0, %v6124_v19 }
 0xbd9   :  { %6127 = vrcp.f32 %v3837_v34  ;;  %v3849_v47 = vand.u32 2147483648, %v3837_v34  ;;  %v3847_v26 = vand.u32 2147483647, %v3837_v34  ;;  %vm3843_vm2 = vweird.f32 %v3837_v34 }
 0xbda   :  { %6129 = vrcp.f32 %v3856_v28  ;;  %v3828_v39 = vpop.f32.mrf.mxu3  ;;  %v3815_v43 = vpop.f32.mrf.mxu2  ;;  %v3868_v19 = vand.u32 2147483648, %v3856_v28  ;;  %vm3862_vm3 = vweird.f32 %v3856_v28 }
 0xbdb   :  { %v3866_v43 = vand.u32 2147483647, %v3856_v28  ;;  %v3850_v50 = vor.u32 1.1754944e-38, %v3849_v47  ;;  %vm3848_vm6 = vcmp.eq.f32.partialorder %v3847_v26, 8.507059e+37 }
 0xbdd   :  { %v6126_v32 = vpop.eup %6125  ;;  %vm3867_vm7 = vcmp.eq.f32.partialorder %v3866_v43, 8.507059e+37 }
 0xbde   :  { %v3876_v56 = vadd.f32 1.0, %v6126_v32 }
 0xbdf   :  { %v6128_v49 = vpop.eup %6127 }
 0xbe0   :  { %v6130_v62 = vpop.eup %6129  ;;  %v3839_v58 = vmul.f32 %v6128_v49, %v3837_v34  ;;  %6131 = vrcp.f32 %v3876_v56  ;;  %vm3844_vm0 = vweird.f32 %v6128_v49  ;;  %vm3882_vm9 = vweird.f32 %v3876_v56 }
 0xbe1   :  { %v3858_v17 = vmul.f32 %v6130_v62, %v3856_v28  ;;  %6133 = vtanh.f32 %v3832_v36  ;;  %vm3863_vm1 = vweird.f32 %v6130_v62  ;;  %vm3845_vm4 = vmor %vm3843_vm2, %vm3844_vm0  ;;  %v5507_v36 = vld [vmem:[%s8153_s5 + $0x10] sm:$0xff]  ;;  %v3886_v13 = vand.u32 2147483647, %v3876_v56 }
 0xbe2   :  { %v3840_v57 = vsub.f32 1.0, %v3839_v58  ;;  %vm3864_vm5 = vmor %vm3862_vm3, %vm3863_vm1  ;;  %v3869_v58 = vor.u32 1.1754944e-38, %v3868_v19  ;;  %v3888_v19 = vand.u32 2147483648, %v3876_v56 }
 0xbe3   :  { %v3859_v38 = vsub.f32 1.0, %v3858_v17  ;;  %vm3887_vm11 = vcmp.eq.f32.partialorder %v3886_v13, 8.507059e+37  ;;  %v3440_v13 = vadd.f32 %v7800_v7, %v7855_v12 }
 0xbe4   :  { %v3841_v4 = vmul.f32 %v6128_v49, %v3840_v57  ;;  %v3889_v26 = vor.u32 1.1754944e-38, %v3888_v19 }
 0xbe5   :  { %v3860_v39 = vmul.f32 %v6130_v62, %v3859_v38 }
 0xbe6   :  { %v6132_v15 = vpop.eup %6131  ;;  %v3842_v5 = vadd.f32 %v6128_v49, %v3841_v4 }
 0xbe7   :  { %v3861_v32 = vadd.f32 %v6130_v62, %v3860_v39  ;;  %v3878_v2 = vmul.f32 %v6132_v15, %v3876_v56  ;;  %v6134_v57 = vpop.eup %6133  ;;  %vm3883_vm8 = vweird.f32 %v6132_v15 }
 0xbe8   :  { %v3846_v17 = vsel %vm3845_vm4, %v6128_v49, %v3842_v5  ;;  %vm3884_vm10 = vmor %vm3882_vm9, %vm3883_vm8 }
 0xbe9   :  { %v3851_v38 = vsel %vm3848_vm6, %v3850_v50, %v3846_v17  ;;  %v3865_v22 = vsel %vm3864_vm5, %v6130_v62, %v3861_v32  ;;  %v3879_v24 = vsub.f32 1.0, %v3878_v2 }
 0xbea   :  { %v3870_v4 = vsel %vm3867_vm7, %v3869_v58, %v3865_v22  ;;  %v3893_v34 = vmul.f32 %v6134_v57, %v3851_v38  ;;  %v3527_v58 = vadd.f32 %v7806_v60, %v7865_v20 }
 0xbeb   :  { %v3892_v28 = vmul.f32 %v5507_v36, %v3870_v4  ;;  %v3880_v9 = vmul.f32 %v6132_v15, %v3879_v24 }
 0xbed   :  { %v7874_v47 = vadd.f32 %v3893_v34, %v3892_v28  ;;  %v3881_v39 = vadd.f32 %v6132_v15, %v3880_v9  ;;  %v3469_v9 = vadd.f32 %v7802_v30, %v7857_v53 }
 0xbef   :  { %6135 = vtanh.f32 %v7874_v47  ;;  %v3885_v49 = vsel %vm3884_vm10, %v6132_v15, %v3881_v39 }
 0xbf0   :  { %v3890_v43 = vsel %vm3887_vm11, %v3889_v26, %v3885_v49 }
 0xbf5   :  { %v6136_v62 = vpop.eup %6135 }
 0xbf6   :  { %v3896_v5 = vmul.f32 %v6136_v62, %v3890_v43  ;;  %v8292_v62 = vld [vmem:[#allocation9_spill] sm:$0xff] }
 0xbf7   :  { %v3498_v60 = vadd.f32 %v8292_v62, %v7868_v63 }
 0xbf8   :  { %3897 = vst [vmem:[%s8154_s6] sm:$0xff] %v3896_v5  ;;  %v3902_v24 = vpack.c.bf16 %v3896_v5, %v3896_v5 }
 0xbfa   :  { %3911 = vmatmul.bf16.vlgmr.msra.gmra.mxu0 %v3902_v24  ;;  %3924 = vmatmul.bf16.vlgmr.msra.gmra.mxu1 %v3902_v24 }
 0xbfb   :  { %3937 = vmatmul.bf16.vlgmr.msra.gmra.mxu2 %v3902_v24  ;;  %3950 = vmatmul.bf16.vlgmr.msra.gmra.mxu3 %v3902_v24 }
 0xbfc   :  { %4153 = vmatpush.bf16.msra.mxu0 %v7570_v3  ;;  %4166 = vmatpush.bf16.msra.mxu1 %v7572_v33 }
 0xbfd   :  { %4179 = vmatpush.bf16.msra.mxu2 %v7577_v41  ;;  %4192 = vmatpush.bf16.msra.mxu3 %v7574_v0 }
 0xc00   :  { %4154 = vmatpush.bf16.msra.mxu0 %v7581_v11  ;;  %4167 = vmatpush.bf16.msra.mxu1 %v7584_v40 }
 0xc01   :  { %4180 = vmatpush.bf16.msra.mxu2 %v7592_v25  ;;  %4193 = vmatpush.bf16.msra.mxu3 %v7587_v59 }
 0xc04   :  { %4155 = vmatpush.bf16.msra.mxu0 %v7595_v54  ;;  %4168 = vmatpush.bf16.msra.mxu1 %v7597_v42 }
 0xc05   :  { %4181 = vmatpush.bf16.msra.mxu2 %v7603_v51  ;;  %4194 = vmatpush.bf16.msra.mxu3 %v7599_v21 }
 0xc08   :  { %4156 = vmatpush.bf16.msra.mxu0 %v7607_v6  ;;  %4169 = vmatpush.bf16.msra.mxu1 %v7611_v46 }
 0xc09   :  { %4182 = vmatpush.bf16.msra.mxu2 %v7633_v35  ;;  %4195 = vmatpush.bf16.msra.mxu3 %v7617_v61 }
 0xc0c   :  { %4157 = vmatpush.bf16.msra.mxu0 %v7623_v16  ;;  %4170 = vmatpush.bf16.msra.mxu1 %v7625_v52 }
 0xc0d   :  { %4183 = vmatpush.bf16.msra.mxu2 %v7658_v8  ;;  %4196 = vmatpush.bf16.msra.mxu3 %v7631_v55 }
 0xc10   :  { %4158 = vmatpush.bf16.msra.mxu0 %v7637_v31  ;;  %4171 = vmatpush.bf16.msra.mxu1 %v7639_v29 }
 0xc11   :  { %4184 = vmatpush.bf16.msra.mxu2 %v7668_v14  ;;  %4197 = vmatpush.bf16.msra.mxu3 %v7645_v27 }
 0xc14   :  { %4159 = vmatpush.bf16.msra.mxu0 %v7671_v10  ;;  %4172 = vmatpush.bf16.msra.mxu1 %v7673_v48 }
 0xc15   :  { %4185 = vmatpush.bf16.msra.mxu2 %v7708_v18  ;;  %4198 = vmatpush.bf16.msra.mxu3 %v7675_v1 }
 0xc18   :  { %4160 = vmatpush.bf16.msra.mxu0 %v7695_v23  ;;  %4173 = vmatpush.bf16.msra.mxu1 %v7706_v45 }
 0xc19   :  { %4186 = vmatpush.bf16.msra.mxu2 %v7719_v44  ;;  %4199 = vmatpush.bf16.msra.mxu3 %v7713_v37 }
 0xc77   :  { %v3912_v15 = vpop.f32.mrf.mxu0  ;;  %v3925_v22 = vpop.f32.mrf.mxu1 }
 0xc78   :  { %v3955_v56 = vadd.f32 %v3912_v15, %v3440_v13  ;;  %v3956_v50 = vadd.f32 %v3925_v22, %v3469_v9 }
 0xc7a   :  { %v5639_v32 = vmul.f32 -1.442695, %v3955_v56  ;;  %v5640_v2 = vmul.f32 -1.442695, %v3956_v50 }
 0xc7c   :  { %6137 = vpow2.f32 %v5639_v32 }
 0xc7d   :  { %6139 = vpow2.f32 %v5640_v2 }
 0xc7e   :  { %v3938_v36 = vpop.f32.mrf.mxu2  ;;  %v3951_v17 = vpop.f32.mrf.mxu3 }
 0xc7f   :  { %v3958_v57 = vadd.f32 %v3951_v17, %v3527_v58  ;;  %v3914_v38 = vpop.f32.mrf.mxu0  ;;  %v3927_v4 = vpop.f32.mrf.mxu1  ;;  %v3957_v24 = vadd.f32 %v3938_v36, %v3498_v60 }
 0xc81   :  { %v5641_v7 = vmul.f32 -1.442695, %v3958_v57 }
 0xc82   :  { %v6138_v34 = vpop.eup %6137 }
 0xc83   :  { %v6140_v28 = vpop.eup %6139  ;;  %v3962_v30 = vadd.f32 1.0, %v6138_v34  ;;  %6141 = vpow2.f32 %v5641_v7 }
 0xc84   :  { %v3981_v39 = vadd.f32 1.0, %v6140_v28 }
 0xc85   :  { %6143 = vrcp.f32 %v3962_v30  ;;  %v3974_v50 = vand.u32 2147483648, %v3962_v30  ;;  %v3972_v58 = vand.u32 2147483647, %v3962_v30  ;;  %vm3968_vm14 = vweird.f32 %v3962_v30 }
 0xc86   :  { %6145 = vrcp.f32 %v3981_v39  ;;  %v3940_v19 = vpop.f32.mrf.mxu2  ;;  %v3953_v49 = vpop.f32.mrf.mxu3  ;;  %v3993_v32 = vand.u32 2147483648, %v3981_v39  ;;  %v3991_v57 = vand.u32 2147483647, %v3981_v39  ;;  %vm3987_vm15 = vweird.f32 %v3981_v39 }
 0xc87   :  { %v3975_v36 = vor.u32 1.1754944e-38, %v3974_v50  ;;  %vm3973_vm2 = vcmp.eq.f32.partialorder %v3972_v58, 8.507059e+37 }
 0xc88   :  { %v3994_v28 = vor.u32 1.1754944e-38, %v3993_v32  ;;  %vm3992_vm3 = vcmp.eq.f32.partialorder %v3991_v57, 8.507059e+37  ;;  %v8294_v57 = vld [vmem:[#allocation13_spill] sm:$0xff] }
 0xc89   :  { %v6142_v26 = vpop.eup %6141 }
 0xc8a   :  { %v4001_v43 = vadd.f32 1.0, %v6142_v26 }
 0xc8b   :  { %v6144_v5 = vpop.eup %6143 }
 0xc8c   :  { %v6146_v13 = vpop.eup %6145  ;;  %v3964_v9 = vmul.f32 %v6144_v5, %v3962_v30  ;;  %6147 = vrcp.f32 %v4001_v43  ;;  %vm3969_vm12 = vweird.f32 %v6144_v5  ;;  %vm4007_vm5 = vweird.f32 %v4001_v43 }
 0xc8d   :  { %v3983_v15 = vmul.f32 %v6146_v13, %v3981_v39  ;;  %6149 = vtanh.f32 %v3957_v24  ;;  %vm3988_vm13 = vweird.f32 %v6146_v13  ;;  %vm3970_vm0 = vmor %vm3968_vm14, %vm3969_vm12 }
 0xc8e   :  { %v3965_v22 = vsub.f32 1.0, %v3964_v9  ;;  %vm3989_vm1 = vmor %vm3987_vm15, %vm3988_vm13 }
 0xc8f   :  { %v3984_v56 = vsub.f32 1.0, %v3983_v15 }
 0xc90   :  { %v3966_v2 = vmul.f32 %v6144_v5, %v3965_v22 }
 0xc91   :  { %v3985_v17 = vmul.f32 %v6146_v13, %v3984_v56  ;;  %v4013_v56 = vand.u32 2147483648, %v4001_v43 }
 0xc92   :  { %v6148_v38 = vpop.eup %6147  ;;  %v3967_v4 = vadd.f32 %v6144_v5, %v3966_v2 }
 0xc93   :  { %v3986_v7 = vadd.f32 %v6146_v13, %v3985_v17  ;;  %v4003_v34 = vmul.f32 %v6148_v38, %v4001_v43  ;;  %v6150_v49 = vpop.eup %6149  ;;  %vm4008_vm4 = vweird.f32 %v6148_v38  ;;  %v4014_v32 = vor.u32 1.1754944e-38, %v4013_v56 }
 0xc94   :  { %v3971_v19 = vsel %vm3970_vm0, %v6144_v5, %v3967_v4  ;;  %v4011_v5 = vand.u32 2147483647, %v4001_v43  ;;  %vm4009_vm6 = vmor %vm4007_vm5, %vm4008_vm4  ;;  %v8293_v43 = vld [vmem:[#allocation10_spill] sm:$0xff] }
 0xc95   :  { %v3976_v26 = vsel %vm3973_vm2, %v3975_v36, %v3971_v19  ;;  %v3990_v62 = vsel %vm3989_vm1, %v6146_v13, %v3986_v7  ;;  %v4004_v60 = vsub.f32 1.0, %v4003_v34  ;;  %v3443_v17 = vadd.f32 %v8293_v43, %v7855_v12 }
 0xc96   :  { %v3995_v24 = vsel %vm3992_vm3, %v3994_v28, %v3990_v62  ;;  %v4018_v9 = vmul.f32 %v6150_v49, %v3976_v26  ;;  %vm4012_vm7 = vcmp.eq.f32.partialorder %v4011_v5, 8.507059e+37  ;;  %v8295_v49 = vld [vmem:[#allocation11_spill] sm:$0xff] }
 0xc97   :  { %v4017_v15 = vmul.f32 %v3995_v24, %v7874_v47  ;;  %v4005_v22 = vmul.f32 %v6148_v38, %v4004_v60  ;;  %v3530_v26 = vadd.f32 %v8295_v49, %v7865_v20 }
 0xc99   :  { %v7921_v30 = vadd.f32 %v4018_v9, %v4017_v15  ;;  %v4006_v39 = vadd.f32 %v6148_v38, %v4005_v22 }
 0xc9b   :  { %6151 = vtanh.f32 %v7921_v30  ;;  %v4010_v50 = vsel %vm4009_vm6, %v6148_v38, %v4006_v39  ;;  %v3472_v38 = vadd.f32 %v8294_v57, %v7857_v53 }
 0xc9c   :  { %v4015_v2 = vsel %vm4012_vm7, %v4014_v32, %v4010_v50 }
 0xca1   :  { %v6152_v13 = vpop.eup %6151 }
 0xca2   :  { %v4021_v58 = vmul.f32 %v6152_v13, %v4015_v2 }
 0xca4   :  { %5642 = vst [vmem:[%s8154_s6 + $0x8] sm:$0xff] %v4021_v58  ;;  %v4027_v47 = vpack.c.bf16 %v4021_v58, %v4021_v58  ;;  %v8296_v58 = vld [vmem:[#allocation12_spill] sm:$0xff] }
 0xca6   :  { %4036 = vmatmul.bf16.vlgmr.msrb.gmra.mxu0 %v4027_v47  ;;  %4049 = vmatmul.bf16.vlgmr.msrb.gmra.mxu1 %v4027_v47 }
 0xca7   :  { %4062 = vmatmul.bf16.vlgmr.msrb.gmra.mxu2 %v4027_v47  ;;  %4075 = vmatmul.bf16.vlgmr.msrb.gmra.mxu3 %v4027_v47  ;;  %v3501_v47 = vadd.f32 %v8296_v58, %v7868_v63 }
 0xca8   :  { %4278 = vmatpush.bf16.msrb.mxu0 %v7570_v3  ;;  %4291 = vmatpush.bf16.msrb.mxu1 %v7572_v33 }
 0xca9   :  { %4304 = vmatpush.bf16.msrb.mxu2 %v7577_v41  ;;  %4317 = vmatpush.bf16.msrb.mxu3 %v7574_v0 }
 0xcac   :  { %4279 = vmatpush.bf16.msrb.mxu0 %v7581_v11  ;;  %4292 = vmatpush.bf16.msrb.mxu1 %v7584_v40 }
 0xcad   :  { %4305 = vmatpush.bf16.msrb.mxu2 %v7592_v25  ;;  %4318 = vmatpush.bf16.msrb.mxu3 %v7587_v59 }
 0xcb0   :  { %4280 = vmatpush.bf16.msrb.mxu0 %v7595_v54  ;;  %4293 = vmatpush.bf16.msrb.mxu1 %v7597_v42 }
 0xcb1   :  { %4306 = vmatpush.bf16.msrb.mxu2 %v7603_v51  ;;  %4319 = vmatpush.bf16.msrb.mxu3 %v7599_v21 }
 0xcb4   :  { %4281 = vmatpush.bf16.msrb.mxu0 %v7607_v6  ;;  %4294 = vmatpush.bf16.msrb.mxu1 %v7611_v46 }
 0xcb5   :  { %4307 = vmatpush.bf16.msrb.mxu2 %v7633_v35  ;;  %4320 = vmatpush.bf16.msrb.mxu3 %v7617_v61 }
 0xcb8   :  { %4282 = vmatpush.bf16.msrb.mxu0 %v7623_v16  ;;  %4295 = vmatpush.bf16.msrb.mxu1 %v7625_v52 }
 0xcb9   :  { %4308 = vmatpush.bf16.msrb.mxu2 %v7658_v8  ;;  %4321 = vmatpush.bf16.msrb.mxu3 %v7631_v55 }
 0xcbc   :  { %4283 = vmatpush.bf16.msrb.mxu0 %v7637_v31  ;;  %4296 = vmatpush.bf16.msrb.mxu1 %v7639_v29 }
 0xcbd   :  { %4309 = vmatpush.bf16.msrb.mxu2 %v7668_v14  ;;  %4322 = vmatpush.bf16.msrb.mxu3 %v7645_v27 }
 0xcc0   :  { %4284 = vmatpush.bf16.msrb.mxu0 %v7671_v10  ;;  %4297 = vmatpush.bf16.msrb.mxu1 %v7673_v48 }
 0xcc1   :  { %4310 = vmatpush.bf16.msrb.mxu2 %v7708_v18  ;;  %4323 = vmatpush.bf16.msrb.mxu3 %v7675_v1 }
 0xcc4   :  { %4285 = vmatpush.bf16.msrb.mxu0 %v7695_v23  ;;  %4298 = vmatpush.bf16.msrb.mxu1 %v7706_v45 }
 0xcc5   :  { %4311 = vmatpush.bf16.msrb.mxu2 %v7719_v44  ;;  %4324 = vmatpush.bf16.msrb.mxu3 %v7713_v37 }
 0xd23   :  { %v4037_v4 = vpop.f32.mrf.mxu0  ;;  %v4050_v36 = vpop.f32.mrf.mxu1 }
 0xd24   :  { %v4080_v7 = vadd.f32 %v4037_v4, %v3443_v17  ;;  %v4081_v34 = vadd.f32 %v4050_v36, %v3472_v38 }
 0xd26   :  { %v5643_v28 = vmul.f32 -1.442695, %v4080_v7  ;;  %v5644_v19 = vmul.f32 -1.442695, %v4081_v34 }
 0xd28   :  { %6153 = vpow2.f32 %v5643_v28 }
 0xd29   :  { %6155 = vpow2.f32 %v5644_v19 }
 0xd2a   :  { %v4063_v62 = vpop.f32.mrf.mxu2  ;;  %v4076_v60 = vpop.f32.mrf.mxu3 }
 0xd2b   :  { %v4083_v24 = vadd.f32 %v4076_v60, %v3530_v26  ;;  %v4039_v9 = vpop.f32.mrf.mxu0  ;;  %v4052_v15 = vpop.f32.mrf.mxu1  ;;  %v4082_v57 = vadd.f32 %v4063_v62, %v3501_v47 }
 0xd2d   :  { %v5645_v22 = vmul.f32 -1.442695, %v4083_v24 }
 0xd2e   :  { %v6154_v39 = vpop.eup %6153 }
 0xd2f   :  { %v6156_v56 = vpop.eup %6155  ;;  %v4087_v5 = vadd.f32 1.0, %v6154_v39  ;;  %6157 = vpow2.f32 %v5645_v22 }
 0xd30   :  { %v4106_v50 = vadd.f32 1.0, %v6156_v56 }
 0xd31   :  { %6159 = vrcp.f32 %v4087_v5  ;;  %v4099_v28 = vand.u32 2147483648, %v4087_v5  ;;  %v4097_v26 = vand.u32 2147483647, %v4087_v5  ;;  %vm4093_vm10 = vweird.f32 %v4087_v5 }
 0xd32   :  { %6161 = vrcp.f32 %v4106_v50  ;;  %v4065_v32 = vpop.f32.mrf.mxu2  ;;  %v4078_v13 = vpop.f32.mrf.mxu3  ;;  %v4118_v19 = vand.u32 2147483648, %v4106_v50  ;;  %v4116_v24 = vand.u32 2147483647, %v4106_v50  ;;  %vm4112_vm11 = vweird.f32 %v4106_v50 }
 0xd33   :  { %v4100_v62 = vor.u32 1.1754944e-38, %v4099_v28  ;;  %vm4098_vm14 = vcmp.eq.f32.partialorder %v4097_v26, 8.507059e+37 }
 0xd34   :  { %v4119_v56 = vor.u32 1.1754944e-38, %v4118_v19  ;;  %vm4117_vm15 = vcmp.eq.f32.partialorder %v4116_v24, 8.507059e+37  ;;  %v8298_v24 = vld [vmem:[#allocation16_spill] sm:$0xff] }
 0xd35   :  { %v6158_v2 = vpop.eup %6157 }
 0xd36   :  { %v4126_v43 = vadd.f32 1.0, %v6158_v2 }
 0xd37   :  { %v6160_v17 = vpop.eup %6159 }
 0xd38   :  { %v6162_v38 = vpop.eup %6161  ;;  %v4089_v4 = vmul.f32 %v6160_v17, %v4087_v5  ;;  %6163 = vrcp.f32 %v4126_v43  ;;  %vm4094_vm8 = vweird.f32 %v6160_v17  ;;  %vm4132_vm1 = vweird.f32 %v4126_v43 }
 0xd39   :  { %v4108_v36 = vmul.f32 %v6162_v38, %v4106_v50  ;;  %6165 = vtanh.f32 %v4082_v57  ;;  %vm4113_vm9 = vweird.f32 %v6162_v38  ;;  %vm4095_vm12 = vmor %vm4093_vm10, %vm4094_vm8 }
 0xd3a   :  { %v4090_v7 = vsub.f32 1.0, %v4089_v4  ;;  %vm4114_vm13 = vmor %vm4112_vm11, %vm4113_vm9 }
 0xd3b   :  { %v4109_v34 = vsub.f32 1.0, %v4108_v36 }
 0xd3c   :  { %v4091_v49 = vmul.f32 %v6160_v17, %v4090_v7 }
 0xd3d   :  { %v4110_v60 = vmul.f32 %v6162_v38, %v4109_v34  ;;  %v4138_v34 = vand.u32 2147483648, %v4126_v43 }
 0xd3e   :  { %v6164_v9 = vpop.eup %6163  ;;  %v4092_v15 = vadd.f32 %v6160_v17, %v4091_v49 }
 0xd3f   :  { %v4111_v22 = vadd.f32 %v6162_v38, %v4110_v60  ;;  %v4128_v39 = vmul.f32 %v6164_v9, %v4126_v43  ;;  %v6166_v13 = vpop.eup %6165  ;;  %vm4133_vm0 = vweird.f32 %v6164_v9  ;;  %v4139_v19 = vor.u32 1.1754944e-38, %v4138_v34 }
 0xd40   :  { %v4096_v32 = vsel %vm4095_vm12, %v6160_v17, %v4092_v15  ;;  %v4136_v17 = vand.u32 2147483647, %v4126_v43  ;;  %vm4134_vm2 = vmor %vm4132_vm1, %vm4133_vm0  ;;  %v8297_v43 = vld [vmem:[#allocation14_spill] sm:$0xff] }
 0xd41   :  { %v4101_v2 = vsel %vm4098_vm14, %v4100_v62, %v4096_v32  ;;  %v4115_v58 = vsel %vm4114_vm13, %v6162_v38, %v4111_v22  ;;  %v4129_v47 = vsub.f32 1.0, %v4128_v39  ;;  %v3445_v60 = vadd.f32 %v8297_v43, %v7855_v12 }
 0xd42   :  { %v4120_v57 = vsel %vm4117_vm15, %v4119_v56, %v4115_v58  ;;  %v4143_v4 = vmul.f32 %v6166_v13, %v4101_v2  ;;  %vm4137_vm3 = vcmp.eq.f32.partialorder %v4136_v17, 8.507059e+37  ;;  %v8299_v13 = vld [vmem:[#allocation15_spill] sm:$0xff] }
 0xd43   :  { %v4142_v36 = vmul.f32 %v4120_v57, %v7921_v30  ;;  %v4130_v7 = vmul.f32 %v6164_v9, %v4129_v47  ;;  %v3532_v2 = vadd.f32 %v8299_v13, %v7865_v20 }
 0xd45   :  { %v7968_v5 = vadd.f32 %v4143_v4, %v4142_v36  ;;  %v4131_v50 = vadd.f32 %v6164_v9, %v4130_v7 }
 0xd47   :  { %6167 = vtanh.f32 %v7968_v5  ;;  %v4135_v28 = vsel %vm4134_vm2, %v6164_v9, %v4131_v50  ;;  %v3474_v9 = vadd.f32 %v8298_v24, %v7857_v53 }
 0xd48   :  { %v4140_v49 = vsel %vm4137_vm3, %v4139_v19, %v4135_v28 }
 0xd4d   :  { %v6168_v38 = vpop.eup %6167 }
 0xd4e   :  { %v4146_v26 = vmul.f32 %v6168_v38, %v4140_v49 }
 0xd50   :  { %5646 = vst [vmem:[%s8154_s6 + $0x10] sm:$0xff] %v4146_v26  ;;  %v4152_v30 = vpack.c.bf16 %v4146_v26, %v4146_v26  ;;  %v8300_v26 = vld [vmem:[#allocation17_spill] sm:$0xff] }
 0xd52   :  { %4161 = vmatmul.bf16.vlgmr.msra.gmra.mxu0 %v4152_v30  ;;  %4174 = vmatmul.bf16.vlgmr.msra.gmra.mxu1 %v4152_v30 }
 0xd53   :  { %4187 = vmatmul.bf16.vlgmr.msra.gmra.mxu2 %v4152_v30  ;;  %4200 = vmatmul.bf16.vlgmr.msra.gmra.mxu3 %v4152_v30  ;;  %v3503_v30 = vadd.f32 %v8300_v26, %v7868_v63 }
 0xd54   :  { %4403 = vmatpush.bf16.msra.mxu0 %v7570_v3  ;;  %4416 = vmatpush.bf16.msra.mxu1 %v7572_v33 }
 0xd55   :  { %4429 = vmatpush.bf16.msra.mxu2 %v7577_v41  ;;  %4442 = vmatpush.bf16.msra.mxu3 %v7574_v0 }
 0xd58   :  { %4404 = vmatpush.bf16.msra.mxu0 %v7581_v11  ;;  %4417 = vmatpush.bf16.msra.mxu1 %v7584_v40 }
 0xd59   :  { %4430 = vmatpush.bf16.msra.mxu2 %v7592_v25  ;;  %4443 = vmatpush.bf16.msra.mxu3 %v7587_v59 }
 0xd5c   :  { %4405 = vmatpush.bf16.msra.mxu0 %v7595_v54  ;;  %4418 = vmatpush.bf16.msra.mxu1 %v7597_v42 }
 0xd5d   :  { %4431 = vmatpush.bf16.msra.mxu2 %v7603_v51  ;;  %4444 = vmatpush.bf16.msra.mxu3 %v7599_v21 }
 0xd60   :  { %4406 = vmatpush.bf16.msra.mxu0 %v7607_v6  ;;  %4419 = vmatpush.bf16.msra.mxu1 %v7611_v46 }
 0xd61   :  { %4432 = vmatpush.bf16.msra.mxu2 %v7633_v35  ;;  %4445 = vmatpush.bf16.msra.mxu3 %v7617_v61 }
 0xd64   :  { %4407 = vmatpush.bf16.msra.mxu0 %v7623_v16  ;;  %4420 = vmatpush.bf16.msra.mxu1 %v7625_v52 }
 0xd65   :  { %4433 = vmatpush.bf16.msra.mxu2 %v7658_v8  ;;  %4446 = vmatpush.bf16.msra.mxu3 %v7631_v55 }
 0xd68   :  { %4408 = vmatpush.bf16.msra.mxu0 %v7637_v31  ;;  %4421 = vmatpush.bf16.msra.mxu1 %v7639_v29 }
 0xd69   :  { %4434 = vmatpush.bf16.msra.mxu2 %v7668_v14  ;;  %4447 = vmatpush.bf16.msra.mxu3 %v7645_v27 }
 0xd6c   :  { %4409 = vmatpush.bf16.msra.mxu0 %v7671_v10  ;;  %4422 = vmatpush.bf16.msra.mxu1 %v7673_v48 }
 0xd6d   :  { %4435 = vmatpush.bf16.msra.mxu2 %v7708_v18  ;;  %4448 = vmatpush.bf16.msra.mxu3 %v7675_v1 }
 0xd70   :  { %4410 = vmatpush.bf16.msra.mxu0 %v7695_v23  ;;  %4423 = vmatpush.bf16.msra.mxu1 %v7706_v45 }
 0xd71   :  { %4436 = vmatpush.bf16.msra.mxu2 %v7719_v44  ;;  %4449 = vmatpush.bf16.msra.mxu3 %v7713_v37 }
 0xdcf   :  { %v4162_v15 = vpop.f32.mrf.mxu0  ;;  %v4175_v62 = vpop.f32.mrf.mxu1 }
 0xdd0   :  { %v4205_v22 = vadd.f32 %v4162_v15, %v3445_v60  ;;  %v4206_v39 = vadd.f32 %v4175_v62, %v3474_v9 }
 0xdd2   :  { %v5647_v56 = vmul.f32 -1.442695, %v4205_v22  ;;  %v5648_v32 = vmul.f32 -1.442695, %v4206_v39 }
 0xdd4   :  { %6169 = vpow2.f32 %v5647_v56 }
 0xdd5   :  { %6171 = vpow2.f32 %v5648_v32 }
 0xdd6   :  { %v4188_v58 = vpop.f32.mrf.mxu2  ;;  %v4201_v47 = vpop.f32.mrf.mxu3 }
 0xdd7   :  { %v4208_v57 = vadd.f32 %v4201_v47, %v3532_v2  ;;  %v4164_v4 = vpop.f32.mrf.mxu0  ;;  %v4177_v36 = vpop.f32.mrf.mxu1  ;;  %v4207_v24 = vadd.f32 %v4188_v58, %v3503_v30 }
 0xdd9   :  { %v5649_v7 = vmul.f32 -1.442695, %v4208_v57 }
 0xdda   :  { %v6170_v50 = vpop.eup %6169 }
 0xddb   :  { %v6172_v34 = vpop.eup %6171  ;;  %v4212_v17 = vadd.f32 1.0, %v6170_v50  ;;  %6173 = vpow2.f32 %v5649_v7 }
 0xddc   :  { %v4231_v28 = vadd.f32 1.0, %v6172_v34 }
 0xddd   :  { %6175 = vrcp.f32 %v4212_v17  ;;  %v4224_v56 = vand.u32 2147483648, %v4212_v17  ;;  %v4222_v2 = vand.u32 2147483647, %v4212_v17  ;;  %vm4218_vm6 = vweird.f32 %v4212_v17 }
 0xdde   :  { %6177 = vrcp.f32 %v4231_v28  ;;  %v4190_v19 = vpop.f32.mrf.mxu2  ;;  %v4203_v38 = vpop.f32.mrf.mxu3  ;;  %v4243_v32 = vand.u32 2147483648, %v4231_v28  ;;  %v4241_v57 = vand.u32 2147483647, %v4231_v28  ;;  %vm4237_vm7 = vweird.f32 %v4231_v28 }
 0xddf   :  { %v4225_v58 = vor.u32 1.1754944e-38, %v4224_v56  ;;  %vm4223_vm10 = vcmp.eq.f32.partialorder %v4222_v2, 8.507059e+37 }
 0xde0   :  { %v4244_v34 = vor.u32 1.1754944e-38, %v4243_v32  ;;  %vm4242_vm11 = vcmp.eq.f32.partialorder %v4241_v57, 8.507059e+37  ;;  %v8302_v57 = vld [vmem:[#allocation21_spill] sm:$0xff] }
 0xde1   :  { %v6174_v49 = vpop.eup %6173 }
 0xde2   :  { %v4251_v43 = vadd.f32 1.0, %v6174_v49 }
 0xde3   :  { %v6176_v60 = vpop.eup %6175 }
 0xde4   :  { %v6178_v9 = vpop.eup %6177  ;;  %v4214_v15 = vmul.f32 %v6176_v60, %v4212_v17  ;;  %6179 = vrcp.f32 %v4251_v43  ;;  %vm4219_vm4 = vweird.f32 %v6176_v60  ;;  %vm4257_vm13 = vweird.f32 %v4251_v43 }
 0xde5   :  { %v4233_v62 = vmul.f32 %v6178_v9, %v4231_v28  ;;  %6181 = vtanh.f32 %v4207_v24  ;;  %vm4238_vm5 = vweird.f32 %v6178_v9  ;;  %vm4220_vm8 = vmor %vm4218_vm6, %vm4219_vm4 }
 0xde6   :  { %v4215_v22 = vsub.f32 1.0, %v4214_v15  ;;  %vm4239_vm9 = vmor %vm4237_vm7, %vm4238_vm5 }
 0xde7   :  { %v4234_v39 = vsub.f32 1.0, %v4233_v62 }
 0xde8   :  { %v4216_v13 = vmul.f32 %v6176_v60, %v4215_v22 }
 0xde9   :  { %v4235_v47 = vmul.f32 %v6178_v9, %v4234_v39  ;;  %v4263_v39 = vand.u32 2147483648, %v4251_v43 }
 0xdea   :  { %v6180_v4 = vpop.eup %6179  ;;  %v4217_v36 = vadd.f32 %v6176_v60, %v4216_v13 }
 0xdeb   :  { %v4236_v7 = vadd.f32 %v6178_v9, %v4235_v47  ;;  %v4253_v50 = vmul.f32 %v6180_v4, %v4251_v43  ;;  %v6182_v38 = vpop.eup %6181  ;;  %vm4258_vm12 = vweird.f32 %v6180_v4  ;;  %v4264_v32 = vor.u32 1.1754944e-38, %v4263_v39 }
 0xdec   :  { %v4221_v19 = vsel %vm4220_vm8, %v6176_v60, %v4217_v36  ;;  %v4261_v60 = vand.u32 2147483647, %v4251_v43  ;;  %vm4259_vm14 = vmor %vm4257_vm13, %vm4258_vm12  ;;  %v8301_v43 = vld [vmem:[#allocation18_spill] sm:$0xff] }
 0xded   :  { %v4226_v49 = vsel %vm4223_vm10, %v4225_v58, %v4221_v19  ;;  %v4240_v26 = vsel %vm4239_vm9, %v6178_v9, %v4236_v7  ;;  %v4254_v30 = vsub.f32 1.0, %v4253_v50  ;;  %v3448_v47 = vadd.f32 %v8301_v43, %v7855_v12 }
 0xdee   :  { %v4245_v24 = vsel %vm4242_vm11, %v4244_v34, %v4240_v26  ;;  %v4268_v15 = vmul.f32 %v6182_v38, %v4226_v49  ;;  %vm4262_vm15 = vcmp.eq.f32.partialorder %v4261_v60, 8.507059e+37  ;;  %v8303_v38 = vld [vmem:[#allocation19_spill] sm:$0xff] }
 0xdef   :  { %v4267_v62 = vmul.f32 %v4245_v24, %v7968_v5  ;;  %v4255_v22 = vmul.f32 %v6180_v4, %v4254_v30  ;;  %v3535_v49 = vadd.f32 %v8303_v38, %v7865_v20 }
 0xdf1   :  { %v8015_v17 = vadd.f32 %v4268_v15, %v4267_v62  ;;  %v4256_v28 = vadd.f32 %v6180_v4, %v4255_v22 }
 0xdf3   :  { %6183 = vtanh.f32 %v8015_v17  ;;  %v4260_v56 = vsel %vm4259_vm14, %v6180_v4, %v4256_v28  ;;  %v3477_v4 = vadd.f32 %v8302_v57, %v7857_v53 }
 0xdf4   :  { %v4265_v13 = vsel %vm4262_vm15, %v4264_v32, %v4260_v56 }
 0xdf9   :  { %v6184_v9 = vpop.eup %6183 }
 0xdfa   :  { %v4271_v2 = vmul.f32 %v6184_v9, %v4265_v13 }
 0xdfc   :  { %5650 = vst [vmem:[%s8154_s6 + $0x18] sm:$0xff] %v4271_v2  ;;  %v4277_v5 = vpack.c.bf16 %v4271_v2, %v4271_v2  ;;  %v8304_v2 = vld [vmem:[#allocation20_spill] sm:$0xff] }
 0xdfe   :  { %4286 = vmatmul.bf16.vlgmr.msrb.gmra.mxu0 %v4277_v5  ;;  %4299 = vmatmul.bf16.vlgmr.msrb.gmra.mxu1 %v4277_v5 }
 0xdff   :  { %4312 = vmatmul.bf16.vlgmr.msrb.gmra.mxu2 %v4277_v5  ;;  %4325 = vmatmul.bf16.vlgmr.msrb.gmra.mxu3 %v4277_v5  ;;  %v3506_v5 = vadd.f32 %v8304_v2, %v7868_v63 }
 0xe00   :  { %4528 = vmatpush.bf16.msrb.mxu0 %v7570_v3  ;;  %4541 = vmatpush.bf16.msrb.mxu1 %v7572_v33 }
 0xe01   :  { %4554 = vmatpush.bf16.msrb.mxu2 %v7577_v41  ;;  %4567 = vmatpush.bf16.msrb.mxu3 %v7574_v0 }
 0xe04   :  { %4529 = vmatpush.bf16.msrb.mxu0 %v7581_v11  ;;  %4542 = vmatpush.bf16.msrb.mxu1 %v7584_v40 }
 0xe05   :  { %4555 = vmatpush.bf16.msrb.mxu2 %v7592_v25  ;;  %4568 = vmatpush.bf16.msrb.mxu3 %v7587_v59 }
 0xe08   :  { %4530 = vmatpush.bf16.msrb.mxu0 %v7595_v54  ;;  %4543 = vmatpush.bf16.msrb.mxu1 %v7597_v42 }
 0xe09   :  { %4556 = vmatpush.bf16.msrb.mxu2 %v7603_v51  ;;  %4569 = vmatpush.bf16.msrb.mxu3 %v7599_v21 }
 0xe0c   :  { %4531 = vmatpush.bf16.msrb.mxu0 %v7607_v6  ;;  %4544 = vmatpush.bf16.msrb.mxu1 %v7611_v46 }
 0xe0d   :  { %4557 = vmatpush.bf16.msrb.mxu2 %v7633_v35  ;;  %4570 = vmatpush.bf16.msrb.mxu3 %v7617_v61 }
 0xe10   :  { %4532 = vmatpush.bf16.msrb.mxu0 %v7623_v16  ;;  %4545 = vmatpush.bf16.msrb.mxu1 %v7625_v52 }
 0xe11   :  { %4558 = vmatpush.bf16.msrb.mxu2 %v7658_v8  ;;  %4571 = vmatpush.bf16.msrb.mxu3 %v7631_v55 }
 0xe14   :  { %4533 = vmatpush.bf16.msrb.mxu0 %v7637_v31  ;;  %4546 = vmatpush.bf16.msrb.mxu1 %v7639_v29 }
 0xe15   :  { %4559 = vmatpush.bf16.msrb.mxu2 %v7668_v14  ;;  %4572 = vmatpush.bf16.msrb.mxu3 %v7645_v27 }
 0xe18   :  { %4534 = vmatpush.bf16.msrb.mxu0 %v7671_v10  ;;  %4547 = vmatpush.bf16.msrb.mxu1 %v7673_v48 }
 0xe19   :  { %4560 = vmatpush.bf16.msrb.mxu2 %v7708_v18  ;;  %4573 = vmatpush.bf16.msrb.mxu3 %v7675_v1 }
 0xe1c   :  { %4535 = vmatpush.bf16.msrb.mxu0 %v7695_v23  ;;  %4548 = vmatpush.bf16.msrb.mxu1 %v7706_v45 }
 0xe1d   :  { %4561 = vmatpush.bf16.msrb.mxu2 %v7719_v44  ;;  %4574 = vmatpush.bf16.msrb.mxu3 %v7713_v37 }
 0xe7b   :  { %v4287_v36 = vpop.f32.mrf.mxu0  ;;  %v4300_v58 = vpop.f32.mrf.mxu1 }
 0xe7c   :  { %v4330_v7 = vadd.f32 %v4287_v36, %v3448_v47  ;;  %v4331_v50 = vadd.f32 %v4300_v58, %v3477_v4 }
 0xe7e   :  { %v5651_v34 = vmul.f32 -1.442695, %v4330_v7  ;;  %v5652_v19 = vmul.f32 -1.442695, %v4331_v50 }
 0xe80   :  { %6185 = vpow2.f32 %v5651_v34 }
 0xe81   :  { %6187 = vpow2.f32 %v5652_v19 }
 0xe82   :  { %v4313_v26 = vpop.f32.mrf.mxu2  ;;  %v4326_v30 = vpop.f32.mrf.mxu3 }
 0xe83   :  { %v4333_v24 = vadd.f32 %v4326_v30, %v3535_v49  ;;  %v4289_v15 = vpop.f32.mrf.mxu0  ;;  %v4302_v62 = vpop.f32.mrf.mxu1  ;;  %v4332_v57 = vadd.f32 %v4313_v26, %v3506_v5 }
 0xe85   :  { %v5653_v22 = vmul.f32 -1.442695, %v4333_v24 }
 0xe86   :  { %v6186_v28 = vpop.eup %6185 }
 0xe87   :  { %v6188_v39 = vpop.eup %6187  ;;  %v4337_v60 = vadd.f32 1.0, %v6186_v28  ;;  %6189 = vpow2.f32 %v5653_v22 }
 0xe88   :  { %v4356_v56 = vadd.f32 1.0, %v6188_v39 }
 0xe89   :  { %6191 = vrcp.f32 %v4337_v60  ;;  %v4349_v34 = vand.u32 2147483648, %v4337_v60  ;;  %v4347_v49 = vand.u32 2147483647, %v4337_v60  ;;  %vm4343_vm2 = vweird.f32 %v4337_v60 }
 0xe8a   :  { %6193 = vrcp.f32 %v4356_v56  ;;  %v4315_v32 = vpop.f32.mrf.mxu2  ;;  %v4328_v9 = vpop.f32.mrf.mxu3  ;;  %v4368_v19 = vand.u32 2147483648, %v4356_v56  ;;  %v4366_v24 = vand.u32 2147483647, %v4356_v56  ;;  %vm4362_vm3 = vweird.f32 %v4356_v56 }
 0xe8b   :  { %v4350_v26 = vor.u32 1.1754944e-38, %v4349_v34  ;;  %vm4348_vm6 = vcmp.eq.f32.partialorder %v4347_v49, 8.507059e+37 }
 0xe8c   :  { %v4369_v39 = vor.u32 1.1754944e-38, %v4368_v19  ;;  %vm4367_vm7 = vcmp.eq.f32.partialorder %v4366_v24, 8.507059e+37 }
 0xe8d   :  { %v6190_v13 = vpop.eup %6189 }
 0xe8e   :  { %v4376_v43 = vadd.f32 1.0, %v6190_v13 }
 0xe8f   :  { %v6192_v47 = vpop.eup %6191 }
 0xe90   :  { %v6194_v4 = vpop.eup %6193  ;;  %v4339_v36 = vmul.f32 %v6192_v47, %v4337_v60  ;;  %6195 = vrcp.f32 %v4376_v43  ;;  %vm4344_vm0 = vweird.f32 %v6192_v47  ;;  %vm4382_vm9 = vweird.f32 %v4376_v43 }
 0xe91   :  { %v4358_v58 = vmul.f32 %v6194_v4, %v4356_v56  ;;  %6197 = vtanh.f32 %v4332_v57  ;;  %vm4363_vm1 = vweird.f32 %v6194_v4  ;;  %vm4345_vm4 = vmor %vm4343_vm2, %vm4344_vm0 }
 0xe92   :  { %v4340_v7 = vsub.f32 1.0, %v4339_v36  ;;  %vm4364_vm5 = vmor %vm4362_vm3, %vm4363_vm1 }
 0xe93   :  { %v4359_v50 = vsub.f32 1.0, %v4358_v58 }
 0xe94   :  { %v4341_v38 = vmul.f32 %v6192_v47, %v4340_v7 }
 0xe95   :  { %v4360_v30 = vmul.f32 %v6194_v4, %v4359_v50  ;;  %v4388_v50 = vand.u32 2147483648, %v4376_v43 }
 0xe96   :  { %v6196_v15 = vpop.eup %6195  ;;  %v4342_v62 = vadd.f32 %v6192_v47, %v4341_v38 }
 0xe97   :  { %v4361_v22 = vadd.f32 %v6194_v4, %v4360_v30  ;;  %v4378_v28 = vmul.f32 %v6196_v15, %v4376_v43  ;;  %v6198_v9 = vpop.eup %6197  ;;  %vm4383_vm8 = vweird.f32 %v6196_v15  ;;  %v4389_v19 = vor.u32 1.1754944e-38, %v4388_v50 }
 0xe98   :  { %v4346_v32 = vsel %vm4345_vm4, %v6192_v47, %v4342_v62  ;;  %v4386_v47 = vand.u32 2147483647, %v4376_v43  ;;  %vm4384_vm10 = vmor %vm4382_vm9, %vm4383_vm8 }
 0xe99   :  { %v4351_v13 = vsel %vm4348_vm6, %v4350_v26, %v4346_v32  ;;  %v4365_v2 = vsel %vm4364_vm5, %v6194_v4, %v4361_v22  ;;  %v4379_v5 = vsub.f32 1.0, %v4378_v28 }
 0xe9a   :  { %v4370_v57 = vsel %vm4367_vm7, %v4369_v39, %v4365_v2  ;;  %v4393_v36 = vmul.f32 %v6198_v9, %v4351_v13  ;;  %vm4387_vm11 = vcmp.eq.f32.partialorder %v4386_v47, 8.507059e+37 }
 0xe9b   :  { %v4392_v58 = vmul.f32 %v4370_v57, %v8015_v17  ;;  %v4380_v7 = vmul.f32 %v6196_v15, %v4379_v5 }
 0xe9d   :  { %v8062_v60 = vadd.f32 %v4393_v36, %v4392_v58  ;;  %v4381_v56 = vadd.f32 %v6196_v15, %v4380_v7 }
 0xe9f   :  { %6199 = vtanh.f32 %v8062_v60  ;;  %v4385_v34 = vsel %vm4384_vm10, %v6196_v15, %v4381_v56 }
 0xea0   :  { %v4390_v38 = vsel %vm4387_vm11, %v4389_v19, %v4385_v34 }
 0xea5   :  { %v6200_v4 = vpop.eup %6199 }
 0xea6   :  { %v4396_v49 = vmul.f32 %v6200_v4, %v4390_v38 }
 0xea8   :  { %5654 = vst [vmem:[%s8154_s6 + $0x20] sm:$0xff] %v4396_v49  ;;  %v4402_v17 = vpack.c.bf16 %v4396_v49, %v4396_v49 }
 0xeaa   :  { %4411 = vmatmul.bf16.vlgmr.msra.gmra.mxu0 %v4402_v17  ;;  %4424 = vmatmul.bf16.vlgmr.msra.gmra.mxu1 %v4402_v17 }
 0xeab   :  { %4437 = vmatmul.bf16.vlgmr.msra.gmra.mxu2 %v4402_v17  ;;  %4450 = vmatmul.bf16.vlgmr.msra.gmra.mxu3 %v4402_v17 }
 0xeac   :  { %4653 = vmatpush.bf16.msra.mxu0 %v7570_v3  ;;  %4666 = vmatpush.bf16.msra.mxu1 %v7572_v33  ;;  %v8305_v3 = vld [vmem:[#allocation22_spill] sm:$0xff] }
 0xead   :  { %4679 = vmatpush.bf16.msra.mxu2 %v7577_v41  ;;  %4692 = vmatpush.bf16.msra.mxu3 %v7574_v0  ;;  %v3450_v33 = vadd.f32 %v8305_v3, %v7855_v12  ;;  %v8306_v0 = vld [vmem:[#allocation24_spill] sm:$0xff] }
 0xeae   :  { %v3479_v41 = vadd.f32 %v8306_v0, %v7857_v53 }
 0xeb0   :  { %4654 = vmatpush.bf16.msra.mxu0 %v7581_v11  ;;  %4667 = vmatpush.bf16.msra.mxu1 %v7584_v40 }
 0xeb1   :  { %4680 = vmatpush.bf16.msra.mxu2 %v7592_v25  ;;  %4693 = vmatpush.bf16.msra.mxu3 %v7587_v59 }
 0xeb4   :  { %4655 = vmatpush.bf16.msra.mxu0 %v7595_v54  ;;  %4668 = vmatpush.bf16.msra.mxu1 %v7597_v42 }
 0xeb5   :  { %4681 = vmatpush.bf16.msra.mxu2 %v7603_v51  ;;  %4694 = vmatpush.bf16.msra.mxu3 %v7599_v21  ;;  %v8307_v21 = vld [vmem:[#allocation23_spill] sm:$0xff] }
 0xeb6   :  { %v3537_v51 = vadd.f32 %v8307_v21, %v7865_v20 }
 0xeb8   :  { %4656 = vmatpush.bf16.msra.mxu0 %v7607_v6  ;;  %4669 = vmatpush.bf16.msra.mxu1 %v7611_v46 }
 0xeb9   :  { %4682 = vmatpush.bf16.msra.mxu2 %v7633_v35  ;;  %4695 = vmatpush.bf16.msra.mxu3 %v7617_v61 }
 0xebc   :  { %4657 = vmatpush.bf16.msra.mxu0 %v7623_v16  ;;  %4670 = vmatpush.bf16.msra.mxu1 %v7625_v52 }
 0xebd   :  { %4683 = vmatpush.bf16.msra.mxu2 %v7658_v8  ;;  %4696 = vmatpush.bf16.msra.mxu3 %v7631_v55 }
 0xec0   :  { %4658 = vmatpush.bf16.msra.mxu0 %v7637_v31  ;;  %4671 = vmatpush.bf16.msra.mxu1 %v7639_v29 }
 0xec1   :  { %4684 = vmatpush.bf16.msra.mxu2 %v7668_v14  ;;  %4697 = vmatpush.bf16.msra.mxu3 %v7645_v27 }
 0xec4   :  { %4659 = vmatpush.bf16.msra.mxu0 %v7671_v10  ;;  %4672 = vmatpush.bf16.msra.mxu1 %v7673_v48  ;;  %v8308_v48 = vld [vmem:[#allocation25_spill] sm:$0xff] }
 0xec5   :  { %4685 = vmatpush.bf16.msra.mxu2 %v7708_v18  ;;  %4698 = vmatpush.bf16.msra.mxu3 %v7675_v1  ;;  %v3508_v1 = vadd.f32 %v8308_v48, %v7868_v63 }
 0xec8   :  { %4660 = vmatpush.bf16.msra.mxu0 %v7695_v23  ;;  %4673 = vmatpush.bf16.msra.mxu1 %v7706_v45 }
 0xec9   :  { %4686 = vmatpush.bf16.msra.mxu2 %v7719_v44  ;;  %4699 = vmatpush.bf16.msra.mxu3 %v7713_v37 }
 0xf27   :  { %v4412_v11 = vpop.f32.mrf.mxu0  ;;  %v4425_v40 = vpop.f32.mrf.mxu1 }
 0xf28   :  { %v4455_v59 = vadd.f32 %v4412_v11, %v3450_v33  ;;  %v4456_v25 = vadd.f32 %v4425_v40, %v3479_v41 }
 0xf2a   :  { %v5655_v54 = vmul.f32 -1.442695, %v4455_v59  ;;  %v5656_v42 = vmul.f32 -1.442695, %v4456_v25  ;;  %v8309_v59 = vld [vmem:[#allocation26_spill] sm:$0xff] }
 0xf2b   :  { %v3453_v25 = vadd.f32 %v8309_v59, %v7855_v12 }
 0xf2c   :  { %6201 = vpow2.f32 %v5655_v54  ;;  %v8310_v54 = vld [vmem:[#allocation29_spill] sm:$0xff] }
 0xf2d   :  { %6203 = vpow2.f32 %v5656_v42  ;;  %v3482_v42 = vadd.f32 %v8310_v54, %v7857_v53 }
 0xf2e   :  { %v4438_v6 = vpop.f32.mrf.mxu2  ;;  %v4451_v46 = vpop.f32.mrf.mxu3 }
 0xf2f   :  { %v4458_v61 = vadd.f32 %v4451_v46, %v3537_v51  ;;  %v4414_v16 = vpop.f32.mrf.mxu0  ;;  %v4427_v52 = vpop.f32.mrf.mxu1  ;;  %v4457_v18 = vadd.f32 %v4438_v6, %v3508_v1 }
 0xf30   :  { %v8311_v52 = vld [vmem:[#allocation27_spill] sm:$0xff] }
 0xf31   :  { %v5657_v55 = vmul.f32 -1.442695, %v4458_v61 }
 0xf32   :  { %v6202_v35 = vpop.eup %6201 }
 0xf33   :  { %v6204_v31 = vpop.eup %6203  ;;  %v4462_v29 = vadd.f32 1.0, %v6202_v35  ;;  %6205 = vpow2.f32 %v5657_v55  ;;  %v3540_v55 = vadd.f32 %v8311_v52, %v7865_v20 }
 0xf34   :  { %v4481_v27 = vadd.f32 1.0, %v6204_v31 }
 0xf35   :  { %6207 = vrcp.f32 %v4462_v29  ;;  %v4474_v15 = vand.u32 2147483648, %v4462_v29  ;;  %v4472_v22 = vand.u32 2147483647, %v4462_v29  ;;  %vm4468_vm14 = vweird.f32 %v4462_v29 }
 0xf36   :  { %6209 = vrcp.f32 %v4481_v27  ;;  %v4440_v8 = vpop.f32.mrf.mxu2  ;;  %v4453_v14 = vpop.f32.mrf.mxu3  ;;  %v4493_v62 = vand.u32 2147483648, %v4481_v27  ;;  %v4491_v39 = vand.u32 2147483647, %v4481_v27  ;;  %vm4487_vm15 = vweird.f32 %v4481_v27 }
 0xf37   :  { %v4475_v13 = vor.u32 1.1754944e-38, %v4474_v15  ;;  %vm4473_vm2 = vcmp.eq.f32.partialorder %v4472_v22, 8.507059e+37 }
 0xf38   :  { %v4494_v57 = vor.u32 1.1754944e-38, %v4493_v62  ;;  %vm4492_vm3 = vcmp.eq.f32.partialorder %v4491_v39, 8.507059e+37 }
 0xf39   :  { %v6206_v10 = vpop.eup %6205 }
 0xf3a   :  { %v4501_v23 = vadd.f32 1.0, %v6206_v10 }
 0xf3b   :  { %v6208_v45 = vpop.eup %6207 }
 0xf3c   :  { %v6210_v37 = vpop.eup %6209  ;;  %v4464_v44 = vmul.f32 %v6208_v45, %v4462_v29  ;;  %6211 = vrcp.f32 %v4501_v23  ;;  %vm4469_vm12 = vweird.f32 %v6208_v45  ;;  %v4513_v17 = vand.u32 2147483648, %v4501_v23 }
 0xf3d   :  { %v4483_v43 = vmul.f32 %v6210_v37, %v4481_v27  ;;  %6213 = vtanh.f32 %v4457_v18  ;;  %vm4488_vm13 = vweird.f32 %v6210_v37  ;;  %vm4470_vm0 = vmor %vm4468_vm14, %vm4469_vm12  ;;  %vm4507_vm5 = vweird.f32 %v4501_v23 }
 0xf3e   :  { %v4465_v30 = vsub.f32 1.0, %v4464_v44  ;;  %vm4489_vm1 = vmor %vm4487_vm15, %vm4488_vm13  ;;  %v4511_v3 = vand.u32 2147483647, %v4501_v23  ;;  %v4514_v0 = vor.u32 1.1754944e-38, %v4513_v17  ;;  %v8312_v44 = vld [vmem:[#allocation28_spill] sm:$0xff] }
 0xf3f   :  { %v4484_v24 = vsub.f32 1.0, %v4483_v43  ;;  %v3511_v43 = vadd.f32 %v8312_v44, %v7868_v63 }
 0xf40   :  { %v4466_v26 = vmul.f32 %v6208_v45, %v4465_v30  ;;  %vm4512_vm7 = vcmp.eq.f32.partialorder %v4511_v3, 8.507059e+37 }
 0xf41   :  { %v4485_v28 = vmul.f32 %v6210_v37, %v4484_v24 }
 0xf42   :  { %v6212_v32 = vpop.eup %6211  ;;  %v4467_v9 = vadd.f32 %v6208_v45, %v4466_v26 }
 0xf43   :  { %v4486_v2 = vadd.f32 %v6210_v37, %v4485_v28  ;;  %v4503_v5 = vmul.f32 %v6212_v32, %v4501_v23  ;;  %v6214_v58 = vpop.eup %6213  ;;  %vm4508_vm4 = vweird.f32 %v6212_v32 }
 0xf44   :  { %v4471_v36 = vsel %vm4470_vm0, %v6208_v45, %v4467_v9  ;;  %vm4509_vm6 = vmor %vm4507_vm5, %vm4508_vm4 }
 0xf45   :  { %v4476_v7 = vsel %vm4473_vm2, %v4475_v13, %v4471_v36  ;;  %v4490_v56 = vsel %vm4489_vm1, %v6210_v37, %v4486_v2  ;;  %v4504_v50 = vsub.f32 1.0, %v4503_v5 }
 0xf46   :  { %v4495_v47 = vsel %vm4492_vm3, %v4494_v57, %v4490_v56  ;;  %v4518_v34 = vmul.f32 %v6214_v58, %v4476_v7 }
 0xf47   :  { %v4517_v19 = vmul.f32 %v4495_v47, %v8062_v60  ;;  %v4505_v4 = vmul.f32 %v6212_v32, %v4504_v50 }
 0xf49   :  { %v8109_v38 = vadd.f32 %v4518_v34, %v4517_v19  ;;  %v4506_v49 = vadd.f32 %v6212_v32, %v4505_v4 }
 0xf4b   :  { %6215 = vtanh.f32 %v8109_v38  ;;  %v4510_v33 = vsel %vm4509_vm6, %v6212_v32, %v4506_v49 }
 0xf4c   :  { %v4515_v11 = vsel %vm4512_vm7, %v4514_v0, %v4510_v33 }
 0xf51   :  { %v6216_v41 = vpop.eup %6215 }
 0xf52   :  { %v4521_v40 = vmul.f32 %v6216_v41, %v4515_v11 }
 0xf54   :  { %5658 = vst [vmem:[%s8154_s6 + $0x28] sm:$0xff] %v4521_v40  ;;  %v4527_v60 = vpack.c.bf16 %v4521_v40, %v4521_v40 }
 0xf56   :  { %4536 = vmatmul.bf16.vlgmr.msrb.gmra.mxu0 %v4527_v60  ;;  %4549 = vmatmul.bf16.vlgmr.msrb.gmra.mxu1 %v4527_v60 }
 0xf57   :  { %4562 = vmatmul.bf16.vlgmr.msrb.gmra.mxu2 %v4527_v60  ;;  %4575 = vmatmul.bf16.vlgmr.msrb.gmra.mxu3 %v4527_v60 }
 0xfd3   :  { %v4537_v21 = vpop.f32.mrf.mxu0  ;;  %v4550_v51 = vpop.f32.mrf.mxu1 }
 0xfd4   :  { %v4580_v6 = vadd.f32 %v4537_v21, %v3453_v25  ;;  %v4581_v46 = vadd.f32 %v4550_v51, %v3482_v42 }
 0xfd6   :  { %v5659_v61 = vmul.f32 -1.442695, %v4580_v6  ;;  %v5660_v16 = vmul.f32 -1.442695, %v4581_v46  ;;  %v8313_v6 = vld [vmem:[#allocation30_spill] sm:$0xff] }
 0xfd7   :  { %v3455_v46 = vadd.f32 %v8313_v6, %v7855_v12 }
 0xfd8   :  { %6217 = vpow2.f32 %v5659_v61  ;;  %v8314_v61 = vld [vmem:[#allocation32_spill] sm:$0xff] }
 0xfd9   :  { %6219 = vpow2.f32 %v5660_v16  ;;  %v3484_v16 = vadd.f32 %v8314_v61, %v7857_v53 }
 0xfda   :  { %v4563_v35 = vpop.f32.mrf.mxu2  ;;  %v4576_v31 = vpop.f32.mrf.mxu3 }
 0xfdb   :  { %v4583_v29 = vadd.f32 %v4576_v31, %v3540_v55  ;;  %v4539_v27 = vpop.f32.mrf.mxu0  ;;  %v4552_v8 = vpop.f32.mrf.mxu1  ;;  %v4582_v15 = vadd.f32 %v4563_v35, %v3511_v43 }
 0xfdc   :  { %v8315_v8 = vld [vmem:[#allocation31_spill] sm:$0xff] }
 0xfdd   :  { %v5661_v14 = vmul.f32 -1.442695, %v4583_v29 }
 0xfde   :  { %v6218_v10 = vpop.eup %6217 }
 0xfdf   :  { %v6220_v48 = vpop.eup %6219  ;;  %v4587_v1 = vadd.f32 1.0, %v6218_v10  ;;  %6221 = vpow2.f32 %v5661_v14  ;;  %v3542_v14 = vadd.f32 %v8315_v8, %v7865_v20 }
 0xfe0   :  { %v4606_v23 = vadd.f32 1.0, %v6220_v48 }
 0xfe1   :  { %6223 = vrcp.f32 %v4587_v1  ;;  %v4599_v32 = vand.u32 2147483648, %v4587_v1  ;;  %v4597_v2 = vand.u32 2147483647, %v4587_v1  ;;  %vm4593_vm10 = vweird.f32 %v4587_v1 }
 0xfe2   :  { %6225 = vrcp.f32 %v4606_v23  ;;  %v4565_v45 = vpop.f32.mrf.mxu2  ;;  %v4578_v18 = vpop.f32.mrf.mxu3  ;;  %v4618_v9 = vand.u32 2147483648, %v4606_v23  ;;  %v4616_v57 = vand.u32 2147483647, %v4606_v23  ;;  %vm4612_vm11 = vweird.f32 %v4606_v23 }
 0xfe3   :  { %v4600_v7 = vor.u32 1.1754944e-38, %v4599_v32  ;;  %vm4598_vm14 = vcmp.eq.f32.partialorder %v4597_v2, 8.507059e+37 }
 0xfe4   :  { %v4619_v47 = vor.u32 1.1754944e-38, %v4618_v9  ;;  %vm4617_vm15 = vcmp.eq.f32.partialorder %v4616_v57, 8.507059e+37 }
 0xfe5   :  { %v6222_v37 = vpop.eup %6221 }
 0xfe6   :  { %v4626_v30 = vadd.f32 1.0, %v6222_v37 }
 0xfe7   :  { %v6224_v24 = vpop.eup %6223 }
 0xfe8   :  { %v6226_v62 = vpop.eup %6225  ;;  %v4589_v26 = vmul.f32 %v6224_v24, %v4587_v1  ;;  %6227 = vrcp.f32 %v4626_v30  ;;  %vm4594_vm8 = vweird.f32 %v6224_v24  ;;  %v4638_v60 = vand.u32 2147483648, %v4626_v30 }
 0xfe9   :  { %v4608_v22 = vmul.f32 %v6226_v62, %v4606_v23  ;;  %6229 = vtanh.f32 %v4582_v15  ;;  %vm4613_vm9 = vweird.f32 %v6226_v62  ;;  %vm4595_vm12 = vmor %vm4593_vm10, %vm4594_vm8  ;;  %vm4632_vm1 = vweird.f32 %v4626_v30  ;;  %v8316_v15 = vld [vmem:[#allocation33_spill] sm:$0xff] }
 0xfea   :  { %v4590_v28 = vsub.f32 1.0, %v4589_v26  ;;  %vm4614_vm13 = vmor %vm4612_vm11, %vm4613_vm9  ;;  %v4636_v59 = vand.u32 2147483647, %v4626_v30  ;;  %v4639_v54 = vor.u32 1.1754944e-38, %v4638_v60  ;;  %v3513_v20 = vadd.f32 %v8316_v15, %v7868_v63 }
 0xfeb   :  { %v4609_v39 = vsub.f32 1.0, %v4608_v22 }
 0xfec   :  { %v4591_v13 = vmul.f32 %v6224_v24, %v4590_v28  ;;  %vm4637_vm3 = vcmp.eq.f32.partialorder %v4636_v59, 8.507059e+37 }
 0xfed   :  { %v4610_v5 = vmul.f32 %v6226_v62, %v4609_v39 }
 0xfee   :  { %v6228_v36 = vpop.eup %6227  ;;  %v4592_v58 = vadd.f32 %v6224_v24, %v4591_v13 }
 0xfef   :  { %v4611_v56 = vadd.f32 %v6226_v62, %v4610_v5  ;;  %v4628_v50 = vmul.f32 %v6228_v36, %v4626_v30  ;;  %v6230_v19 = vpop.eup %6229  ;;  %vm4633_vm0 = vweird.f32 %v6228_v36 }
 0xff0   :  { %v4596_v34 = vsel %vm4595_vm12, %v6224_v24, %v4592_v58  ;;  %vm4634_vm2 = vmor %vm4632_vm1, %vm4633_vm0 }
 0xff1   :  { %v4601_v4 = vsel %vm4598_vm14, %v4600_v7, %v4596_v34  ;;  %v4615_v49 = vsel %vm4614_vm13, %v6226_v62, %v4611_v56  ;;  %v4629_v17 = vsub.f32 1.0, %v4628_v50 }
 0xff2   :  { %v4620_v3 = vsel %vm4617_vm15, %v4619_v47, %v4615_v49  ;;  %v4643_v33 = vmul.f32 %v6230_v19, %v4601_v4 }
 0xff3   :  { %v4642_v0 = vmul.f32 %v4620_v3, %v8109_v38  ;;  %v4630_v41 = vmul.f32 %v6228_v36, %v4629_v17 }
 0xff5   :  { %v8124_v11 = vadd.f32 %v4643_v33, %v4642_v0  ;;  %v4631_v40 = vadd.f32 %v6228_v36, %v4630_v41 }
 0xff7   :  { %6231 = vtanh.f32 %v8124_v11  ;;  %v4635_v25 = vsel %vm4634_vm2, %v6228_v36, %v4631_v40 }
 0xff8   :  { %v4640_v21 = vsel %vm4637_vm3, %v4639_v54, %v4635_v25 }
 0xffd   :  { %v6232_v42 = vpop.eup %6231 }
 0xffe   :  { %v4646_v51 = vmul.f32 %v6232_v42, %v4640_v21 }
0x1000   :  { %5662 = vst [vmem:[%s8154_s6 + $0x30] sm:$0xff] %v4646_v51  ;;  %v4652_v38 = vpack.c.bf16 %v4646_v51, %v4646_v51 }
0x1002   :  { %4661 = vmatmul.bf16.vlgmr.msra.gmra.mxu0 %v4652_v38  ;;  %4674 = vmatmul.bf16.vlgmr.msra.gmra.mxu1 %v4652_v38 }
0x1003   :  { %4687 = vmatmul.bf16.vlgmr.msra.gmra.mxu2 %v4652_v38  ;;  %4700 = vmatmul.bf16.vlgmr.msra.gmra.mxu3 %v4652_v38 }
0x107f   :  { %v4662_v52 = vpop.f32.mrf.mxu0  ;;  %v4675_v55 = vpop.f32.mrf.mxu1 }
0x1080   :  { %v4705_v35 = vadd.f32 %v4662_v52, %v3455_v46  ;;  %v4706_v31 = vadd.f32 %v4675_v55, %v3484_v16 }
0x1082   :  { %v5663_v29 = vmul.f32 -1.442695, %v4705_v35  ;;  %v5664_v27 = vmul.f32 -1.442695, %v4706_v31 }
0x1084   :  { %6233 = vpow2.f32 %v5663_v29 }
0x1085   :  { %6235 = vpow2.f32 %v5664_v27 }
0x1086   :  { %v4688_v10 = vpop.f32.mrf.mxu2  ;;  %v4701_v48 = vpop.f32.mrf.mxu3 }
0x1087   :  { %v4708_v1 = vadd.f32 %v4701_v48, %v3542_v14  ;;  %v4664_v23 = vpop.f32.mrf.mxu0  ;;  %v4677_v45 = vpop.f32.mrf.mxu1  ;;  %v4707_v22 = vadd.f32 %v4688_v10, %v3513_v20 }
0x1089   :  { %v5665_v12 = vmul.f32 -1.442695, %v4708_v1 }
0x108a   :  { %v6234_v18 = vpop.eup %6233 }
0x108b   :  { %v6236_v37 = vpop.eup %6235  ;;  %v4712_v53 = vadd.f32 1.0, %v6234_v18  ;;  %6237 = vpow2.f32 %v5665_v12 }
0x108c   :  { %v4731_v44 = vadd.f32 1.0, %v6236_v37 }
0x108d   :  { %6239 = vrcp.f32 %v4712_v53  ;;  %v4724_v2 = vand.u32 2147483648, %v4712_v53  ;;  %v4722_v36 = vand.u32 2147483647, %v4712_v53  ;;  %vm4718_vm6 = vweird.f32 %v4712_v53 }
0x108e   :  { %6241 = vrcp.f32 %v4731_v44  ;;  %v4690_v43 = vpop.f32.mrf.mxu2  ;;  %v4703_v30 = vpop.f32.mrf.mxu3  ;;  %v4743_v5 = vand.u32 2147483648, %v4731_v44  ;;  %v4741_v7 = vand.u32 2147483647, %v4731_v44  ;;  %vm4737_vm7 = vweird.f32 %v4731_v44 }
0x108f   :  { %v4725_v50 = vor.u32 1.1754944e-38, %v4724_v2  ;;  %vm4723_vm10 = vcmp.eq.f32.partialorder %v4722_v36, 8.507059e+37 }
0x1090   :  { %v4744_v19 = vor.u32 1.1754944e-38, %v4743_v5  ;;  %vm4742_vm11 = vcmp.eq.f32.partialorder %v4741_v7, 8.507059e+37 }
0x1091   :  { %v6238_v24 = vpop.eup %6237 }
0x1092   :  { %v4751_v62 = vadd.f32 1.0, %v6238_v24 }
0x1093   :  { %v6240_v26 = vpop.eup %6239 }
0x1094   :  { %v6242_v28 = vpop.eup %6241  ;;  %v4714_v39 = vmul.f32 %v6240_v26, %v4712_v53  ;;  %6243 = vrcp.f32 %v4751_v62  ;;  %vm4719_vm4 = vweird.f32 %v6240_v26  ;;  %v4763_v54 = vand.u32 2147483648, %v4751_v62 }
0x1095   :  { %v4733_v32 = vmul.f32 %v6242_v28, %v4731_v44  ;;  %6245 = vtanh.f32 %v4707_v22  ;;  %vm4738_vm5 = vweird.f32 %v6242_v28  ;;  %vm4720_vm8 = vmor %vm4718_vm6, %vm4719_vm4  ;;  %vm4757_vm13 = vweird.f32 %v4751_v62 }
0x1096   :  { %v4715_v9 = vsub.f32 1.0, %v4714_v39  ;;  %vm4739_vm9 = vmor %vm4737_vm7, %vm4738_vm5  ;;  %v4761_v42 = vand.u32 2147483647, %v4751_v62  ;;  %v4764_v51 = vor.u32 1.1754944e-38, %v4763_v54 }
0x1097   :  { %v4734_v13 = vsub.f32 1.0, %v4733_v32 }
0x1098   :  { %v4716_v57 = vmul.f32 %v6240_v26, %v4715_v9  ;;  %vm4762_vm15 = vcmp.eq.f32.partialorder %v4761_v42, 8.507059e+37 }
0x1099   :  { %v4735_v58 = vmul.f32 %v6242_v28, %v4734_v13 }
0x109a   :  { %v6244_v56 = vpop.eup %6243  ;;  %v4717_v63 = vadd.f32 %v6240_v26, %v4716_v57 }
0x109b   :  { %v4736_v47 = vadd.f32 %v6242_v28, %v4735_v58  ;;  %v4753_v34 = vmul.f32 %v6244_v56, %v4751_v62  ;;  %v6246_v49 = vpop.eup %6245  ;;  %vm4758_vm12 = vweird.f32 %v6244_v56 }
0x109c   :  { %v4721_v4 = vsel %vm4720_vm8, %v6240_v26, %v4717_v63  ;;  %vm4759_vm14 = vmor %vm4757_vm13, %vm4758_vm12 }
0x109d   :  { %v4726_v17 = vsel %vm4723_vm10, %v4725_v50, %v4721_v4  ;;  %v4740_v3 = vsel %vm4739_vm9, %v6242_v28, %v4736_v47  ;;  %v4754_v33 = vsub.f32 1.0, %v4753_v34 }
0x109e   :  { %v4745_v0 = vsel %vm4742_vm11, %v4744_v19, %v4740_v3  ;;  %v4768_v41 = vmul.f32 %v6246_v49, %v4726_v17 }
0x109f   :  { %v4767_v40 = vmul.f32 %v4745_v0, %v8124_v11  ;;  %v4755_v60 = vmul.f32 %v6244_v56, %v4754_v33 }
0x10a1   :  { %v4769_v59 = vadd.f32 %v4768_v41, %v4767_v40  ;;  %v4756_v25 = vadd.f32 %v6244_v56, %v4755_v60 }
0x10a3   :  { %6247 = vtanh.f32 %v4769_v59  ;;  %5668 = vst [vmem:[%s8156_s8 + $0x10] sm:$0xff] %v4769_v59  ;;  %v4760_v21 = vsel %vm4759_vm14, %v6244_v56, %v4756_v25 }
0x10a4   :  { %v4765_v6 = vsel %vm4762_vm15, %v4764_v51, %v4760_v21 }
0x10a9   :  { %v6248_v38 = vpop.eup %6247 }
0x10aa   :  { %v4771_v46 = vmul.f32 %v6248_v38, %v4765_v6 }
0x10ac   :  { %5666 = vst [vmem:[%s8154_s6 + $0x38] sm:$0xff] %v4771_v46 }
0x10ad   :  { %5667 = vst [vmem:[%s8155_s7 + $0x10] sm:$0xff] %v4771_v46 }
0x10ae   :  { %4789 = vsyncpa [#allocation4], 1 }
0x10af   :  { %4790 = vsyncpa [#allocation6], 1 }

</bundles_post_ra>
